<compile_context>
chip_gen: v7x
topology: tpu7x:2x2x1
jax: 0.10.0
libtpu: 0.0.40
codegen_flags: <defaults>
</compile_context>

<pallas_src>
import functools

import jax
import jax.numpy as jnp
from jax.experimental import pallas as pl
from jax.experimental.pallas import tpu as pltpu


def _round_up(x, m):
    return (x + m - 1) // m * m


# ----------------------------------------------------------------------------
# Parameter preparation (wrapper side, tiny, runs once per call via XLA).
# ----------------------------------------------------------------------------
def build_banded_weight(w_folded, win, stride):
    """Fold the kw taps + W zero-padding of a 3x3 conv into a banded matrix.

    w_folded: (3, 3, cin, cout) f32 conv weight with BN scale already folded.
    Returns:  (3, win*cin, wout*cout) f32, one band per kh tap, such that
              out[h, wo*cout+co] = sum_kh X_kh[h] @ band[kh]
              with X_kh the kh-shifted (H-padded) flat activation rows.
    """
    _, _, cin, cout = w_folded.shape
    wout = (win + 2 - 3) // stride + 1
    wo = jnp.arange(wout)
    bands = []
    for kh in range(3):
        acc = jnp.zeros((win, cin, wout, cout), jnp.float32)
        for kw in range(3):
            w_in = wo * stride + kw - 1                       # tap's input col
            valid = (w_in >= 0) & (w_in < win)                # W zero-padding
            sel = ((jnp.arange(win)[:, None] == w_in[None, :])
                   & valid[None, :]).astype(jnp.float32)      # (win, wout)
            acc = acc + jnp.einsum('IO,cd->IcOd', sel, w_folded[kh, kw])
        bands.append(acc.reshape(win * cin, wout * cout))
    return jnp.stack(bands, axis=0)


# ----------------------------------------------------------------------------
# Fused kernel: one batch tile -> 3x (conv3x3 + folded-BN + ReLU).
#
# Row layout of every activation buffer (input ref and scratch refs), with
# P = H + 2 padded rows per image and m_rows = batch_tile * P:
#   row 0                : guard zero row
#   rows 1 .. m_rows     : [img0: pad, H rows, pad][img1: pad, H rows, pad]...
#   remaining rows       : guard / alignment zero rows
# The three kh taps of the 3x3 conv are then the unit-stride row windows
# [kh, kh+m_rows) of that buffer, and each tap is ONE big MXU matmul against a
# banded (Toeplitz) weight that folds the kw taps, the W zero-padding and the
# BatchNorm scale.
# ----------------------------------------------------------------------------
def _fused_convx3_kernel(x_ref, wb1_ref, wb2_ref, wb3_ref,
                         b1_ref, b2_ref, b3_ref, mask_ref,
                         o_ref, s2_ref, s3_ref, *, m_rows):
    """
    x_ref:     (rows_in, W*C0)  bf16  padded input rows for this batch tile
    wb{i}_ref: (3, W*Cin_i, W*Cout_i) bf16 banded weights (BN scale folded)
    b{i}_ref:  (1, W*Cout_i)    f32   tiled folded-BN bias
    mask_ref:  (m_rows, 1)      f32   1.0 on interior rows, 0.0 on H-pad rows
    o_ref:     (rows_out, W*C3) f32   padded-layout output (pad rows sliced
                                      off in the wrapper)
    s2/s3_ref: VMEM scratch holding the padded bf16 intermediate activations
    """

    def conv_bn_relu(in_ref, wb_ref, b_ref):
        # 3 kh taps -> 3 deep MXU matmuls with M = batch_tile*(H+2) rows each;
        # LHS windows are unit-stride row slices read straight from the ref.
        acc = jnp.dot(in_ref[pl.ds(0, m_rows), :], wb_ref[0],
                      preferred_element_type=jnp.float32)
        acc = acc + jnp.dot(in_ref[pl.ds(1, m_rows), :], wb_ref[1],
                            preferred_element_type=jnp.float32)
        acc = acc + jnp.dot(in_ref[pl.ds(2, m_rows), :], wb_ref[2],
                            preferred_element_type=jnp.float32)
        return jnp.maximum(acc + b_ref[...], 0.0)     # folded-BN bias + ReLU (f32)

    # Zero the scratch buffers so their guard rows (row 0 and row m_rows+1)
    # are 0; interior rows are fully overwritten below.  Done every grid step
    # so each megacore sees initialized scratch.  (~76 KiB total -> negligible)
    s2_ref[...] = jnp.zeros_like(s2_ref)
    s3_ref[...] = jnp.zeros_like(s3_ref)

    mask = mask_ref[...]                              # (m_rows, 1) f32

    # Layer 1: input comes straight from the (wrapper-padded) HBM block.
    y1 = conv_bn_relu(x_ref, wb1_ref, b1_ref)         # (m_rows, W*C1) f32
    s2_ref[pl.ds(1, m_rows), :] = (y1 * mask).astype(s2_ref.dtype)

    # Layer 2.
    y2 = conv_bn_relu(s2_ref, wb2_ref, b2_ref)        # (m_rows, W*C2) f32
    s3_ref[pl.ds(1, m_rows), :] = (y2 * mask).astype(s3_ref.dtype)

    # Layer 3: lane-dense (W*C3 wide) store; per-image pad rows are garbage
    # and get sliced off in the wrapper.
    y3 = conv_bn_relu(s3_ref, wb3_ref, b3_ref)        # (m_rows, W*C3) f32
    o_ref[pl.ds(0, m_rows), :] = y3.astype(o_ref.dtype)


# ----------------------------------------------------------------------------
# Wrapper: NCHW in -> NCHW out, single fused pallas_call.
# ----------------------------------------------------------------------------
def convx3_pallas(x_nchw, params, batch_tile=None):
    n, c0, h, w = x_nchw.shape
    strides = tuple(int(p['stride']) for p in params)
    if strides != (1, 1, 1):
        # TODO(synk): stride > 1 needs the H-tiled, tap-decomposed kernel.
        raise NotImplementedError("fused Convx3 kernel supports stride 1 only")

    if batch_tile is None:
        # Fold the whole batch into one grid step (max matmul M) unless the
        # batch is large enough that two "parallel" steps (one per v7x
        # TensorCore) still leave each matmul a big M.
        batch_tile = n if (n % 2 != 0 or n * (h + 2) <= 512) else n // 2
    assert n % batch_tile == 0
    num_tiles = n // batch_tile

    p_rows = h + 2                        # padded rows per image
    m_rows = batch_tile * p_rows          # matmul M per grid step
    rows_in = _round_up(m_rows + 2, 8)    # +2 guard rows for the 3 tap windows
    rows_out = _round_up(m_rows, 8)

    c1 = params[0]['w'].shape[-1]
    c2 = params[1]['w'].shape[-1]
    c3 = params[2]['w'].shape[-1]

    # --- activations: NCHW -> lane-dense padded rows, bf16 ------------------
    x_nhwc = jnp.transpose(x_nchw, (0, 2, 3, 1)).astype(jnp.bfloat16)
    x_pad = jnp.pad(x_nhwc, ((0, 0), (1, 1), (0, 0), (0, 0)))   # H zero-pad
    x_rows = x_pad.reshape(num_tiles, m_rows, w * c0)
    x_rows = jnp.pad(x_rows, ((0, 0), (1, rows_in - m_rows - 1), (0, 0)))
    x_rows = x_rows.reshape(num_tiles * rows_in, w * c0)

    # --- weights: fold BN scale (f32), build banded matrices, cast bf16 -----
    wbs, bflats = [], []
    for p in params:
        cout = p['w'].shape[-1]
        w_folded = p['w'] * p['scale'].reshape(1, 1, 1, -1)
        wbs.append(build_banded_weight(w_folded, w, 1).astype(jnp.bfloat16))
        bflats.append(jnp.tile(p['bias'].reshape(-1), w)
                      .reshape(1, w * cout).astype(jnp.float32))

    # Interior-row mask: 1 on real output rows, 0 on per-image H-pad rows.
    p_idx = jnp.arange(m_rows) % p_rows
    row_mask = ((p_idx >= 1) & (p_idx <= h)).astype(jnp.float32) \
        .reshape(m_rows, 1)

    kernel = functools.partial(_fused_convx3_kernel, m_rows=m_rows)
    const2 = lambda i: (0, 0)
    const3 = lambda i: (0, 0, 0)
    single = pl.Buffered(1)     # constant-index blocks: no double-buffer cost

    out_rows = pl.pallas_call(
        kernel,
        out_shape=jax.ShapeDtypeStruct((num_tiles * rows_out, w * c3),
                                       jnp.float32),
        grid=(num_tiles,),
        in_specs=[
            pl.BlockSpec((rows_in, w * c0), lambda i: (i, 0)),
            pl.BlockSpec(wbs[0].shape, const3, pipeline_mode=single),
            pl.BlockSpec(wbs[1].shape, const3, pipeline_mode=single),
            pl.BlockSpec(wbs[2].shape, const3, pipeline_mode=single),
            pl.BlockSpec(bflats[0].shape, const2, pipeline_mode=single),
            pl.BlockSpec(bflats[1].shape, const2, pipeline_mode=single),
            pl.BlockSpec(bflats[2].shape, const2, pipeline_mode=single),
            pl.BlockSpec(row_mask.shape, const2, pipeline_mode=single),
        ],
        out_specs=pl.BlockSpec((rows_out, w * c3), lambda i: (i, 0)),
        scratch_shapes=[
            pltpu.VMEM((m_rows + 2, w * c1), jnp.bfloat16),
            pltpu.VMEM((m_rows + 2, w * c2), jnp.bfloat16),
        ],
        compiler_params=pltpu.CompilerParams(
            dimension_semantics=("parallel",),
            vmem_limit_bytes=32 * 1024 * 1024),
    )(x_rows, wbs[0], wbs[1], wbs[2], bflats[0], bflats[1], bflats[2], row_mask)

    # Drop guard/pad rows, back to NCHW f32.
    out = out_rows.reshape(num_tiles, rows_out, w, c3)[:, :m_rows]
    out = out.reshape(num_tiles, batch_tile, p_rows, w, c3)[:, :, 1:h + 1]
    out = out.reshape(n, h, w, c3)
    return jnp.transpose(out, (0, 3, 1, 2))            # NHWC -> NCHW


# ----------------------------------------------------------------------------
# Parameters + reference
# ----------------------------------------------------------------------------
def init_params(key, strides=(1, 1, 1), channels=(3, 32, 32, 64), eps=1e-5):
    """Deterministic parameter init matching Convx3.__init__ shapes (inference BN)."""
    params = []
    for i in range(3):
        cin, cout = channels[i], channels[i + 1]
        key, kw_, kg, kb, km, kv = jax.random.split(key, 6)
        std = (2.0 / (cin * 9)) ** 0.5        # kaiming_normal_(nonlinearity='relu')
        wt = jax.random.normal(kw_, (3, 3, cin, cout), jnp.float32) * std   # HWIO
        gamma = 1.0 + 0.1 * jax.random.normal(kg, (cout,), jnp.float32)
        beta = 0.1 * jax.random.normal(kb, (cout,), jnp.float32)
        run_mean = 0.1 * jax.random.normal(km, (cout,), jnp.float32)
        run_var = 0.5 + jnp.abs(jax.random.normal(kv, (cout,), jnp.float32))
        scale = gamma / jnp.sqrt(run_var + eps)
        bias = beta - run_mean * scale
        params.append(dict(w=wt, scale=scale, bias=bias, stride=strides[i]))
    return params


def convx3_reference(x_nchw, params):
    """Independent XLA-conv reference with the same precision policy
    (bf16 inputs/weights, f32 accumulate/bias/ReLU, bf16 between layers)."""
    x = jnp.transpose(x_nchw, (0, 2, 3, 1)).astype(jnp.bfloat16)
    for i, p in enumerate(params):
        s = int(p['stride'])
        w_folded = (p['w'] * p['scale'].reshape(1, 1, 1, -1)).astype(jnp.bfloat16)
        y = jax.lax.conv_general_dilated(
            x, w_folded, window_strides=(s, s), padding=((1, 1), (1, 1)),
            dimension_numbers=('NHWC', 'HWIO', 'NHWC'),
            preferred_element_type=jnp.float32)
        y = jnp.maximum(y + p['bias'].reshape(1, 1, 1, -1), 0.0)
        x = y.astype(jnp.bfloat16) if i < 2 else y
    return jnp.transpose(x, (0, 3, 1, 2))


if __name__ == "__main__":
    key = jax.random.PRNGKey(0)
    key, kx = jax.random.split(key)

    # Small shapes consistent with Convx3 defaults: channels [3, 32, 32, 64].
    x = jax.random.normal(kx, (2, 3, 16, 16), jnp.float32)     # NCHW input
    params = init_params(key)

    out = convx3_pallas(x, params)
    out = jax.block_until_ready(out)

    ref = convx3_reference(x, params)
    assert out.shape == (2, 64, 16, 16), out.shape
    max_err = float(jnp.max(jnp.abs(out - ref)))
    assert jnp.allclose(out, ref, atol=1e-2, rtol=1e-2), max_err

    print("KERNEL_OK")
</pallas_src>

<mosaic_0001>
module attributes {stable_mosaic.version = 11 : i64} {
  func.func @_fused_convx3_kernel(%arg0: i32, %arg1: memref<40x48xbf16, #tpu.memory_space<vmem>>, %arg2: memref<3x48x512xbf16, #tpu.memory_space<vmem>>, %arg3: memref<3x512x512xbf16, #tpu.memory_space<vmem>>, %arg4: memref<3x512x1024xbf16, #tpu.memory_space<vmem>>, %arg5: memref<1x512xf32, #tpu.memory_space<vmem>>, %arg6: memref<1x512xf32, #tpu.memory_space<vmem>>, %arg7: memref<1x1024xf32, #tpu.memory_space<vmem>>, %arg8: memref<36x1xf32, #tpu.memory_space<vmem>>, %arg9: memref<40x1024xf32, #tpu.memory_space<vmem>>, %arg10: memref<38x512xbf16, #tpu.memory_space<vmem>>, %arg11: memref<38x512xbf16, #tpu.memory_space<vmem>>) attributes {dimension_semantics = [#tpu.dimension_semantics<parallel>], iteration_bounds = array<i64: 1>, scalar_prefetch = 0 : i64, scratch_operands = 2 : i64, tpu.core_type = #tpu.core_type<tc>, window_params = [{transform_indices = @transform_0, window_bounds = array<i64: 40, 48>}, {pipeline_mode = #tpu.pipeline_mode<synchronous>, transform_indices = @transform_1, window_bounds = array<i64: 3, 48, 512>}, {pipeline_mode = #tpu.pipeline_mode<synchronous>, transform_indices = @transform_2, window_bounds = array<i64: 3, 512, 512>}, {pipeline_mode = #tpu.pipeline_mode<synchronous>, transform_indices = @transform_3, window_bounds = array<i64: 3, 512, 1024>}, {pipeline_mode = #tpu.pipeline_mode<synchronous>, transform_indices = @transform_4, window_bounds = array<i64: 1, 512>}, {pipeline_mode = #tpu.pipeline_mode<synchronous>, transform_indices = @transform_5, window_bounds = array<i64: 1, 512>}, {pipeline_mode = #tpu.pipeline_mode<synchronous>, transform_indices = @transform_6, window_bounds = array<i64: 1, 1024>}, {pipeline_mode = #tpu.pipeline_mode<synchronous>, transform_indices = @transform_7, window_bounds = array<i64: 36, 1>}, {transform_indices = @transform_8, window_bounds = array<i64: 40, 1024>}]} {
    %cst = arith.constant 0.000000e+00 : bf16
    %0 = vector.broadcast %cst : bf16 to vector<38x512xbf16>
    %c0 = arith.constant 0 : index
    %c0_0 = arith.constant 0 : index
    %1 = vector.load %arg10[%c0, %c0_0] : memref<38x512xbf16, #tpu.memory_space<vmem>>, vector<38x512xbf16>
    tpu.vector_store %arg10[%c0, %c0_0], %0 {strides = array<i32>} : memref<38x512xbf16, #tpu.memory_space<vmem>>, vector<38x512xbf16>,
    %cst_1 = arith.constant 0.000000e+00 : bf16
    %2 = vector.broadcast %cst_1 : bf16 to vector<38x512xbf16>
    %c0_2 = arith.constant 0 : index
    %c0_3 = arith.constant 0 : index
    %3 = vector.load %arg11[%c0_2, %c0_3] : memref<38x512xbf16, #tpu.memory_space<vmem>>, vector<38x512xbf16>
    tpu.vector_store %arg11[%c0_2, %c0_3], %2 {strides = array<i32>} : memref<38x512xbf16, #tpu.memory_space<vmem>>, vector<38x512xbf16>,
    %c0_4 = arith.constant 0 : index
    %c0_5 = arith.constant 0 : index
    %4 = vector.load %arg8[%c0_4, %c0_5] : memref<36x1xf32, #tpu.memory_space<vmem>>, vector<36x1xf32>
    %c0_6 = arith.constant 0 : index
    %c0_7 = arith.constant 0 : index
    %5 = vector.load %arg1[%c0_6, %c0_7] : memref<40x48xbf16, #tpu.memory_space<vmem>>, vector<36x48xbf16>
    %c0_8 = arith.constant 0 : index
    %c0_9 = arith.constant 0 : index
    %c0_10 = arith.constant 0 : index
    %6 = vector.load %arg2[%c0_8, %c0_9, %c0_10] : memref<3x48x512xbf16, #tpu.memory_space<vmem>>, vector<1x48x512xbf16>
    %7 = vector.shape_cast %6 : vector<1x48x512xbf16> to vector<48x512xbf16>
    %cst_11 = arith.constant dense<0.000000e+00> : vector<36x512xf32>
    %8 = tpu.matmul %5, %7, %cst_11 {dimension_numbers = #tpu.dot_dimension_numbers<[1], [0], [0], [1], [0, 0, 1, 1], [], []>} : vector<36x48xbf16>, vector<48x512xbf16>, vector<36x512xf32> -> vector<36x512xf32>
    %c1 = arith.constant 1 : index
    %c0_12 = arith.constant 0 : index
    %9 = vector.load %arg1[%c1, %c0_12] : memref<40x48xbf16, #tpu.memory_space<vmem>>, vector<36x48xbf16>
    %c1_13 = arith.constant 1 : index
    %c0_14 = arith.constant 0 : index
    %c0_15 = arith.constant 0 : index
    %10 = vector.load %arg2[%c1_13, %c0_14, %c0_15] : memref<3x48x512xbf16, #tpu.memory_space<vmem>>, vector<1x48x512xbf16>
    %11 = vector.shape_cast %10 : vector<1x48x512xbf16> to vector<48x512xbf16>
    %cst_16 = arith.constant dense<0.000000e+00> : vector<36x512xf32>
    %12 = tpu.matmul %9, %11, %cst_16 {dimension_numbers = #tpu.dot_dimension_numbers<[1], [0], [0], [1], [0, 0, 1, 1], [], []>} : vector<36x48xbf16>, vector<48x512xbf16>, vector<36x512xf32> -> vector<36x512xf32>
    %13 = arith.addf %8, %12 : vector<36x512xf32>
    %c2 = arith.constant 2 : index
    %c0_17 = arith.constant 0 : index
    %14 = vector.load %arg1[%c2, %c0_17] : memref<40x48xbf16, #tpu.memory_space<vmem>>, vector<36x48xbf16>
    %c2_18 = arith.constant 2 : index
    %c0_19 = arith.constant 0 : index
    %c0_20 = arith.constant 0 : index
    %15 = vector.load %arg2[%c2_18, %c0_19, %c0_20] : memref<3x48x512xbf16, #tpu.memory_space<vmem>>, vector<1x48x512xbf16>
    %16 = vector.shape_cast %15 : vector<1x48x512xbf16> to vector<48x512xbf16>
    %cst_21 = arith.constant dense<0.000000e+00> : vector<36x512xf32>
    %17 = tpu.matmul %14, %16, %cst_21 {dimension_numbers = #tpu.dot_dimension_numbers<[1], [0], [0], [1], [0, 0, 1, 1], [], []>} : vector<36x48xbf16>, vector<48x512xbf16>, vector<36x512xf32> -> vector<36x512xf32>
    %18 = arith.addf %13, %17 : vector<36x512xf32>
    %c0_22 = arith.constant 0 : index
    %c0_23 = arith.constant 0 : index
    %19 = vector.load %arg5[%c0_22, %c0_23] : memref<1x512xf32, #tpu.memory_space<vmem>>, vector<1x512xf32>
    %20 = vector.broadcast %19 : vector<1x512xf32> to vector<36x512xf32>
    %21 = arith.addf %18, %20 : vector<36x512xf32>
    %cst_24 = arith.constant 0.000000e+00 : f32
    %22 = vector.broadcast %cst_24 : f32 to vector<36x512xf32>
    %23 = arith.maximumf %21, %22 : vector<36x512xf32>
    %24 = vector.broadcast %4 : vector<36x1xf32> to vector<36x512xf32>
    %25 = arith.mulf %23, %24 : vector<36x512xf32>
    %26 = arith.truncf %25 : vector<36x512xf32> to vector<36x512xbf16>
    %c1_25 = arith.constant 1 : index
    %c0_26 = arith.constant 0 : index
    %27 = vector.load %arg10[%c1_25, %c0_26] : memref<38x512xbf16, #tpu.memory_space<vmem>>, vector<36x512xbf16>
    tpu.vector_store %arg10[%c1_25, %c0_26], %26 {strides = array<i32>} : memref<38x512xbf16, #tpu.memory_space<vmem>>, vector<36x512xbf16>,
    %c0_27 = arith.constant 0 : index
    %c0_28 = arith.constant 0 : index
    %28 = vector.load %arg10[%c0_27, %c0_28] : memref<38x512xbf16, #tpu.memory_space<vmem>>, vector<36x512xbf16>
    %c0_29 = arith.constant 0 : index
    %c0_30 = arith.constant 0 : index
    %c0_31 = arith.constant 0 : index
    %29 = vector.load %arg3[%c0_29, %c0_30, %c0_31] : memref<3x512x512xbf16, #tpu.memory_space<vmem>>, vector<1x512x512xbf16>
    %30 = vector.shape_cast %29 : vector<1x512x512xbf16> to vector<512x512xbf16>
    %cst_32 = arith.constant dense<0.000000e+00> : vector<36x512xf32>
    %31 = tpu.matmul %28, %30, %cst_32 {dimension_numbers = #tpu.dot_dimension_numbers<[1], [0], [0], [1], [0, 0, 1, 1], [], []>} : vector<36x512xbf16>, vector<512x512xbf16>, vector<36x512xf32> -> vector<36x512xf32>
    %c1_33 = arith.constant 1 : index
    %c0_34 = arith.constant 0 : index
    %32 = vector.load %arg10[%c1_33, %c0_34] : memref<38x512xbf16, #tpu.memory_space<vmem>>, vector<36x512xbf16>
    %c1_35 = arith.constant 1 : index
    %c0_36 = arith.constant 0 : index
    %c0_37 = arith.constant 0 : index
    %33 = vector.load %arg3[%c1_35, %c0_36, %c0_37] : memref<3x512x512xbf16, #tpu.memory_space<vmem>>, vector<1x512x512xbf16>
    %34 = vector.shape_cast %33 : vector<1x512x512xbf16> to vector<512x512xbf16>
    %cst_38 = arith.constant dense<0.000000e+00> : vector<36x512xf32>
    %35 = tpu.matmul %32, %34, %cst_38 {dimension_numbers = #tpu.dot_dimension_numbers<[1], [0], [0], [1], [0, 0, 1, 1], [], []>} : vector<36x512xbf16>, vector<512x512xbf16>, vector<36x512xf32> -> vector<36x512xf32>
    %36 = arith.addf %31, %35 : vector<36x512xf32>
    %c2_39 = arith.constant 2 : index
    %c0_40 = arith.constant 0 : index
    %37 = vector.load %arg10[%c2_39, %c0_40] : memref<38x512xbf16, #tpu.memory_space<vmem>>, vector<36x512xbf16>
    %c2_41 = arith.constant 2 : index
    %c0_42 = arith.constant 0 : index
    %c0_43 = arith.constant 0 : index
    %38 = vector.load %arg3[%c2_41, %c0_42, %c0_43] : memref<3x512x512xbf16, #tpu.memory_space<vmem>>, vector<1x512x512xbf16>
    %39 = vector.shape_cast %38 : vector<1x512x512xbf16> to vector<512x512xbf16>
    %cst_44 = arith.constant dense<0.000000e+00> : vector<36x512xf32>
    %40 = tpu.matmul %37, %39, %cst_44 {dimension_numbers = #tpu.dot_dimension_numbers<[1], [0], [0], [1], [0, 0, 1, 1], [], []>} : vector<36x512xbf16>, vector<512x512xbf16>, vector<36x512xf32> -> vector<36x512xf32>
    %41 = arith.addf %36, %40 : vector<36x512xf32>
    %c0_45 = arith.constant 0 : index
    %c0_46 = arith.constant 0 : index
    %42 = vector.load %arg6[%c0_45, %c0_46] : memref<1x512xf32, #tpu.memory_space<vmem>>, vector<1x512xf32>
    %43 = vector.broadcast %42 : vector<1x512xf32> to vector<36x512xf32>
    %44 = arith.addf %41, %43 : vector<36x512xf32>
    %cst_47 = arith.constant 0.000000e+00 : f32
    %45 = vector.broadcast %cst_47 : f32 to vector<36x512xf32>
    %46 = arith.maximumf %44, %45 : vector<36x512xf32>
    %47 = vector.broadcast %4 : vector<36x1xf32> to vector<36x512xf32>
    %48 = arith.mulf %46, %47 : vector<36x512xf32>
    %49 = arith.truncf %48 : vector<36x512xf32> to vector<36x512xbf16>
    %c1_48 = arith.constant 1 : index
    %c0_49 = arith.constant 0 : index
    %50 = vector.load %arg11[%c1_48, %c0_49] : memref<38x512xbf16, #tpu.memory_space<vmem>>, vector<36x512xbf16>
    tpu.vector_store %arg11[%c1_48, %c0_49], %49 {strides = array<i32>} : memref<38x512xbf16, #tpu.memory_space<vmem>>, vector<36x512xbf16>,
    %c0_50 = arith.constant 0 : index
    %c0_51 = arith.constant 0 : index
    %51 = vector.load %arg11[%c0_50, %c0_51] : memref<38x512xbf16, #tpu.memory_space<vmem>>, vector<36x512xbf16>
    %c0_52 = arith.constant 0 : index
    %c0_53 = arith.constant 0 : index
    %c0_54 = arith.constant 0 : index
    %52 = vector.load %arg4[%c0_52, %c0_53, %c0_54] : memref<3x512x1024xbf16, #tpu.memory_space<vmem>>, vector<1x512x1024xbf16>
    %53 = vector.shape_cast %52 : vector<1x512x1024xbf16> to vector<512x1024xbf16>
    %cst_55 = arith.constant dense<0.000000e+00> : vector<36x1024xf32>
    %54 = tpu.matmul %51, %53, %cst_55 {dimension_numbers = #tpu.dot_dimension_numbers<[1], [0], [0], [1], [0, 0, 1, 1], [], []>} : vector<36x512xbf16>, vector<512x1024xbf16>, vector<36x1024xf32> -> vector<36x1024xf32>
    %c1_56 = arith.constant 1 : index
    %c0_57 = arith.constant 0 : index
    %55 = vector.load %arg11[%c1_56, %c0_57] : memref<38x512xbf16, #tpu.memory_space<vmem>>, vector<36x512xbf16>
    %c1_58 = arith.constant 1 : index
    %c0_59 = arith.constant 0 : index
    %c0_60 = arith.constant 0 : index
    %56 = vector.load %arg4[%c1_58, %c0_59, %c0_60] : memref<3x512x1024xbf16, #tpu.memory_space<vmem>>, vector<1x512x1024xbf16>
    %57 = vector.shape_cast %56 : vector<1x512x1024xbf16> to vector<512x1024xbf16>
    %cst_61 = arith.constant dense<0.000000e+00> : vector<36x1024xf32>
    %58 = tpu.matmul %55, %57, %cst_61 {dimension_numbers = #tpu.dot_dimension_numbers<[1], [0], [0], [1], [0, 0, 1, 1], [], []>} : vector<36x512xbf16>, vector<512x1024xbf16>, vector<36x1024xf32> -> vector<36x1024xf32>
    %59 = arith.addf %54, %58 : vector<36x1024xf32>
    %c2_62 = arith.constant 2 : index
    %c0_63 = arith.constant 0 : index
    %60 = vector.load %arg11[%c2_62, %c0_63] : memref<38x512xbf16, #tpu.memory_space<vmem>>, vector<36x512xbf16>
    %c2_64 = arith.constant 2 : index
    %c0_65 = arith.constant 0 : index
    %c0_66 = arith.constant 0 : index
    %61 = vector.load %arg4[%c2_64, %c0_65, %c0_66] : memref<3x512x1024xbf16, #tpu.memory_space<vmem>>, vector<1x512x1024xbf16>
    %62 = vector.shape_cast %61 : vector<1x512x1024xbf16> to vector<512x1024xbf16>
    %cst_67 = arith.constant dense<0.000000e+00> : vector<36x1024xf32>
    %63 = tpu.matmul %60, %62, %cst_67 {dimension_numbers = #tpu.dot_dimension_numbers<[1], [0], [0], [1], [0, 0, 1, 1], [], []>} : vector<36x512xbf16>, vector<512x1024xbf16>, vector<36x1024xf32> -> vector<36x1024xf32>
    %64 = arith.addf %59, %63 : vector<36x1024xf32>
    %c0_68 = arith.constant 0 : index
    %c0_69 = arith.constant 0 : index
    %65 = vector.load %arg7[%c0_68, %c0_69] : memref<1x1024xf32, #tpu.memory_space<vmem>>, vector<1x1024xf32>
    %66 = vector.broadcast %65 : vector<1x1024xf32> to vector<36x1024xf32>
    %67 = arith.addf %64, %66 : vector<36x1024xf32>
    %cst_70 = arith.constant 0.000000e+00 : f32
    %68 = vector.broadcast %cst_70 : f32 to vector<36x1024xf32>
    %69 = arith.maximumf %67, %68 : vector<36x1024xf32>
    %c0_71 = arith.constant 0 : index
    %c0_72 = arith.constant 0 : index
    %70 = vector.load %arg9[%c0_71, %c0_72] : memref<40x1024xf32, #tpu.memory_space<vmem>>, vector<36x1024xf32>
    tpu.vector_store %arg9[%c0_71, %c0_72], %69 {strides = array<i32>} : memref<40x1024xf32, #tpu.memory_space<vmem>>, vector<36x1024xf32>,
    return
  }
  func.func @transform_0(%arg0: i32) -> (i32, i32) {
    %c0_i32 = arith.constant 0 : i32
    %c0_i32_0 = arith.constant 0 : i32
    return %arg0, %c0_i32 : i32, i32
  }
  func.func @transform_1(%arg0: i32) -> (i32, i32, i32) {
    %c0_i32 = arith.constant 0 : i32
    %c0_i32_0 = arith.constant 0 : i32
    %c0_i32_1 = arith.constant 0 : i32
    %c0_i32_2 = arith.constant 0 : i32
    return %c0_i32, %c0_i32_0, %c0_i32_1 : i32, i32, i32
  }
  func.func @transform_2(%arg0: i32) -> (i32, i32, i32) {
    %c0_i32 = arith.constant 0 : i32
    %c0_i32_0 = arith.constant 0 : i32
    %c0_i32_1 = arith.constant 0 : i32
    %c0_i32_2 = arith.constant 0 : i32
    return %c0_i32, %c0_i32_0, %c0_i32_1 : i32, i32, i32
  }
  func.func @transform_3(%arg0: i32) -> (i32, i32, i32) {
    %c0_i32 = arith.constant 0 : i32
    %c0_i32_0 = arith.constant 0 : i32
    %c0_i32_1 = arith.constant 0 : i32
    %c0_i32_2 = arith.constant 0 : i32
    return %c0_i32, %c0_i32_0, %c0_i32_1 : i32, i32, i32
  }
  func.func @transform_4(%arg0: i32) -> (i32, i32) {
    %c0_i32 = arith.constant 0 : i32
    %c0_i32_0 = arith.constant 0 : i32
    %c0_i32_1 = arith.constant 0 : i32
    return %c0_i32, %c0_i32_0 : i32, i32
  }
  func.func @transform_5(%arg0: i32) -> (i32, i32) {
    %c0_i32 = arith.constant 0 : i32
    %c0_i32_0 = arith.constant 0 : i32
    %c0_i32_1 = arith.constant 0 : i32
    return %c0_i32, %c0_i32_0 : i32, i32
  }
  func.func @transform_6(%arg0: i32) -> (i32, i32) {
    %c0_i32 = arith.constant 0 : i32
    %c0_i32_0 = arith.constant 0 : i32
    %c0_i32_1 = arith.constant 0 : i32
    return %c0_i32, %c0_i32_0 : i32, i32
  }
  func.func @transform_7(%arg0: i32) -> (i32, i32) {
    %c0_i32 = arith.constant 0 : i32
    %c0_i32_0 = arith.constant 0 : i32
    %c0_i32_1 = arith.constant 0 : i32
    return %c0_i32, %c0_i32_0 : i32, i32
  }
  func.func @transform_8(%arg0: i32) -> (i32, i32) {
    %c0_i32 = arith.constant 0 : i32
    %c0_i32_0 = arith.constant 0 : i32
    return %arg0, %c0_i32 : i32, i32
  }
}

</mosaic_0001>

<bundles_post_ra>
// kernel: tpu_custom_call.1
= control target key start
LH: loop header
LB: loop body
LE: loop exit
PB: predicated region body
PF: predicated region fallthrough
CT: control target
= control target key end

     0   :  { %13 = vsyncpa [#allocation5], 0  ;;  %s14861_s0 = inlined_call_operand.hbm [shape: bf16[40,48], index: 0, kind: input, shape index: {}]   ;;  %s14862_s1 = inlined_call_operand.hbm [shape: bf16[3,48,512], index: 1, kind: input, shape index: {}]   ;;  %s14863_s2 = inlined_call_operand.hbm [shape: bf16[3,512,512], index: 2, kind: input, shape index: {}]   ;;  %s14864_s3 = inlined_call_operand.hbm [shape: bf16[3,512,1024], index: 3, kind: input, shape index: {}]   ;;  %s14865_s4 = inlined_call_operand.hbm [shape: f32[1,512], index: 4, kind: input, shape index: {}]   ;;  %s14866_s5 = inlined_call_operand.hbm [shape: f32[1,512], index: 5, kind: input, shape index: {}]   ;;  %s14867_s6 = inlined_call_operand.hbm [shape: f32[1,1024], index: 6, kind: input, shape index: {}]   ;;  %s14868_s7 = inlined_call_operand.vmem [shape: f32[36,1], index: 7, kind: input, shape index: {}]   ;;  %s14869_s8 = inlined_call_operand.hbm [shape: f32[40,1024], index: 8, kind: output, shape index: {}]  }
   0x1   :  { %14 = vsyncpa [#allocation8], 0 }
   0x2   :  { %15 = vsyncpa [#allocation11], 0 }
   0x3   :  { %16 = vsyncpa [#allocation14], 0 }
   0x4   :  { %17 = vsyncpa [#allocation6], 0  ;;  %s13597_s27 = smov [#allocation7]   ;;  %s13411_s9 = scalar_lea.hbm %s14862_s1, 4608 }
   0x5   :  { %s35_s28 = sshll.u32 %s13597_s27, 4  ;;  %p13412_p0 = scmp.ne.s32.totalorder %s14862_s1, %s13411_s9  ;;  %s36_s28 = int_to_ptr.vmem [resolvable:$true] %s35_s28 }
   0x6   :  { %p13415_p1 = scmp.lt.u32.totalorder %s13411_s9, %s14862_s1 }
   0x8   :  { %p13417_p2 = pnand %p13415_p1, %p13412_p0 }
   0xa   :  { %13420 = shalt.err (!%p13417_p2)
}
   0xb   :  { %s13421_s14 = scalar_lea.vmem %s36_s28, 4608  ;;  %p13426_p4 = scmp.lt.s32.totalorder %s36_s28, %s36_s28 }
   0xc   :  { %p13422_p3 = scmp.ne.s32.totalorder %s36_s28, %s13421_s14  ;;  %p13427_p5 = scmp.lt.s32.totalorder %s13421_s14, %s13421_s14 }
   0xe   :  { %p13428_p6 = por %p13427_p5, %p13426_p4 }
  0x10   :  { %p13429_p7 = pnand %p13428_p6, %p13422_p3 }
  0x12   :  { %13432 = shalt.err (!%p13429_p7)
}
  0x13   :  { %s13598_s15 = smov 256   ;;  %s13599_s16 = smov 16  }
  0x14   :  { %41 = dma.hbm_to_vmem [thread:$0]  %s14862_s1, 4608, %s36_s28, [#allocation8], %s13598_s15, %s13598_s15, %s13599_s16  }
  0x15   :  { %s13600_s19 = smov [#allocation10]   ;;  %s13433_s23 = scalar_lea.hbm %s14864_s3, 98304 }
  0x16   :  { %s59_s20 = sshll.u32 %s13600_s19, 4  ;;  %p13434_p8 = scmp.ne.s32.totalorder %s14864_s3, %s13433_s23  ;;  %s60_s20 = int_to_ptr.vmem [resolvable:$true] %s59_s20 }
  0x17   :  { %p13437_p9 = scmp.lt.u32.totalorder %s13433_s23, %s14864_s3 }
  0x19   :  { %p13439_p10 = pnand %p13437_p9, %p13434_p8 }
  0x1b   :  { %13442 = shalt.err (!%p13439_p10)
}
  0x1c   :  { %s13443_s29 = scalar_lea.vmem %s60_s20, 98304  ;;  %p13448_p12 = scmp.lt.s32.totalorder %s60_s20, %s60_s20 }
  0x1d   :  { %p13444_p11 = scmp.ne.s32.totalorder %s60_s20, %s13443_s29  ;;  %p13449_p13 = scmp.lt.s32.totalorder %s13443_s29, %s13443_s29 }
  0x1f   :  { %p13450_p0 = por %p13449_p13, %p13448_p12 }
  0x21   :  { %p13451_p1 = pnand %p13450_p0, %p13444_p11 }
  0x23   :  { %13454 = shalt.err (!%p13451_p1)
}
  0x24   :  { %s13601_s1 = smov 512   ;;  %s13602_s28 = smov 32  }
  0x25   :  { %65 = dma.hbm_to_vmem [thread:$0]  %s14864_s3, 98304, %s60_s20, [#allocation11], %s13601_s1, %s13601_s1, %s13602_s28  }
  0x26   :  { %s13603_s10 = smov [#allocation13]   ;;  %s13604_s12 = smov [#allocation4]  }
  0x27   :  { %s82_s11 = sshll.u32 %s13603_s10, 4  ;;  %s23_s13 = sshll.u32 %s13604_s12, 4  ;;  %s83_s11 = int_to_ptr.vmem [resolvable:$true] %s82_s11  ;;  %s13685_s13 = int_to_ptr.vmem [resolvable:$true] %s23_s13 }
  0x28   :  { %s13455_s18 = scalar_lea.hbm %s14866_s5, 64 }
  0x29   :  { %p13456_p2 = scmp.ne.s32.totalorder %s14866_s5, %s13455_s18  ;;  %p13459_p3 = scmp.lt.u32.totalorder %s13455_s18, %s14866_s5 }
  0x2b   :  { %p13461_p4 = pnand %p13459_p3, %p13456_p2 }
  0x2d   :  { %13464 = shalt.err (!%p13461_p4)
}
  0x2e   :  { %s13465_s3 = scalar_lea.vmem %s83_s11, 64  ;;  %p13470_p6 = scmp.lt.s32.totalorder %s83_s11, %s83_s11 }
  0x2f   :  { %p13466_p5 = scmp.ne.s32.totalorder %s83_s11, %s13465_s3  ;;  %p13471_p7 = scmp.lt.s32.totalorder %s13465_s3, %s13465_s3 }
  0x31   :  { %p13472_p8 = por %p13471_p7, %p13470_p6 }
  0x33   :  { %p13473_p9 = pnand %p13472_p8, %p13466_p5 }
  0x35   :  { %13476 = shalt.err (!%p13473_p9)
}
  0x36   :  { %85 = dma.hbm_to_vmem [thread:$0]  %s14866_s5, 64, %s83_s11, [#allocation14]  }
  0x37   :  { %s13477_s27 = scalar_lea.hbm %s14861_s0, 320 }
  0x38   :  { %p13478_p10 = scmp.ne.s32.totalorder %s14861_s0, %s13477_s27  ;;  %p13481_p11 = scmp.lt.u32.totalorder %s13477_s27, %s14861_s0 }
  0x3a   :  { %p13483_p12 = pnand %p13481_p11, %p13478_p10 }
  0x3c   :  { %13486 = shalt.err (!%p13483_p12)
}
  0x3d   :  { %s13487_s9 = scalar_lea.vmem %s13685_s13, 320  ;;  %p13492_p0 = scmp.lt.s32.totalorder %s13685_s13, %s13685_s13 }
  0x3e   :  { %p13488_p13 = scmp.ne.s32.totalorder %s13685_s13, %s13487_s9  ;;  %p13493_p1 = scmp.lt.s32.totalorder %s13487_s9, %s13487_s9 }
  0x40   :  { %p13494_p2 = por %p13493_p1, %p13492_p0 }
  0x42   :  { %p13495_p3 = pnand %p13494_p2, %p13488_p13 }
  0x44   :  { %13498 = shalt.err (!%p13495_p3)
}
  0x45   :  { %s13605_s5 = smov 64   ;;  %s13606_s10 = smov 4  }
  0x46   :  { %29 = dma.hbm_to_vmem [thread:$0]  %s14861_s0, 320, %s13685_s13, [#allocation5], %s13605_s5, %s13605_s5, %s13606_s10  }
  0x47   :  { %s13607_s14 = smov [#allocation9]   ;;  %s13608_s18 = smov [#allocation12]  }
  0x48   :  { %s47_s17 = sshll.u32 %s13607_s14, 4  ;;  %s72_s19 = sshll.u32 %s13608_s18, 4  ;;  %s48_s17 = int_to_ptr.vmem [resolvable:$true] %s47_s17  ;;  %s73_s19 = int_to_ptr.vmem [resolvable:$true] %s72_s19 }
  0x49   :  { %s13499_s23 = scalar_lea.hbm %s14863_s2, 49152 }
  0x4a   :  { %p13500_p4 = scmp.ne.s32.totalorder %s14863_s2, %s13499_s23  ;;  %p13503_p5 = scmp.lt.u32.totalorder %s13499_s23, %s14863_s2 }
  0x4c   :  { %p13505_p6 = pnand %p13503_p5, %p13500_p4 }
  0x4e   :  { %13508 = shalt.err (!%p13505_p6)
}
  0x4f   :  { %s13509_s0 = scalar_lea.vmem %s48_s17, 49152  ;;  %p13514_p8 = scmp.lt.s32.totalorder %s48_s17, %s48_s17 }
  0x50   :  { %p13510_p7 = scmp.ne.s32.totalorder %s48_s17, %s13509_s0  ;;  %p13515_p9 = scmp.lt.s32.totalorder %s13509_s0, %s13509_s0 }
  0x52   :  { %p13516_p10 = por %p13515_p9, %p13514_p8 }
  0x54   :  { %p13517_p11 = pnand %p13516_p10, %p13510_p7 }
  0x56   :  { %13520 = shalt.err (!%p13517_p11)
}
  0x57   :  { %53 = dma.hbm_to_vmem [thread:$0]  %s14863_s2, 49152, %s48_s17, [#allocation8], %s13598_s15, %s13598_s15, %s13599_s16  }
  0x58   :  { %s13521_s1 = scalar_lea.hbm %s14865_s4, 64 }
  0x59   :  { %p13522_p12 = scmp.ne.s32.totalorder %s14865_s4, %s13521_s1  ;;  %p13525_p13 = scmp.lt.u32.totalorder %s13521_s1, %s14865_s4 }
  0x5b   :  { %p13527_p0 = pnand %p13525_p13, %p13522_p12 }
  0x5d   :  { %13530 = shalt.err (!%p13527_p0)
}
  0x5e   :  { %s13531_s11 = scalar_lea.vmem %s73_s19, 64  ;;  %p13536_p2 = scmp.lt.s32.totalorder %s73_s19, %s73_s19 }
  0x5f   :  { %p13532_p1 = scmp.ne.s32.totalorder %s73_s19, %s13531_s11  ;;  %p13537_p3 = scmp.lt.s32.totalorder %s13531_s11, %s13531_s11 }
  0x61   :  { %p13538_p4 = por %p13537_p3, %p13536_p2 }
  0x63   :  { %p13539_p5 = pnand %p13538_p4, %p13532_p1 }
  0x65   :  { %13542 = shalt.err (!%p13539_p5)
}
  0x66   :  { %75 = dma.hbm_to_vmem [thread:$0]  %s14865_s4, 64, %s73_s19, [#allocation11]  }
  0x67   :  { %s13609_s16 = smov [#allocation15]   ;;  %s13543_s18 = scalar_lea.hbm %s14867_s6, 128 }
  0x68   :  { %s92_s12 = sshll.u32 %s13609_s16, 4  ;;  %p13544_p6 = scmp.ne.s32.totalorder %s14867_s6, %s13543_s18  ;;  %s93_s12 = int_to_ptr.vmem [resolvable:$true] %s92_s12 }
  0x69   :  { %p13547_p7 = scmp.lt.u32.totalorder %s13543_s18, %s14867_s6 }
  0x6b   :  { %p13549_p8 = pnand %p13547_p7, %p13544_p6 }
  0x6d   :  { %13552 = shalt.err (!%p13549_p8)
}
  0x6e   :  { %s13553_s20 = scalar_lea.vmem %s93_s12, 128  ;;  %p13558_p10 = scmp.lt.s32.totalorder %s93_s12, %s93_s12 }
  0x6f   :  { %p13554_p9 = scmp.ne.s32.totalorder %s93_s12, %s13553_s20  ;;  %p13559_p11 = scmp.lt.s32.totalorder %s13553_s20, %s13553_s20 }
  0x71   :  { %p13560_p12 = por %p13559_p11, %p13558_p10 }
  0x73   :  { %p13561_p13 = pnand %p13560_p12, %p13554_p9 }
  0x75   :  { %13564 = shalt.err (!%p13561_p13)
}
  0x76   :  { %95 = dma.hbm_to_vmem [thread:$0]  %s14867_s6, 128, %s93_s12, [#allocation14]  }
  0x77   :  { %13587 = dma.done.wait [#allocation5], 320  }
  0x78   :  { %13588 = vsyncadd [#allocation5], 4294966976 }
  0x79   :  { %13589 = dma.done.wait [#allocation8], 53760  }
  0x7a   :  { %13590 = vsyncadd [#allocation8], 4294913536 }
  0x7b   :  { %13591 = dma.done.wait [#allocation11], 98368  }
  0x7c   :  { %13592 = vsyncadd [#allocation11], 4294868928 }
  0x7d   :  { %13593 = dma.done.wait [#allocation14], 192  }
  0x7e   :  { %13594 = vsyncadd [#allocation14], 4294967104  ;;  %v13610_v0 = vmov 0   ;;  %v12756_v1 = vld [vmem:[#allocation7 + $0x64] ss:$16 sps:$4 sm:$0xff]   ;;  %vm273_vm1 = vcmask 392192  }
  0x7f   :  { %315 = vmatprep.mubr.bf16.mxu0 %v13610_v0  ;;  %128 = vst [vmem:[#allocation2 + $0x40] sm:$0x77] %v13610_v0  ;;  %129 = vst [vmem:[#allocation2 + $0x48] sm:$0x77] %v13610_v0  ;;  %376 = vmatprep.mubr.bf16.mxu1 %v13610_v0  ;;  %v12758_v2 = vld [vmem:[#allocation7 + $0x6c] ss:$16 sps:$4 sm:$0xff]  }
  0x80   :  { %138 = vst [vmem:[#allocation3 + $0x40] sm:$0x77] %v13610_v0  ;;  %139 = vst [vmem:[#allocation3 + $0x48] sm:$0x77] %v13610_v0  ;;  %12754 = vset.pattern.permute.xlu0 %v13610_v0  ;;  %12755 = vset.pattern.permute.xlu1 %v13610_v0  ;;  %v12760_v3 = vld [vmem:[#allocation7 + $0x60] ss:$16 sps:$4 sm:$0xff]  }
  0x81   :  { %283 = vmatprep.subr.bf16.mxu0 %v12756_v1  ;;  %v12761_v4 = vld [vmem:[#allocation7 + $0x68] ss:$16 sps:$4 sm:$0xff]   ;;  %344 = vmatprep.subr.bf16.mxu1 %v12758_v2  ;;  %v12762_v5 = vld [vmem:[#allocation7 + $0x84] ss:$16 sps:$4 sm:$0xff]   ;;  %v12764_v6 = vld [vmem:[#allocation7 + $0x8c] ss:$16 sps:$4 sm:$0xff]  }
  0x82   :  { %284 = vmatpush1.bf16.msra.mxu0 %v12760_v3  ;;  %345 = vmatpush1.bf16.msra.mxu1 %v12761_v4  ;;  %v12766_v7 = vld [vmem:[#allocation7 + $0x80] ss:$16 sps:$4 sm:$0xff]   ;;  %v12767_v8 = vld [vmem:[#allocation7 + $0x88] ss:$16 sps:$4 sm:$0xff]   ;;  %v12768_v9 = vld [vmem:[#allocation7 + $0xa4] ss:$16 sps:$4 sm:$0xff]  }
  0x83   :  { %285 = vmatprep.subr.bf16.mxu0 %v12762_v5  ;;  %346 = vmatprep.subr.bf16.mxu1 %v12764_v6  ;;  %v12770_v10 = vld [vmem:[#allocation7 + $0xac] ss:$16 sps:$4 sm:$0xff]   ;;  %v12772_v11 = vld [vmem:[#allocation7 + $0xa0] ss:$16 sps:$4 sm:$0xff]   ;;  %v12773_v12 = vld [vmem:[#allocation7 + $0xa8] ss:$16 sps:$4 sm:$0xff]  }
  0x84   :  { %v145_v13 = vld [vmem:[#allocation4] sm:$0xf]  ;;  %v13765_v14 = vld [vmem:[#allocation4 + $0x4] sm:$0xf]  ;;  %v13770_v16 = vld [vmem:[#allocation4 + $0x8] sm:$0xff]   ;;  %vm614_vm2 = vcmask 1046528  }
  0x85   :  { %v13768_v15 = vcombine.low %v145_v13, %v13765_v14  ;;  %v12778_v17 = vld [vmem:[#allocation7 + $0x4] ss:$16 sps:$4 sm:$0xff]   ;;  %v198_v20 = vshll.u32 %v13770_v16, 16  ;;  %v13775_v21 = vld [vmem:[#allocation4 + $0x10] ss:$0 sps:$4 sm:$0x77]  }
  0x86   :  { %286 = vmatpush1.bf16.msra.mxu0 %v12766_v7  ;;  %347 = vmatpush1.bf16.msra.mxu1 %v12767_v8  ;;  %vm189_vm0 = vsmask.f32 7424  ;;  %v12776_v24 = vld [vmem:[#allocation7] ss:$16 sps:$4 sm:$0xff]   ;;  %v202_v26 = vshrl.u32 %v13770_v16, 16  ;;  %v206_v27 = vshll.u32 %v13775_v21, 16 }
  0x87   :  { %287 = vmatprep.subr.bf16.mxu0 %v12768_v9  ;;  %348 = vmatprep.subr.bf16.mxu1 %v12770_v10  ;;  %v191_v18 = vshrl.u32 %v13768_v15, 16  ;;  %v193_v19 = vshll.u32 %v13768_v15, 16  ;;  %v200_v23 = vrot.slane %v198_v20, 1  ;;  %v12785_v28 = vld [vmem:[#allocation7 + $0xc] ss:$16 sps:$4 sm:$0xff]   ;;  %v210_v43 = vshrl.u32 %v13775_v21, 16 }
  0x88   :  { %v12782_v29 = vld [vmem:[#allocation7 + $0x24] ss:$16 sps:$4 sm:$0xff]   ;;  %v12783_v31 = vld [vmem:[#allocation7 + $0x8] ss:$16 sps:$4 sm:$0xff]   ;;  %v12791_v32 = vld [vmem:[#allocation7 + $0x2c] ss:$16 sps:$4 sm:$0xff]  }
  0x89   :  { %v195_v22 = vrot.slane %v193_v19, 1  ;;  %v204_v33 = vor.u32 %v202_v26, %v200_v23  ;;  %v208_v34 = vrot.slane %v206_v27, 1  ;;  %v12780_v35 = vld [vmem:[#allocation7 + $0x20] ss:$16 sps:$4 sm:$0xff]   ;;  %v12788_v36 = vld [vmem:[#allocation7 + $0x44] ss:$16 sps:$4 sm:$0xff]  }
  0x8a   :  { %288 = vmatpush1.bf16.msra.mxu0 %v12772_v11  ;;  %349 = vmatpush1.bf16.msra.mxu1 %v12773_v12  ;;  %v12789_v37 = vld [vmem:[#allocation7 + $0x28] ss:$16 sps:$4 sm:$0xff]   ;;  %v12786_v39 = vld [vmem:[#allocation7 + $0x40] ss:$16 sps:$4 sm:$0xff]   ;;  %v12794_v41 = vld [vmem:[#allocation7 + $0x4c] ss:$16 sps:$4 sm:$0xff]  }
  0x8b   :  { %475 = vmatprep.subr.bf16.mxu0 %v12778_v17  ;;  %v196_v25 = vor.u32 %v195_v22, %v191_v18  ;;  %536 = vmatprep.subr.bf16.mxu1 %v12785_v28  ;;  %v209_v38 = vsel %vm189_vm0, %v204_v33, %v208_v34  ;;  %v12792_v40 = vld [vmem:[#allocation7 + $0x48] ss:$16 sps:$4 sm:$0xff]   ;;  %v12797_v42 = vld [vmem:[#allocation7 + $0xc4] ss:$16 sps:$4 sm:$0xff]   ;;  %v12803_v44 = vld [vmem:[#allocation7 + $0xcc] ss:$16 sps:$4 sm:$0xff]   ;;  %v212_v47 = vor.u32 %v210_v43, %v208_v34 }
  0x8c   :  { %v140_v45 = vld [vmem:[%s14868_s7] sm:$0xff]  ;;  %v142_v46 = vld [vmem:[%s14868_s7 + $0x10] sm:$0xff]  ;;  %v141_v48 = vld [vmem:[%s14868_s7 + $0x8] sm:$0xff]  ;;  %v616_v2 = vrot.slane %v13770_v16, 1  ;;  %v618_v4 = vrot.slane %v13775_v21, 1  ;;  %vm1091_vm3 = vcmask 1043456  }
  0x8d   :  { %v201_v30 = vsel %vm189_vm0, %v196_v25, %v200_v23  ;;  %895 = vperm.xlu0 %12754, %v140_v45   ;;  %905 = vperm.xlu1 %12755, %v142_v46   ;;  %v143_v49 = vld [vmem:[%s14868_s7 + $0x18] sm:$0xff]  ;;  %v144_v50 = vld [vmem:[%s14868_s7 + $0x20] sm:$0xf]  ;;  %v12795_v51 = vld [vmem:[#allocation7 + $0xc0] ss:$16 sps:$4 sm:$0xff]   ;;  %vm1094_vm5 = vcmask 1047556  }
  0x8e   :  { %11190 = vmatmul.mubr.msk.bf16.vlgmr.msra.gmra.mrb[0].mxu0 %vm273_vm1, %v201_v30  ;;  %11193 = vmatmul.mubr.msk.bf16.vlgmr.msra.gmra.mrb[0].mxu1 %vm273_vm1, %v201_v30  ;;  %v12800_v52 = vld [vmem:[#allocation7 + $0xe4] ss:$16 sps:$4 sm:$0xff]   ;;  %v12801_v53 = vld [vmem:[#allocation7 + $0xc8] ss:$16 sps:$4 sm:$0xff]   ;;  %v12810_v54 = vld [vmem:[#allocation7 + $0xec] ss:$16 sps:$4 sm:$0xff]   ;;  %v619_v5 = vsel %vm614_vm2, %v616_v2, %v618_v4 }
  0x8f   :  { %476 = vmatpush1.bf16.msra.mxu0 %v12776_v24  ;;  %325 = vmatprep.mubr.bf16.mxu0 %v13610_v0  ;;  %v12798_v55 = vld [vmem:[#allocation7 + $0xe0] ss:$16 sps:$4 sm:$0xff]   ;;  %v12807_v56 = vld [vmem:[#allocation7 + $0x104] ss:$16 sps:$4 sm:$0xff]   ;;  %v12808_v57 = vld [vmem:[#allocation7 + $0xe8] ss:$16 sps:$4 sm:$0xff]  }
  0x90   :  { %386 = vmatprep.mubr.bf16.mxu1 %v13610_v0  ;;  %477 = vmatprep.subr.bf16.mxu0 %v12782_v29  ;;  %v12805_v58 = vld [vmem:[#allocation7 + $0x100] ss:$16 sps:$4 sm:$0xff]   ;;  %v12813_v59 = vld [vmem:[#allocation7 + $0x10c] ss:$16 sps:$4 sm:$0xff]   ;;  %v12811_v60 = vld [vmem:[#allocation7 + $0x108] ss:$16 sps:$4 sm:$0xff]  }
  0x91   :  { %537 = vmatpush1.bf16.msra.mxu1 %v12783_v31  ;;  %900 = vperm.xlu0 %12754, %v141_v48   ;;  %v597_v61 = vld [vmem:[#allocation4] sm:$0xe]  ;;  %v12804_v62 = vld [vmem:[#allocation4 + $0x10] ss:$0 sps:$4 sm:$0x33]   ;;  %vm1110_vm13 = vcmask 1042432  }
  0x92   :  { %538 = vmatprep.subr.bf16.mxu1 %v12791_v32  ;;  %910 = vperm.xlu1 %12755, %v143_v49   ;;  %v11215_v63 = vcombine.low %v597_v61, %v13765_v14  ;;  %v12817_v6 = vld [vmem:[#allocation9 + $0x404] ss:$16 sps:$4 sm:$0xff]   ;;  %v12820_v7 = vld [vmem:[#allocation9 + $0x40c] ss:$16 sps:$4 sm:$0xff]   ;;  %v12815_v8 = vld [vmem:[#allocation9 + $0x400] ss:$16 sps:$4 sm:$0xff]  }
  0x93   :  { %478 = vmatpush1.bf16.msra.mxu0 %v12780_v35  ;;  %v12818_v9 = vld [vmem:[#allocation9 + $0x408] ss:$16 sps:$4 sm:$0xff]   ;;  %v12821_v10 = vld [vmem:[#allocation9 + $0x420] ss:$16 sps:$4 sm:$0xff]   ;;  %v12823_v11 = vld [vmem:[#allocation9 + $0x424] ss:$16 sps:$4 sm:$0xff]  }
  0x94   :  { %479 = vmatprep.subr.bf16.mxu0 %v12788_v36  ;;  %v615_v1 = vrot.slane %v11215_v63, 1  ;;  %v12824_v12 = vld [vmem:[#allocation9 + $0x428] ss:$16 sps:$4 sm:$0xff]   ;;  %v12826_v13 = vld [vmem:[#allocation9 + $0x42c] ss:$16 sps:$4 sm:$0xff]   ;;  %vm1113_vm15 = vcmask 1046532  }
  0x95   :  { %539 = vmatpush1.bf16.msra.mxu1 %v12789_v37  ;;  %915 = vperm.xlu0 %12754, %v144_v50   ;;  %v12829_v14 = vld [vmem:[#allocation9 + $0x444] ss:$16 sps:$4 sm:$0xff]   ;;  %v12838_v18 = vld [vmem:[#allocation9 + $0x46c] ss:$16 sps:$4 sm:$0xff]   ;;  %v12833_v19 = vld [vmem:[#allocation9 + $0x460] ss:$16 sps:$4 sm:$0xff]  }
  0x96   :  { %11191 = vmatmul.mubr.msk.bf16.gmra.mrb[4].mxu0 %vm273_vm1, %v209_v38  ;;  %11194 = vmatmul.mubr.msk.bf16.gmra.mrb[4].mxu1 %vm273_vm1, %v209_v38  ;;  %v617_v3 = vsel %vm614_vm2, %v615_v1, %v616_v2  ;;  %v12835_v17 = vld [vmem:[#allocation9 + $0x464] ss:$16 sps:$4 sm:$0xff]   ;;  %v12836_v20 = vld [vmem:[#allocation9 + $0x468] ss:$16 sps:$4 sm:$0xff]   ;;  %v12844_v22 = vld [vmem:[#allocation9 + $0x48c] ss:$16 sps:$4 sm:$0xff]  }
  0x97   :  { %335 = vmatprep.mubr.bf16.mxu0 %v13610_v0  ;;  %396 = vmatprep.mubr.bf16.mxu1 %v13610_v0  ;;  %v12841_v21 = vld [vmem:[#allocation9 + $0x484] ss:$16 sps:$4 sm:$0xff]   ;;  %v12839_v23 = vld [vmem:[#allocation9 + $0x480] ss:$16 sps:$4 sm:$0xff]   ;;  %v12842_v24 = vld [vmem:[#allocation9 + $0x488] ss:$16 sps:$4 sm:$0xff]  }
  0x98   :  { %480 = vmatpush1.bf16.msra.mxu0 %v12786_v39  ;;  %540 = vmatprep.subr.bf16.mxu1 %v12794_v41  ;;  %v12847_v25 = vld [vmem:[#allocation9 + $0x4a4] ss:$16 sps:$4 sm:$0xff]   ;;  %v12850_v26 = vld [vmem:[#allocation9 + $0x4ac] ss:$16 sps:$4 sm:$0xff]   ;;  %v12845_v27 = vld [vmem:[#allocation9 + $0x4a0] ss:$16 sps:$4 sm:$0xff]  }
  0x99   :  { %541 = vmatpush1.bf16.msra.mxu1 %v12792_v40  ;;  %689 = vmatprep.subr.bf16.mxu0 %v12797_v42  ;;  %v12848_v28 = vld [vmem:[#allocation9 + $0x4a8] ss:$16 sps:$4 sm:$0xff]   ;;  %v12853_v29 = vld [vmem:[#allocation9 + $0x4c4] ss:$16 sps:$4 sm:$0xff]   ;;  %v12856_v30 = vld [vmem:[#allocation9 + $0x4cc] ss:$16 sps:$4 sm:$0xff]  }
  0x9a   :  { %750 = vmatprep.subr.bf16.mxu1 %v12803_v44  ;;  %v12851_v31 = vld [vmem:[#allocation9 + $0x4c0] ss:$16 sps:$4 sm:$0xff]   ;;  %v12854_v32 = vld [vmem:[#allocation9 + $0x4c8] ss:$16 sps:$4 sm:$0xff]   ;;  %v12859_v33 = vld [vmem:[#allocation9 + $0x4e4] ss:$16 sps:$4 sm:$0xff]  }
  0x9b   :  { %v12862_v34 = vld [vmem:[#allocation9 + $0x4ec] ss:$16 sps:$4 sm:$0xff]   ;;  %v12857_v35 = vld [vmem:[#allocation9 + $0x4e0] ss:$16 sps:$4 sm:$0xff]   ;;  %v12860_v36 = vld [vmem:[#allocation9 + $0x4e8] ss:$16 sps:$4 sm:$0xff]  }
  0x9c   :  { %v12865_v37 = vld [vmem:[#allocation9 + $0x504] ss:$16 sps:$4 sm:$0xff]   ;;  %v12868_v38 = vld [vmem:[#allocation9 + $0x50c] ss:$16 sps:$4 sm:$0xff]   ;;  %v12863_v39 = vld [vmem:[#allocation9 + $0x500] ss:$16 sps:$4 sm:$0xff]  }
  0x9d   :  { %v12866_v40 = vld [vmem:[#allocation9 + $0x508] ss:$16 sps:$4 sm:$0xff]   ;;  %v12871_v41 = vld [vmem:[#allocation9 + $0x524] ss:$16 sps:$4 sm:$0xff]   ;;  %v12874_v42 = vld [vmem:[#allocation9 + $0x52c] ss:$16 sps:$4 sm:$0xff]  }
  0x9e   :  { %11192 = vmatmul.mubr.msk.bf16.gmra.mrb[8].mxu0 %vm273_vm1, %v212_v47  ;;  %11195 = vmatmul.mubr.msk.bf16.gmra.mrb[8].mxu1 %vm273_vm1, %v212_v47  ;;  %v12869_v43 = vld [vmem:[#allocation9 + $0x520] ss:$16 sps:$4 sm:$0xff]   ;;  %v12872_v44 = vld [vmem:[#allocation9 + $0x528] ss:$16 sps:$4 sm:$0xff]   ;;  %v12877_v45 = vld [vmem:[#allocation9 + $0x544] ss:$16 sps:$4 sm:$0xff]  }
  0x9f   :  { %507 = vmatprep.mubr.bf16.mxu0 %v13610_v0  ;;  %568 = vmatprep.mubr.bf16.mxu1 %v13610_v0  ;;  %v12875_v46 = vld [vmem:[#allocation9 + $0x540] ss:$16 sps:$4 sm:$0xff]   ;;  %v12878_v47 = vld [vmem:[#allocation9 + $0x548] ss:$16 sps:$4 sm:$0xff]   ;;  %v12880_v48 = vld [vmem:[#allocation9 + $0x54c] ss:$16 sps:$4 sm:$0xff]  }
  0xa0   :  { %v12883_v49 = vld [vmem:[#allocation9 + $0x564] ss:$16 sps:$4 sm:$0xff]   ;;  %v12886_v50 = vld [vmem:[#allocation9 + $0x56c] ss:$16 sps:$4 sm:$0xff]   ;;  %v12899_v63 = vld [vmem:[#allocation9 + $0x5c0] ss:$16 sps:$4 sm:$0xff]  }
  0xa1   :  { %v12901_v61 = vld [vmem:[#allocation9 + $0x5c4] ss:$16 sps:$4 sm:$0xff]   ;;  %v12902_v1 = vld [vmem:[#allocation9 + $0x5c8] ss:$16 sps:$4 sm:$0xff]   ;;  %vm1092_vm4 = vsmask.f32 7938 }
  0xa2   :  { %v12907_v2 = vld [vmem:[#allocation9 + $0x5e4] ss:$16 sps:$4 sm:$0xff]   ;;  %vm1095_vm6 = vsmask.f32 7954  ;;  %vm13896_vm7 = vmand %vm1091_vm3, %vm1092_vm4  ;;  %vm992_vm8 = vsmask.f32 256 }
  0xa3   :  { %vm13904_vm9 = vmand %vm1094_vm5, %vm1095_vm6  ;;  %vm993_vm11 = vsmask.f32 4368  ;;  %vm1111_vm14 = vsmask.f32 2304  ;;  %s13611_s7 = smov [#allocation16]  }
  0xa4   :  { %vm13914_vm10 = vmor %vm13904_vm9, %vm13896_vm7  ;;  %s11160_s30 = sshll.u32 %s13611_s7, 4  ;;  %s11161_s30 = int_to_ptr.vmem [resolvable:$true] %s11160_s30 }
  0xa5   :  { %vm13933_vm12 = vmor %vm992_vm8, %vm993_vm11  ;;  %s13565_s9 = scalar_lea.vmem %s11161_s30, 5120  ;;  %p13570_p1 = scmp.lt.s32.totalorder %s11161_s30, %s11161_s30 }
  0xa6   :  { %11209 = vmatmul.mubr.msk.bf16.vlgmr.msra.gmra.mrb[0].mxu0 %vm273_vm1, %v13768_v15  ;;  %11212 = vmatmul.mubr.msk.bf16.vlgmr.msra.gmra.mrb[0].mxu1 %vm273_vm1, %v13768_v15  ;;  %v12827_v15 = vld [vmem:[#allocation9 + $0x440] ss:$16 sps:$4 sm:$0xff]   ;;  %vm14000_vm3 = vmand %vm1110_vm13, %vm1111_vm14  ;;  %p13566_p0 = scmp.ne.s32.totalorder %s11161_s30, %s13565_s9  ;;  %p13571_p2 = scmp.lt.s32.totalorder %s13565_s9, %s13565_s9 }
  0xa7   :  { %690 = vmatpush1.bf16.msra.mxu0 %v12795_v51  ;;  %517 = vmatprep.mubr.bf16.mxu0 %v13610_v0  ;;  %v12881_v51 = vld [vmem:[#allocation9 + $0x560] ss:$16 sps:$4 sm:$0xff]  }
  0xa8   :  { %578 = vmatprep.mubr.bf16.mxu1 %v13610_v0  ;;  %691 = vmatprep.subr.bf16.mxu0 %v12800_v52  ;;  %v12884_v52 = vld [vmem:[#allocation9 + $0x568] ss:$16 sps:$4 sm:$0xff]   ;;  %p13572_p3 = por %p13571_p2, %p13570_p1 }
  0xa9   :  { %751 = vmatpush1.bf16.msra.mxu1 %v12801_v53  ;;  %v12889_v53 = vld [vmem:[#allocation9 + $0x584] ss:$16 sps:$4 sm:$0xff]  }
  0xaa   :  { %752 = vmatprep.subr.bf16.mxu1 %v12810_v54  ;;  %v12892_v54 = vld [vmem:[#allocation9 + $0x58c] ss:$16 sps:$4 sm:$0xff]   ;;  %p13573_p4 = pnand %p13572_p3, %p13566_p0 }
  0xab   :  { %692 = vmatpush1.bf16.msra.mxu0 %v12798_v55  ;;  %v12887_v55 = vld [vmem:[#allocation9 + $0x580] ss:$16 sps:$4 sm:$0xff]  }
  0xac   :  { %693 = vmatprep.subr.bf16.mxu0 %v12807_v56  ;;  %v12890_v56 = vld [vmem:[#allocation9 + $0x588] ss:$16 sps:$4 sm:$0xff]  }
  0xad   :  { %753 = vmatpush1.bf16.msra.mxu1 %v12808_v57  ;;  %v12895_v57 = vld [vmem:[#allocation9 + $0x5a4] ss:$16 sps:$4 sm:$0xff]  }
  0xae   :  { %11210 = vmatmul.mubr.msk.bf16.gmra.mrb[4].mxu0 %vm273_vm1, %v13770_v16  ;;  %11213 = vmatmul.mubr.msk.bf16.gmra.mrb[4].mxu1 %vm273_vm1, %v13770_v16  ;;  %v12830_v16 = vld [vmem:[#allocation9 + $0x448] ss:$16 sps:$4 sm:$0xff]  }
  0xaf   :  { %527 = vmatprep.mubr.bf16.mxu0 %v13610_v0  ;;  %588 = vmatprep.mubr.bf16.mxu1 %v13610_v0 }
  0xb0   :  { %694 = vmatpush1.bf16.msra.mxu0 %v12805_v58  ;;  %754 = vmatprep.subr.bf16.mxu1 %v12813_v59  ;;  %v12898_v58 = vld [vmem:[#allocation9 + $0x5ac] ss:$16 sps:$4 sm:$0xff]   ;;  %v12893_v59 = vld [vmem:[#allocation9 + $0x5a0] ss:$16 sps:$4 sm:$0xff]  }
  0xb1   :  { %755 = vmatpush1.bf16.msra.mxu1 %v12811_v60  ;;  %2178 = vmatprep.subr.bf16.mxu0 %v12817_v6  ;;  %v12896_v60 = vld [vmem:[#allocation9 + $0x5a8] ss:$16 sps:$4 sm:$0xff]   ;;  %v12913_v6 = vld [vmem:[#allocation9 + $0x604] ss:$16 sps:$4 sm:$0xff]  }
  0xb2   :  { %2300 = vmatprep.subr.bf16.mxu1 %v12820_v7  ;;  %v12916_v7 = vld [vmem:[#allocation9 + $0x60c] ss:$16 sps:$4 sm:$0xff]  }
  0xb6   :  { %11211 = vmatmul.mubr.msk.bf16.gmra.mrb[12].mxu0 %vm273_vm1, %v12804_v62  ;;  %11214 = vmatmul.mubr.msk.bf16.gmra.mrb[12].mxu1 %vm273_vm1, %v12804_v62  ;;  %v12904_v62 = vld [vmem:[#allocation9 + $0x5cc] ss:$16 sps:$4 sm:$0xff]  }
  0xb7   :  { %721 = vmatprep.mubr.bf16.mxu0 %v13610_v0  ;;  %782 = vmatprep.mubr.bf16.mxu1 %v13610_v0 }
  0xbe   :  { %11228 = vmatmul.mubr.msk.bf16.vlgmr.msra.gmra.mrb[0].mxu0 %vm273_vm1, %v617_v3  ;;  %11231 = vmatmul.mubr.msk.bf16.vlgmr.msra.gmra.mrb[0].mxu1 %vm273_vm1, %v617_v3  ;;  %v12910_v3 = vld [vmem:[#allocation9 + $0x5ec] ss:$16 sps:$4 sm:$0xff]  }
  0xbf   :  { %731 = vmatprep.mubr.bf16.mxu0 %v13610_v0  ;;  %792 = vmatprep.mubr.bf16.mxu1 %v13610_v0 }
  0xc0   :  { %2179 = vmatpush1.bf16.msra.mxu0 %v12815_v8  ;;  %2301 = vmatpush1.bf16.msra.mxu1 %v12818_v9 }
  0xc1   :  { %2180 = vmatprep.subr.bf16.mxu0 %v12823_v11  ;;  %2302 = vmatprep.subr.bf16.mxu1 %v12826_v13 }
  0xc4   :  { %2181 = vmatpush1.bf16.msra.mxu0 %v12821_v10  ;;  %2303 = vmatpush1.bf16.msra.mxu1 %v12824_v12 }
  0xc5   :  { %2182 = vmatprep.subr.bf16.mxu0 %v12829_v14 }
  0xc6   :  { %11229 = vmatmul.mubr.msk.bf16.gmra.mrb[4].mxu0 %vm273_vm1, %v619_v5  ;;  %11232 = vmatmul.mubr.msk.bf16.gmra.mrb[4].mxu1 %vm273_vm1, %v619_v5  ;;  %v12908_v5 = vld [vmem:[#allocation9 + $0x5e8] ss:$16 sps:$4 sm:$0xff]  }
  0xc7   :  { %741 = vmatprep.mubr.bf16.mxu0 %v13610_v0  ;;  %802 = vmatprep.mubr.bf16.mxu1 %v13610_v0  ;;  %v12832_v0 = vld [vmem:[#allocation9 + $0x44c] ss:$16 sps:$4 sm:$0xff]  }
  0xc8   :  { %2304 = vmatprep.subr.bf16.mxu1 %v12832_v0  ;;  %2183 = vmatpush1.bf16.msra.mxu0 %v12827_v15  ;;  %v833_v0 = vlaneseq }
  0xc9   :  { %2305 = vmatpush1.bf16.msra.mxu1 %v12830_v16  ;;  %2184 = vmatprep.subr.bf16.mxu0 %v12835_v17 }
  0xca   :  { %2306 = vmatprep.subr.bf16.mxu1 %v12838_v18  ;;  %v13840_v16 = vshrl.u32 %v833_v0, 7 }
  0xcc   :  { %2185 = vmatpush1.bf16.msra.mxu0 %v12833_v19 }
  0xcd   :  { %2307 = vmatpush1.bf16.msra.mxu1 %v12836_v20  ;;  %2186 = vmatprep.subr.bf16.mxu0 %v12841_v21 }
  0xce   :  { %11230 = vmatmul.mubr.msk.bf16.gmra.mrb[16].mxu0 %vm273_vm1, %v618_v4  ;;  %11233 = vmatmul.mubr.msk.bf16.gmra.mrb[16].mxu1 %vm273_vm1, %v618_v4  ;;  %v12905_v4 = vld [vmem:[#allocation9 + $0x5e0] ss:$16 sps:$4 sm:$0xff]   ;;  %vm1114_vm1 = vsmask.f32 6400 }
  0xcf   :  { %2308 = vmatprep.subr.bf16.mxu1 %v12844_v22  ;;  %vm14009_vm4 = vmand %vm1113_vm15, %vm1114_vm1 }
  0xd0   :  { %2187 = vmatpush1.bf16.msra.mxu0 %v12839_v23  ;;  %v13847_v23 = vsub.s32 0, %v13840_v16  ;;  %vm14027_vm5 = vmor %vm14009_vm4, %vm14000_vm3 }
  0xd1   :  { %2309 = vmatpush1.bf16.msra.mxu1 %v12842_v24  ;;  %2188 = vmatprep.subr.bf16.mxu0 %v12847_v25  ;;  %v13850_v24 = vsub.s32 2, %v13840_v16 }
  0xd2   :  { %2310 = vmatprep.subr.bf16.mxu1 %v12850_v26 }
  0xd4   :  { %2189 = vmatpush1.bf16.msra.mxu0 %v12845_v27 }
  0xd5   :  { %2311 = vmatpush1.bf16.msra.mxu1 %v12848_v28  ;;  %2190 = vmatprep.subr.bf16.mxu0 %v12853_v29  ;;  %v831_v29 = vld [vmem:[#allocation12] sm:$0xf] }
  0xd6   :  { %2312 = vmatprep.subr.bf16.mxu1 %v12856_v30  ;;  %v13857_v30 = vsub.s32 1, %v13840_v16 }
  0xd8   :  { %2191 = vmatpush1.bf16.msra.mxu0 %v12851_v31  ;;  %v13860_v31 = vsub.s32 3, %v13840_v16 }
  0xd9   :  { %2313 = vmatpush1.bf16.msra.mxu1 %v12854_v32  ;;  %2192 = vmatprep.subr.bf16.mxu0 %v12859_v33 }
  0xda   :  { %2314 = vmatprep.subr.bf16.mxu1 %v12862_v34  ;;  %v13863_v34 = vrot.slane %v831_v29, %v13847_v23 }
  0xdc   :  { %2193 = vmatpush1.bf16.msra.mxu0 %v12857_v35  ;;  %v13866_v35 = vrot.slane %v831_v29, %v13850_v24 }
  0xdd   :  { %2315 = vmatpush1.bf16.msra.mxu1 %v12860_v36  ;;  %2194 = vmatprep.subr.bf16.mxu0 %v12865_v37  ;;  %v13869_v36 = vrot.slane %v831_v29, %v13857_v30  ;;  %v13872_v37 = vrot.slane %v831_v29, %v13860_v31 }
  0xde   :  { %2316 = vmatprep.subr.bf16.mxu1 %v12868_v38 }
  0xe0   :  { %2195 = vmatpush1.bf16.msra.mxu0 %v12863_v39 }
  0xe1   :  { %2317 = vmatpush1.bf16.msra.mxu1 %v12866_v40  ;;  %2196 = vmatprep.subr.bf16.mxu0 %v12871_v41 }
  0xe2   :  { %2318 = vmatprep.subr.bf16.mxu1 %v12874_v42 }
  0xe4   :  { %2197 = vmatpush1.bf16.msra.mxu0 %v12869_v43 }
  0xe5   :  { %2319 = vmatpush1.bf16.msra.mxu1 %v12872_v44  ;;  %2198 = vmatprep.subr.bf16.mxu0 %v12877_v45 }
  0xe6   :  { %2320 = vmatprep.subr.bf16.mxu1 %v12880_v48 }
  0xe8   :  { %2199 = vmatpush1.bf16.msra.mxu0 %v12875_v46 }
  0xe9   :  { %2321 = vmatpush1.bf16.msra.mxu1 %v12878_v47  ;;  %2200 = vmatprep.subr.bf16.mxu0 %v12883_v49 }
  0xea   :  { %2322 = vmatprep.subr.bf16.mxu1 %v12886_v50 }
  0xec   :  { %2201 = vmatpush1.bf16.msra.mxu0 %v12881_v51 }
  0xed   :  { %2323 = vmatpush1.bf16.msra.mxu1 %v12884_v52  ;;  %2202 = vmatprep.subr.bf16.mxu0 %v12889_v53 }
  0xee   :  { %2324 = vmatprep.subr.bf16.mxu1 %v12892_v54 }
  0xf0   :  { %2203 = vmatpush1.bf16.msra.mxu0 %v12887_v55 }
  0xf1   :  { %2325 = vmatpush1.bf16.msra.mxu1 %v12890_v56  ;;  %2204 = vmatprep.subr.bf16.mxu0 %v12895_v57 }
  0xf2   :  { %2326 = vmatprep.subr.bf16.mxu1 %v12898_v58 }
  0xf4   :  { %2205 = vmatpush1.bf16.msra.mxu0 %v12893_v59 }
  0xf5   :  { %2327 = vmatpush1.bf16.msra.mxu1 %v12896_v60  ;;  %2206 = vmatprep.subr.bf16.mxu0 %v12901_v61 }
  0xf6   :  { %2328 = vmatprep.subr.bf16.mxu1 %v12904_v62 }
  0xf8   :  { %2207 = vmatpush1.bf16.msra.mxu0 %v12899_v63 }
  0xf9   :  { %2329 = vmatpush1.bf16.msra.mxu1 %v12902_v1  ;;  %2208 = vmatprep.subr.bf16.mxu0 %v12907_v2 }
  0xfa   :  { %2330 = vmatprep.subr.bf16.mxu1 %v12910_v3 }
  0xfc   :  { %2209 = vmatpush1.bf16.msra.mxu0 %v12905_v4 }
  0xfd   :  { %2331 = vmatpush1.bf16.msra.mxu1 %v12908_v5  ;;  %2239 = vmatprep.subr.bf16.mxu0 %v12913_v6 }
  0xfe   :  { %2361 = vmatprep.subr.bf16.mxu1 %v12916_v7 }
 0x10c   :  { %v13874_v38 = vpop.permute.xlu0 %895 }
 0x110   :  { %v13884_v59 = vpop.permute.xlu0 %900 }
 0x171   :  { %v337_v8 = vpop.f32.mrb[8].mxu0  ;;  %v398_v9 = vpop.f32.mrb[8].mxu1 }
 0x172   :  { %v339_v10 = vpop.f32.mrb[9].mxu0  ;;  %v400_v11 = vpop.f32.mrb[9].mxu1 }
 0x173   :  { %v341_v12 = vpop.f32.mrb[10].mxu0  ;;  %v402_v13 = vpop.f32.mrb[10].mxu1 }
 0x174   :  { %v342_v14 = vpop.f32.mrb[11].mxu0  ;;  %v403_v15 = vpop.f32.mrb[11].mxu1 }
 0x189   :  { %v529_v17 = vpop.f32.mrb[12].mxu0  ;;  %v590_v18 = vpop.f32.mrb[12].mxu1 }
 0x18a   :  { %v13842_v19 = vadd.f32 %v529_v17, %v337_v8  ;;  %v531_v20 = vpop.f32.mrb[13].mxu0  ;;  %v13844_v21 = vadd.f32 %v590_v18, %v398_v9  ;;  %v592_v22 = vpop.f32.mrb[13].mxu1 }
 0x18b   :  { %v13852_v25 = vadd.f32 %v531_v20, %v339_v10  ;;  %v533_v26 = vpop.f32.mrb[14].mxu0  ;;  %v13854_v27 = vadd.f32 %v592_v22, %v400_v11  ;;  %v594_v28 = vpop.f32.mrb[14].mxu1 }
 0x18c   :  { %v534_v32 = vpop.f32.mrb[15].mxu0  ;;  %v595_v33 = vpop.f32.mrb[15].mxu1 }
 0x191   :  { %v723_v39 = vpop.f32.mrb[0].mxu0  ;;  %v784_v40 = vpop.f32.mrb[0].mxu1 }
 0x192   :  { %v853_v41 = vadd.f32 %v13863_v34, %v723_v39  ;;  %v855_v42 = vadd.f32 %v13866_v35, %v784_v40  ;;  %v725_v43 = vpop.f32.mrb[1].mxu0  ;;  %v786_v44 = vpop.f32.mrb[1].mxu1 }
 0x193   :  { %v854_v45 = vadd.f32 %v13869_v36, %v725_v43  ;;  %v856_v46 = vadd.f32 %v13872_v37, %v786_v44  ;;  %v727_v47 = vpop.f32.mrb[2].mxu0  ;;  %v788_v48 = vpop.f32.mrb[2].mxu1 }
 0x194   :  { %v873_v49 = vmax.f32 %v853_v41, 0.0  ;;  %v875_v50 = vmax.f32 %v855_v42, 0.0  ;;  %v857_v51 = vadd.f32 %v13863_v34, %v727_v47  ;;  %v859_v52 = vadd.f32 %v13866_v35, %v788_v48  ;;  %v729_v53 = vpop.f32.mrb[3].mxu0  ;;  %v790_v54 = vpop.f32.mrb[3].mxu1 }
 0x195   :  { %v874_v55 = vmax.f32 %v854_v45, 0.0  ;;  %v876_v56 = vmax.f32 %v856_v46, 0.0  ;;  %v858_v57 = vadd.f32 %v13869_v36, %v729_v53  ;;  %v860_v58 = vadd.f32 %v13872_v37, %v790_v54 }
 0x196   :  { %v877_v60 = vmax.f32 %v857_v51, 0.0  ;;  %v879_v61 = vmax.f32 %v859_v52, 0.0  ;;  %v918_v62 = vmul.f32 %v13874_v38, %v873_v49  ;;  %v920_v63 = vmul.f32 %v13874_v38, %v875_v50  ;;  %v13918_v51 = vpop.permute.xlu1 %905 }
 0x197   :  { %v919_v1 = vmul.f32 %v13874_v38, %v874_v55  ;;  %v921_v2 = vmul.f32 %v13874_v38, %v876_v56  ;;  %v878_v3 = vmax.f32 %v858_v57, 0.0  ;;  %v880_v4 = vmax.f32 %v860_v58, 0.0 }
 0x198   :  { %v922_v5 = vmul.f32 %v13884_v59, %v877_v60  ;;  %v924_v6 = vmul.f32 %v13884_v59, %v879_v61 }
 0x199   :  { %v12446_v7 = vpack.c.bf16 %v919_v1, %v918_v62  ;;  %v12447_v8 = vpack.c.bf16 %v921_v2, %v920_v63  ;;  %v923_v9 = vmul.f32 %v13884_v59, %v878_v3  ;;  %v925_v10 = vmul.f32 %v13884_v59, %v880_v4  ;;  %v733_v11 = vpop.f32.mrb[4].mxu0  ;;  %v794_v12 = vpop.f32.mrb[4].mxu1 }
 0x19a   :  { %v861_v14 = vadd.f32 %v13863_v34, %v733_v11  ;;  %v863_v15 = vadd.f32 %v13866_v35, %v794_v12  ;;  %v735_v0 = vpop.f32.mrb[5].mxu0  ;;  %v796_v17 = vpop.f32.mrb[5].mxu1 }
 0x19b   :  { %v996_v20 = vshrl.u32 %v12446_v7, 16  ;;  %v999_v22 = vshll.u32 %v12446_v7, 16  ;;  %v1003_v26 = vshrl.u32 %v12447_v8, 16  ;;  %v1006_v28 = vshll.u32 %v12447_v8, 16  ;;  %v737_v29 = vpop.f32.mrb[6].mxu0  ;;  %v798_v32 = vpop.f32.mrb[6].mxu1 }
 0x19c   :  { %v12448_v33 = vpack.c.bf16 %v923_v9, %v922_v5  ;;  %v12449_v39 = vpack.c.bf16 %v925_v10, %v924_v6  ;;  %v881_v40 = vmax.f32 %v861_v14, 0.0  ;;  %v883_v41 = vmax.f32 %v863_v15, 0.0  ;;  %v739_v42 = vpop.f32.mrb[7].mxu0  ;;  %v800_v43 = vpop.f32.mrb[7].mxu1 }
 0x19d   :  { %v998_v44 = vrot.slane %v996_v20, 7  ;;  %v1005_v45 = vrot.slane %v1003_v26, 7  ;;  %v862_v46 = vadd.f32 %v13869_v36, %v735_v0  ;;  %v864_v47 = vadd.f32 %v13872_v37, %v796_v17 }
 0x19e   :  { %v1014_v49 = vshll.u32 %v12448_v33, 16  ;;  %v1023_v50 = vshll.u32 %v12449_v39, 16  ;;  %v1011_v52 = vshrl.u32 %v12448_v33, 16  ;;  %v926_v56 = vmul.f32 %v13918_v51, %v881_v40 }
 0x19f   :  { %v1001_v53 = vor.u32 %v999_v22, %v998_v44  ;;  %v1008_v54 = vor.u32 %v1006_v28, %v1005_v45  ;;  %v1009_v55 = vrot.slane %v998_v44, 4  ;;  %v882_v57 = vmax.f32 %v862_v46, 0.0 }
 0x1a0   :  { %v13921_v58 = vrot.slane %v1011_v52, 7  ;;  %v884_v60 = vmax.f32 %v864_v47, 0.0  ;;  %v928_v61 = vmul.f32 %v13918_v51, %v883_v41  ;;  %v1020_v2 = vshrl.u32 %v12449_v39, 16 }
 0x1a1   :  { %v13926_v62 = vsel %vm13914_vm10, %v1001_v53, 0  ;;  %v13930_v63 = vsel %vm13914_vm10, %v1008_v54, 0  ;;  %v865_v3 = vadd.f32 %v13863_v34, %v737_v29  ;;  %v743_v4 = vpop.f32.mrb[16].mxu0  ;;  %v804_v5 = vpop.f32.mrb[16].mxu1  ;;  %v1018_v6 = vrot.slane %v1005_v45, 4 }
 0x1a2   :  { %1100 = vst [vmem:[#allocation2] sm:$0xff] %v13926_v62  ;;  %1103 = vst [vmem:[#allocation2 + $0x8] sm:$0xff] %v13930_v63  ;;  %v927_v7 = vmul.f32 %v13918_v51, %v882_v57  ;;  %v1016_v8 = vor.u32 %v1014_v49, %v13921_v58  ;;  %v929_v9 = vmul.f32 %v13918_v51, %v884_v60  ;;  %v745_v10 = vpop.f32.mrb[17].mxu0  ;;  %v806_v11 = vpop.f32.mrb[17].mxu1  ;;  %v1022_v12 = vrot.slane %v1020_v2, 7 }
 0x1a3   :  { %v885_v13 = vmax.f32 %v865_v3, 0.0  ;;  %v867_v14 = vadd.f32 %v13866_v35, %v798_v32  ;;  %v866_v15 = vadd.f32 %v13869_v36, %v739_v42  ;;  %v747_v0 = vpop.f32.mrb[18].mxu0  ;;  %v808_v17 = vpop.f32.mrb[18].mxu1  ;;  %v868_v26 = vadd.f32 %v13872_v37, %v800_v43 }
 0x1a4   :  { %v12450_v18 = vpack.c.bf16 %v927_v7, %v926_v56  ;;  %v1017_v20 = vsel %vm13933_vm12, %v1009_v55, %v1016_v8  ;;  %v12451_v22 = vpack.c.bf16 %v929_v9, %v928_v61  ;;  %v748_v28 = vpop.f32.mrb[19].mxu0  ;;  %v809_v29 = vpop.f32.mrb[19].mxu1  ;;  %v1025_v33 = vor.u32 %v1023_v50, %v1022_v12 }
 0x1a5   :  { %1104 = vst [vmem:[#allocation2 + $0x10] sm:$0xff] %v1017_v20  ;;  %v887_v39 = vmax.f32 %v867_v14, 0.0  ;;  %v886_v40 = vmax.f32 %v866_v15, 0.0  ;;  %v13948_v42 = vpop.permute.xlu1 %910  ;;  %v888_v47 = vmax.f32 %v868_v26, 0.0  ;;  %v827_v54 = vadd.f32 %v743_v4, %v13842_v19  ;;  %v13972_v14 = vpop.permute.xlu0 %915 }
 0x1a6   :  { %v1029_v41 = vshrl.u32 %v12450_v18, 16  ;;  %v1032_v44 = vshll.u32 %v12450_v18, 16  ;;  %v1038_v32 = vshrl.u32 %v12451_v22, 16  ;;  %v1041_v45 = vshll.u32 %v12451_v22, 16 }
 0x1a7   :  { %v13952_v46 = vsel %vm13933_vm12, %v1018_v6, %v1025_v33  ;;  %v930_v49 = vmul.f32 %v13948_v42, %v885_v13  ;;  %v931_v43 = vmul.f32 %v13948_v42, %v886_v40  ;;  %v932_v50 = vmul.f32 %v13948_v42, %v887_v39 }
 0x1a8   :  { %v1031_v52 = vrot.slane %v1029_v41, 7  ;;  %v1040_v53 = vrot.slane %v1038_v32, 7  ;;  %1105 = vst [vmem:[#allocation2 + $0x18] sm:$0xff] %v13952_v46  ;;  %v933_v55 = vmul.f32 %v13948_v42, %v888_v47  ;;  %v829_v57 = vadd.f32 %v804_v5, %v13844_v21 }
 0x1a9   :  { %v12452_v56 = vpack.c.bf16 %v931_v43, %v930_v49  ;;  %v828_v60 = vadd.f32 %v745_v10, %v13852_v25  ;;  %v1027_v61 = vrot.slane %v13921_v58, 4  ;;  %v1036_v3 = vrot.slane %v1022_v12, 4 }
 0x1aa   :  { %v1034_v2 = vor.u32 %v1032_v44, %v1031_v52  ;;  %v1043_v6 = vor.u32 %v1041_v45, %v1040_v53  ;;  %v1045_v7 = vrot.slane %v1031_v52, 4  ;;  %v12453_v8 = vpack.c.bf16 %v933_v55, %v932_v50 }
 0x1ab   :  { %v1047_v9 = vshrl.u32 %v12452_v56, 16  ;;  %v869_v19 = vadd.f32 %v13863_v34, %v827_v54  ;;  %v871_v25 = vadd.f32 %v13866_v35, %v829_v57  ;;  %v870_v58 = vadd.f32 %v13869_v36, %v828_v60 }
 0x1ac   :  { %v1035_v4 = vsel %vm13933_vm12, %v1027_v61, %v1034_v2  ;;  %v13968_v21 = vsel %vm13933_vm12, %v1036_v3, %v1043_v6  ;;  %v1050_v10 = vshll.u32 %v12452_v56, 16  ;;  %v1056_v12 = vshrl.u32 %v12453_v8, 16  ;;  %v1117_v3 = vld [vmem:[#allocation2 + $0x40] sm:$0x77] }
 0x1ad   :  { %v1049_v5 = vrot.slane %v1047_v9, 7  ;;  %v889_v13 = vmax.f32 %v869_v19, 0.0  ;;  %v891_v15 = vmax.f32 %v871_v25, 0.0  ;;  %v890_v0 = vmax.f32 %v870_v58, 0.0 }
 0x1ae   :  { %v830_v34 = vadd.f32 %v806_v11, %v13854_v27  ;;  %v13976_v17 = vcombine.low %v13926_v62, %v1017_v20  ;;  %v13978_v22 = vrot.slane %v1056_v12, 7  ;;  %v1059_v26 = vshll.u32 %v12453_v8, 16  ;;  %v12914_v12 = vld [vmem:[#allocation9 + $0x608] ss:$16 sps:$4 sm:$0xff]  }
 0x1af   :  { %v1052_v18 = vor.u32 %v1050_v10, %v1049_v5  ;;  %v934_v35 = vmul.f32 %v13972_v14, %v889_v13  ;;  %v935_v36 = vmul.f32 %v13972_v14, %v890_v0  ;;  %v13984_v29 = vcombine.high %v13926_v62, %v1017_v20  ;;  %v12911_v10 = vld [vmem:[#allocation9 + $0x600] ss:$16 sps:$4 sm:$0xff]  }
 0x1b0   :  { %v872_v28 = vadd.f32 %v13872_v37, %v830_v34  ;;  %v1054_v33 = vrot.slane %v1040_v53, 4  ;;  %v1061_v11 = vor.u32 %v1059_v26, %v13978_v22  ;;  %v936_v39 = vmul.f32 %v13972_v14, %v891_v15  ;;  %v12922_v34 = vld [vmem:[#allocation9 + $0x62c] ss:$16 sps:$4 sm:$0xff]   ;;  %v12934_v53 = vld [vmem:[#allocation9 + $0x668] ss:$16 sps:$4 sm:$0xff]  }
 0x1b1   :  { %v1053_v27 = vsel %vm13933_vm12, %v1045_v7, %v1052_v18  ;;  %v12454_v40 = vpack.c.bf16 %v935_v36, %v934_v35  ;;  %v1449_v62 = vshll.u32 %v13984_v29, 16  ;;  %v1437_v20 = vshll.u32 %v13976_v17, 16 }
 0x1b2   :  { %v892_v41 = vmax.f32 %v872_v28, 0.0  ;;  %v13990_v44 = vcombine.low %v1035_v4, %v1053_v27  ;;  %v13992_v32 = vcombine.high %v1035_v4, %v1053_v27  ;;  %v1062_v37 = vsel %vm13933_vm12, %v1054_v33, %v1061_v11  ;;  %v1120_v27 = vld [vmem:[#allocation2 + $0x48] sm:$0x77]  ;;  %v12917_v11 = vld [vmem:[#allocation9 + $0x620] ss:$16 sps:$4 sm:$0xff]  }
 0x1b3   :  { %v1065_v45 = vshrl.u32 %v12454_v40, 16  ;;  %v1435_v52 = vshrl.u32 %v13976_v17, 16  ;;  %v1447_v50 = vshrl.u32 %v13984_v29, 16  ;;  %v1451_v54 = vrot.slane %v1449_v62, 1  ;;  %v12923_v62 = vld [vmem:[#allocation9 + $0x640] ss:$16 sps:$4 sm:$0xff]  }
 0x1b4   :  { %v937_v49 = vmul.f32 %v13972_v14, %v892_v41  ;;  %v1454_v43 = vshll.u32 %v13992_v32, 16  ;;  %v1439_v55 = vrot.slane %v1437_v20, 1  ;;  %v1442_v56 = vshll.u32 %v13990_v44, 16  ;;  %v12928_v41 = vld [vmem:[#allocation9 + $0x64c] ss:$16 sps:$4 sm:$0xff]  }
 0x1b5   :  { %v1067_v57 = vrot.slane %v1065_v45, 7  ;;  %v1068_v60 = vshll.u32 %v12454_v40, 16  ;;  %v1452_v6 = vor.u32 %v1451_v54, %v1447_v50  ;;  %v14021_v9 = vcombine.low %v13930_v63, %v13952_v46  ;;  %v12925_v40 = vld [vmem:[#allocation9 + $0x644] ss:$16 sps:$4 sm:$0xff]   ;;  %v12936_v45 = vld [vmem:[#allocation9 + $0x66c] ss:$16 sps:$4 sm:$0xff]  }
 0x1b6   :  { %v12455_v61 = vpack.c.bf16 %v937_v49, %v936_v39  ;;  %v14015_v2 = vrot.slane %v1454_v43, 1  ;;  %v1440_v7 = vor.u32 %v1439_v55, %v1435_v52  ;;  %v14017_v8 = vrot.slane %v1442_v56, 1  ;;  %v12920_v39 = vld [vmem:[#allocation9 + $0x628] ss:$16 sps:$4 sm:$0xff]   ;;  %v12933_v20 = vld [vmem:[#allocation9 + $0x664] ss:$16 sps:$4 sm:$0xff]  }
 0x1b7   :  { %v1063_v19 = vrot.slane %v1049_v5, 4  ;;  %v1070_v4 = vor.u32 %v1068_v60, %v1067_v57  ;;  %v12919_v5 = vld [vmem:[#allocation9 + $0x624] ss:$16 sps:$4 sm:$0xff]   ;;  %v14037_v18 = vcombine.high %v13930_v63, %v13952_v46  ;;  %v14042_v36 = vcombine.low %v13968_v21, %v1062_v37  ;;  %v12931_v52 = vld [vmem:[#allocation9 + $0x660] ss:$16 sps:$4 sm:$0xff]  }
 0x1b8   :  { %v1074_v58 = vshrl.u32 %v12455_v61, 16  ;;  %v1077_v13 = vshll.u32 %v12455_v61, 16  ;;  %v1457_v15 = vsel %vm189_vm0, %v1452_v6, %v14015_v2  ;;  %v1445_v0 = vsel %vm189_vm0, %v1440_v7, %v14017_v8  ;;  %v12939_v54 = vld [vmem:[#allocation9 + $0x684] ss:$16 sps:$4 sm:$0xff]   ;;  %v12942_v55 = vld [vmem:[#allocation9 + $0x68c] ss:$16 sps:$4 sm:$0xff]  }
 0x1b9   :  { %v1071_v26 = vsel %vm13933_vm12, %v1063_v19, %v1070_v4  ;;  %2210 = vmatprep.mubr.bf16.mxu0 %v1457_v15  ;;  %2332 = vmatprep.mubr.bf16.mxu1 %v1457_v15  ;;  %v14045_v28 = vcombine.high %v13968_v21, %v1062_v37  ;;  %v1072_v63 = vrot.slane %v13978_v22, 4  ;;  %v12926_v22 = vld [vmem:[#allocation9 + $0x648] ss:$16 sps:$4 sm:$0xff]   ;;  %v1490_v50 = vshrl.u32 %v13992_v32, 16 }
 0x1ba   :  { %v1076_v35 = vrot.slane %v1074_v58, 7  ;;  %v1118_v33 = vsel %vm14027_vm5, %v1071_v26, %v1117_v3  ;;  %2211 = vmatmul.mubr.bf16.vlgmr.msra.gmra.mrb[20].mxu0 %v1445_v0  ;;  %2333 = vmatmul.mubr.bf16.vlgmr.msra.gmra.mrb[20].mxu1 %v1445_v0  ;;  %v1482_v57 = vshrl.u32 %v13990_v44, 16  ;;  %v1473_v15 = vshll.u32 %v14037_v18, 16  ;;  %v12946_v26 = vld [vmem:[#allocation9 + $0x6a8] ss:$16 sps:$4 sm:$0xff]  }
 0x1bb   :  { %1119 = vst [vmem:[#allocation2 + $0x40] sm:$0x77] %v1118_v33  ;;  %2240 = vmatpush1.bf16.msra.mxu0 %v12911_v10  ;;  %2362 = vmatpush1.bf16.msra.mxu1 %v12914_v12  ;;  %v1492_v61 = vor.u32 %v1490_v50, %v14015_v2  ;;  %v12937_v12 = vld [vmem:[#allocation9 + $0x680] ss:$16 sps:$4 sm:$0xff]   ;;  %v12945_v2 = vld [vmem:[#allocation9 + $0x6a4] ss:$16 sps:$4 sm:$0xff]  }
 0x1bc   :  { %v1079_v46 = vor.u32 %v1077_v13, %v1076_v35  ;;  %2241 = vmatprep.subr.bf16.mxu0 %v12919_v5  ;;  %2363 = vmatprep.subr.bf16.mxu1 %v12922_v34  ;;  %v1484_v6 = vor.u32 %v1482_v57, %v14017_v8  ;;  %v12940_v13 = vld [vmem:[#allocation9 + $0x688] ss:$16 sps:$4 sm:$0xff]   ;;  %v12948_v8 = vld [vmem:[#allocation9 + $0x6ac] ss:$16 sps:$4 sm:$0xff]   ;;  %v1478_v0 = vshll.u32 %v14045_v28, 16  ;;  %v1475_v5 = vrot.slane %v1473_v15, 1 }
 0x1bd   :  { %v12943_v34 = vld [vmem:[#allocation9 + $0x6a0] ss:$16 sps:$4 sm:$0xff]   ;;  %v12951_v35 = vld [vmem:[#allocation9 + $0x6c4] ss:$16 sps:$4 sm:$0xff]   ;;  %v12954_v33 = vld [vmem:[#allocation9 + $0x6cc] ss:$16 sps:$4 sm:$0xff]  }
 0x1be   :  { %v1080_v21 = vsel %vm13933_vm12, %v1072_v63, %v1079_v46  ;;  %v1471_v63 = vshrl.u32 %v14037_v18, 16  ;;  %v14071_v46 = vrot.slane %v1478_v0, 1  ;;  %v12969_v50 = vld [vmem:[#allocation9 + $0x724] ss:$16 sps:$4 sm:$0xff]   ;;  %v12994_v0 = vld [vmem:[#allocation9 + $0x7a8] ss:$16 sps:$4 sm:$0xff]  }
 0x1bf   :  { %v1121_v37 = vsel %vm14027_vm5, %v1080_v21, %v1120_v27  ;;  %2242 = vmatpush1.bf16.msra.mxu0 %v12917_v11  ;;  %2364 = vmatpush1.bf16.msra.mxu1 %v12920_v39  ;;  %v12957_v21 = vld [vmem:[#allocation9 + $0x6e4] ss:$16 sps:$4 sm:$0xff]  }
 0x1c0   :  { %1122 = vst [vmem:[#allocation2 + $0x48] sm:$0x77] %v1121_v37  ;;  %2243 = vmatprep.subr.bf16.mxu0 %v12925_v40  ;;  %2365 = vmatprep.subr.bf16.mxu1 %v12928_v41  ;;  %v1476_v39 = vor.u32 %v1475_v5, %v1471_v63  ;;  %v12949_v40 = vld [vmem:[#allocation9 + $0x6c0] ss:$16 sps:$4 sm:$0xff]   ;;  %v12952_v41 = vld [vmem:[#allocation9 + $0x6c8] ss:$16 sps:$4 sm:$0xff]  }
 0x1c1   :  { %v12960_v37 = vld [vmem:[#allocation9 + $0x6ec] ss:$16 sps:$4 sm:$0xff]   ;;  %v12975_v57 = vld [vmem:[#allocation9 + $0x744] ss:$16 sps:$4 sm:$0xff]   ;;  %v1461_v63 = vshll.u32 %v14021_v9, 16 }
 0x1c2   :  { %v1261_v47 = vld [vmem:[#allocation2 + $0x40] sm:$0x77]  ;;  %v12993_v15 = vld [vmem:[#allocation9 + $0x7a4] ss:$16 sps:$4 sm:$0xff]  }
 0x1c3   :  { %v14054_v49 = vcombine.high %v1261_v47, %v1261_v47  ;;  %2244 = vmatpush1.bf16.msra.mxu0 %v12923_v62  ;;  %2366 = vmatpush1.bf16.msra.mxu1 %v12926_v22  ;;  %v14056_v43 = vcombine.low %v1261_v47, %v1261_v47  ;;  %v1481_v62 = vsel %vm189_vm0, %v1476_v39, %v14071_v46  ;;  %v12955_v22 = vld [vmem:[#allocation9 + $0x6e0] ss:$16 sps:$4 sm:$0xff]   ;;  %v12966_v47 = vld [vmem:[#allocation9 + $0x70c] ss:$16 sps:$4 sm:$0xff]  }
 0x1c4   :  { %2245 = vmatprep.subr.bf16.mxu0 %v12933_v20  ;;  %2367 = vmatprep.subr.bf16.mxu1 %v12936_v45  ;;  %v12958_v20 = vld [vmem:[#allocation9 + $0x6e8] ss:$16 sps:$4 sm:$0xff]   ;;  %v12963_v45 = vld [vmem:[#allocation9 + $0x704] ss:$16 sps:$4 sm:$0xff]   ;;  %v13008_v39 = vld [vmem:[#allocation9 + $0x7ec] ss:$16 sps:$4 sm:$0xff]  }
 0x1c5   :  { %v1494_v56 = vshll.u32 %v14054_v49, 16  ;;  %v1486_v60 = vshll.u32 %v14056_v43, 16  ;;  %v1517_v19 = vshrl.u32 %v14054_v49, 16  ;;  %v1514_v27 = vshrl.u32 %v14056_v43, 16 }
 0x1c7   :  { %v1496_v3 = vrot.slane %v1494_v56, 1  ;;  %v1488_v7 = vrot.slane %v1486_v60, 1  ;;  %2246 = vmatpush1.bf16.msra.mxu0 %v12931_v52  ;;  %2368 = vmatpush1.bf16.msra.mxu1 %v12934_v53  ;;  %v12961_v52 = vld [vmem:[#allocation9 + $0x700] ss:$16 sps:$4 sm:$0xff]   ;;  %v12964_v53 = vld [vmem:[#allocation9 + $0x708] ss:$16 sps:$4 sm:$0xff]  }
 0x1c8   :  { %2247 = vmatprep.subr.bf16.mxu0 %v12939_v54  ;;  %2369 = vmatprep.subr.bf16.mxu1 %v12942_v55  ;;  %v12972_v54 = vld [vmem:[#allocation9 + $0x72c] ss:$16 sps:$4 sm:$0xff]   ;;  %v12967_v55 = vld [vmem:[#allocation9 + $0x720] ss:$16 sps:$4 sm:$0xff]   ;;  %v12970_v56 = vld [vmem:[#allocation9 + $0x728] ss:$16 sps:$4 sm:$0xff]  }
 0x1c9   :  { %v1497_v4 = vsel %vm189_vm0, %v1492_v61, %v1496_v3  ;;  %v1489_v58 = vsel %vm189_vm0, %v1484_v6, %v1488_v7  ;;  %v1519_v10 = vor.u32 %v1517_v19, %v1496_v3  ;;  %v1516_v11 = vor.u32 %v1514_v27, %v1488_v7  ;;  %v12978_v60 = vld [vmem:[#allocation9 + $0x74c] ss:$16 sps:$4 sm:$0xff]   ;;  %v12973_v61 = vld [vmem:[#allocation9 + $0x740] ss:$16 sps:$4 sm:$0xff]   ;;  %v12976_v3 = vld [vmem:[#allocation9 + $0x748] ss:$16 sps:$4 sm:$0xff]  }
 0x1ca   :  { %2220 = vmatprep.mubr.bf16.mxu0 %v1497_v4  ;;  %2342 = vmatprep.mubr.bf16.mxu1 %v1497_v4  ;;  %v12981_v6 = vld [vmem:[#allocation9 + $0x764] ss:$16 sps:$4 sm:$0xff]   ;;  %v12984_v7 = vld [vmem:[#allocation9 + $0x76c] ss:$16 sps:$4 sm:$0xff]   ;;  %v12979_v19 = vld [vmem:[#allocation9 + $0x760] ss:$16 sps:$4 sm:$0xff]  }
 0x1cb   :  { %2221 = vmatmul.mubr.bf16.gmra.mrb[24].mxu0 %v1489_v58  ;;  %2343 = vmatmul.mubr.bf16.gmra.mrb[24].mxu1 %v1489_v58  ;;  %v12982_v4 = vld [vmem:[#allocation9 + $0x768] ss:$16 sps:$4 sm:$0xff]   ;;  %v12987_v58 = vld [vmem:[#allocation9 + $0x784] ss:$16 sps:$4 sm:$0xff]  }
 0x1cc   :  { %2230 = vmatprep.mubr.bf16.mxu0 %v1519_v10  ;;  %2352 = vmatprep.mubr.bf16.mxu1 %v1519_v10  ;;  %v12990_v10 = vld [vmem:[#allocation9 + $0x78c] ss:$16 sps:$4 sm:$0xff]   ;;  %v1262_v5 = vld [vmem:[#allocation2 + $0x48] sm:$0x77] }
 0x1cd   :  { %2248 = vmatpush1.bf16.msra.mxu0 %v12937_v12  ;;  %2370 = vmatpush1.bf16.msra.mxu1 %v12940_v13  ;;  %v12985_v12 = vld [vmem:[#allocation9 + $0x780] ss:$16 sps:$4 sm:$0xff]   ;;  %v12988_v13 = vld [vmem:[#allocation9 + $0x788] ss:$16 sps:$4 sm:$0xff]  }
 0x1ce   :  { %2249 = vmatprep.subr.bf16.mxu0 %v12945_v2  ;;  %2371 = vmatprep.subr.bf16.mxu1 %v12948_v8  ;;  %v12996_v2 = vld [vmem:[#allocation9 + $0x7ac] ss:$16 sps:$4 sm:$0xff]   ;;  %v12991_v8 = vld [vmem:[#allocation9 + $0x7a0] ss:$16 sps:$4 sm:$0xff]   ;;  %v13000_v27 = vld [vmem:[#allocation9 + $0x7c8] ss:$16 sps:$4 sm:$0xff]  }
 0x1d1   :  { %2250 = vmatpush1.bf16.msra.mxu0 %v12943_v34  ;;  %2372 = vmatpush1.bf16.msra.mxu1 %v12946_v26  ;;  %v12999_v34 = vld [vmem:[#allocation9 + $0x7c4] ss:$16 sps:$4 sm:$0xff]   ;;  %v13002_v26 = vld [vmem:[#allocation9 + $0x7cc] ss:$16 sps:$4 sm:$0xff]  }
 0x1d2   :  { %2251 = vmatprep.subr.bf16.mxu0 %v12951_v35  ;;  %2373 = vmatprep.subr.bf16.mxu1 %v12954_v33  ;;  %v14075_v35 = vcombine.high %v1262_v5, %v1262_v5  ;;  %v12997_v33 = vld [vmem:[#allocation9 + $0x7c0] ss:$16 sps:$4 sm:$0xff]  }
 0x1d3   :  { %2231 = vmatmul.mubr.bf16.gmra.mrb[28].mxu0 %v1516_v11  ;;  %2353 = vmatmul.mubr.bf16.gmra.mrb[28].mxu1 %v1516_v11  ;;  %v13005_v11 = vld [vmem:[#allocation9 + $0x7e4] ss:$16 sps:$4 sm:$0xff]  }
 0x1d4   :  { %2271 = vmatprep.mubr.bf16.mxu0 %v1481_v62  ;;  %2393 = vmatprep.mubr.bf16.mxu1 %v1481_v62  ;;  %v1463_v62 = vrot.slane %v1461_v63, 1  ;;  %v13037_v63 = vld [vmem:[#allocation9 + $0x84] ss:$16 sps:$4 sm:$0xff]  }
 0x1d5   :  { %2252 = vmatpush1.bf16.msra.mxu0 %v12949_v40  ;;  %2374 = vmatpush1.bf16.msra.mxu1 %v12952_v41  ;;  %v1466_v40 = vshll.u32 %v14042_v36, 16  ;;  %v1510_v41 = vshll.u32 %v14075_v35, 16 }
 0x1d6   :  { %2253 = vmatprep.subr.bf16.mxu0 %v12957_v21  ;;  %2375 = vmatprep.subr.bf16.mxu1 %v12960_v37  ;;  %v13003_v21 = vld [vmem:[#allocation9 + $0x7e0] ss:$16 sps:$4 sm:$0xff]   ;;  %v13006_v37 = vld [vmem:[#allocation9 + $0x7e8] ss:$16 sps:$4 sm:$0xff]  }
 0x1d9   :  { %2254 = vmatpush1.bf16.msra.mxu0 %v12955_v22  ;;  %2376 = vmatpush1.bf16.msra.mxu1 %v12958_v20  ;;  %v13011_v22 = vld [vmem:[#allocation9 + $0x4] ss:$16 sps:$4 sm:$0xff]   ;;  %v13014_v20 = vld [vmem:[#allocation9 + $0xc] ss:$16 sps:$4 sm:$0xff]  }
 0x1da   :  { %2255 = vmatprep.subr.bf16.mxu0 %v12963_v45  ;;  %2377 = vmatprep.subr.bf16.mxu1 %v12966_v47  ;;  %v1459_v45 = vshrl.u32 %v14021_v9, 16  ;;  %v1468_v47 = vrot.slane %v1466_v40, 1 }
 0x1dd   :  { %2256 = vmatpush1.bf16.msra.mxu0 %v12961_v52  ;;  %2378 = vmatpush1.bf16.msra.mxu1 %v12964_v53  ;;  %v14081_v52 = vcombine.low %v1262_v5, %v1262_v5  ;;  %v1506_v53 = vshrl.u32 %v14045_v28, 16 }
 0x1de   :  { %2257 = vmatprep.subr.bf16.mxu0 %v12969_v50  ;;  %2379 = vmatprep.subr.bf16.mxu1 %v12972_v54  ;;  %v1512_v50 = vrot.slane %v1510_v41, 1  ;;  %v1464_v54 = vor.u32 %v1463_v62, %v1459_v45  ;;  %v13035_v41 = vld [vmem:[#allocation9 + $0x80] ss:$16 sps:$4 sm:$0xff]   ;;  %v13046_v62 = vld [vmem:[#allocation9 + $0xac] ss:$16 sps:$4 sm:$0xff]  }
 0x1df   :  { %v13049_v45 = vld [vmem:[#allocation9 + $0xc4] ss:$16 sps:$4 sm:$0xff]  }
 0x1e1   :  { %2258 = vmatpush1.bf16.msra.mxu0 %v12967_v55  ;;  %2380 = vmatpush1.bf16.msra.mxu1 %v12970_v56  ;;  %v13009_v55 = vld [vmem:[#allocation9] ss:$16 sps:$4 sm:$0xff]   ;;  %v13012_v56 = vld [vmem:[#allocation9 + $0x8] ss:$16 sps:$4 sm:$0xff]  }
 0x1e2   :  { %2259 = vmatprep.subr.bf16.mxu0 %v12975_v57  ;;  %2381 = vmatprep.subr.bf16.mxu1 %v12978_v60  ;;  %v1508_v57 = vor.u32 %v1506_v53, %v14071_v46  ;;  %v1469_v60 = vsel %vm189_vm0, %v1464_v54, %v1468_v47  ;;  %v1498_v46 = vshrl.u32 %v14042_v36, 16  ;;  %v13047_v53 = vld [vmem:[#allocation9 + $0xc0] ss:$16 sps:$4 sm:$0xff]   ;;  %v13055_v54 = vld [vmem:[#allocation9 + $0xe4] ss:$16 sps:$4 sm:$0xff]  }
 0x1e5   :  { %2260 = vmatpush1.bf16.msra.mxu0 %v12973_v61  ;;  %2382 = vmatpush1.bf16.msra.mxu1 %v12976_v3  ;;  %v13018_v61 = vld [vmem:[#allocation9 + $0x24] ss:$16 sps:$4 sm:$0xff]   ;;  %v13021_v3 = vld [vmem:[#allocation9 + $0x2c] ss:$16 sps:$4 sm:$0xff]  }
 0x1e6   :  { %2261 = vmatprep.subr.bf16.mxu0 %v12981_v6  ;;  %2383 = vmatprep.subr.bf16.mxu1 %v12984_v7  ;;  %v1502_v6 = vshll.u32 %v14081_v52, 16  ;;  %v1513_v7 = vsel %vm189_vm0, %v1508_v57, %v1512_v50  ;;  %v13061_v57 = vld [vmem:[#allocation9 + $0x104] ss:$16 sps:$4 sm:$0xff]  }
 0x1e9   :  { %2262 = vmatpush1.bf16.msra.mxu0 %v12979_v19  ;;  %2384 = vmatpush1.bf16.msra.mxu1 %v12982_v4  ;;  %v13016_v19 = vld [vmem:[#allocation9 + $0x20] ss:$16 sps:$4 sm:$0xff]   ;;  %v13019_v4 = vld [vmem:[#allocation9 + $0x28] ss:$16 sps:$4 sm:$0xff]  }
 0x1ea   :  { %2263 = vmatprep.subr.bf16.mxu0 %v12987_v58  ;;  %2385 = vmatprep.subr.bf16.mxu1 %v12990_v10  ;;  %v1504_v58 = vrot.slane %v1502_v6, 1  ;;  %v13025_v10 = vld [vmem:[#allocation9 + $0x44] ss:$16 sps:$4 sm:$0xff]  }
 0x1eb   :  { %v13067_v6 = vld [vmem:[#allocation9 + $0x124] ss:$16 sps:$4 sm:$0xff]  }
 0x1ed   :  { %2264 = vmatpush1.bf16.msra.mxu0 %v12985_v12  ;;  %2386 = vmatpush1.bf16.msra.mxu1 %v12988_v13  ;;  %v13028_v12 = vld [vmem:[#allocation9 + $0x4c] ss:$16 sps:$4 sm:$0xff]   ;;  %v1500_v13 = vor.u32 %v1498_v46, %v1468_v47  ;;  %v13073_v46 = vld [vmem:[#allocation9 + $0x144] ss:$16 sps:$4 sm:$0xff]  }
 0x1ee   :  { %2265 = vmatprep.subr.bf16.mxu0 %v12993_v15  ;;  %2387 = vmatprep.subr.bf16.mxu1 %v12996_v2  ;;  %v1523_v15 = vshrl.u32 %v14075_v35, 16  ;;  %v13023_v2 = vld [vmem:[#allocation9 + $0x40] ss:$16 sps:$4 sm:$0xff]   ;;  %v13052_v47 = vld [vmem:[#allocation9 + $0xcc] ss:$16 sps:$4 sm:$0xff]  }
 0x1f0   :  { %v1525_v5 = vor.u32 %v1523_v15, %v1512_v50  ;;  %v13050_v50 = vld [vmem:[#allocation9 + $0xc8] ss:$16 sps:$4 sm:$0xff]   ;;  %v13082_v15 = vld [vmem:[#allocation9 + $0x16c] ss:$16 sps:$4 sm:$0xff]  }
 0x1f1   :  { %2266 = vmatpush1.bf16.msra.mxu0 %v12991_v8  ;;  %2388 = vmatpush1.bf16.msra.mxu1 %v12994_v0  ;;  %v13026_v8 = vld [vmem:[#allocation9 + $0x48] ss:$16 sps:$4 sm:$0xff]   ;;  %v1505_v0 = vsel %vm189_vm0, %v1500_v13, %v1504_v58  ;;  %v13079_v13 = vld [vmem:[#allocation9 + $0x164] ss:$16 sps:$4 sm:$0xff]  }
 0x1f2   :  { %2267 = vmatprep.subr.bf16.mxu0 %v12999_v34  ;;  %2389 = vmatprep.subr.bf16.mxu1 %v13002_v26  ;;  %v13031_v34 = vld [vmem:[#allocation9 + $0x64] ss:$16 sps:$4 sm:$0xff]   ;;  %v13034_v26 = vld [vmem:[#allocation9 + $0x6c] ss:$16 sps:$4 sm:$0xff]  }
 0x1f5   :  { %2268 = vmatpush1.bf16.msra.mxu0 %v12997_v33  ;;  %2390 = vmatpush1.bf16.msra.mxu1 %v13000_v27  ;;  %v13029_v33 = vld [vmem:[#allocation9 + $0x60] ss:$16 sps:$4 sm:$0xff]   ;;  %v13032_v27 = vld [vmem:[#allocation9 + $0x68] ss:$16 sps:$4 sm:$0xff]  }
 0x1f6   :  { %2269 = vmatprep.subr.bf16.mxu0 %v13005_v11  ;;  %2391 = vmatprep.subr.bf16.mxu1 %v13008_v39  ;;  %v13040_v11 = vld [vmem:[#allocation9 + $0x8c] ss:$16 sps:$4 sm:$0xff]   ;;  %v1520_v39 = vshrl.u32 %v14081_v52, 16 }
 0x1f8   :  { %v1522_v40 = vor.u32 %v1520_v39, %v1504_v58  ;;  %v13076_v58 = vld [vmem:[#allocation9 + $0x14c] ss:$16 sps:$4 sm:$0xff]   ;;  %v13097_v39 = vld [vmem:[#allocation9 + $0x1c4] ss:$16 sps:$4 sm:$0xff]  }
 0x1f9   :  { %2270 = vmatpush1.bf16.msra.mxu0 %v13003_v21  ;;  %2392 = vmatpush1.bf16.msra.mxu1 %v13006_v37  ;;  %v13038_v21 = vld [vmem:[#allocation9 + $0x88] ss:$16 sps:$4 sm:$0xff]   ;;  %v13043_v37 = vld [vmem:[#allocation9 + $0xa4] ss:$16 sps:$4 sm:$0xff]  }
 0x1fa   :  { %3084 = vmatprep.subr.bf16.mxu0 %v13011_v22  ;;  %3206 = vmatprep.subr.bf16.mxu1 %v13014_v20  ;;  %v13041_v22 = vld [vmem:[#allocation9 + $0xa0] ss:$16 sps:$4 sm:$0xff]   ;;  %v13044_v20 = vld [vmem:[#allocation9 + $0xa8] ss:$16 sps:$4 sm:$0xff]  }
 0x1fc   :  { %2272 = vmatmul.mubr.bf16.vlgmr.msra.gmra.mrb[20].mxu0 %v1469_v60  ;;  %2394 = vmatmul.mubr.bf16.vlgmr.msra.gmra.mrb[20].mxu1 %v1469_v60  ;;  %v13064_v60 = vld [vmem:[#allocation9 + $0x10c] ss:$16 sps:$4 sm:$0xff]  }
 0x1fd   :  { %2281 = vmatprep.mubr.bf16.mxu0 %v1513_v7  ;;  %2403 = vmatprep.mubr.bf16.mxu1 %v1513_v7  ;;  %v13070_v7 = vld [vmem:[#allocation9 + $0x12c] ss:$16 sps:$4 sm:$0xff]  }
 0x1fe   :  { %3085 = vmatpush1.bf16.msra.mxu0 %v13009_v55  ;;  %3207 = vmatpush1.bf16.msra.mxu1 %v13012_v56  ;;  %v13058_v55 = vld [vmem:[#allocation9 + $0xec] ss:$16 sps:$4 sm:$0xff]   ;;  %v13053_v56 = vld [vmem:[#allocation9 + $0xe0] ss:$16 sps:$4 sm:$0xff]  }
 0x1ff   :  { %3086 = vmatprep.subr.bf16.mxu0 %v13018_v61  ;;  %3208 = vmatprep.subr.bf16.mxu1 %v13021_v3  ;;  %v13059_v61 = vld [vmem:[#allocation9 + $0x100] ss:$16 sps:$4 sm:$0xff]   ;;  %v13062_v3 = vld [vmem:[#allocation9 + $0x108] ss:$16 sps:$4 sm:$0xff]  }
 0x202   :  { %3087 = vmatpush1.bf16.msra.mxu0 %v13016_v19  ;;  %3209 = vmatpush1.bf16.msra.mxu1 %v13019_v4  ;;  %v13065_v19 = vld [vmem:[#allocation9 + $0x120] ss:$16 sps:$4 sm:$0xff]   ;;  %v13068_v4 = vld [vmem:[#allocation9 + $0x128] ss:$16 sps:$4 sm:$0xff]  }
 0x203   :  { %3088 = vmatprep.subr.bf16.mxu0 %v13025_v10  ;;  %3210 = vmatprep.subr.bf16.mxu1 %v13028_v12  ;;  %v13071_v10 = vld [vmem:[#allocation9 + $0x140] ss:$16 sps:$4 sm:$0xff]   ;;  %v13074_v12 = vld [vmem:[#allocation9 + $0x148] ss:$16 sps:$4 sm:$0xff]  }
 0x204   :  { %2282 = vmatmul.mubr.bf16.gmra.mrb[24].mxu0 %v1505_v0  ;;  %2404 = vmatmul.mubr.bf16.gmra.mrb[24].mxu1 %v1505_v0  ;;  %v13085_v0 = vld [vmem:[#allocation9 + $0x184] ss:$16 sps:$4 sm:$0xff]  }
 0x205   :  { %2291 = vmatprep.mubr.bf16.mxu0 %v1525_v5  ;;  %2413 = vmatprep.mubr.bf16.mxu1 %v1525_v5  ;;  %v13088_v5 = vld [vmem:[#allocation9 + $0x18c] ss:$16 sps:$4 sm:$0xff]  }
 0x206   :  { %3089 = vmatpush1.bf16.msra.mxu0 %v13023_v2  ;;  %3211 = vmatpush1.bf16.msra.mxu1 %v13026_v8  ;;  %v13077_v2 = vld [vmem:[#allocation9 + $0x160] ss:$16 sps:$4 sm:$0xff]   ;;  %v13080_v8 = vld [vmem:[#allocation9 + $0x168] ss:$16 sps:$4 sm:$0xff]  }
 0x207   :  { %3090 = vmatprep.subr.bf16.mxu0 %v13031_v34  ;;  %3212 = vmatprep.subr.bf16.mxu1 %v13034_v26  ;;  %v13083_v34 = vld [vmem:[#allocation9 + $0x180] ss:$16 sps:$4 sm:$0xff]   ;;  %v13086_v26 = vld [vmem:[#allocation9 + $0x188] ss:$16 sps:$4 sm:$0xff]  }
 0x20a   :  { %3091 = vmatpush1.bf16.msra.mxu0 %v13029_v33  ;;  %3213 = vmatpush1.bf16.msra.mxu1 %v13032_v27  ;;  %v13091_v33 = vld [vmem:[#allocation9 + $0x1a4] ss:$16 sps:$4 sm:$0xff]   ;;  %v13094_v27 = vld [vmem:[#allocation9 + $0x1ac] ss:$16 sps:$4 sm:$0xff]  }
 0x20b   :  { %3092 = vmatprep.subr.bf16.mxu0 %v13037_v63  ;;  %3214 = vmatprep.subr.bf16.mxu1 %v13040_v11  ;;  %v13089_v63 = vld [vmem:[#allocation9 + $0x1a0] ss:$16 sps:$4 sm:$0xff]   ;;  %v13092_v11 = vld [vmem:[#allocation9 + $0x1a8] ss:$16 sps:$4 sm:$0xff]  }
 0x20c   :  { %2292 = vmatmul.mubr.bf16.gmra.mrb[32].mxu0 %v1522_v40  ;;  %2414 = vmatmul.mubr.bf16.gmra.mrb[32].mxu1 %v1522_v40  ;;  %v13100_v40 = vld [vmem:[#allocation9 + $0x1cc] ss:$16 sps:$4 sm:$0xff]  }
 0x20d   :  { %3116 = vmatprep.mubr.bf16.mxu0 %v13984_v29  ;;  %3238 = vmatprep.mubr.bf16.mxu1 %v13984_v29  ;;  %v13056_v29 = vld [vmem:[#allocation9 + $0xe8] ss:$16 sps:$4 sm:$0xff]  }
 0x20e   :  { %3093 = vmatpush1.bf16.msra.mxu0 %v13035_v41  ;;  %3215 = vmatpush1.bf16.msra.mxu1 %v13038_v21  ;;  %v13095_v41 = vld [vmem:[#allocation9 + $0x1c0] ss:$16 sps:$4 sm:$0xff]   ;;  %v13098_v21 = vld [vmem:[#allocation9 + $0x1c8] ss:$16 sps:$4 sm:$0xff]  }
 0x20f   :  { %3094 = vmatprep.subr.bf16.mxu0 %v13043_v37  ;;  %3216 = vmatprep.subr.bf16.mxu1 %v13046_v62  ;;  %v13103_v37 = vld [vmem:[#allocation9 + $0x1e4] ss:$16 sps:$4 sm:$0xff]   ;;  %v13106_v62 = vld [vmem:[#allocation9 + $0x1ec] ss:$16 sps:$4 sm:$0xff]  }
 0x212   :  { %3095 = vmatpush1.bf16.msra.mxu0 %v13041_v22  ;;  %3217 = vmatpush1.bf16.msra.mxu1 %v13044_v20  ;;  %v13101_v22 = vld [vmem:[#allocation9 + $0x1e0] ss:$16 sps:$4 sm:$0xff]   ;;  %v13104_v20 = vld [vmem:[#allocation9 + $0x1e8] ss:$16 sps:$4 sm:$0xff]  }
 0x213   :  { %3096 = vmatprep.subr.bf16.mxu0 %v13049_v45  ;;  %3218 = vmatprep.subr.bf16.mxu1 %v13052_v47  ;;  %v13109_v45 = vld [vmem:[#allocation9 + $0x204] ss:$16 sps:$4 sm:$0xff]   ;;  %v13112_v47 = vld [vmem:[#allocation9 + $0x20c] ss:$16 sps:$4 sm:$0xff]  }
 0x216   :  { %3097 = vmatpush1.bf16.msra.mxu0 %v13047_v53  ;;  %3219 = vmatpush1.bf16.msra.mxu1 %v13050_v50  ;;  %v13107_v53 = vld [vmem:[#allocation9 + $0x200] ss:$16 sps:$4 sm:$0xff]   ;;  %v13110_v50 = vld [vmem:[#allocation9 + $0x208] ss:$16 sps:$4 sm:$0xff]  }
 0x217   :  { %3098 = vmatprep.subr.bf16.mxu0 %v13055_v54  ;;  %3220 = vmatprep.subr.bf16.mxu1 %v13058_v55  ;;  %v13115_v54 = vld [vmem:[#allocation9 + $0x224] ss:$16 sps:$4 sm:$0xff]   ;;  %v13118_v55 = vld [vmem:[#allocation9 + $0x22c] ss:$16 sps:$4 sm:$0xff]  }
 0x21a   :  { %3099 = vmatpush1.bf16.msra.mxu0 %v13053_v56  ;;  %3221 = vmatpush1.bf16.msra.mxu1 %v13056_v29  ;;  %v13113_v56 = vld [vmem:[#allocation9 + $0x220] ss:$16 sps:$4 sm:$0xff]   ;;  %v13116_v29 = vld [vmem:[#allocation9 + $0x228] ss:$16 sps:$4 sm:$0xff]  }
 0x21b   :  { %3100 = vmatprep.subr.bf16.mxu0 %v13061_v57  ;;  %3222 = vmatprep.subr.bf16.mxu1 %v13064_v60  ;;  %v13121_v57 = vld [vmem:[#allocation9 + $0x244] ss:$16 sps:$4 sm:$0xff]   ;;  %v13124_v60 = vld [vmem:[#allocation9 + $0x24c] ss:$16 sps:$4 sm:$0xff]  }
 0x21e   :  { %3101 = vmatpush1.bf16.msra.mxu0 %v13059_v61  ;;  %3223 = vmatpush1.bf16.msra.mxu1 %v13062_v3  ;;  %v1131_v61 = vld [vmem:[#allocation2 + $0x40] sm:$0x33] }
 0x21f   :  { %3102 = vmatprep.subr.bf16.mxu0 %v13067_v6  ;;  %3224 = vmatprep.subr.bf16.mxu1 %v13070_v7  ;;  %v13119_v3 = vld [vmem:[#allocation9 + $0x240] ss:$16 sps:$4 sm:$0xff]   ;;  %v13122_v6 = vld [vmem:[#allocation9 + $0x248] ss:$16 sps:$4 sm:$0xff]   ;;  %v13128_v7 = vld [vmem:[#allocation9 + $0x264] ss:$16 sps:$4 sm:$0xff]  }
 0x222   :  { %3103 = vmatpush1.bf16.msra.mxu0 %v13065_v19  ;;  %3225 = vmatpush1.bf16.msra.mxu1 %v13068_v4  ;;  %v13131_v19 = vld [vmem:[#allocation9 + $0x26c] ss:$16 sps:$4 sm:$0xff]   ;;  %v13126_v4 = vld [vmem:[#allocation9 + $0x260] ss:$16 sps:$4 sm:$0xff]  }
 0x223   :  { %3104 = vmatprep.subr.bf16.mxu0 %v13073_v46  ;;  %3226 = vmatprep.subr.bf16.mxu1 %v13076_v58  ;;  %v13129_v46 = vld [vmem:[#allocation9 + $0x268] ss:$16 sps:$4 sm:$0xff]   ;;  %v13135_v58 = vld [vmem:[#allocation9 + $0x284] ss:$16 sps:$4 sm:$0xff]  }
 0x226   :  { %3105 = vmatpush1.bf16.msra.mxu0 %v13071_v10  ;;  %3227 = vmatpush1.bf16.msra.mxu1 %v13074_v12  ;;  %v13138_v10 = vld [vmem:[#allocation9 + $0x28c] ss:$16 sps:$4 sm:$0xff]   ;;  %v13133_v12 = vld [vmem:[#allocation9 + $0x280] ss:$16 sps:$4 sm:$0xff]  }
 0x227   :  { %3106 = vmatprep.subr.bf16.mxu0 %v13079_v13  ;;  %3228 = vmatprep.subr.bf16.mxu1 %v13082_v15  ;;  %v11384_v13 = vcombine.low %v1131_v61, %v1131_v61  ;;  %v13136_v15 = vld [vmem:[#allocation9 + $0x288] ss:$16 sps:$4 sm:$0xff]  }
 0x22a   :  { %3107 = vmatpush1.bf16.msra.mxu0 %v13077_v2  ;;  %3229 = vmatpush1.bf16.msra.mxu1 %v13080_v8  ;;  %v13141_v2 = vld [vmem:[#allocation9 + $0x2a4] ss:$16 sps:$4 sm:$0xff]   ;;  %v13144_v8 = vld [vmem:[#allocation9 + $0x2ac] ss:$16 sps:$4 sm:$0xff]  }
 0x22b   :  { %3108 = vmatprep.subr.bf16.mxu0 %v13085_v0  ;;  %3230 = vmatprep.subr.bf16.mxu1 %v13088_v5  ;;  %v13139_v0 = vld [vmem:[#allocation9 + $0x2a0] ss:$16 sps:$4 sm:$0xff]   ;;  %v13142_v5 = vld [vmem:[#allocation9 + $0x2a8] ss:$16 sps:$4 sm:$0xff]  }
 0x22e   :  { %3109 = vmatpush1.bf16.msra.mxu0 %v13083_v34  ;;  %3231 = vmatpush1.bf16.msra.mxu1 %v13086_v26  ;;  %v13147_v34 = vld [vmem:[#allocation9 + $0x2c4] ss:$16 sps:$4 sm:$0xff]   ;;  %v13150_v26 = vld [vmem:[#allocation9 + $0x2cc] ss:$16 sps:$4 sm:$0xff]  }
 0x22f   :  { %3110 = vmatprep.subr.bf16.mxu0 %v13091_v33  ;;  %3232 = vmatprep.subr.bf16.mxu1 %v13094_v27  ;;  %v13145_v33 = vld [vmem:[#allocation9 + $0x2c0] ss:$16 sps:$4 sm:$0xff]   ;;  %v13148_v27 = vld [vmem:[#allocation9 + $0x2c8] ss:$16 sps:$4 sm:$0xff]  }
 0x232   :  { %3111 = vmatpush1.bf16.msra.mxu0 %v13089_v63  ;;  %3233 = vmatpush1.bf16.msra.mxu1 %v13092_v11  ;;  %v13153_v63 = vld [vmem:[#allocation9 + $0x2e4] ss:$16 sps:$4 sm:$0xff]   ;;  %v13156_v11 = vld [vmem:[#allocation9 + $0x2ec] ss:$16 sps:$4 sm:$0xff]  }
 0x233   :  { %3112 = vmatprep.subr.bf16.mxu0 %v13097_v39  ;;  %3234 = vmatprep.subr.bf16.mxu1 %v13100_v40  ;;  %v13151_v39 = vld [vmem:[#allocation9 + $0x2e0] ss:$16 sps:$4 sm:$0xff]   ;;  %v13154_v40 = vld [vmem:[#allocation9 + $0x2e8] ss:$16 sps:$4 sm:$0xff]  }
 0x236   :  { %3113 = vmatpush1.bf16.msra.mxu0 %v13095_v41  ;;  %3235 = vmatpush1.bf16.msra.mxu1 %v13098_v21  ;;  %v13159_v41 = vld [vmem:[#allocation9 + $0x304] ss:$16 sps:$4 sm:$0xff]   ;;  %v13157_v21 = vld [vmem:[#allocation9 + $0x300] ss:$16 sps:$4 sm:$0xff]  }
 0x237   :  { %3114 = vmatprep.subr.bf16.mxu0 %v13103_v37  ;;  %3236 = vmatprep.subr.bf16.mxu1 %v13106_v62  ;;  %v13160_v37 = vld [vmem:[#allocation9 + $0x308] ss:$16 sps:$4 sm:$0xff]   ;;  %v13165_v62 = vld [vmem:[#allocation9 + $0x324] ss:$16 sps:$4 sm:$0xff]  }
 0x23a   :  { %3115 = vmatpush1.bf16.msra.mxu0 %v13101_v22  ;;  %3237 = vmatpush1.bf16.msra.mxu1 %v13104_v20  ;;  %v13168_v22 = vld [vmem:[#allocation9 + $0x32c] ss:$16 sps:$4 sm:$0xff]   ;;  %v13163_v20 = vld [vmem:[#allocation9 + $0x320] ss:$16 sps:$4 sm:$0xff]  }
 0x23b   :  { %3145 = vmatprep.subr.bf16.mxu0 %v13109_v45  ;;  %3267 = vmatprep.subr.bf16.mxu1 %v13112_v47  ;;  %v13166_v45 = vld [vmem:[#allocation9 + $0x328] ss:$16 sps:$4 sm:$0xff]   ;;  %v13171_v47 = vld [vmem:[#allocation9 + $0x344] ss:$16 sps:$4 sm:$0xff]  }
 0x23d   :  { %3117 = vmatmul.mubr.bf16.vlgmr.msra.gmra.mrb[20].mxu0 %v13976_v17  ;;  %3239 = vmatmul.mubr.bf16.vlgmr.msra.gmra.mrb[20].mxu1 %v13976_v17  ;;  %v11385_v17 = vcombine.high %v1131_v61, %v1131_v61  ;;  %v13186_v61 = vld [vmem:[#allocation9 + $0x38c] ss:$16 sps:$4 sm:$0xff]  }
 0x23e   :  { %3126 = vmatprep.mubr.bf16.mxu0 %v13992_v32  ;;  %3146 = vmatpush1.bf16.msra.mxu0 %v13107_v53  ;;  %v13174_v53 = vld [vmem:[#allocation9 + $0x34c] ss:$16 sps:$4 sm:$0xff]  }
 0x23f   :  { %3248 = vmatprep.mubr.bf16.mxu1 %v13992_v32  ;;  %3268 = vmatpush1.bf16.msra.mxu1 %v13110_v50  ;;  %v13169_v50 = vld [vmem:[#allocation9 + $0x340] ss:$16 sps:$4 sm:$0xff]  }
 0x240   :  { %3147 = vmatprep.subr.bf16.mxu0 %v13115_v54  ;;  %3269 = vmatprep.subr.bf16.mxu1 %v13118_v55  ;;  %v13172_v54 = vld [vmem:[#allocation9 + $0x348] ss:$16 sps:$4 sm:$0xff]   ;;  %v13177_v55 = vld [vmem:[#allocation9 + $0x364] ss:$16 sps:$4 sm:$0xff]  }
 0x242   :  { %3148 = vmatpush1.bf16.msra.mxu0 %v13113_v56  ;;  %v13180_v56 = vld [vmem:[#allocation9 + $0x36c] ss:$16 sps:$4 sm:$0xff]  }
 0x243   :  { %3270 = vmatpush1.bf16.msra.mxu1 %v13116_v29  ;;  %3149 = vmatprep.subr.bf16.mxu0 %v13121_v57  ;;  %v13175_v29 = vld [vmem:[#allocation9 + $0x360] ss:$16 sps:$4 sm:$0xff]   ;;  %v13178_v57 = vld [vmem:[#allocation9 + $0x368] ss:$16 sps:$4 sm:$0xff]  }
 0x244   :  { %3271 = vmatprep.subr.bf16.mxu1 %v13124_v60  ;;  %v13183_v60 = vld [vmem:[#allocation9 + $0x384] ss:$16 sps:$4 sm:$0xff]  }
 0x245   :  { %3127 = vmatmul.mubr.bf16.gmra.mrb[24].mxu0 %v13990_v44  ;;  %3249 = vmatmul.mubr.bf16.gmra.mrb[24].mxu1 %v13990_v44 }
 0x246   :  { %3136 = vmatprep.mubr.bf16.mxu0 %v11385_v17  ;;  %3150 = vmatpush1.bf16.msra.mxu0 %v13119_v3  ;;  %v13181_v3 = vld [vmem:[#allocation9 + $0x380] ss:$16 sps:$4 sm:$0xff]  }
 0x247   :  { %3258 = vmatprep.mubr.bf16.mxu1 %v11385_v17  ;;  %3272 = vmatpush1.bf16.msra.mxu1 %v13122_v6  ;;  %v13184_v6 = vld [vmem:[#allocation9 + $0x388] ss:$16 sps:$4 sm:$0xff]   ;;  %v13189_v17 = vld [vmem:[#allocation9 + $0x3a4] ss:$16 sps:$4 sm:$0xff]  }
 0x248   :  { %3151 = vmatprep.subr.bf16.mxu0 %v13128_v7  ;;  %3273 = vmatprep.subr.bf16.mxu1 %v13131_v19  ;;  %v13192_v7 = vld [vmem:[#allocation9 + $0x3ac] ss:$16 sps:$4 sm:$0xff]   ;;  %v13187_v19 = vld [vmem:[#allocation9 + $0x3a0] ss:$16 sps:$4 sm:$0xff]  }
 0x24a   :  { %3152 = vmatpush1.bf16.msra.mxu0 %v13126_v4  ;;  %v13190_v4 = vld [vmem:[#allocation9 + $0x3a8] ss:$16 sps:$4 sm:$0xff]  }
 0x24b   :  { %3274 = vmatpush1.bf16.msra.mxu1 %v13129_v46  ;;  %3153 = vmatprep.subr.bf16.mxu0 %v13135_v58  ;;  %v13195_v46 = vld [vmem:[#allocation9 + $0x3c4] ss:$16 sps:$4 sm:$0xff]   ;;  %v13198_v58 = vld [vmem:[#allocation9 + $0x3cc] ss:$16 sps:$4 sm:$0xff]  }
 0x24c   :  { %3275 = vmatprep.subr.bf16.mxu1 %v13138_v10  ;;  %v13193_v10 = vld [vmem:[#allocation9 + $0x3c0] ss:$16 sps:$4 sm:$0xff]  }
 0x24d   :  { %3137 = vmatmul.mubr.bf16.gmra.mrb[36].mxu0 %v11384_v13  ;;  %3259 = vmatmul.mubr.bf16.gmra.mrb[36].mxu1 %v11384_v13  ;;  %v13201_v13 = vld [vmem:[#allocation9 + $0x3e4] ss:$16 sps:$4 sm:$0xff]  }
 0x24e   :  { %3154 = vmatpush1.bf16.msra.mxu0 %v13133_v12  ;;  %3177 = vmatprep.mubr.bf16.mxu0 %v14037_v18  ;;  %v13196_v12 = vld [vmem:[#allocation9 + $0x3c8] ss:$16 sps:$4 sm:$0xff]  }
 0x24f   :  { %3276 = vmatpush1.bf16.msra.mxu1 %v13136_v15  ;;  %3299 = vmatprep.mubr.bf16.mxu1 %v14037_v18  ;;  %v13162_v18 = vld [vmem:[#allocation9 + $0x30c] ss:$16 sps:$4 sm:$0xff]  }
 0x250   :  { %3155 = vmatprep.subr.bf16.mxu0 %v13141_v2  ;;  %3277 = vmatprep.subr.bf16.mxu1 %v13144_v8  ;;  %v13204_v15 = vld [vmem:[#allocation9 + $0x3ec] ss:$16 sps:$4 sm:$0xff]   ;;  %v13199_v2 = vld [vmem:[#allocation9 + $0x3e0] ss:$16 sps:$4 sm:$0xff]   ;;  %v13202_v8 = vld [vmem:[#allocation9 + $0x3e8] ss:$16 sps:$4 sm:$0xff]  }
 0x252   :  { %3156 = vmatpush1.bf16.msra.mxu0 %v13139_v0  ;;  %v13207_v0 = vld [vmem:[#allocation9 + $0x804] ss:$16 sps:$4 sm:$0xff]  }
 0x253   :  { %3278 = vmatpush1.bf16.msra.mxu1 %v13142_v5  ;;  %3157 = vmatprep.subr.bf16.mxu0 %v13147_v34  ;;  %v13210_v5 = vld [vmem:[#allocation9 + $0x80c] ss:$16 sps:$4 sm:$0xff]   ;;  %v13205_v34 = vld [vmem:[#allocation9 + $0x800] ss:$16 sps:$4 sm:$0xff]  }
 0x254   :  { %3279 = vmatprep.subr.bf16.mxu1 %v13150_v26  ;;  %v13208_v26 = vld [vmem:[#allocation9 + $0x808] ss:$16 sps:$4 sm:$0xff]  }
 0x256   :  { %3158 = vmatpush1.bf16.msra.mxu0 %v13145_v33  ;;  %v13213_v33 = vld [vmem:[#allocation9 + $0x824] ss:$16 sps:$4 sm:$0xff]  }
 0x257   :  { %3280 = vmatpush1.bf16.msra.mxu1 %v13148_v27  ;;  %3159 = vmatprep.subr.bf16.mxu0 %v13153_v63  ;;  %v13216_v27 = vld [vmem:[#allocation9 + $0x82c] ss:$16 sps:$4 sm:$0xff]   ;;  %v13211_v63 = vld [vmem:[#allocation9 + $0x820] ss:$16 sps:$4 sm:$0xff]  }
 0x258   :  { %3281 = vmatprep.subr.bf16.mxu1 %v13156_v11  ;;  %v13214_v11 = vld [vmem:[#allocation9 + $0x828] ss:$16 sps:$4 sm:$0xff]  }
 0x25a   :  { %3160 = vmatpush1.bf16.msra.mxu0 %v13151_v39  ;;  %v13219_v39 = vld [vmem:[#allocation9 + $0x844] ss:$16 sps:$4 sm:$0xff]  }
 0x25b   :  { %3282 = vmatpush1.bf16.msra.mxu1 %v13154_v40  ;;  %3161 = vmatprep.subr.bf16.mxu0 %v13159_v41  ;;  %v13222_v40 = vld [vmem:[#allocation9 + $0x84c] ss:$16 sps:$4 sm:$0xff]   ;;  %v1132_v41 = vld [vmem:[#allocation2 + $0x48] sm:$0x33] }
 0x25c   :  { %3283 = vmatprep.subr.bf16.mxu1 %v13162_v18  ;;  %v13217_v18 = vld [vmem:[#allocation9 + $0x840] ss:$16 sps:$4 sm:$0xff]  }
 0x25e   :  { %3162 = vmatpush1.bf16.msra.mxu0 %v13157_v21  ;;  %v13220_v21 = vld [vmem:[#allocation9 + $0x848] ss:$16 sps:$4 sm:$0xff]  }
 0x25f   :  { %3284 = vmatpush1.bf16.msra.mxu1 %v13160_v37  ;;  %3163 = vmatprep.subr.bf16.mxu0 %v13165_v62  ;;  %v11387_v37 = vcombine.high %v1132_v41, %v1132_v41  ;;  %v14106_v62 = vld [vmem:[#allocation2] sm:$0xee] }
 0x260   :  { %3285 = vmatprep.subr.bf16.mxu1 %v13168_v22  ;;  %v13229_v22 = vld [vmem:[#allocation9 + $0x86c] ss:$16 sps:$4 sm:$0xff]  }
 0x262   :  { %3164 = vmatpush1.bf16.msra.mxu0 %v13163_v20  ;;  %v13224_v20 = vld [vmem:[#allocation9 + $0x860] ss:$16 sps:$4 sm:$0xff]  }
 0x263   :  { %3286 = vmatpush1.bf16.msra.mxu1 %v13166_v45  ;;  %3165 = vmatprep.subr.bf16.mxu0 %v13171_v47  ;;  %v14110_v45 = vld [vmem:[#allocation2 + $0x10] sm:$0xff] }
 0x264   :  { %3287 = vmatprep.subr.bf16.mxu1 %v13174_v53  ;;  %v11517_v47 = vcombine.high %v14106_v62, %v14110_v45  ;;  %v13227_v53 = vld [vmem:[#allocation9 + $0x868] ss:$16 sps:$4 sm:$0xff]  }
 0x266   :  { %3166 = vmatpush1.bf16.msra.mxu0 %v13169_v50  ;;  %v13233_v50 = vld [vmem:[#allocation9 + $0x884] ss:$16 sps:$4 sm:$0xff]  }
 0x267   :  { %3288 = vmatpush1.bf16.msra.mxu1 %v13172_v54  ;;  %3167 = vmatprep.subr.bf16.mxu0 %v13177_v55  ;;  %v13236_v54 = vld [vmem:[#allocation9 + $0x88c] ss:$16 sps:$4 sm:$0xff]   ;;  %v3473_v55 = vrot.slane %v13992_v32, 1 }
 0x268   :  { %3289 = vmatprep.subr.bf16.mxu1 %v13180_v56  ;;  %v11386_v56 = vcombine.low %v1132_v41, %v1132_v41  ;;  %v13275_v41 = vld [vmem:[#allocation9 + $0x964] ss:$16 sps:$4 sm:$0xff]  }
 0x26a   :  { %3168 = vmatpush1.bf16.msra.mxu0 %v13175_v29  ;;  %v13231_v29 = vld [vmem:[#allocation9 + $0x880] ss:$16 sps:$4 sm:$0xff]  }
 0x26b   :  { %3290 = vmatpush1.bf16.msra.mxu1 %v13178_v57  ;;  %3169 = vmatprep.subr.bf16.mxu0 %v13183_v60  ;;  %v3472_v57 = vrot.slane %v11517_v47, 1  ;;  %v13234_v60 = vld [vmem:[#allocation9 + $0x888] ss:$16 sps:$4 sm:$0xff]  }
 0x26c   :  { %3291 = vmatprep.subr.bf16.mxu1 %v13186_v61  ;;  %v13239_v61 = vld [vmem:[#allocation9 + $0x8a4] ss:$16 sps:$4 sm:$0xff]  }
 0x26e   :  { %3170 = vmatpush1.bf16.msra.mxu0 %v13181_v3  ;;  %v3474_v3 = vsel %vm614_vm2, %v3472_v57, %v3473_v55  ;;  %v13284_v57 = vld [vmem:[#allocation9 + $0x98c] ss:$16 sps:$4 sm:$0xff]  }
 0x26f   :  { %3292 = vmatpush1.bf16.msra.mxu1 %v13184_v6  ;;  %3171 = vmatprep.subr.bf16.mxu0 %v13189_v17  ;;  %v13242_v6 = vld [vmem:[#allocation9 + $0x8ac] ss:$16 sps:$4 sm:$0xff]   ;;  %v13237_v17 = vld [vmem:[#allocation9 + $0x8a0] ss:$16 sps:$4 sm:$0xff]  }
 0x270   :  { %3293 = vmatprep.subr.bf16.mxu1 %v13192_v7  ;;  %v13240_v7 = vld [vmem:[#allocation9 + $0x8a8] ss:$16 sps:$4 sm:$0xff]  }
 0x272   :  { %3172 = vmatpush1.bf16.msra.mxu0 %v13187_v19  ;;  %v13245_v19 = vld [vmem:[#allocation9 + $0x8c4] ss:$16 sps:$4 sm:$0xff]  }
 0x273   :  { %3294 = vmatpush1.bf16.msra.mxu1 %v13190_v4  ;;  %3173 = vmatprep.subr.bf16.mxu0 %v13195_v46  ;;  %v13248_v4 = vld [vmem:[#allocation9 + $0x8cc] ss:$16 sps:$4 sm:$0xff]   ;;  %v13243_v46 = vld [vmem:[#allocation9 + $0x8c0] ss:$16 sps:$4 sm:$0xff]  }
 0x274   :  { %3295 = vmatprep.subr.bf16.mxu1 %v13198_v58  ;;  %v13246_v58 = vld [vmem:[#allocation9 + $0x8c8] ss:$16 sps:$4 sm:$0xff]  }
 0x276   :  { %3174 = vmatpush1.bf16.msra.mxu0 %v13193_v10  ;;  %v13251_v10 = vld [vmem:[#allocation9 + $0x8e4] ss:$16 sps:$4 sm:$0xff]  }
 0x277   :  { %3296 = vmatpush1.bf16.msra.mxu1 %v13196_v12  ;;  %3175 = vmatprep.subr.bf16.mxu0 %v13201_v13  ;;  %v13254_v12 = vld [vmem:[#allocation9 + $0x8ec] ss:$16 sps:$4 sm:$0xff]   ;;  %v13249_v13 = vld [vmem:[#allocation9 + $0x8e0] ss:$16 sps:$4 sm:$0xff]  }
 0x278   :  { %3297 = vmatprep.subr.bf16.mxu1 %v13204_v15  ;;  %v13252_v15 = vld [vmem:[#allocation9 + $0x8e8] ss:$16 sps:$4 sm:$0xff]  }
 0x27a   :  { %3176 = vmatpush1.bf16.msra.mxu0 %v13199_v2  ;;  %v13257_v2 = vld [vmem:[#allocation9 + $0x904] ss:$16 sps:$4 sm:$0xff]  }
 0x27b   :  { %3298 = vmatpush1.bf16.msra.mxu1 %v13202_v8  ;;  %4141 = vmatprep.subr.bf16.mxu0 %v13207_v0  ;;  %v13260_v8 = vld [vmem:[#allocation9 + $0x90c] ss:$16 sps:$4 sm:$0xff]   ;;  %v13255_v0 = vld [vmem:[#allocation9 + $0x900] ss:$16 sps:$4 sm:$0xff]  }
 0x27c   :  { %4263 = vmatprep.subr.bf16.mxu1 %v13210_v5  ;;  %v13258_v5 = vld [vmem:[#allocation9 + $0x908] ss:$16 sps:$4 sm:$0xff]  }
 0x27d   :  { %3178 = vmatmul.mubr.bf16.vlgmr.msra.gmra.mrb[20].mxu0 %v14021_v9 }
 0x27e   :  { %3300 = vmatmul.mubr.bf16.vlgmr.msra.gmra.mrb[20].mxu1 %v14021_v9  ;;  %3187 = vmatprep.mubr.bf16.mxu0 %v14045_v28  ;;  %v13226_v9 = vld [vmem:[#allocation9 + $0x864] ss:$16 sps:$4 sm:$0xff]  }
 0x27f   :  { %3309 = vmatprep.mubr.bf16.mxu1 %v14045_v28  ;;  %4142 = vmatpush1.bf16.msra.mxu0 %v13205_v34  ;;  %v13263_v34 = vld [vmem:[#allocation9 + $0x924] ss:$16 sps:$4 sm:$0xff]  }
 0x280   :  { %4264 = vmatpush1.bf16.msra.mxu1 %v13208_v26  ;;  %4143 = vmatprep.subr.bf16.mxu0 %v13213_v33  ;;  %v13266_v26 = vld [vmem:[#allocation9 + $0x92c] ss:$16 sps:$4 sm:$0xff]   ;;  %v13261_v33 = vld [vmem:[#allocation9 + $0x920] ss:$16 sps:$4 sm:$0xff]  }
 0x281   :  { %4265 = vmatprep.subr.bf16.mxu1 %v13216_v27  ;;  %v13264_v27 = vld [vmem:[#allocation9 + $0x928] ss:$16 sps:$4 sm:$0xff]  }
 0x283   :  { %4144 = vmatpush1.bf16.msra.mxu0 %v13211_v63  ;;  %v13269_v63 = vld [vmem:[#allocation9 + $0x944] ss:$16 sps:$4 sm:$0xff]  }
 0x284   :  { %4266 = vmatpush1.bf16.msra.mxu1 %v13214_v11  ;;  %4145 = vmatprep.subr.bf16.mxu0 %v13219_v39  ;;  %v13272_v11 = vld [vmem:[#allocation9 + $0x94c] ss:$16 sps:$4 sm:$0xff]   ;;  %v13267_v39 = vld [vmem:[#allocation9 + $0x940] ss:$16 sps:$4 sm:$0xff]  }
 0x285   :  { %3188 = vmatmul.mubr.bf16.gmra.mrb[24].mxu0 %v14042_v36  ;;  %4267 = vmatprep.subr.bf16.mxu1 %v13222_v40  ;;  %v13270_v40 = vld [vmem:[#allocation9 + $0x948] ss:$16 sps:$4 sm:$0xff]  }
 0x286   :  { %3310 = vmatmul.mubr.bf16.gmra.mrb[24].mxu1 %v14042_v36  ;;  %3197 = vmatprep.mubr.bf16.mxu0 %v11387_v37 }
 0x287   :  { %3319 = vmatprep.mubr.bf16.mxu1 %v11387_v37  ;;  %4146 = vmatpush1.bf16.msra.mxu0 %v13217_v18  ;;  %v13278_v18 = vld [vmem:[#allocation9 + $0x96c] ss:$16 sps:$4 sm:$0xff]  }
 0x288   :  { %4268 = vmatpush1.bf16.msra.mxu1 %v13220_v21  ;;  %4147 = vmatprep.subr.bf16.mxu0 %v13226_v9 }
 0x289   :  { %4269 = vmatprep.subr.bf16.mxu1 %v13229_v22 }
 0x28b   :  { %4148 = vmatpush1.bf16.msra.mxu0 %v13224_v20  ;;  %v13273_v20 = vld [vmem:[#allocation9 + $0x960] ss:$16 sps:$4 sm:$0xff]  }
 0x28c   :  { %4270 = vmatpush1.bf16.msra.mxu1 %v13227_v53  ;;  %4149 = vmatprep.subr.bf16.mxu0 %v13233_v50  ;;  %v13276_v50 = vld [vmem:[#allocation9 + $0x968] ss:$16 sps:$4 sm:$0xff]  }
 0x28d   :  { %3198 = vmatmul.mubr.bf16.gmra.mrb[40].mxu0 %v11386_v56  ;;  %4271 = vmatprep.subr.bf16.mxu1 %v13236_v54  ;;  %v13281_v54 = vld [vmem:[#allocation9 + $0x984] ss:$16 sps:$4 sm:$0xff]  }
 0x28e   :  { %3320 = vmatmul.mubr.bf16.gmra.mrb[40].mxu1 %v11386_v56  ;;  %4173 = vmatprep.mubr.bf16.mxu0 %v3474_v3 }
 0x28f   :  { %4150 = vmatpush1.bf16.msra.mxu0 %v13231_v29  ;;  %4295 = vmatprep.mubr.bf16.mxu1 %v3474_v3  ;;  %v13287_v3 = vld [vmem:[#allocation9 + $0x9a4] ss:$16 sps:$4 sm:$0xff]  }
 0x290   :  { %4272 = vmatpush1.bf16.msra.mxu1 %v13234_v60  ;;  %4151 = vmatprep.subr.bf16.mxu0 %v13239_v61  ;;  %v13279_v60 = vld [vmem:[#allocation9 + $0x980] ss:$16 sps:$4 sm:$0xff]   ;;  %v13282_v61 = vld [vmem:[#allocation9 + $0x988] ss:$16 sps:$4 sm:$0xff]  }
 0x291   :  { %4273 = vmatprep.subr.bf16.mxu1 %v13242_v6  ;;  %v13290_v6 = vld [vmem:[#allocation9 + $0x9ac] ss:$16 sps:$4 sm:$0xff]  }
 0x293   :  { %4152 = vmatpush1.bf16.msra.mxu0 %v13237_v17  ;;  %v13285_v17 = vld [vmem:[#allocation9 + $0x9a0] ss:$16 sps:$4 sm:$0xff]  }
 0x294   :  { %4274 = vmatpush1.bf16.msra.mxu1 %v13240_v7  ;;  %4153 = vmatprep.subr.bf16.mxu0 %v13245_v19  ;;  %v13288_v7 = vld [vmem:[#allocation9 + $0x9a8] ss:$16 sps:$4 sm:$0xff]   ;;  %v13293_v19 = vld [vmem:[#allocation9 + $0x9c4] ss:$16 sps:$4 sm:$0xff]  }
 0x295   :  { %4275 = vmatprep.subr.bf16.mxu1 %v13248_v4  ;;  %v13296_v4 = vld [vmem:[#allocation9 + $0x9cc] ss:$16 sps:$4 sm:$0xff]  }
 0x297   :  { %4154 = vmatpush1.bf16.msra.mxu0 %v13243_v46  ;;  %v13291_v46 = vld [vmem:[#allocation9 + $0x9c0] ss:$16 sps:$4 sm:$0xff]  }
 0x298   :  { %4276 = vmatpush1.bf16.msra.mxu1 %v13246_v58  ;;  %4155 = vmatprep.subr.bf16.mxu0 %v13251_v10  ;;  %v13294_v58 = vld [vmem:[#allocation9 + $0x9c8] ss:$16 sps:$4 sm:$0xff]   ;;  %v13299_v10 = vld [vmem:[#allocation9 + $0x9e4] ss:$16 sps:$4 sm:$0xff]  }
 0x299   :  { %4277 = vmatprep.subr.bf16.mxu1 %v13254_v12  ;;  %v13302_v12 = vld [vmem:[#allocation9 + $0x9ec] ss:$16 sps:$4 sm:$0xff]  }
 0x29b   :  { %4156 = vmatpush1.bf16.msra.mxu0 %v13249_v13  ;;  %v11516_v13 = vcombine.low %v14106_v62, %v14110_v45  ;;  %v13306_v62 = vld [vmem:[#allocation9 + $0xa08] ss:$16 sps:$4 sm:$0xff]   ;;  %v13311_v45 = vld [vmem:[#allocation9 + $0xa24] ss:$16 sps:$4 sm:$0xff]  }
 0x29c   :  { %4278 = vmatpush1.bf16.msra.mxu1 %v13252_v15  ;;  %4157 = vmatprep.subr.bf16.mxu0 %v13257_v2  ;;  %v13297_v15 = vld [vmem:[#allocation9 + $0x9e0] ss:$16 sps:$4 sm:$0xff]   ;;  %v13300_v2 = vld [vmem:[#allocation9 + $0x9e8] ss:$16 sps:$4 sm:$0xff]  }
 0x29d   :  { %4279 = vmatprep.subr.bf16.mxu1 %v13260_v8  ;;  %v13305_v8 = vld [vmem:[#allocation9 + $0xa04] ss:$16 sps:$4 sm:$0xff]  }
 0x29f   :  { %4158 = vmatpush1.bf16.msra.mxu0 %v13255_v0  ;;  %v3470_v0 = vrot.slane %v13990_v44, 1  ;;  %v13309_v44 = vld [vmem:[#allocation9 + $0xa20] ss:$16 sps:$4 sm:$0xff]  }
 0x2a0   :  { %4280 = vmatpush1.bf16.msra.mxu1 %v13258_v5  ;;  %4159 = vmatprep.subr.bf16.mxu0 %v13263_v34  ;;  %v13308_v5 = vld [vmem:[#allocation9 + $0xa0c] ss:$16 sps:$4 sm:$0xff]   ;;  %v3483_v34 = vrot.slane %v14054_v49, 1  ;;  %v13312_v49 = vld [vmem:[#allocation9 + $0xa28] ss:$16 sps:$4 sm:$0xff]  }
 0x2a1   :  { %4281 = vmatprep.subr.bf16.mxu1 %v13266_v26  ;;  %v3469_v26 = vrot.slane %v11516_v13, 1  ;;  %v13342_v13 = vld [vmem:[#allocation9 + $0xac8] ss:$16 sps:$4 sm:$0xff]  }
 0x2a3   :  { %4160 = vmatpush1.bf16.msra.mxu0 %v13261_v33  ;;  %v13303_v33 = vld [vmem:[#allocation9 + $0xa00] ss:$16 sps:$4 sm:$0xff]  }
 0x2a4   :  { %4282 = vmatpush1.bf16.msra.mxu1 %v13264_v27  ;;  %4161 = vmatprep.subr.bf16.mxu0 %v13269_v63  ;;  %v3471_v27 = vsel %vm614_vm2, %v3469_v26, %v3470_v0  ;;  %v3484_v63 = vsel %vm614_vm2, %v3473_v55, %v3483_v34  ;;  %v13318_v55 = vld [vmem:[#allocation9 + $0xa48] ss:$16 sps:$4 sm:$0xff]   ;;  %v13351_v26 = vld [vmem:[#allocation9 + $0xb00] ss:$16 sps:$4 sm:$0xff]  }
 0x2a5   :  { %4283 = vmatprep.subr.bf16.mxu1 %v13272_v11  ;;  %v13314_v11 = vld [vmem:[#allocation9 + $0xa2c] ss:$16 sps:$4 sm:$0xff]  }
 0x2a6   :  { %v14118_v21 = vpop.f32.mrb[28].mxu0  ;;  %v14120_v37 = vpop.f32.mrb[28].mxu1 }
 0x2a7   :  { %v14122_v9 = vpop.f32.mrb[29].mxu0  ;;  %v14124_v22 = vpop.f32.mrb[29].mxu1  ;;  %4162 = vmatpush1.bf16.msra.mxu0 %v13267_v39  ;;  %v3481_v39 = vrot.slane %v14056_v43, 1  ;;  %v13321_v43 = vld [vmem:[#allocation9 + $0xa60] ss:$16 sps:$4 sm:$0xff]  }
 0x2a8   :  { %v2236_v47 = vpop.f32.mrb[30].mxu0  ;;  %v2358_v53 = vpop.f32.mrb[30].mxu1  ;;  %4284 = vmatpush1.bf16.msra.mxu1 %v13270_v40  ;;  %4163 = vmatprep.subr.bf16.mxu0 %v13275_v41  ;;  %v13317_v40 = vld [vmem:[#allocation9 + $0xa44] ss:$16 sps:$4 sm:$0xff]   ;;  %v13320_v41 = vld [vmem:[#allocation9 + $0xa4c] ss:$16 sps:$4 sm:$0xff]  }
 0x2a9   :  { %v2237_v56 = vpop.f32.mrb[31].mxu0  ;;  %v2359_v29 = vpop.f32.mrb[31].mxu1  ;;  %4285 = vmatprep.subr.bf16.mxu1 %v13278_v18  ;;  %v13315_v18 = vld [vmem:[#allocation9 + $0xa40] ss:$16 sps:$4 sm:$0xff]   ;;  %v3482_v32 = vsel %vm614_vm2, %v3470_v0, %v3481_v39  ;;  %v14136_v47 = vld [vmem:[#allocation2 + $0x8] sm:$0xee] }
 0x2aa   :  { %v13326_v53 = vld [vmem:[#allocation9 + $0xa6c] ss:$16 sps:$4 sm:$0xff]   ;;  %v13324_v56 = vld [vmem:[#allocation9 + $0xa68] ss:$16 sps:$4 sm:$0xff]   ;;  %v13329_v29 = vld [vmem:[#allocation9 + $0xa84] ss:$16 sps:$4 sm:$0xff]  }
 0x2ab   :  { %4164 = vmatpush1.bf16.msra.mxu0 %v13273_v20  ;;  %v13323_v20 = vld [vmem:[#allocation9 + $0xa64] ss:$16 sps:$4 sm:$0xff]   ;;  %v13348_v0 = vld [vmem:[#allocation9 + $0xae8] ss:$16 sps:$4 sm:$0xff]  }
 0x2ac   :  { %4286 = vmatpush1.bf16.msra.mxu1 %v13276_v50  ;;  %4165 = vmatprep.subr.bf16.mxu0 %v13281_v54  ;;  %v14138_v50 = vld [vmem:[#allocation2 + $0x18] sm:$0xff] }
 0x2ad   :  { %4287 = vmatprep.subr.bf16.mxu1 %v13284_v57  ;;  %v11519_v54 = vcombine.high %v14136_v47, %v14138_v50  ;;  %v13332_v57 = vld [vmem:[#allocation9 + $0xa8c] ss:$16 sps:$4 sm:$0xff]  }
 0x2af   :  { %4166 = vmatpush1.bf16.msra.mxu0 %v13279_v60  ;;  %v3479_v60 = vrot.slane %v14045_v28, 1 }
 0x2b0   :  { %4288 = vmatpush1.bf16.msra.mxu1 %v13282_v61  ;;  %4167 = vmatprep.subr.bf16.mxu0 %v13287_v3  ;;  %v13327_v61 = vld [vmem:[#allocation9 + $0xa80] ss:$16 sps:$4 sm:$0xff]   ;;  %v3478_v3 = vrot.slane %v11519_v54, 1 }
 0x2b1   :  { %4289 = vmatprep.subr.bf16.mxu1 %v13290_v6  ;;  %v13330_v6 = vld [vmem:[#allocation9 + $0xa88] ss:$16 sps:$4 sm:$0xff]   ;;  %v13363_v54 = vld [vmem:[#allocation9 + $0xb40] ss:$16 sps:$4 sm:$0xff]  }
 0x2b3   :  { %4168 = vmatpush1.bf16.msra.mxu0 %v13285_v17  ;;  %v13335_v17 = vld [vmem:[#allocation9 + $0xaa4] ss:$16 sps:$4 sm:$0xff]  }
 0x2b4   :  { %4290 = vmatpush1.bf16.msra.mxu1 %v13288_v7  ;;  %4169 = vmatprep.subr.bf16.mxu0 %v13293_v19  ;;  %v3480_v7 = vsel %vm614_vm2, %v3478_v3, %v3479_v60  ;;  %v13338_v19 = vld [vmem:[#allocation9 + $0xaac] ss:$16 sps:$4 sm:$0xff]  }
 0x2b5   :  { %4291 = vmatprep.subr.bf16.mxu1 %v13296_v4  ;;  %v13333_v4 = vld [vmem:[#allocation9 + $0xaa0] ss:$16 sps:$4 sm:$0xff]   ;;  %v13380_v3 = vld [vmem:[#allocation9 + $0xb8c] ss:$16 sps:$4 sm:$0xff]  }
 0x2b7   :  { %4170 = vmatpush1.bf16.msra.mxu0 %v13291_v46  ;;  %v13336_v46 = vld [vmem:[#allocation9 + $0xaa8] ss:$16 sps:$4 sm:$0xff]  }
 0x2b8   :  { %4292 = vmatpush1.bf16.msra.mxu1 %v13294_v58  ;;  %4171 = vmatprep.subr.bf16.mxu0 %v13299_v10  ;;  %v13341_v58 = vld [vmem:[#allocation9 + $0xac4] ss:$16 sps:$4 sm:$0xff]   ;;  %v13344_v10 = vld [vmem:[#allocation9 + $0xacc] ss:$16 sps:$4 sm:$0xff]  }
 0x2b9   :  { %4293 = vmatprep.subr.bf16.mxu1 %v13302_v12  ;;  %v13339_v12 = vld [vmem:[#allocation9 + $0xac0] ss:$16 sps:$4 sm:$0xff]  }
 0x2bb   :  { %4172 = vmatpush1.bf16.msra.mxu0 %v13297_v15  ;;  %v13347_v15 = vld [vmem:[#allocation9 + $0xae4] ss:$16 sps:$4 sm:$0xff]  }
 0x2bc   :  { %4294 = vmatpush1.bf16.msra.mxu1 %v13300_v2  ;;  %4202 = vmatprep.subr.bf16.mxu0 %v13305_v8  ;;  %v13350_v2 = vld [vmem:[#allocation9 + $0xaec] ss:$16 sps:$4 sm:$0xff]   ;;  %v13345_v8 = vld [vmem:[#allocation9 + $0xae0] ss:$16 sps:$4 sm:$0xff]  }
 0x2bd   :  { %4324 = vmatprep.subr.bf16.mxu1 %v13308_v5  ;;  %v13353_v5 = vld [vmem:[#allocation9 + $0xb04] ss:$16 sps:$4 sm:$0xff]  }
 0x2be   :  { %4174 = vmatmul.mubr.bf16.vlgmr.msra.gmra.mrb[20].mxu0 %v3471_v27 }
 0x2bf   :  { %4296 = vmatmul.mubr.bf16.vlgmr.msra.gmra.mrb[20].mxu1 %v3471_v27  ;;  %4183 = vmatprep.mubr.bf16.mxu0 %v3484_v63  ;;  %v13359_v27 = vld [vmem:[#allocation9 + $0xb24] ss:$16 sps:$4 sm:$0xff]  }
 0x2c0   :  { %4203 = vmatpush1.bf16.msra.mxu0 %v13303_v33  ;;  %4305 = vmatprep.mubr.bf16.mxu1 %v3484_v63  ;;  %v13354_v33 = vld [vmem:[#allocation9 + $0xb08] ss:$16 sps:$4 sm:$0xff]  }
 0x2c1   :  { %4325 = vmatpush1.bf16.msra.mxu1 %v13306_v62  ;;  %4204 = vmatprep.subr.bf16.mxu0 %v13311_v45  ;;  %v13362_v62 = vld [vmem:[#allocation9 + $0xb2c] ss:$16 sps:$4 sm:$0xff]  }
 0x2c2   :  { %4326 = vmatprep.subr.bf16.mxu1 %v13314_v11 }
 0x2c4   :  { %4205 = vmatpush1.bf16.msra.mxu0 %v13309_v44 }
 0x2c5   :  { %4327 = vmatpush1.bf16.msra.mxu1 %v13312_v49  ;;  %4206 = vmatprep.subr.bf16.mxu0 %v13317_v40  ;;  %v13357_v40 = vld [vmem:[#allocation9 + $0xb20] ss:$16 sps:$4 sm:$0xff]  }
 0x2c6   :  { %4184 = vmatmul.mubr.bf16.gmra.mrb[24].mxu0 %v3482_v32  ;;  %4328 = vmatprep.subr.bf16.mxu1 %v13320_v41 }
 0x2c7   :  { %4306 = vmatmul.mubr.bf16.gmra.mrb[24].mxu1 %v3482_v32  ;;  %4193 = vmatprep.mubr.bf16.mxu0 %v3483_v34  ;;  %v13360_v32 = vld [vmem:[#allocation9 + $0xb28] ss:$16 sps:$4 sm:$0xff]  }
 0x2c8   :  { %4207 = vmatpush1.bf16.msra.mxu0 %v13315_v18  ;;  %4315 = vmatprep.mubr.bf16.mxu1 %v3483_v34  ;;  %v13356_v34 = vld [vmem:[#allocation9 + $0xb0c] ss:$16 sps:$4 sm:$0xff]  }
 0x2c9   :  { %4329 = vmatpush1.bf16.msra.mxu1 %v13318_v55  ;;  %4208 = vmatprep.subr.bf16.mxu0 %v13323_v20 }
 0x2ca   :  { %4330 = vmatprep.subr.bf16.mxu1 %v13326_v53  ;;  %v13365_v53 = vld [vmem:[#allocation9 + $0xb44] ss:$16 sps:$4 sm:$0xff]  }
 0x2cc   :  { %4209 = vmatpush1.bf16.msra.mxu0 %v13321_v43 }
 0x2cd   :  { %4331 = vmatpush1.bf16.msra.mxu1 %v13324_v56  ;;  %4210 = vmatprep.subr.bf16.mxu0 %v13329_v29  ;;  %v13366_v56 = vld [vmem:[#allocation9 + $0xb48] ss:$16 sps:$4 sm:$0xff]   ;;  %v13371_v29 = vld [vmem:[#allocation9 + $0xb64] ss:$16 sps:$4 sm:$0xff]  }
 0x2ce   :  { %4194 = vmatmul.mubr.bf16.gmra.mrb[44].mxu0 %v3481_v39  ;;  %4332 = vmatprep.subr.bf16.mxu1 %v13332_v57  ;;  %v13372_v57 = vld [vmem:[#allocation9 + $0xb68] ss:$16 sps:$4 sm:$0xff]  }
 0x2cf   :  { %4316 = vmatmul.mubr.bf16.gmra.mrb[44].mxu1 %v3481_v39  ;;  %4234 = vmatprep.mubr.bf16.mxu0 %v3480_v7 }
 0x2d0   :  { %4211 = vmatpush1.bf16.msra.mxu0 %v13327_v61  ;;  %4356 = vmatprep.mubr.bf16.mxu1 %v3480_v7  ;;  %v13377_v61 = vld [vmem:[#allocation9 + $0xb84] ss:$16 sps:$4 sm:$0xff]  }
 0x2d1   :  { %4333 = vmatpush1.bf16.msra.mxu1 %v13330_v6  ;;  %4212 = vmatprep.subr.bf16.mxu0 %v13335_v17  ;;  %v13375_v6 = vld [vmem:[#allocation9 + $0xb80] ss:$16 sps:$4 sm:$0xff]   ;;  %v13378_v17 = vld [vmem:[#allocation9 + $0xb88] ss:$16 sps:$4 sm:$0xff]   ;;  %v13383_v7 = vld [vmem:[#allocation9 + $0xba4] ss:$16 sps:$4 sm:$0xff]  }
 0x2d2   :  { %4334 = vmatprep.subr.bf16.mxu1 %v13338_v19  ;;  %v13386_v19 = vld [vmem:[#allocation9 + $0xbac] ss:$16 sps:$4 sm:$0xff]  }
 0x2d4   :  { %4213 = vmatpush1.bf16.msra.mxu0 %v13333_v4  ;;  %v13381_v4 = vld [vmem:[#allocation9 + $0xba0] ss:$16 sps:$4 sm:$0xff]  }
 0x2d5   :  { %4335 = vmatpush1.bf16.msra.mxu1 %v13336_v46  ;;  %4214 = vmatprep.subr.bf16.mxu0 %v13341_v58  ;;  %v13384_v46 = vld [vmem:[#allocation9 + $0xba8] ss:$16 sps:$4 sm:$0xff]   ;;  %v13389_v58 = vld [vmem:[#allocation9 + $0xbc4] ss:$16 sps:$4 sm:$0xff]  }
 0x2d6   :  { %4336 = vmatprep.subr.bf16.mxu1 %v13344_v10  ;;  %v13392_v10 = vld [vmem:[#allocation9 + $0xbcc] ss:$16 sps:$4 sm:$0xff]  }
 0x2d8   :  { %4215 = vmatpush1.bf16.msra.mxu0 %v13339_v12  ;;  %v13387_v12 = vld [vmem:[#allocation9 + $0xbc0] ss:$16 sps:$4 sm:$0xff]  }
 0x2d9   :  { %4337 = vmatpush1.bf16.msra.mxu1 %v13342_v13  ;;  %4216 = vmatprep.subr.bf16.mxu0 %v13347_v15  ;;  %v13390_v13 = vld [vmem:[#allocation9 + $0xbc8] ss:$16 sps:$4 sm:$0xff]   ;;  %v13395_v15 = vld [vmem:[#allocation9 + $0xbe4] ss:$16 sps:$4 sm:$0xff]  }
 0x2da   :  { %4338 = vmatprep.subr.bf16.mxu1 %v13350_v2  ;;  %v13398_v2 = vld [vmem:[#allocation9 + $0xbec] ss:$16 sps:$4 sm:$0xff]  }
 0x2dc   :  { %4217 = vmatpush1.bf16.msra.mxu0 %v13345_v8  ;;  %v11518_v8 = vcombine.low %v14136_v47, %v14138_v50  ;;  %v3485_v50 = vrot.slane %v14081_v52, 1 }
 0x2dd   :  { %4339 = vmatpush1.bf16.msra.mxu1 %v13348_v0  ;;  %4218 = vmatprep.subr.bf16.mxu0 %v13353_v5  ;;  %v13393_v0 = vld [vmem:[#allocation9 + $0xbe0] ss:$16 sps:$4 sm:$0xff]   ;;  %v13396_v5 = vld [vmem:[#allocation9 + $0xbe8] ss:$16 sps:$4 sm:$0xff]  }
 0x2de   :  { %4340 = vmatprep.subr.bf16.mxu1 %v13356_v34  ;;  %v3476_v34 = vrot.slane %v14042_v36, 1 }
 0x2df   :  { %v2293_v45 = vpop.f32.mrb[32].mxu0  ;;  %v2415_v63 = vpop.f32.mrb[32].mxu1 }
 0x2e0   :  { %4219 = vmatpush1.bf16.msra.mxu0 %v13351_v26  ;;  %v14147_v11 = vadd.f32 %v2293_v45, %v14118_v21  ;;  %v14150_v44 = vadd.f32 %v2415_v63, %v14120_v37  ;;  %v2295_v49 = vpop.f32.mrb[33].mxu0  ;;  %v2417_v39 = vpop.f32.mrb[33].mxu1  ;;  %v13368_v37 = vld [vmem:[#allocation9 + $0xb4c] ss:$16 sps:$4 sm:$0xff]   ;;  %v3487_v26 = vrot.slane %v14075_v35, 1 }
 0x2e1   :  { %4341 = vmatpush1.bf16.msra.mxu1 %v13354_v33  ;;  %v14153_v41 = vadd.f32 %v2295_v49, %v14122_v9  ;;  %v14156_v18 = vadd.f32 %v2417_v39, %v14124_v22  ;;  %4220 = vmatprep.subr.bf16.mxu0 %v13359_v27  ;;  %v2297_v55 = vpop.f32.mrb[34].mxu0  ;;  %v2419_v20 = vpop.f32.mrb[34].mxu1  ;;  %v13374_v9 = vld [vmem:[#allocation9 + $0xb6c] ss:$16 sps:$4 sm:$0xff]   ;;  %v13369_v22 = vld [vmem:[#allocation9 + $0xb60] ss:$16 sps:$4 sm:$0xff]  }
 0x2e2   :  { %4342 = vmatprep.subr.bf16.mxu1 %v13362_v62  ;;  %v2298_v21 = vpop.f32.mrb[35].mxu0  ;;  %v2420_v43 = vpop.f32.mrb[35].mxu1  ;;  %v3475_v33 = vrot.slane %v11518_v8, 1  ;;  %v3488_v47 = vsel %vm614_vm2, %v3479_v60, %v3487_v26  ;;  %v3486_v62 = vsel %vm614_vm2, %v3476_v34, %v3485_v50  ;;  %v4924_v20 = vld [vmem:[#allocation10 + $0x800] sm:$0xff] }
 0x2e3   :  { %v4925_v21 = vld [vmem:[#allocation10 + $0x808] sm:$0xff] }
 0x2e4   :  { %4221 = vmatpush1.bf16.msra.mxu0 %v13357_v40  ;;  %v3477_v27 = vsel %vm614_vm2, %v3475_v33, %v3476_v34  ;;  %v4957_v34 = vld [vmem:[#allocation10 + $0x908] sm:$0xff] }
 0x2e5   :  { %4343 = vmatpush1.bf16.msra.mxu1 %v13360_v32  ;;  %4222 = vmatprep.subr.bf16.mxu0 %v13365_v53  ;;  %v4928_v53 = vld [vmem:[#allocation10 + $0x820] sm:$0xff] }
 0x2e6   :  { %4344 = vmatprep.subr.bf16.mxu1 %v13368_v37  ;;  %v11671_v43 = vcombine.high %v4924_v20, %v4928_v53  ;;  %v4929_v37 = vld [vmem:[#allocation10 + $0x828] sm:$0xff] }
 0x2e8   :  { %4223 = vmatpush1.bf16.msra.mxu0 %v13363_v54  ;;  %v4936_v54 = vld [vmem:[#allocation10 + $0x860] sm:$0xff] }
 0x2e9   :  { %4345 = vmatpush1.bf16.msra.mxu1 %v13366_v56  ;;  %4224 = vmatprep.subr.bf16.mxu0 %v13371_v29  ;;  %v11672_v56 = vcombine.low %v4925_v21, %v4929_v37  ;;  %v11673_v29 = vcombine.high %v4925_v21, %v4929_v37  ;;  %v4976_v21 = vld [vmem:[#allocation10 + $0x9a0] sm:$0xff]  ;;  %v4977_v37 = vld [vmem:[#allocation10 + $0x9a8] sm:$0xff] }
 0x2ea   :  { %4346 = vmatprep.subr.bf16.mxu1 %v13374_v9 }
 0x2ec   :  { %4225 = vmatpush1.bf16.msra.mxu0 %v13369_v22  ;;  %v4937_v22 = vld [vmem:[#allocation10 + $0x868] sm:$0xff] }
 0x2ed   :  { %4347 = vmatpush1.bf16.msra.mxu1 %v13372_v57  ;;  %4226 = vmatprep.subr.bf16.mxu0 %v13377_v61  ;;  %v4940_v57 = vld [vmem:[#allocation10 + $0x880] sm:$0xff] }
 0x2ee   :  { %4348 = vmatprep.subr.bf16.mxu1 %v13380_v3  ;;  %v4944_v61 = vld [vmem:[#allocation10 + $0x8a0] sm:$0xff]  ;;  %v4941_v3 = vld [vmem:[#allocation10 + $0x888] sm:$0xff] }
 0x2f0   :  { %4227 = vmatpush1.bf16.msra.mxu0 %v13375_v6  ;;  %v4945_v6 = vld [vmem:[#allocation10 + $0x8a8] sm:$0xff] }
 0x2f1   :  { %4349 = vmatpush1.bf16.msra.mxu1 %v13378_v17  ;;  %4228 = vmatprep.subr.bf16.mxu0 %v13383_v7 }
 0x2f2   :  { %4350 = vmatprep.subr.bf16.mxu1 %v13386_v19  ;;  %v11687_v19 = vcombine.high %v4940_v57, %v4944_v61 }
 0x2f4   :  { %4229 = vmatpush1.bf16.msra.mxu0 %v13381_v4  ;;  %v11689_v4 = vcombine.high %v4941_v3, %v4945_v6 }
 0x2f5   :  { %4351 = vmatpush1.bf16.msra.mxu1 %v13384_v46  ;;  %4230 = vmatprep.subr.bf16.mxu0 %v13389_v58  ;;  %v4948_v46 = vld [vmem:[#allocation10 + $0x8c0] sm:$0xff] }
 0x2f6   :  { %4352 = vmatprep.subr.bf16.mxu1 %v13392_v10  ;;  %v4952_v58 = vld [vmem:[#allocation10 + $0x8e0] sm:$0xff]  ;;  %v4949_v10 = vld [vmem:[#allocation10 + $0x8c8] sm:$0xff] }
 0x2f7   :  { %v11694_v33 = vcombine.low %v4948_v46, %v4952_v58 }
 0x2f8   :  { %4231 = vmatpush1.bf16.msra.mxu0 %v13387_v12  ;;  %v4953_v12 = vld [vmem:[#allocation10 + $0x8e8] sm:$0xff] }
 0x2f9   :  { %4353 = vmatpush1.bf16.msra.mxu1 %v13390_v13  ;;  %4232 = vmatprep.subr.bf16.mxu0 %v13395_v15  ;;  %v11686_v13 = vcombine.low %v4940_v57, %v4944_v61  ;;  %v11688_v15 = vcombine.low %v4941_v3, %v4945_v6  ;;  %v11697_v8 = vcombine.high %v4949_v10, %v4953_v12  ;;  %v4985_v57 = vld [vmem:[#allocation10 + $0x9e8] sm:$0xff]  ;;  %v4988_v6 = vld [vmem:[#allocation10 + $0xa00] sm:$0xff] }
 0x2fa   :  { %4354 = vmatprep.subr.bf16.mxu1 %v13398_v2  ;;  %v11695_v2 = vcombine.high %v4948_v46, %v4952_v58 }
 0x2fc   :  { %4233 = vmatpush1.bf16.msra.mxu0 %v13393_v0  ;;  %v4956_v0 = vld [vmem:[#allocation10 + $0x900] sm:$0xff] }
 0x2fd   :  { %4355 = vmatpush1.bf16.msra.mxu1 %v13396_v5  ;;  %6606 = vmatprep.subr.bf16.mxu0 %v11671_v43  ;;  %v4960_v5 = vld [vmem:[#allocation10 + $0x920] sm:$0xff] }
 0x2fe   :  { %6728 = vmatprep.subr.bf16.mxu1 %v11673_v29  ;;  %v4980_v29 = vld [vmem:[#allocation10 + $0x9c0] sm:$0xff] }
 0x2ff   :  { %4235 = vmatmul.mubr.bf16.vlgmr.msra.gmra.mrb[20].mxu0 %v3477_v27 }
 0x300   :  { %4357 = vmatmul.mubr.bf16.vlgmr.msra.gmra.mrb[20].mxu1 %v3477_v27  ;;  %4244 = vmatprep.mubr.bf16.mxu0 %v3488_v47  ;;  %v11696_v27 = vcombine.low %v4949_v10, %v4953_v12  ;;  %v4996_v12 = vld [vmem:[#allocation10 + $0xa40] sm:$0xff] }
 0x301   :  { %4366 = vmatprep.mubr.bf16.mxu1 %v3488_v47  ;;  %6729 = vmatpush1.bf16.msra.mxu1 %v11672_v56  ;;  %v11703_v47 = vcombine.high %v4956_v0, %v4960_v5 }
 0x307   :  { %4245 = vmatmul.mubr.bf16.gmra.mrb[24].mxu0 %v3486_v62 }
 0x308   :  { %4367 = vmatmul.mubr.bf16.gmra.mrb[24].mxu1 %v3486_v62  ;;  %4254 = vmatprep.mubr.bf16.mxu0 %v3487_v26  ;;  %v4964_v62 = vld [vmem:[#allocation10 + $0x940] sm:$0xff] }
 0x309   :  { %4376 = vmatprep.mubr.bf16.mxu1 %v3487_v26  ;;  %v4961_v26 = vld [vmem:[#allocation10 + $0x928] sm:$0xff] }
 0x30f   :  { %4255 = vmatmul.mubr.bf16.gmra.mrb[48].mxu0 %v3485_v50 }
 0x310   :  { %4377 = vmatmul.mubr.bf16.gmra.mrb[48].mxu1 %v3485_v50  ;;  %v11705_v50 = vcombine.high %v4957_v34, %v4961_v26 }
 0x320   :  { %v3138_v36 = vpop.f32.mrb[36].mxu0  ;;  %v3260_v35 = vpop.f32.mrb[36].mxu1 }
 0x321   :  { %v14169_v45 = vadd.f32 %v3138_v36, %v14147_v11  ;;  %v14172_v28 = vadd.f32 %v3260_v35, %v14150_v44  ;;  %v3140_v60 = vpop.f32.mrb[37].mxu0  ;;  %v3262_v63 = vpop.f32.mrb[37].mxu1  ;;  %v11670_v11 = vcombine.low %v4924_v20, %v4928_v53  ;;  %v4932_v44 = vld [vmem:[#allocation10 + $0x840] sm:$0xff]  ;;  %v4965_v35 = vld [vmem:[#allocation10 + $0x948] sm:$0xff] }
 0x322   :  { %v14175_v52 = vadd.f32 %v3140_v60, %v14153_v41  ;;  %v14178_v49 = vadd.f32 %v3262_v63, %v14156_v18  ;;  %v3142_v39 = vpop.f32.mrb[38].mxu0  ;;  %v3264_v40 = vpop.f32.mrb[38].mxu1  ;;  %v11679_v9 = vcombine.high %v4932_v44, %v4936_v54  ;;  %v4933_v41 = vld [vmem:[#allocation10 + $0x848] sm:$0xff]  ;;  %v11678_v17 = vcombine.low %v4932_v44, %v4936_v54  ;;  %v4968_v36 = vld [vmem:[#allocation10 + $0x960] sm:$0xff] }
 0x323   :  { %v3143_v32 = vpop.f32.mrb[39].mxu0  ;;  %v3265_v55 = vpop.f32.mrb[39].mxu1  ;;  %v11681_v18 = vcombine.high %v4933_v41, %v4937_v22  ;;  %6607 = vmatpush1.bf16.msra.mxu0 %v11670_v11  ;;  %v11680_v7 = vcombine.low %v4933_v41, %v4937_v22  ;;  %v4969_v60 = vld [vmem:[#allocation10 + $0x968] sm:$0xff]  ;;  %v11702_v63 = vcombine.low %v4956_v0, %v4960_v5  ;;  %v11704_v39 = vcombine.low %v4957_v34, %v4961_v26  ;;  %v4972_v53 = vld [vmem:[#allocation10 + $0x980] sm:$0xff] }
 0x324   :  { %6608 = vmatprep.subr.bf16.mxu0 %v11679_v9  ;;  %v11711_v40 = vcombine.high %v4964_v62, %v4968_v36  ;;  %v11713_v32 = vcombine.high %v4965_v35, %v4969_v60  ;;  %v11710_v55 = vcombine.low %v4964_v62, %v4968_v36  ;;  %v11712_v20 = vcombine.low %v4965_v35, %v4969_v60  ;;  %v4973_v11 = vld [vmem:[#allocation10 + $0x988] sm:$0xff]  ;;  %v4984_v9 = vld [vmem:[#allocation10 + $0x9e0] sm:$0xff] }
 0x325   :  { %6730 = vmatprep.subr.bf16.mxu1 %v11681_v18  ;;  %v11719_v43 = vcombine.high %v4972_v53, %v4976_v21  ;;  %v11718_v44 = vcombine.low %v4972_v53, %v4976_v21  ;;  %v11720_v54 = vcombine.low %v4973_v11, %v4977_v37  ;;  %v11721_v56 = vcombine.high %v4973_v11, %v4977_v37  ;;  %v4981_v41 = vld [vmem:[#allocation10 + $0x9c8] sm:$0xff]  ;;  %v5012_v11 = vld [vmem:[#allocation10 + $0xac0] sm:$0xff] }
 0x326   :  { %6731 = vmatpush1.bf16.msra.mxu1 %v11680_v7  ;;  %v11727_v22 = vcombine.high %v4980_v29, %v4984_v9  ;;  %v11726_v18 = vcombine.low %v4980_v29, %v4984_v9  ;;  %v11728_v61 = vcombine.low %v4981_v41, %v4985_v57  ;;  %v11729_v3 = vcombine.high %v4981_v41, %v4985_v57  ;;  %v4989_v7 = vld [vmem:[#allocation10 + $0xa08] sm:$0xff]  ;;  %v5020_v9 = vld [vmem:[#allocation10 + $0xb00] sm:$0xff] }
 0x327   :  { %6609 = vmatpush1.bf16.msra.mxu0 %v11678_v17  ;;  %6732 = vmatprep.subr.bf16.mxu1 %v11689_v4  ;;  %v4992_v17 = vld [vmem:[#allocation10 + $0xa20] sm:$0xff]  ;;  %v4993_v4 = vld [vmem:[#allocation10 + $0xa28] sm:$0xff] }
 0x328   :  { %6610 = vmatprep.subr.bf16.mxu0 %v11687_v19  ;;  %v11735_v19 = vcombine.high %v4988_v6, %v4992_v17  ;;  %v11734_v46 = vcombine.low %v4988_v6, %v4992_v17  ;;  %v11736_v58 = vcombine.low %v4989_v7, %v4993_v4  ;;  %v11737_v10 = vcombine.high %v4989_v7, %v4993_v4  ;;  %v5001_v0 = vld [vmem:[#allocation10 + $0xa68] sm:$0xff]  ;;  %v5024_v41 = vld [vmem:[#allocation10 + $0xb20] sm:$0xff] }
 0x329   :  { %v11767_v57 = vcombine.high %v5020_v9, %v5024_v41  ;;  %v5028_v17 = vld [vmem:[#allocation10 + $0xb40] sm:$0xff] }
 0x32a   :  { %6733 = vmatpush1.bf16.msra.mxu1 %v11688_v15  ;;  %v4997_v15 = vld [vmem:[#allocation10 + $0xa48] sm:$0xff]  ;;  %v5032_v7 = vld [vmem:[#allocation10 + $0xb60] sm:$0xff] }
 0x32b   :  { %6611 = vmatpush1.bf16.msra.mxu0 %v11686_v13  ;;  %6734 = vmatprep.subr.bf16.mxu1 %v11697_v8  ;;  %v5000_v13 = vld [vmem:[#allocation10 + $0xa60] sm:$0xff]  ;;  %v11775_v4 = vcombine.high %v5028_v17, %v5032_v7 }
 0x32c   :  { %6612 = vmatprep.subr.bf16.mxu0 %v11695_v2  ;;  %v11743_v8 = vcombine.high %v4996_v12, %v5000_v13 }
 0x32e   :  { %6735 = vmatpush1.bf16.msra.mxu1 %v11696_v27  ;;  %v11744_v27 = vcombine.low %v4997_v15, %v5001_v0 }
 0x32f   :  { %6613 = vmatpush1.bf16.msra.mxu0 %v11694_v33  ;;  %6736 = vmatprep.subr.bf16.mxu1 %v11705_v50  ;;  %v11742_v33 = vcombine.low %v4996_v12, %v5000_v13  ;;  %v5036_v13 = vld [vmem:[#allocation10 + $0xb80] sm:$0xff] }
 0x330   :  { %6614 = vmatprep.subr.bf16.mxu0 %v11703_v47  ;;  %v11745_v47 = vcombine.high %v4997_v15, %v5001_v0  ;;  %v5040_v15 = vld [vmem:[#allocation10 + $0xba0] sm:$0xff]  ;;  %v5041_v0 = vld [vmem:[#allocation10 + $0xba8] sm:$0xff] }
 0x332   :  { %6737 = vmatpush1.bf16.msra.mxu1 %v11704_v39  ;;  %v5004_v39 = vld [vmem:[#allocation10 + $0xa80] sm:$0xff] }
 0x333   :  { %6615 = vmatpush1.bf16.msra.mxu0 %v11702_v63  ;;  %6738 = vmatprep.subr.bf16.mxu1 %v11713_v32  ;;  %v5005_v32 = vld [vmem:[#allocation10 + $0xa88] sm:$0xff] }
 0x334   :  { %6616 = vmatprep.subr.bf16.mxu0 %v11711_v40  ;;  %v5008_v40 = vld [vmem:[#allocation10 + $0xaa0] sm:$0xff] }
 0x335   :  { %v11750_v53 = vcombine.low %v5004_v39, %v5008_v40 }
 0x336   :  { %6739 = vmatpush1.bf16.msra.mxu1 %v11712_v20  ;;  %v5009_v20 = vld [vmem:[#allocation10 + $0xaa8] sm:$0xff] }
 0x337   :  { %6617 = vmatpush1.bf16.msra.mxu0 %v11710_v55  ;;  %6740 = vmatprep.subr.bf16.mxu1 %v11721_v56  ;;  %v11753_v21 = vcombine.high %v5005_v32, %v5009_v20 }
 0x338   :  { %6618 = vmatprep.subr.bf16.mxu0 %v11719_v43  ;;  %v5013_v43 = vld [vmem:[#allocation10 + $0xac8] sm:$0xff] }
 0x33a   :  { %6741 = vmatpush1.bf16.msra.mxu1 %v11720_v54 }
 0x33b   :  { %6619 = vmatpush1.bf16.msra.mxu0 %v11718_v44  ;;  %6742 = vmatprep.subr.bf16.mxu1 %v11729_v3  ;;  %v5017_v44 = vld [vmem:[#allocation10 + $0xae8] sm:$0xff] }
 0x33c   :  { %6620 = vmatprep.subr.bf16.mxu0 %v11727_v22  ;;  %v11760_v56 = vcombine.low %v5013_v43, %v5017_v44  ;;  %v11761_v29 = vcombine.high %v5013_v43, %v5017_v44  ;;  %v5021_v22 = vld [vmem:[#allocation10 + $0xb08] sm:$0xff] }
 0x33e   :  { %6743 = vmatpush1.bf16.msra.mxu1 %v11728_v61  ;;  %v11766_v61 = vcombine.low %v5020_v9, %v5024_v41  ;;  %v4405_v41 = vld [vmem:[#allocation13] sm:$0xf] }
 0x33f   :  { %6621 = vmatpush1.bf16.msra.mxu0 %v11726_v18  ;;  %6744 = vmatprep.subr.bf16.mxu1 %v11737_v10  ;;  %v5025_v18 = vld [vmem:[#allocation10 + $0xb28] sm:$0xff] }
 0x340   :  { %6622 = vmatprep.subr.bf16.mxu0 %v11735_v19  ;;  %v11768_v3 = vcombine.low %v5021_v22, %v5025_v18  ;;  %v11769_v6 = vcombine.high %v5021_v22, %v5025_v18  ;;  %v5029_v19 = vld [vmem:[#allocation10 + $0xb48] sm:$0xff]  ;;  %v14217_v22 = vrot.slane %v4405_v41, %v13847_v23  ;;  %v14223_v18 = vrot.slane %v4405_v41, %v13857_v30 }
 0x342   :  { %6745 = vmatpush1.bf16.msra.mxu1 %v11736_v58  ;;  %v11774_v58 = vcombine.low %v5028_v17, %v5032_v7 }
 0x343   :  { %6623 = vmatpush1.bf16.msra.mxu0 %v11734_v46  ;;  %6746 = vmatprep.subr.bf16.mxu1 %v11745_v47  ;;  %v5033_v46 = vld [vmem:[#allocation10 + $0xb68] sm:$0xff]  ;;  %v5048_v47 = vld [vmem:[#allocation10 + $0xbe0] sm:$0xff] }
 0x344   :  { %6624 = vmatprep.subr.bf16.mxu0 %v11743_v8  ;;  %v11776_v10 = vcombine.low %v5029_v19, %v5033_v46  ;;  %v11777_v12 = vcombine.high %v5029_v19, %v5033_v46  ;;  %v11783_v8 = vcombine.high %v5036_v13, %v5040_v15 }
 0x346   :  { %6747 = vmatpush1.bf16.msra.mxu1 %v11744_v27  ;;  %v5044_v27 = vld [vmem:[#allocation10 + $0xbc0] sm:$0xff] }
 0x347   :  { %6625 = vmatpush1.bf16.msra.mxu0 %v11742_v33  ;;  %6748 = vmatprep.subr.bf16.mxu1 %v11753_v21 }
 0x360   :  { %v3199_v2 = vpop.f32.mrb[40].mxu0 }
 0x361   :  { %v14181_v5 = vadd.f32 %v3199_v2, %v14169_v45  ;;  %v3321_v34 = vpop.f32.mrb[40].mxu1  ;;  %v3201_v26 = vpop.f32.mrb[41].mxu0  ;;  %v5037_v2 = vld [vmem:[#allocation10 + $0xb88] sm:$0xff] }
 0x362   :  { %v14184_v50 = vadd.f32 %v3321_v34, %v14172_v28  ;;  %v14187_v62 = vadd.f32 %v3201_v26, %v14175_v52  ;;  %v3323_v36 = vpop.f32.mrb[41].mxu1  ;;  %v3203_v35 = vpop.f32.mrb[42].mxu0  ;;  %v11751_v28 = vcombine.high %v5004_v39, %v5008_v40  ;;  %v11752_v52 = vcombine.low %v5005_v32, %v5009_v20  ;;  %v14192_v32 = vld [vmem:[#allocation10 + $0xc00] sm:$0xff] }
 0x363   :  { %v14190_v60 = vadd.f32 %v3323_v36, %v14178_v49  ;;  %v3325_v63 = vpop.f32.mrb[42].mxu1  ;;  %v3204_v45 = vpop.f32.mrb[43].mxu0  ;;  %v5016_v49 = vld [vmem:[#allocation10 + $0xae0] sm:$0xff]  ;;  %v11782_v34 = vcombine.low %v5036_v13, %v5040_v15  ;;  %v11784_v26 = vcombine.low %v5037_v2, %v5041_v0  ;;  %v11785_v33 = vcombine.high %v5037_v2, %v5041_v0  ;;  %v5045_v36 = vld [vmem:[#allocation10 + $0xbc8] sm:$0xff] }
 0x364   :  { %v3326_v55 = vpop.f32.mrb[43].mxu1  ;;  %6626 = vmatprep.subr.bf16.mxu0 %v11751_v28  ;;  %6749 = vmatpush1.bf16.msra.mxu1 %v11752_v52  ;;  %v11759_v37 = vcombine.high %v5012_v11, %v5016_v49  ;;  %v11758_v54 = vcombine.low %v5012_v11, %v5016_v49  ;;  %v11791_v35 = vcombine.high %v5044_v27, %v5048_v47  ;;  %v5049_v63 = vld [vmem:[#allocation10 + $0xbe8] sm:$0xff] }
 0x365   :  { %6627 = vmatpush1.bf16.msra.mxu0 %v11750_v53  ;;  %6750 = vmatprep.subr.bf16.mxu1 %v11761_v29  ;;  %v11790_v45 = vcombine.low %v5044_v27, %v5048_v47  ;;  %v11792_v39 = vcombine.low %v5045_v36, %v5049_v63  ;;  %v11793_v40 = vcombine.high %v5045_v36, %v5049_v63  ;;  %v14194_v55 = vld [vmem:[#allocation10 + $0xc20] sm:$0xff]  ;;  %v14196_v28 = vld [vmem:[#allocation10 + $0xc08] sm:$0xff] }
 0x366   :  { %6628 = vmatprep.subr.bf16.mxu0 %v11759_v37  ;;  %v11799_v20 = vcombine.high %v14192_v32, %v14194_v55  ;;  %v14200_v53 = vld [vmem:[#allocation10 + $0xc28] sm:$0xff]  ;;  %v11798_v52 = vcombine.low %v14192_v32, %v14194_v55 }
 0x367   :  { %v11800_v21 = vcombine.low %v14196_v28, %v14200_v53  ;;  %v11801_v11 = vcombine.high %v14196_v28, %v14200_v53 }
 0x368   :  { %6751 = vmatpush1.bf16.msra.mxu1 %v11760_v56 }
 0x369   :  { %6629 = vmatpush1.bf16.msra.mxu0 %v11758_v54  ;;  %6752 = vmatprep.subr.bf16.mxu1 %v11769_v6 }
 0x36a   :  { %6630 = vmatprep.subr.bf16.mxu0 %v11767_v57  ;;  %v14220_v57 = vrot.slane %v4405_v41, %v13850_v24 }
 0x36c   :  { %6753 = vmatpush1.bf16.msra.mxu1 %v11768_v3 }
 0x36d   :  { %6631 = vmatpush1.bf16.msra.mxu0 %v11766_v61  ;;  %6754 = vmatprep.subr.bf16.mxu1 %v11777_v12  ;;  %v14226_v61 = vrot.slane %v4405_v41, %v13860_v31 }
 0x36e   :  { %6632 = vmatprep.subr.bf16.mxu0 %v11775_v4 }
 0x370   :  { %6755 = vmatpush1.bf16.msra.mxu1 %v11776_v10 }
 0x371   :  { %6633 = vmatpush1.bf16.msra.mxu0 %v11774_v58  ;;  %6756 = vmatprep.subr.bf16.mxu1 %v11785_v33 }
 0x372   :  { %6634 = vmatprep.subr.bf16.mxu0 %v11783_v8 }
 0x374   :  { %6757 = vmatpush1.bf16.msra.mxu1 %v11784_v26 }
 0x375   :  { %6635 = vmatpush1.bf16.msra.mxu0 %v11782_v34  ;;  %6758 = vmatprep.subr.bf16.mxu1 %v11793_v40 }
 0x376   :  { %6636 = vmatprep.subr.bf16.mxu0 %v11791_v35 }
 0x378   :  { %6759 = vmatpush1.bf16.msra.mxu1 %v11792_v39 }
 0x379   :  { %6637 = vmatpush1.bf16.msra.mxu0 %v11790_v45  ;;  %6789 = vmatprep.subr.bf16.mxu1 %v11801_v11 }
 0x37a   :  { %6667 = vmatprep.subr.bf16.mxu0 %v11799_v20 }
 0x3a1   :  { %v14208_v49 = vpop.f32.mrb[44].mxu0 }
 0x3a2   :  { %v14210_v43 = vpop.f32.mrb[44].mxu1  ;;  %v14212_v37 = vpop.f32.mrb[45].mxu0 }
 0x3a3   :  { %v14214_v44 = vpop.f32.mrb[45].mxu1  ;;  %v4199_v54 = vpop.f32.mrb[46].mxu0 }
 0x3a4   :  { %v4321_v56 = vpop.f32.mrb[46].mxu1  ;;  %v4200_v29 = vpop.f32.mrb[47].mxu0 }
 0x3a5   :  { %v4322_v9 = vpop.f32.mrb[47].mxu1 }
 0x3d2   :  { %v4236_v3 = vpop.f32.mrb[20].mxu0 }
 0x3d3   :  { %v4427_v6 = vadd.f32 %v14217_v22, %v4236_v3  ;;  %v4358_v17 = vpop.f32.mrb[20].mxu1  ;;  %v4238_v7 = vpop.f32.mrb[21].mxu0 }
 0x3d4   :  { %v4429_v19 = vadd.f32 %v14220_v57, %v4358_v17  ;;  %v4428_v4 = vadd.f32 %v14223_v18, %v4238_v7  ;;  %v4360_v46 = vpop.f32.mrb[21].mxu1  ;;  %v4240_v58 = vpop.f32.mrb[22].mxu0 }
 0x3d5   :  { %v4447_v10 = vmax.f32 %v4427_v6, 0.0  ;;  %v4430_v12 = vadd.f32 %v14226_v61, %v4360_v46  ;;  %v4431_v13 = vadd.f32 %v14217_v22, %v4240_v58  ;;  %v4362_v15 = vpop.f32.mrb[22].mxu1  ;;  %v4242_v2 = vpop.f32.mrb[23].mxu0 }
 0x3d6   :  { %v4449_v8 = vmax.f32 %v4429_v19, 0.0  ;;  %v4448_v0 = vmax.f32 %v4428_v4, 0.0  ;;  %v4433_v34 = vadd.f32 %v14220_v57, %v4362_v15  ;;  %v4432_v26 = vadd.f32 %v14223_v18, %v4242_v2  ;;  %v4364_v33 = vpop.f32.mrb[23].mxu1 }
 0x3d7   :  { %v4467_v27 = vmul.f32 %v4447_v10, %v13874_v38  ;;  %v4450_v47 = vmax.f32 %v4430_v12, 0.0  ;;  %v4451_v36 = vmax.f32 %v4431_v13, 0.0  ;;  %v4434_v35 = vadd.f32 %v14226_v61, %v4364_v33 }
 0x3d8   :  { %v4469_v63 = vmul.f32 %v4449_v8, %v13874_v38  ;;  %v4468_v45 = vmul.f32 %v4448_v0, %v13874_v38  ;;  %v4453_v39 = vmax.f32 %v4433_v34, 0.0  ;;  %v4452_v40 = vmax.f32 %v4432_v26, 0.0 }
 0x3d9   :  { %v4470_v20 = vmul.f32 %v4450_v47, %v13874_v38  ;;  %v4471_v11 = vmul.f32 %v4451_v36, %v13884_v59  ;;  %v4454_v54 = vmax.f32 %v4434_v35, 0.0 }
 0x3da   :  { %v12456_v56 = vpack.c.bf16 %v4468_v45, %v4467_v27  ;;  %v4473_v29 = vmul.f32 %v4453_v39, %v13884_v59  ;;  %v4472_v9 = vmul.f32 %v4452_v40, %v13884_v59  ;;  %v4246_v41 = vpop.f32.mrb[24].mxu0 }
 0x3db   :  { %v12457_v3 = vpack.c.bf16 %v4470_v20, %v4469_v63  ;;  %v4474_v6 = vmul.f32 %v4454_v54, %v13884_v59  ;;  %v4435_v17 = vadd.f32 %v14217_v22, %v4246_v41  ;;  %v4368_v7 = vpop.f32.mrb[24].mxu1  ;;  %v4248_v19 = vpop.f32.mrb[25].mxu0 }
 0x3dc   :  { %v4542_v4 = vshrl.u32 %v12456_v56, 16  ;;  %v12458_v46 = vpack.c.bf16 %v4472_v9, %v4471_v11  ;;  %v4437_v38 = vadd.f32 %v14220_v57, %v4368_v7  ;;  %v4370_v58 = vpop.f32.mrb[25].mxu1  ;;  %v4250_v10 = vpop.f32.mrb[26].mxu0  ;;  %v4545_v34 = vshll.u32 %v12456_v56, 16 }
 0x3dd   :  { %v4549_v12 = vshrl.u32 %v12457_v3, 16  ;;  %v12459_v13 = vpack.c.bf16 %v4474_v6, %v4473_v29  ;;  %v4455_v15 = vmax.f32 %v4435_v17, 0.0  ;;  %v4372_v2 = vpop.f32.mrb[26].mxu1  ;;  %v4252_v8 = vpop.f32.mrb[27].mxu0  ;;  %v4552_v47 = vshll.u32 %v12457_v3, 16 }
 0x3de   :  { %v4544_v0 = vrot.slane %v4542_v4, 7  ;;  %v4557_v26 = vshrl.u32 %v12458_v46, 16  ;;  %v4457_v33 = vmax.f32 %v4437_v38, 0.0  ;;  %v4374_v59 = vpop.f32.mrb[27].mxu1  ;;  %v4560_v36 = vshll.u32 %v12458_v46, 16 }
 0x3df   :  { %v4551_v27 = vrot.slane %v4549_v12, 7  ;;  %v4566_v35 = vshrl.u32 %v12459_v13, 16  ;;  %v4569_v39 = vshll.u32 %v12459_v13, 16  ;;  %v4475_v40 = vmul.f32 %v4455_v15, %v13918_v51 }
 0x3e0   :  { %v4547_v63 = vor.u32 %v4545_v34, %v4544_v0  ;;  %v14246_v45 = vrot.slane %v4557_v26, 7  ;;  %v4555_v20 = vrot.slane %v4544_v0, 4  ;;  %v4436_v29 = vadd.f32 %v14223_v18, %v4248_v19 }
 0x3e1   :  { %v4554_v11 = vor.u32 %v4552_v47, %v4551_v27  ;;  %v14249_v54 = vrot.slane %v4566_v35, 7  ;;  %v4477_v41 = vmul.f32 %v4457_v33, %v13918_v51  ;;  %v4438_v3 = vadd.f32 %v14226_v61, %v4370_v58 }
 0x3e2   :  { %v14254_v56 = vsel %vm13914_vm10, %v4547_v63, 0  ;;  %v4562_v9 = vor.u32 %v4560_v36, %v14246_v45  ;;  %v4256_v6 = vpop.f32.mrb[48].mxu0  ;;  %v4564_v17 = vrot.slane %v4551_v27, 4  ;;  %v4456_v4 = vmax.f32 %v4436_v29, 0.0 }
 0x3e3   :  { %4639 = vst [vmem:[#allocation3] sm:$0xff] %v14254_v56  ;;  %v14262_v7 = vsel %vm13914_vm10, %v4554_v11, 0  ;;  %v4571_v19 = vor.u32 %v4569_v39, %v14249_v54  ;;  %v4378_v46 = vpop.f32.mrb[48].mxu1  ;;  %v4258_v38 = vpop.f32.mrb[49].mxu0  ;;  %v4458_v58 = vmax.f32 %v4438_v3, 0.0  ;;  %v4439_v13 = vadd.f32 %v14217_v22, %v4250_v10 }
 0x3e4   :  { %4642 = vst [vmem:[#allocation3 + $0x8] sm:$0xff] %v14262_v7  ;;  %v14268_v12 = vsel %vm13933_vm12, %v4555_v20, %v4562_v9  ;;  %v4441_v15 = vadd.f32 %v14220_v57, %v4372_v2  ;;  %v4380_v0 = vpop.f32.mrb[49].mxu1  ;;  %v4260_v48 = vpop.f32.mrb[50].mxu0  ;;  %v4476_v26 = vmul.f32 %v4456_v4, %v13918_v51  ;;  %v4440_v33 = vadd.f32 %v14223_v18, %v4252_v8 }
 0x3e5   :  { %4643 = vst [vmem:[#allocation3 + $0x10] sm:$0xff] %v14268_v12  ;;  %v14275_v34 = vsel %vm13933_vm12, %v4564_v17, %v4571_v19  ;;  %v4442_v27 = vadd.f32 %v14226_v61, %v4374_v59  ;;  %v4382_v47 = vpop.f32.mrb[50].mxu1  ;;  %v4261_v36 = vpop.f32.mrb[51].mxu0  ;;  %v4478_v10 = vmul.f32 %v4458_v58, %v13918_v51  ;;  %v4459_v2 = vmax.f32 %v4439_v13, 0.0 }
 0x3e6   :  { %4644 = vst [vmem:[#allocation3 + $0x18] sm:$0xff] %v14275_v34  ;;  %v4461_v35 = vmax.f32 %v4441_v15, 0.0  ;;  %v4257_v63 = vadd.f32 %v4256_v6, %v14208_v49  ;;  %v4383_v39 = vpop.f32.mrb[51].mxu1  ;;  %v12460_v20 = vpack.c.bf16 %v4476_v26, %v4475_v40  ;;  %v4460_v11 = vmax.f32 %v4440_v33, 0.0 }
 0x3e7   :  { %v4462_v29 = vmax.f32 %v4442_v27, 0.0  ;;  %v4379_v9 = vadd.f32 %v4378_v46, %v14210_v43  ;;  %v12461_v3 = vpack.c.bf16 %v4478_v10, %v4477_v41  ;;  %v4479_v8 = vmul.f32 %v4459_v2, %v13948_v42 }
 0x3e8   :  { %v4481_v59 = vmul.f32 %v4461_v35, %v13948_v42  ;;  %v4401_v17 = vadd.f32 %v4257_v63, %v14181_v5  ;;  %v4575_v19 = vshrl.u32 %v12460_v20, 16  ;;  %v4480_v51 = vmul.f32 %v4460_v11, %v13948_v42 }
 0x3e9   :  { %v4482_v4 = vmul.f32 %v4462_v29, %v13948_v42  ;;  %v4578_v58 = vshll.u32 %v12460_v20, 16  ;;  %v4584_v49 = vshrl.u32 %v12461_v3, 16  ;;  %v4403_v6 = vadd.f32 %v4379_v9, %v14184_v50 }
 0x3ea   :  { %v4443_v40 = vadd.f32 %v14217_v22, %v4401_v17  ;;  %v4577_v13 = vrot.slane %v4575_v19, 7  ;;  %v12462_v43 = vpack.c.bf16 %v4480_v51, %v4479_v8  ;;  %v4259_v46 = vadd.f32 %v4258_v38, %v14212_v37 }
 0x3eb   :  { %v12463_v41 = vpack.c.bf16 %v4482_v4, %v4481_v59  ;;  %v4586_v15 = vrot.slane %v4584_v49, 7  ;;  %v4587_v48 = vshll.u32 %v12461_v3, 16  ;;  %v4445_v5 = vadd.f32 %v14220_v57, %v4403_v6 }
 0x3ec   :  { %v4381_v26 = vadd.f32 %v4380_v0, %v14214_v44  ;;  %v4573_v33 = vrot.slane %v14246_v45, 4  ;;  %v4582_v42 = vrot.slane %v14249_v54, 4  ;;  %v4580_v27 = vor.u32 %v4578_v58, %v4577_v13 }
 0x3ed   :  { %v4593_v47 = vshrl.u32 %v12462_v43, 16  ;;  %v4589_v22 = vor.u32 %v4587_v48, %v4586_v15  ;;  %v4596_v36 = vshll.u32 %v12462_v43, 16  ;;  %v4602_v50 = vshrl.u32 %v12463_v41, 16 }
 0x3ee   :  { %v4463_v10 = vmax.f32 %v4443_v40, 0.0  ;;  %v4581_v2 = vsel %vm13933_vm12, %v4573_v33, %v4580_v27  ;;  %v4605_v38 = vshll.u32 %v12463_v41, 16  ;;  %v4465_v35 = vmax.f32 %v4445_v5, 0.0  ;;  %v5061_v33 = vld [vmem:[#allocation10 + $0xc48] sm:$0xff] }
 0x3ef   :  { %v14298_v37 = vrot.slane %v4593_v47, 7  ;;  %v4590_v44 = vsel %vm13933_vm12, %v4582_v42, %v4589_v22  ;;  %v14302_v57 = vrot.slane %v4602_v50, 7  ;;  %v4402_v45 = vadd.f32 %v4259_v46, %v14187_v62  ;;  %v5060_v46 = vld [vmem:[#allocation10 + $0xc40] sm:$0xff]  ;;  %v5065_v42 = vld [vmem:[#allocation10 + $0xc68] sm:$0xff] }
 0x3f0   :  { %v4404_v54 = vadd.f32 %v4381_v26, %v14190_v60  ;;  %v4591_v0 = vrot.slane %v4577_v13, 4  ;;  %v4600_v63 = vrot.slane %v4586_v15, 4  ;;  %v14309_v20 = vcombine.low %v14254_v56, %v14268_v12  ;;  %v5064_v15 = vld [vmem:[#allocation10 + $0xc60] sm:$0xff] }
 0x3f1   :  { %v4598_v39 = vor.u32 %v4596_v36, %v14298_v37  ;;  %v4607_v11 = vor.u32 %v4605_v38, %v14302_v57  ;;  %v4483_v29 = vmul.f32 %v4463_v10, %v13972_v14  ;;  %v4444_v9 = vadd.f32 %v14223_v18, %v4402_v45 }
 0x3f2   :  { %v4446_v3 = vadd.f32 %v14226_v61, %v4404_v54  ;;  %v4485_v60 = vmul.f32 %v4465_v35, %v13972_v14  ;;  %v14320_v8 = vcombine.high %v14254_v56, %v14268_v12  ;;  %v5225_v59 = vshll.u32 %v14309_v20, 16 }
 0x3f3   :  { %v4599_v62 = vsel %vm13933_vm12, %v4591_v0, %v4598_v39  ;;  %v4608_v17 = vsel %vm13933_vm12, %v4600_v63, %v4607_v11  ;;  %v4464_v19 = vmax.f32 %v4444_v9, 0.0  ;;  %v5223_v58 = vshrl.u32 %v14309_v20, 16  ;;  %v5068_v0 = vld [vmem:[#allocation10 + $0xc80] sm:$0xff]  ;;  %v5069_v11 = vld [vmem:[#allocation10 + $0xc88] sm:$0xff] }
 0x3f4   :  { %v4466_v51 = vmax.f32 %v4446_v3, 0.0  ;;  %v14325_v4 = vcombine.low %v4581_v2, %v4599_v62  ;;  %v14327_v18 = vcombine.high %v4581_v2, %v4599_v62  ;;  %v5237_v61 = vshll.u32 %v14320_v8, 16 }
 0x3f5   :  { %v5227_v49 = vrot.slane %v5225_v59, 1  ;;  %v4484_v40 = vmul.f32 %v4464_v19, %v13972_v14  ;;  %v5235_v6 = vshrl.u32 %v14320_v8, 16  ;;  %v14340_v27 = vcombine.low %v14262_v7, %v14275_v34 }
 0x3f6   :  { %v4486_v56 = vmul.f32 %v4466_v51, %v13972_v14  ;;  %v5230_v12 = vshll.u32 %v14325_v4, 16  ;;  %v5239_v13 = vrot.slane %v5237_v61, 1  ;;  %v5242_v43 = vshll.u32 %v14327_v18, 16  ;;  %v4649_v51 = vld [vmem:[#allocation3 + $0x40] sm:$0x77] }
 0x3f7   :  { %v5228_v41 = vor.u32 %v5227_v49, %v5223_v58  ;;  %v12464_v48 = vpack.c.bf16 %v4484_v40, %v4483_v29  ;;  %v14346_v22 = vcombine.high %v14262_v7, %v14275_v34  ;;  %v14348_v36 = vcombine.low %v4590_v44, %v4608_v17  ;;  %v5072_v34 = vld [vmem:[#allocation10 + $0xca0] sm:$0xff]  ;;  %v5073_v29 = vld [vmem:[#allocation10 + $0xca8] sm:$0xff] }
 0x3f8   :  { %v12465_v5 = vpack.c.bf16 %v4486_v56, %v4485_v60  ;;  %v14336_v26 = vrot.slane %v5230_v12, 1  ;;  %v5240_v14 = vor.u32 %v5239_v13, %v5235_v6  ;;  %v14342_v47 = vrot.slane %v5242_v43, 1  ;;  %v4652_v58 = vld [vmem:[#allocation3 + $0x48] sm:$0x77] }
 0x3f9   :  { %v4611_v50 = vshrl.u32 %v12464_v48, 16  ;;  %v11807_v2 = vcombine.high %v5060_v46, %v5064_v15  ;;  %v4614_v38 = vshll.u32 %v12464_v48, 16  ;;  %v11809_v54 = vcombine.high %v5061_v33, %v5065_v42  ;;  %v5076_v49 = vld [vmem:[#allocation10 + $0xcc0] sm:$0xff]  ;;  %v5077_v56 = vld [vmem:[#allocation10 + $0xcc8] sm:$0xff] }
 0x3fa   :  { %v4620_v10 = vshrl.u32 %v12465_v5, 16  ;;  %v14352_v35 = vsel %vm189_vm0, %v5240_v14, %v14342_v47  ;;  %v14356_v45 = vsel %vm189_vm0, %v5228_v41, %v14336_v26  ;;  %v4623_v7 = vshll.u32 %v12465_v5, 16  ;;  %v5080_v40 = vld [vmem:[#allocation10 + $0xce0] sm:$0xff]  ;;  %v5081_v12 = vld [vmem:[#allocation10 + $0xce8] sm:$0xff] }
 0x3fb   :  { %v4613_v63 = vrot.slane %v4611_v50, 7  ;;  %6638 = vmatprep.mubr.bf16.mxu0 %v14352_v35  ;;  %6760 = vmatprep.mubr.bf16.mxu1 %v14352_v35  ;;  %v14360_v9 = vcombine.high %v4590_v44, %v4608_v17  ;;  %v11806_v3 = vcombine.low %v5060_v46, %v5064_v15  ;;  %v11808_v62 = vcombine.low %v5061_v33, %v5065_v42  ;;  %v5088_v6 = vld [vmem:[#allocation10 + $0xd20] sm:$0xff]  ;;  %v5085_v13 = vld [vmem:[#allocation10 + $0xd08] sm:$0xff] }
 0x3fc   :  { %v4622_v39 = vrot.slane %v4620_v10, 7  ;;  %6639 = vmatmul.mubr.bf16.vlgmr.msra.gmra.mrb[52].mxu0 %v14356_v45  ;;  %6761 = vmatmul.mubr.bf16.vlgmr.msra.gmra.mrb[52].mxu1 %v14356_v45  ;;  %v4609_v60 = vrot.slane %v14298_v37, 4  ;;  %v4618_v59 = vrot.slane %v14302_v57, 4  ;;  %v11815_v44 = vcombine.high %v5068_v0, %v5072_v34  ;;  %v5089_v43 = vld [vmem:[#allocation10 + $0xd28] sm:$0xff]  ;;  %v5092_v48 = vld [vmem:[#allocation10 + $0xd40] sm:$0xff] }
 0x3fd   :  { %v4616_v19 = vor.u32 %v4614_v38, %v4613_v63  ;;  %6668 = vmatpush1.bf16.msra.mxu0 %v11798_v52  ;;  %6790 = vmatpush1.bf16.msra.mxu1 %v11800_v21  ;;  %v11817_v17 = vcombine.high %v5069_v11, %v5073_v29  ;;  %v11814_v28 = vcombine.low %v5068_v0, %v5072_v34  ;;  %v5084_v21 = vld [vmem:[#allocation10 + $0xd00] sm:$0xff]  ;;  %v5093_v33 = vld [vmem:[#allocation10 + $0xd48] sm:$0xff] }
 0x3fe   :  { %v4625_v61 = vor.u32 %v4623_v7, %v4622_v39  ;;  %6669 = vmatprep.subr.bf16.mxu0 %v11807_v2  ;;  %6791 = vmatprep.subr.bf16.mxu1 %v11809_v54  ;;  %v11816_v53 = vcombine.low %v5069_v11, %v5073_v29  ;;  %v11823_v52 = vcombine.high %v5076_v49, %v5080_v40  ;;  %v5096_v5 = vld [vmem:[#allocation10 + $0xd60] sm:$0xff]  ;;  %v5097_v42 = vld [vmem:[#allocation10 + $0xd68] sm:$0xff]  ;;  %v5278_v54 = vshrl.u32 %v14327_v18, 16 }
 0x3ff   :  { %v4617_v37 = vsel %vm13933_vm12, %v4609_v60, %v4616_v19  ;;  %v11825_v1 = vcombine.high %v5077_v56, %v5081_v12  ;;  %v11822_v41 = vcombine.low %v5076_v49, %v5080_v40  ;;  %v11824_v46 = vcombine.low %v5077_v56, %v5081_v12  ;;  %v5100_v29 = vld [vmem:[#allocation10 + $0xd80] sm:$0xff] }
 0x400   :  { %v4626_v57 = vsel %vm13933_vm12, %v4618_v59, %v4625_v61  ;;  %v4650_v32 = vsel %vm14027_vm5, %v4617_v37, %v4649_v51  ;;  %v11831_v25 = vcombine.high %v5084_v21, %v5088_v6  ;;  %v11833_v15 = vcombine.high %v5085_v13, %v5089_v43  ;;  %v5104_v19 = vld [vmem:[#allocation10 + $0xda0] sm:$0xff]  ;;  %v5101_v51 = vld [vmem:[#allocation10 + $0xd88] sm:$0xff] }
 0x401   :  { %v4653_v55 = vsel %vm14027_vm5, %v4626_v57, %v4652_v58  ;;  %4651 = vst [vmem:[#allocation3 + $0x40] sm:$0x77] %v4650_v32  ;;  %6670 = vmatpush1.bf16.msra.mxu0 %v11806_v3  ;;  %6792 = vmatpush1.bf16.msra.mxu1 %v11808_v62  ;;  %v11830_v50 = vcombine.low %v5084_v21, %v5088_v6  ;;  %v5270_v7 = vshrl.u32 %v14325_v4, 16  ;;  %v5105_v61 = vld [vmem:[#allocation10 + $0xda8] sm:$0xff]  ;;  %v5108_v40 = vld [vmem:[#allocation10 + $0xdc0] sm:$0xff]  ;;  %v5266_v56 = vshll.u32 %v14360_v9, 16 }
 0x402   :  { %4654 = vst [vmem:[#allocation3 + $0x48] sm:$0x77] %v4653_v55  ;;  %6671 = vmatprep.subr.bf16.mxu0 %v11815_v44  ;;  %6793 = vmatprep.subr.bf16.mxu1 %v11817_v17  ;;  %v11832_v38 = vcombine.low %v5085_v13, %v5089_v43  ;;  %v11839_v0 = vcombine.high %v5092_v48, %v5096_v5  ;;  %v5112_v12 = vld [vmem:[#allocation10 + $0xde0] sm:$0xff]  ;;  %v5109_v32 = vld [vmem:[#allocation10 + $0xdc8] sm:$0xff]  ;;  %v5259_v43 = vshrl.u32 %v14346_v22, 16 }
 0x403   :  { %v11841_v63 = vcombine.high %v5093_v33, %v5097_v42  ;;  %v5280_v11 = vor.u32 %v5278_v54, %v14342_v47  ;;  %v5272_v62 = vor.u32 %v5270_v7, %v14336_v26  ;;  %v11838_v58 = vcombine.low %v5092_v48, %v5096_v5  ;;  %v5113_v55 = vld [vmem:[#allocation10 + $0xde8] sm:$0xff]  ;;  %v5116_v6 = vld [vmem:[#allocation10 + $0xe00] sm:$0xff] }
 0x404   :  { %v11840_v44 = vcombine.low %v5093_v33, %v5097_v42  ;;  %v5261_v26 = vshll.u32 %v14346_v22, 16  ;;  %v11847_v37 = vcombine.high %v5100_v29, %v5104_v19  ;;  %v11849_v57 = vcombine.high %v5101_v51, %v5105_v61 }
 0x405   :  { %6672 = vmatpush1.bf16.msra.mxu0 %v11814_v28  ;;  %6794 = vmatpush1.bf16.msra.mxu1 %v11816_v53  ;;  %v11846_v53 = vcombine.low %v5100_v29, %v5104_v19  ;;  %v11857_v21 = vcombine.high %v5109_v32, %v5113_v55  ;;  %v11854_v48 = vcombine.low %v5108_v40, %v5112_v12 }
 0x406   :  { %6673 = vmatprep.subr.bf16.mxu0 %v11823_v52  ;;  %6795 = vmatprep.subr.bf16.mxu1 %v11825_v1  ;;  %v5263_v28 = vrot.slane %v5261_v26, 1  ;;  %v11848_v52 = vcombine.low %v5101_v51, %v5105_v61  ;;  %v11855_v1 = vcombine.high %v5108_v40, %v5112_v12  ;;  %v11856_v42 = vcombine.low %v5109_v32, %v5113_v55  ;;  %v5144_v26 = vld [vmem:[#allocation10 + $0xee0] sm:$0xff] }
 0x407   :  { %v5148_v55 = vld [vmem:[#allocation10 + $0xf00] sm:$0xff] }
 0x408   :  { %v4921_v14 = vld [vmem:[#allocation3 + $0x40] sm:$0x77]  ;;  %v5264_v33 = vor.u32 %v5263_v28, %v5259_v43 }
 0x409   :  { %v14380_v10 = vcombine.high %v4921_v14, %v4921_v14  ;;  %v14382_v2 = vcombine.low %v4921_v14, %v4921_v14  ;;  %6674 = vmatpush1.bf16.msra.mxu0 %v11822_v41  ;;  %6796 = vmatpush1.bf16.msra.mxu1 %v11824_v46  ;;  %v14409_v41 = vrot.slane %v5266_v56, 1  ;;  %v5120_v46 = vld [vmem:[#allocation10 + $0xe20] sm:$0xff] }
 0x40a   :  { %6675 = vmatprep.subr.bf16.mxu0 %v11831_v25  ;;  %6797 = vmatprep.subr.bf16.mxu1 %v11833_v15  ;;  %v5117_v25 = vld [vmem:[#allocation10 + $0xe08] sm:$0xff]  ;;  %v11863_v14 = vcombine.high %v5116_v6, %v5120_v46  ;;  %v11862_v7 = vcombine.low %v5116_v6, %v5120_v46  ;;  %v5152_v28 = vld [vmem:[#allocation10 + $0xf20] sm:$0xff] }
 0x40b   :  { %v5282_v39 = vshll.u32 %v14380_v10, 16  ;;  %v5274_v34 = vshll.u32 %v14382_v2, 16  ;;  %v5305_v59 = vshrl.u32 %v14380_v10, 16  ;;  %v5302_v13 = vshrl.u32 %v14382_v2, 16  ;;  %v5121_v15 = vld [vmem:[#allocation10 + $0xe28] sm:$0xff]  ;;  %v5156_v43 = vld [vmem:[#allocation10 + $0xf40] sm:$0xff] }
 0x40c   :  { %v14417_v54 = vsel %vm189_vm0, %v5264_v33, %v14409_v41  ;;  %v11895_v6 = vcombine.high %v5148_v55, %v5152_v28  ;;  %v5160_v46 = vld [vmem:[#allocation10 + $0xf60] sm:$0xff] }
 0x40d   :  { %v5284_v3 = vrot.slane %v5282_v39, 1  ;;  %v5276_v60 = vrot.slane %v5274_v34, 1  ;;  %6676 = vmatpush1.bf16.msra.mxu0 %v11830_v50  ;;  %6798 = vmatpush1.bf16.msra.mxu1 %v11832_v38  ;;  %v11865_v50 = vcombine.high %v5117_v25, %v5121_v15  ;;  %v5124_v38 = vld [vmem:[#allocation10 + $0xe40] sm:$0xff]  ;;  %v5129_v39 = vld [vmem:[#allocation10 + $0xe68] sm:$0xff]  ;;  %v11864_v34 = vcombine.low %v5117_v25, %v5121_v15 }
 0x40e   :  { %6677 = vmatprep.subr.bf16.mxu0 %v11839_v0  ;;  %6799 = vmatprep.subr.bf16.mxu1 %v11841_v63  ;;  %v5128_v0 = vld [vmem:[#allocation10 + $0xe60] sm:$0xff]  ;;  %v5125_v63 = vld [vmem:[#allocation10 + $0xe48] sm:$0xff] }
 0x40f   :  { %v14392_v17 = vsel %vm189_vm0, %v5280_v11, %v5284_v3  ;;  %v14395_v47 = vsel %vm189_vm0, %v5272_v62, %v5276_v60  ;;  %v14397_v49 = vor.u32 %v5305_v59, %v5284_v3  ;;  %v14411_v5 = vor.u32 %v5302_v13, %v5276_v60  ;;  %v5132_v3 = vld [vmem:[#allocation10 + $0xe80] sm:$0xff]  ;;  %v5133_v60 = vld [vmem:[#allocation10 + $0xe88] sm:$0xff] }
 0x410   :  { %6648 = vmatprep.mubr.bf16.mxu0 %v14392_v17  ;;  %6770 = vmatprep.mubr.bf16.mxu1 %v14392_v17  ;;  %v11871_v11 = vcombine.high %v5124_v38, %v5128_v0  ;;  %v11873_v29 = vcombine.high %v5125_v63, %v5129_v39  ;;  %v5136_v62 = vld [vmem:[#allocation10 + $0xea0] sm:$0xff]  ;;  %v5137_v59 = vld [vmem:[#allocation10 + $0xea8] sm:$0xff]  ;;  %v11870_v19 = vcombine.low %v5124_v38, %v5128_v0 }
 0x411   :  { %6649 = vmatmul.mubr.bf16.gmra.mrb[56].mxu0 %v14395_v47  ;;  %6771 = vmatmul.mubr.bf16.gmra.mrb[56].mxu1 %v14395_v47  ;;  %v11872_v51 = vcombine.low %v5125_v63, %v5129_v39  ;;  %v11879_v61 = vcombine.high %v5132_v3, %v5136_v62  ;;  %v11878_v40 = vcombine.low %v5132_v3, %v5136_v62  ;;  %v5157_v25 = vld [vmem:[#allocation10 + $0xf48] sm:$0xff]  ;;  %v5168_v38 = vld [vmem:[#allocation10 + $0xfa0] sm:$0xff] }
 0x412   :  { %6658 = vmatprep.mubr.bf16.mxu0 %v14397_v49  ;;  %6780 = vmatprep.mubr.bf16.mxu1 %v14397_v49  ;;  %v11880_v56 = vcombine.low %v5133_v60, %v5137_v59  ;;  %v5161_v15 = vld [vmem:[#allocation10 + $0xf68] sm:$0xff]  ;;  %v11902_v39 = vcombine.low %v5156_v43, %v5160_v46  ;;  %v5172_v3 = vld [vmem:[#allocation10 + $0xfc0] sm:$0xff] }
 0x413   :  { %6678 = vmatpush1.bf16.msra.mxu0 %v11838_v58  ;;  %6800 = vmatpush1.bf16.msra.mxu1 %v11840_v44  ;;  %v11881_v58 = vcombine.high %v5133_v60, %v5137_v59  ;;  %v5140_v44 = vld [vmem:[#allocation10 + $0xec0] sm:$0xff]  ;;  %v5165_v0 = vld [vmem:[#allocation10 + $0xf88] sm:$0xff] }
 0x414   :  { %6679 = vmatprep.subr.bf16.mxu0 %v11847_v37  ;;  %6801 = vmatprep.subr.bf16.mxu1 %v11849_v57  ;;  %v5141_v37 = vld [vmem:[#allocation10 + $0xec8] sm:$0xff]  ;;  %v11887_v12 = vcombine.high %v5140_v44, %v5144_v26  ;;  %v5176_v62 = vld [vmem:[#allocation10 + $0xfe0] sm:$0xff] }
 0x415   :  { %v5145_v57 = vld [vmem:[#allocation10 + $0xee8] sm:$0xff] }
 0x416   :  { %v11889_v32 = vcombine.high %v5141_v37, %v5145_v57  ;;  %v5169_v63 = vld [vmem:[#allocation10 + $0xfa8] sm:$0xff] }
 0x417   :  { %6680 = vmatpush1.bf16.msra.mxu0 %v11846_v53  ;;  %6802 = vmatpush1.bf16.msra.mxu1 %v11848_v52  ;;  %v5149_v53 = vld [vmem:[#allocation10 + $0xf08] sm:$0xff] }
 0x418   :  { %6681 = vmatprep.subr.bf16.mxu0 %v11855_v1  ;;  %6803 = vmatprep.subr.bf16.mxu1 %v11857_v21  ;;  %v5153_v52 = vld [vmem:[#allocation10 + $0xf28] sm:$0xff]  ;;  %v11886_v1 = vcombine.low %v5140_v44, %v5144_v26  ;;  %v11888_v21 = vcombine.low %v5141_v37, %v5145_v57  ;;  %v11919_v44 = vcombine.high %v5172_v3, %v5176_v62  ;;  %v4926_v37 = vld [vmem:[#allocation10 + $0x810] sm:$0xff]  ;;  %v5254_v57 = vshll.u32 %v14348_v36, 16 }
 0x419   :  { %6659 = vmatmul.mubr.bf16.gmra.mrb[60].mxu0 %v14411_v5  ;;  %6781 = vmatmul.mubr.bf16.gmra.mrb[60].mxu1 %v14411_v5  ;;  %v11897_v13 = vcombine.high %v5149_v53, %v5153_v52  ;;  %v11896_v33 = vcombine.low %v5149_v53, %v5153_v52  ;;  %v5173_v60 = vld [vmem:[#allocation10 + $0xfc8] sm:$0xff] }
 0x41a   :  { %6699 = vmatprep.mubr.bf16.mxu0 %v14417_v54  ;;  %6821 = vmatprep.mubr.bf16.mxu1 %v14417_v54  ;;  %v5177_v59 = vld [vmem:[#allocation10 + $0xfe8] sm:$0xff] }
 0x41b   :  { %6682 = vmatpush1.bf16.msra.mxu0 %v11854_v48  ;;  %6804 = vmatpush1.bf16.msra.mxu1 %v11856_v42  ;;  %v11894_v48 = vcombine.low %v5148_v55, %v5152_v28  ;;  %v11903_v42 = vcombine.high %v5156_v43, %v5160_v46  ;;  %v11921_v26 = vcombine.high %v5173_v60, %v5177_v59  ;;  %v5294_v46 = vshrl.u32 %v14360_v9, 16 }
 0x41c   :  { %6683 = vmatprep.subr.bf16.mxu0 %v11863_v14  ;;  %6805 = vmatprep.subr.bf16.mxu1 %v11865_v50  ;;  %v11905_v14 = vcombine.high %v5157_v25, %v5161_v15  ;;  %v5164_v50 = vld [vmem:[#allocation10 + $0xf80] sm:$0xff]  ;;  %v11918_v55 = vcombine.low %v5172_v3, %v5176_v62  ;;  %v11920_v28 = vcombine.low %v5173_v60, %v5177_v59  ;;  %v4943_v3 = vld [vmem:[#allocation10 + $0x898] sm:$0xff]  ;;  %v5286_v59 = vshrl.u32 %v14348_v36, 16 }
 0x41d   :  { %v4947_v62 = vld [vmem:[#allocation10 + $0x8b8] sm:$0xff] }
 0x41f   :  { %6684 = vmatpush1.bf16.msra.mxu0 %v11862_v7  ;;  %6806 = vmatpush1.bf16.msra.mxu1 %v11864_v34  ;;  %v11904_v7 = vcombine.low %v5157_v25, %v5161_v15  ;;  %v4922_v34 = vld [vmem:[#allocation3 + $0x48] sm:$0x77]  ;;  %v4938_v15 = vld [vmem:[#allocation10 + $0x870] sm:$0xff] }
 0x420   :  { %6685 = vmatprep.subr.bf16.mxu0 %v11871_v11  ;;  %6807 = vmatprep.subr.bf16.mxu1 %v11873_v29  ;;  %v11911_v11 = vcombine.high %v5164_v50, %v5168_v38  ;;  %v11913_v29 = vcombine.high %v5165_v0, %v5169_v63  ;;  %v14427_v43 = vcombine.low %v4922_v34, %v4922_v34 }
 0x423   :  { %6686 = vmatpush1.bf16.msra.mxu0 %v11870_v19  ;;  %6808 = vmatpush1.bf16.msra.mxu1 %v11872_v51  ;;  %v14421_v19 = vcombine.high %v4922_v34, %v4922_v34  ;;  %v11910_v51 = vcombine.low %v5164_v50, %v5168_v38  ;;  %v5296_v38 = vor.u32 %v5294_v46, %v14409_v41  ;;  %v4942_v34 = vld [vmem:[#allocation10 + $0x890] sm:$0xff] }
 0x424   :  { %6687 = vmatprep.subr.bf16.mxu0 %v11879_v61  ;;  %6809 = vmatprep.subr.bf16.mxu1 %v11881_v58  ;;  %v11912_v61 = vcombine.low %v5165_v0, %v5169_v63  ;;  %v5249_v58 = vshll.u32 %v14340_v27, 16 }
 0x426   :  { %v5251_v53 = vrot.slane %v5249_v58, 1  ;;  %v11693_v58 = vcombine.high %v4943_v3, %v4947_v62 }
 0x427   :  { %6688 = vmatpush1.bf16.msra.mxu0 %v11878_v40  ;;  %6810 = vmatpush1.bf16.msra.mxu1 %v11880_v56  ;;  %v4930_v40 = vld [vmem:[#allocation10 + $0x830] sm:$0xff]  ;;  %v4927_v56 = vld [vmem:[#allocation10 + $0x818] sm:$0xff] }
 0x428   :  { %6689 = vmatprep.subr.bf16.mxu0 %v11887_v12  ;;  %6811 = vmatprep.subr.bf16.mxu1 %v11889_v32  ;;  %v4931_v12 = vld [vmem:[#allocation10 + $0x838] sm:$0xff]  ;;  %v5298_v32 = vshll.u32 %v14421_v19, 16  ;;  %v11675_v52 = vcombine.high %v4926_v37, %v4930_v40 }
 0x429   :  { %v11676_v50 = vcombine.low %v4927_v56, %v4931_v12 }
 0x42a   :  { %v5300_v25 = vrot.slane %v5298_v32, 1  ;;  %v11692_v32 = vcombine.low %v4943_v3, %v4947_v62  ;;  %v4974_v3 = vld [vmem:[#allocation10 + $0x990] sm:$0xff] }
 0x42b   :  { %6690 = vmatpush1.bf16.msra.mxu0 %v11886_v1  ;;  %6812 = vmatpush1.bf16.msra.mxu1 %v11888_v21  ;;  %v11677_v1 = vcombine.high %v4927_v56, %v4931_v12  ;;  %v5247_v21 = vshrl.u32 %v14340_v27, 16  ;;  %v5311_v56 = vshrl.u32 %v14421_v19, 16  ;;  %v4978_v62 = vld [vmem:[#allocation10 + $0x9b0] sm:$0xff] }
 0x42c   :  { %6691 = vmatprep.subr.bf16.mxu0 %v11895_v6  ;;  %6813 = vmatprep.subr.bf16.mxu1 %v11897_v13  ;;  %v5256_v6 = vrot.slane %v5254_v57, 1  ;;  %v4934_v13 = vld [vmem:[#allocation10 + $0x850] sm:$0xff]  ;;  %v4955_v57 = vld [vmem:[#allocation10 + $0x8f8] sm:$0xff] }
 0x42d   :  { %v11683_v63 = vcombine.high %v4934_v13, %v4938_v15  ;;  %v11682_v41 = vcombine.low %v4934_v13, %v4938_v15  ;;  %v4963_v13 = vld [vmem:[#allocation10 + $0x938] sm:$0xff] }
 0x42f   :  { %6692 = vmatpush1.bf16.msra.mxu0 %v11894_v48  ;;  %6814 = vmatpush1.bf16.msra.mxu1 %v11896_v33  ;;  %v4935_v48 = vld [vmem:[#allocation10 + $0x858] sm:$0xff] }
 0x430   :  { %6693 = vmatprep.subr.bf16.mxu0 %v11903_v42  ;;  %6815 = vmatprep.subr.bf16.mxu1 %v11905_v14  ;;  %v4939_v33 = vld [vmem:[#allocation10 + $0x878] sm:$0xff]  ;;  %v5252_v42 = vor.u32 %v5251_v53, %v5247_v21  ;;  %v11674_v14 = vcombine.low %v4926_v37, %v4930_v40  ;;  %v5288_v40 = vor.u32 %v5286_v59, %v5256_v6  ;;  %v4962_v21 = vld [vmem:[#allocation10 + $0x930] sm:$0xff] }
 0x431   :  { %v11684_v60 = vcombine.low %v4935_v48, %v4939_v33  ;;  %v4951_v37 = vld [vmem:[#allocation10 + $0x8d8] sm:$0xff]  ;;  %v14447_v53 = vor.u32 %v5311_v56, %v5300_v25 }
 0x432   :  { %v14432_v0 = vsel %vm189_vm0, %v5252_v42, %v5256_v6  ;;  %v4959_v6 = vld [vmem:[#allocation10 + $0x918] sm:$0xff]  ;;  %v11700_v15 = vcombine.low %v4951_v37, %v4955_v57  ;;  %v5308_v42 = vshrl.u32 %v14427_v43, 16 }
 0x433   :  { %6694 = vmatpush1.bf16.msra.mxu0 %v11902_v39  ;;  %6816 = vmatpush1.bf16.msra.mxu1 %v11904_v7  ;;  %v11685_v39 = vcombine.high %v4935_v48, %v4939_v33  ;;  %v5290_v7 = vshll.u32 %v14427_v43, 16  ;;  %v11709_v48 = vcombine.high %v4959_v6, %v4963_v13  ;;  %v4966_v33 = vld [vmem:[#allocation10 + $0x950] sm:$0xff] }
 0x434   :  { %6695 = vmatprep.subr.bf16.mxu0 %v11911_v11  ;;  %6817 = vmatprep.subr.bf16.mxu1 %v11913_v29  ;;  %v14438_v11 = vsel %vm189_vm0, %v5296_v38, %v5300_v25  ;;  %v4946_v29 = vld [vmem:[#allocation10 + $0x8b0] sm:$0xff]  ;;  %v4971_v38 = vld [vmem:[#allocation10 + $0x978] sm:$0xff] }
 0x435   :  { %v11690_v12 = vcombine.low %v4942_v34, %v4946_v29 }
 0x437   :  { %6696 = vmatpush1.bf16.msra.mxu0 %v11910_v51  ;;  %6818 = vmatpush1.bf16.msra.mxu1 %v11912_v61  ;;  %v5292_v51 = vrot.slane %v5290_v7, 1  ;;  %v11691_v61 = vcombine.high %v4942_v34, %v4946_v29  ;;  %v11708_v7 = vcombine.low %v4959_v6, %v4963_v13 }
 0x438   :  { %6697 = vmatprep.subr.bf16.mxu0 %v11919_v44  ;;  %6819 = vmatprep.subr.bf16.mxu1 %v11921_v26  ;;  %v4950_v44 = vld [vmem:[#allocation10 + $0x8d0] sm:$0xff] }
 0x439   :  { %v4954_v26 = vld [vmem:[#allocation10 + $0x8f0] sm:$0xff] }
 0x43a   :  { %v11698_v46 = vcombine.low %v4950_v44, %v4954_v26 }
 0x43b   :  { %6698 = vmatpush1.bf16.msra.mxu0 %v11918_v55  ;;  %6820 = vmatpush1.bf16.msra.mxu1 %v11920_v28  ;;  %v11699_v55 = vcombine.high %v4950_v44, %v4954_v26  ;;  %v14445_v28 = vsel %vm189_vm0, %v5288_v40, %v5292_v51  ;;  %v4982_v44 = vld [vmem:[#allocation10 + $0x9d0] sm:$0xff]  ;;  %v11722_v40 = vcombine.low %v4974_v3, %v4978_v62 }
 0x43c   :  { %6850 = vmatprep.subr.bf16.mxu0 %v11675_v52  ;;  %6972 = vmatprep.subr.bf16.mxu1 %v11677_v1  ;;  %v11701_v52 = vcombine.high %v4951_v37, %v4955_v57  ;;  %v4958_v1 = vld [vmem:[#allocation10 + $0x910] sm:$0xff]  ;;  %v4983_v37 = vld [vmem:[#allocation10 + $0x9d8] sm:$0xff] }
 0x43d   :  { %v11707_v25 = vcombine.high %v4958_v1, %v4962_v21  ;;  %v4986_v26 = vld [vmem:[#allocation10 + $0x9f0] sm:$0xff]  ;;  %v4987_v57 = vld [vmem:[#allocation10 + $0x9f8] sm:$0xff] }
 0x43e   :  { %6700 = vmatmul.mubr.bf16.vlgmr.msra.gmra.mrb[52].mxu0 %v14432_v0  ;;  %6822 = vmatmul.mubr.bf16.vlgmr.msra.gmra.mrb[52].mxu1 %v14432_v0  ;;  %v11732_v6 = vcombine.low %v4983_v37, %v4987_v57 }
 0x43f   :  { %6709 = vmatprep.mubr.bf16.mxu0 %v14438_v11  ;;  %6831 = vmatprep.mubr.bf16.mxu1 %v14438_v11 }
 0x440   :  { %6851 = vmatpush1.bf16.msra.mxu0 %v11674_v14  ;;  %6973 = vmatpush1.bf16.msra.mxu1 %v11676_v50  ;;  %v4970_v14 = vld [vmem:[#allocation10 + $0x970] sm:$0xff]  ;;  %v4967_v50 = vld [vmem:[#allocation10 + $0x958] sm:$0xff] }
 0x441   :  { %6852 = vmatprep.subr.bf16.mxu0 %v11683_v63  ;;  %6974 = vmatprep.subr.bf16.mxu1 %v11685_v39  ;;  %v14454_v63 = vor.u32 %v5308_v42, %v5292_v51  ;;  %v11706_v39 = vcombine.low %v4958_v1, %v4962_v21  ;;  %v11715_v34 = vcombine.high %v4966_v33, %v4970_v14  ;;  %v4995_v1 = vld [vmem:[#allocation10 + $0xa38] sm:$0xff] }
 0x442   :  { %v11717_v29 = vcombine.high %v4967_v50, %v4971_v38  ;;  %v11714_v59 = vcombine.low %v4966_v33, %v4970_v14  ;;  %v11716_v51 = vcombine.low %v4967_v50, %v4971_v38  ;;  %v11730_v21 = vcombine.low %v4982_v44, %v4986_v26  ;;  %v5003_v33 = vld [vmem:[#allocation10 + $0xa78] sm:$0xff] }
 0x444   :  { %6853 = vmatpush1.bf16.msra.mxu0 %v11682_v41  ;;  %6975 = vmatpush1.bf16.msra.mxu1 %v11684_v60  ;;  %v4975_v41 = vld [vmem:[#allocation10 + $0x998] sm:$0xff] }
 0x445   :  { %6854 = vmatprep.subr.bf16.mxu0 %v11691_v61  ;;  %6976 = vmatprep.subr.bf16.mxu1 %v11693_v58  ;;  %v4979_v60 = vld [vmem:[#allocation10 + $0x9b8] sm:$0xff]  ;;  %v11723_v61 = vcombine.high %v4974_v3, %v4978_v62 }
 0x446   :  { %6710 = vmatmul.mubr.bf16.gmra.mrb[56].mxu0 %v14445_v28  ;;  %6832 = vmatmul.mubr.bf16.gmra.mrb[56].mxu1 %v14445_v28  ;;  %v11725_v58 = vcombine.high %v4975_v41, %v4979_v60  ;;  %v11724_v56 = vcombine.low %v4975_v41, %v4979_v60 }
 0x447   :  { %6719 = vmatprep.mubr.bf16.mxu0 %v14447_v53  ;;  %6841 = vmatprep.mubr.bf16.mxu1 %v14447_v53 }
 0x448   :  { %6855 = vmatpush1.bf16.msra.mxu0 %v11690_v12  ;;  %6977 = vmatpush1.bf16.msra.mxu1 %v11692_v32  ;;  %v11731_v12 = vcombine.high %v4982_v44, %v4986_v26  ;;  %v4990_v32 = vld [vmem:[#allocation10 + $0xa10] sm:$0xff] }
 0x449   :  { %6856 = vmatprep.subr.bf16.mxu0 %v11699_v55  ;;  %6978 = vmatprep.subr.bf16.mxu1 %v11701_v52  ;;  %v4994_v55 = vld [vmem:[#allocation10 + $0xa30] sm:$0xff]  ;;  %v4991_v52 = vld [vmem:[#allocation10 + $0xa18] sm:$0xff] }
 0x44a   :  { %v11739_v13 = vcombine.high %v4990_v32, %v4994_v55  ;;  %v11738_v42 = vcombine.low %v4990_v32, %v4994_v55  ;;  %v11740_v14 = vcombine.low %v4991_v52, %v4995_v1 }
 0x44c   :  { %6857 = vmatpush1.bf16.msra.mxu0 %v11698_v46  ;;  %6979 = vmatpush1.bf16.msra.mxu1 %v11700_v15  ;;  %v11741_v46 = vcombine.high %v4991_v52, %v4995_v1  ;;  %v4998_v15 = vld [vmem:[#allocation10 + $0xa50] sm:$0xff] }
 0x44d   :  { %6858 = vmatprep.subr.bf16.mxu0 %v11707_v25  ;;  %6980 = vmatprep.subr.bf16.mxu1 %v11709_v48  ;;  %v5002_v25 = vld [vmem:[#allocation10 + $0xa70] sm:$0xff]  ;;  %v4999_v48 = vld [vmem:[#allocation10 + $0xa58] sm:$0xff] }
 0x44e   :  { %6720 = vmatmul.mubr.bf16.gmra.mrb[64].mxu0 %v14454_v63  ;;  %6842 = vmatmul.mubr.bf16.gmra.mrb[64].mxu1 %v14454_v63  ;;  %v11747_v50 = vcombine.high %v4998_v15, %v5002_v25  ;;  %v11749_v38 = vcombine.high %v4999_v48, %v5003_v33  ;;  %v11746_v3 = vcombine.low %v4998_v15, %v5002_v25 }
 0x44f   :  { %6882 = vmatprep.mubr.bf16.mxu0 %v14352_v35  ;;  %7004 = vmatprep.mubr.bf16.mxu1 %v14352_v35  ;;  %v11733_v35 = vcombine.high %v4983_v37, %v4987_v57  ;;  %v11748_v62 = vcombine.low %v4999_v48, %v5003_v33 }
 0x450   :  { %6859 = vmatpush1.bf16.msra.mxu0 %v11706_v39  ;;  %6981 = vmatpush1.bf16.msra.mxu1 %v11708_v7  ;;  %v5006_v39 = vld [vmem:[#allocation10 + $0xa90] sm:$0xff] }
 0x451   :  { %6860 = vmatprep.subr.bf16.mxu0 %v11715_v34  ;;  %6982 = vmatprep.subr.bf16.mxu1 %v11717_v29  ;;  %v5010_v7 = vld [vmem:[#allocation10 + $0xab0] sm:$0xff]  ;;  %v5007_v34 = vld [vmem:[#allocation10 + $0xa98] sm:$0xff] }
 0x452   :  { %v5011_v29 = vld [vmem:[#allocation10 + $0xab8] sm:$0xff]  ;;  %v11755_v41 = vcombine.high %v5006_v39, %v5010_v7  ;;  %v11754_v44 = vcombine.low %v5006_v39, %v5010_v7 }
 0x453   :  { %v11757_v60 = vcombine.high %v5007_v34, %v5011_v29  ;;  %v11756_v26 = vcombine.low %v5007_v34, %v5011_v29 }
 0x454   :  { %6861 = vmatpush1.bf16.msra.mxu0 %v11714_v59  ;;  %6983 = vmatpush1.bf16.msra.mxu1 %v11716_v51  ;;  %v5014_v59 = vld [vmem:[#allocation10 + $0xad0] sm:$0xff] }
 0x455   :  { %6862 = vmatprep.subr.bf16.mxu0 %v11723_v61  ;;  %6984 = vmatprep.subr.bf16.mxu1 %v11725_v58  ;;  %v5018_v51 = vld [vmem:[#allocation10 + $0xaf0] sm:$0xff]  ;;  %v5015_v61 = vld [vmem:[#allocation10 + $0xad8] sm:$0xff] }
 0x456   :  { %v5019_v58 = vld [vmem:[#allocation10 + $0xaf8] sm:$0xff]  ;;  %v11763_v37 = vcombine.high %v5014_v59, %v5018_v51  ;;  %v11762_v32 = vcombine.low %v5014_v59, %v5018_v51 }
 0x457   :  { %v11765_v57 = vcombine.high %v5015_v61, %v5019_v58  ;;  %v11764_v55 = vcombine.low %v5015_v61, %v5019_v58 }
 0x458   :  { %6863 = vmatpush1.bf16.msra.mxu0 %v11722_v40  ;;  %6985 = vmatpush1.bf16.msra.mxu1 %v11724_v56  ;;  %v5022_v40 = vld [vmem:[#allocation10 + $0xb10] sm:$0xff] }
 0x459   :  { %6864 = vmatprep.subr.bf16.mxu0 %v11731_v12  ;;  %6986 = vmatprep.subr.bf16.mxu1 %v11733_v35  ;;  %v5026_v56 = vld [vmem:[#allocation10 + $0xb30] sm:$0xff]  ;;  %v5023_v12 = vld [vmem:[#allocation10 + $0xb18] sm:$0xff] }
 0x45a   :  { %v5027_v35 = vld [vmem:[#allocation10 + $0xb38] sm:$0xff]  ;;  %v11771_v52 = vcombine.high %v5022_v40, %v5026_v56  ;;  %v11770_v15 = vcombine.low %v5022_v40, %v5026_v56 }
 0x45b   :  { %v11773_v1 = vcombine.high %v5023_v12, %v5027_v35  ;;  %v11772_v25 = vcombine.low %v5023_v12, %v5027_v35 }
 0x45c   :  { %6865 = vmatpush1.bf16.msra.mxu0 %v11730_v21  ;;  %6987 = vmatpush1.bf16.msra.mxu1 %v11732_v6  ;;  %v5030_v21 = vld [vmem:[#allocation10 + $0xb50] sm:$0xff] }
 0x45d   :  { %6866 = vmatprep.subr.bf16.mxu0 %v11739_v13  ;;  %6988 = vmatprep.subr.bf16.mxu1 %v11741_v46  ;;  %v5034_v6 = vld [vmem:[#allocation10 + $0xb70] sm:$0xff]  ;;  %v5031_v13 = vld [vmem:[#allocation10 + $0xb58] sm:$0xff] }
 0x45e   :  { %v5035_v46 = vld [vmem:[#allocation10 + $0xb78] sm:$0xff]  ;;  %v11779_v48 = vcombine.high %v5030_v21, %v5034_v6  ;;  %v11778_v39 = vcombine.low %v5030_v21, %v5034_v6 }
 0x45f   :  { %v11781_v33 = vcombine.high %v5031_v13, %v5035_v46  ;;  %v11780_v7 = vcombine.low %v5031_v13, %v5035_v46 }
 0x460   :  { %6867 = vmatpush1.bf16.msra.mxu0 %v11738_v42  ;;  %6989 = vmatpush1.bf16.msra.mxu1 %v11740_v14  ;;  %v5038_v42 = vld [vmem:[#allocation10 + $0xb90] sm:$0xff] }
 0x461   :  { %6868 = vmatprep.subr.bf16.mxu0 %v11747_v50  ;;  %6990 = vmatprep.subr.bf16.mxu1 %v11749_v38  ;;  %v5042_v14 = vld [vmem:[#allocation10 + $0xbb0] sm:$0xff]  ;;  %v5039_v50 = vld [vmem:[#allocation10 + $0xb98] sm:$0xff] }
 0x462   :  { %v5043_v38 = vld [vmem:[#allocation10 + $0xbb8] sm:$0xff]  ;;  %v11787_v34 = vcombine.high %v5038_v42, %v5042_v14  ;;  %v11786_v59 = vcombine.low %v5038_v42, %v5042_v14 }
 0x463   :  { %v11789_v29 = vcombine.high %v5039_v50, %v5043_v38  ;;  %v11788_v51 = vcombine.low %v5039_v50, %v5043_v38 }
 0x464   :  { %6869 = vmatpush1.bf16.msra.mxu0 %v11746_v3  ;;  %6991 = vmatpush1.bf16.msra.mxu1 %v11748_v62  ;;  %v5046_v3 = vld [vmem:[#allocation10 + $0xbd0] sm:$0xff] }
 0x465   :  { %6870 = vmatprep.subr.bf16.mxu0 %v11755_v41  ;;  %6992 = vmatprep.subr.bf16.mxu1 %v11757_v60  ;;  %v5050_v62 = vld [vmem:[#allocation10 + $0xbf0] sm:$0xff]  ;;  %v5047_v41 = vld [vmem:[#allocation10 + $0xbd8] sm:$0xff] }
 0x466   :  { %v5051_v60 = vld [vmem:[#allocation10 + $0xbf8] sm:$0xff]  ;;  %v11795_v61 = vcombine.high %v5046_v3, %v5050_v62  ;;  %v11794_v40 = vcombine.low %v5046_v3, %v5050_v62 }
 0x467   :  { %v11797_v58 = vcombine.high %v5047_v41, %v5051_v60  ;;  %v11796_v56 = vcombine.low %v5047_v41, %v5051_v60  ;;  %v5086_v60 = vld [vmem:[#allocation10 + $0xd10] sm:$0xff] }
 0x468   :  { %6871 = vmatpush1.bf16.msra.mxu0 %v11754_v44  ;;  %6993 = vmatpush1.bf16.msra.mxu1 %v11756_v26  ;;  %v5054_v44 = vld [vmem:[#allocation10 + $0xc10] sm:$0xff] }
 0x469   :  { %6872 = vmatprep.subr.bf16.mxu0 %v11763_v37  ;;  %6994 = vmatprep.subr.bf16.mxu1 %v11765_v57  ;;  %v5058_v26 = vld [vmem:[#allocation10 + $0xc30] sm:$0xff]  ;;  %v5055_v37 = vld [vmem:[#allocation10 + $0xc18] sm:$0xff] }
 0x46a   :  { %v5059_v57 = vld [vmem:[#allocation10 + $0xc38] sm:$0xff]  ;;  %v11803_v12 = vcombine.high %v5054_v44, %v5058_v26  ;;  %v11802_v21 = vcombine.low %v5054_v44, %v5058_v26 }
 0x46b   :  { %v11805_v35 = vcombine.high %v5055_v37, %v5059_v57  ;;  %v11804_v6 = vcombine.low %v5055_v37, %v5059_v57  ;;  %v5094_v37 = vld [vmem:[#allocation10 + $0xd50] sm:$0xff] }
 0x46c   :  { %6873 = vmatpush1.bf16.msra.mxu0 %v11762_v32  ;;  %6995 = vmatpush1.bf16.msra.mxu1 %v11764_v55  ;;  %v5062_v32 = vld [vmem:[#allocation10 + $0xc50] sm:$0xff] }
 0x46d   :  { %6874 = vmatprep.subr.bf16.mxu0 %v11771_v52  ;;  %6996 = vmatprep.subr.bf16.mxu1 %v11773_v1  ;;  %v5066_v55 = vld [vmem:[#allocation10 + $0xc70] sm:$0xff]  ;;  %v5063_v52 = vld [vmem:[#allocation10 + $0xc58] sm:$0xff] }
 0x46e   :  { %v5067_v1 = vld [vmem:[#allocation10 + $0xc78] sm:$0xff]  ;;  %v11811_v13 = vcombine.high %v5062_v32, %v5066_v55  ;;  %v11810_v42 = vcombine.low %v5062_v32, %v5066_v55  ;;  %v5098_v57 = vld [vmem:[#allocation10 + $0xd70] sm:$0xff] }
 0x46f   :  { %v11813_v46 = vcombine.high %v5063_v52, %v5067_v1  ;;  %v11812_v14 = vcombine.low %v5063_v52, %v5067_v1  ;;  %v5102_v55 = vld [vmem:[#allocation10 + $0xd90] sm:$0xff]  ;;  %v5103_v52 = vld [vmem:[#allocation10 + $0xd98] sm:$0xff] }
 0x470   :  { %6875 = vmatpush1.bf16.msra.mxu0 %v11770_v15  ;;  %6997 = vmatpush1.bf16.msra.mxu1 %v11772_v25  ;;  %v5070_v15 = vld [vmem:[#allocation10 + $0xc90] sm:$0xff]  ;;  %v5107_v1 = vld [vmem:[#allocation10 + $0xdb8] sm:$0xff] }
 0x471   :  { %6876 = vmatprep.subr.bf16.mxu0 %v11779_v48  ;;  %6998 = vmatprep.subr.bf16.mxu1 %v11781_v33  ;;  %v5074_v25 = vld [vmem:[#allocation10 + $0xcb0] sm:$0xff]  ;;  %v5071_v48 = vld [vmem:[#allocation10 + $0xc98] sm:$0xff] }
 0x472   :  { %v5075_v33 = vld [vmem:[#allocation10 + $0xcb8] sm:$0xff]  ;;  %v11819_v50 = vcombine.high %v5070_v15, %v5074_v25 }
 0x473   :  { %v11821_v38 = vcombine.high %v5071_v48, %v5075_v33  ;;  %v11820_v3 = vcombine.low %v5071_v48, %v5075_v33  ;;  %v5111_v48 = vld [vmem:[#allocation10 + $0xdd8] sm:$0xff] }
 0x474   :  { %6877 = vmatpush1.bf16.msra.mxu0 %v11778_v39  ;;  %6999 = vmatpush1.bf16.msra.mxu1 %v11780_v7  ;;  %v5078_v39 = vld [vmem:[#allocation10 + $0xcd0] sm:$0xff]  ;;  %v5115_v33 = vld [vmem:[#allocation10 + $0xdf8] sm:$0xff] }
 0x475   :  { %6878 = vmatprep.subr.bf16.mxu0 %v11787_v34  ;;  %7000 = vmatprep.subr.bf16.mxu1 %v11789_v29  ;;  %v5082_v7 = vld [vmem:[#allocation10 + $0xcf0] sm:$0xff]  ;;  %v5079_v34 = vld [vmem:[#allocation10 + $0xcd8] sm:$0xff] }
 0x476   :  { %v5083_v29 = vld [vmem:[#allocation10 + $0xcf8] sm:$0xff]  ;;  %v11827_v62 = vcombine.high %v5078_v39, %v5082_v7 }
 0x477   :  { %v11829_v41 = vcombine.high %v5079_v34, %v5083_v29 }
 0x478   :  { %6879 = vmatpush1.bf16.msra.mxu0 %v11786_v59  ;;  %7001 = vmatpush1.bf16.msra.mxu1 %v11788_v51  ;;  %v5087_v59 = vld [vmem:[#allocation10 + $0xd18] sm:$0xff] }
 0x479   :  { %6880 = vmatprep.subr.bf16.mxu0 %v11795_v61  ;;  %7002 = vmatprep.subr.bf16.mxu1 %v11797_v58  ;;  %v5091_v51 = vld [vmem:[#allocation10 + $0xd38] sm:$0xff]  ;;  %v11826_v61 = vcombine.low %v5078_v39, %v5082_v7  ;;  %v11828_v58 = vcombine.low %v5079_v34, %v5083_v29  ;;  %v5122_v39 = vld [vmem:[#allocation10 + $0xe30] sm:$0xff]  ;;  %v11860_v29 = vcombine.low %v5111_v48, %v5115_v33 }
 0x47a   :  { %v11837_v26 = vcombine.high %v5087_v59, %v5091_v51  ;;  %v5123_v7 = vld [vmem:[#allocation10 + $0xe38] sm:$0xff] }
 0x47c   :  { %6881 = vmatpush1.bf16.msra.mxu0 %v11794_v40  ;;  %7003 = vmatpush1.bf16.msra.mxu1 %v11796_v56  ;;  %v5095_v40 = vld [vmem:[#allocation10 + $0xd58] sm:$0xff] }
 0x47d   :  { %6911 = vmatprep.subr.bf16.mxu0 %v11803_v12  ;;  %7033 = vmatprep.subr.bf16.mxu1 %v11805_v35  ;;  %v5099_v56 = vld [vmem:[#allocation10 + $0xd78] sm:$0xff]  ;;  %v11836_v12 = vcombine.low %v5087_v59, %v5091_v51  ;;  %v11843_v35 = vcombine.high %v5094_v37, %v5098_v57 }
 0x47e   :  { %v11845_v32 = vcombine.high %v5095_v40, %v5099_v56 }
 0x47f   :  { %6883 = vmatmul.mubr.bf16.vlgmr.msra.gmra.mrb[68].mxu0 %v14356_v45  ;;  %7005 = vmatmul.mubr.bf16.vlgmr.msra.gmra.mrb[68].mxu1 %v14356_v45  ;;  %v11818_v45 = vcombine.low %v5070_v15, %v5074_v25  ;;  %v5110_v15 = vld [vmem:[#allocation10 + $0xdd0] sm:$0xff] }
 0x480   :  { %6892 = vmatprep.mubr.bf16.mxu0 %v14392_v17  ;;  %6912 = vmatpush1.bf16.msra.mxu0 %v11802_v21  ;;  %v11842_v21 = vcombine.low %v5094_v37, %v5098_v57  ;;  %v5114_v25 = vld [vmem:[#allocation10 + $0xdf0] sm:$0xff]  ;;  %v5135_v37 = vld [vmem:[#allocation10 + $0xe98] sm:$0xff] }
 0x481   :  { %7014 = vmatprep.mubr.bf16.mxu1 %v14392_v17  ;;  %7034 = vmatpush1.bf16.msra.mxu1 %v11804_v6  ;;  %v5090_v17 = vld [vmem:[#allocation10 + $0xd30] sm:$0xff]  ;;  %v11844_v6 = vcombine.low %v5095_v40, %v5099_v56  ;;  %v11858_v34 = vcombine.low %v5110_v15, %v5114_v25  ;;  %v5139_v57 = vld [vmem:[#allocation10 + $0xeb8] sm:$0xff] }
 0x482   :  { %6913 = vmatprep.subr.bf16.mxu0 %v11811_v13  ;;  %7035 = vmatprep.subr.bf16.mxu1 %v11813_v46  ;;  %v11835_v44 = vcombine.high %v5086_v60, %v5090_v17  ;;  %v11853_v46 = vcombine.high %v5103_v52, %v5107_v1 }
 0x484   :  { %6914 = vmatpush1.bf16.msra.mxu0 %v11810_v42  ;;  %v11852_v42 = vcombine.low %v5103_v52, %v5107_v1  ;;  %v11884_v1 = vcombine.low %v5135_v37, %v5139_v57 }
 0x485   :  { %7036 = vmatpush1.bf16.msra.mxu1 %v11812_v14  ;;  %6915 = vmatprep.subr.bf16.mxu0 %v11819_v50  ;;  %v11859_v14 = vcombine.high %v5110_v15, %v5114_v25  ;;  %v11861_v50 = vcombine.high %v5111_v48, %v5115_v33  ;;  %v5151_v15 = vld [vmem:[#allocation10 + $0xf18] sm:$0xff] }
 0x486   :  { %7037 = vmatprep.subr.bf16.mxu1 %v11821_v38  ;;  %v5118_v38 = vld [vmem:[#allocation10 + $0xe10] sm:$0xff]  ;;  %v5155_v25 = vld [vmem:[#allocation10 + $0xf38] sm:$0xff] }
 0x487   :  { %6893 = vmatmul.mubr.bf16.gmra.mrb[72].mxu0 %v14395_v47  ;;  %7015 = vmatmul.mubr.bf16.gmra.mrb[72].mxu1 %v14395_v47  ;;  %v11834_v47 = vcombine.low %v5086_v60, %v5090_v17  ;;  %v5127_v60 = vld [vmem:[#allocation10 + $0xe58] sm:$0xff]  ;;  %v11866_v59 = vcombine.low %v5118_v38, %v5122_v39 }
 0x488   :  { %6902 = vmatprep.mubr.bf16.mxu0 %v14397_v49  ;;  %6916 = vmatpush1.bf16.msra.mxu0 %v11818_v45  ;;  %v11867_v45 = vcombine.high %v5118_v38, %v5122_v39  ;;  %v5131_v17 = vld [vmem:[#allocation10 + $0xe78] sm:$0xff] }
 0x489   :  { %7024 = vmatprep.mubr.bf16.mxu1 %v14397_v49  ;;  %7038 = vmatpush1.bf16.msra.mxu1 %v11820_v3  ;;  %v5106_v49 = vld [vmem:[#allocation10 + $0xdb0] sm:$0xff]  ;;  %v11876_v56 = vcombine.low %v5127_v60, %v5131_v17  ;;  %v5159_v38 = vld [vmem:[#allocation10 + $0xf58] sm:$0xff] }
 0x48a   :  { %6917 = vmatprep.subr.bf16.mxu0 %v11827_v62  ;;  %7039 = vmatprep.subr.bf16.mxu1 %v11829_v41  ;;  %v11851_v13 = vcombine.high %v5102_v55, %v5106_v49  ;;  %v5126_v62 = vld [vmem:[#allocation10 + $0xe50] sm:$0xff]  ;;  %v5163_v39 = vld [vmem:[#allocation10 + $0xf78] sm:$0xff] }
 0x48b   :  { %v5130_v41 = vld [vmem:[#allocation10 + $0xe70] sm:$0xff] }
 0x48c   :  { %6918 = vmatpush1.bf16.msra.mxu0 %v11826_v61  ;;  %v11875_v61 = vcombine.high %v5126_v62, %v5130_v41  ;;  %v11874_v40 = vcombine.low %v5126_v62, %v5130_v41  ;;  %v5167_v62 = vld [vmem:[#allocation10 + $0xf98] sm:$0xff] }
 0x48d   :  { %7040 = vmatpush1.bf16.msra.mxu1 %v11828_v58  ;;  %6919 = vmatprep.subr.bf16.mxu0 %v11835_v44  ;;  %v11877_v58 = vcombine.high %v5127_v60, %v5131_v17  ;;  %v5134_v44 = vld [vmem:[#allocation10 + $0xe90] sm:$0xff]  ;;  %v5171_v41 = vld [vmem:[#allocation10 + $0xfb8] sm:$0xff]  ;;  %v11908_v17 = vcombine.low %v5159_v38, %v5163_v39 }
 0x48e   :  { %7041 = vmatprep.subr.bf16.mxu1 %v11837_v26  ;;  %v5138_v26 = vld [vmem:[#allocation10 + $0xeb0] sm:$0xff] }
 0x48f   :  { %6903 = vmatmul.mubr.bf16.gmra.mrb[76].mxu0 %v14411_v5  ;;  %7025 = vmatmul.mubr.bf16.gmra.mrb[76].mxu1 %v14411_v5  ;;  %v11850_v5 = vcombine.low %v5102_v55, %v5106_v49  ;;  %v5143_v55 = vld [vmem:[#allocation10 + $0xed8] sm:$0xff]  ;;  %v11882_v52 = vcombine.low %v5134_v44, %v5138_v26 }
 0x490   :  { %6920 = vmatpush1.bf16.msra.mxu0 %v11834_v47  ;;  %6943 = vmatprep.mubr.bf16.mxu0 %v14417_v54  ;;  %v11883_v47 = vcombine.high %v5134_v44, %v5138_v26  ;;  %v5147_v49 = vld [vmem:[#allocation10 + $0xef8] sm:$0xff] }
 0x491   :  { %7042 = vmatpush1.bf16.msra.mxu1 %v11836_v12  ;;  %7065 = vmatprep.mubr.bf16.mxu1 %v14417_v54  ;;  %v5119_v54 = vld [vmem:[#allocation10 + $0xe18] sm:$0xff]  ;;  %v11885_v12 = vcombine.high %v5135_v37, %v5139_v57  ;;  %v11892_v33 = vcombine.low %v5143_v55, %v5147_v49  ;;  %v11916_v57 = vcombine.low %v5167_v62, %v5171_v41 }
 0x492   :  { %6921 = vmatprep.subr.bf16.mxu0 %v11843_v35  ;;  %7043 = vmatprep.subr.bf16.mxu1 %v11845_v32  ;;  %v11869_v3 = vcombine.high %v5119_v54, %v5123_v7  ;;  %v11868_v51 = vcombine.low %v5119_v54, %v5123_v7  ;;  %v5142_v35 = vld [vmem:[#allocation10 + $0xed0] sm:$0xff]  ;;  %v11900_v7 = vcombine.low %v5151_v15, %v5155_v25  ;;  %v5175_v44 = vld [vmem:[#allocation10 + $0xfd8] sm:$0xff] }
 0x493   :  { %v5146_v32 = vld [vmem:[#allocation10 + $0xef0] sm:$0xff]  ;;  %v5179_v26 = vld [vmem:[#allocation10 + $0xff8] sm:$0xff] }
 0x494   :  { %6922 = vmatpush1.bf16.msra.mxu0 %v11842_v21  ;;  %v11891_v21 = vcombine.high %v5142_v35, %v5146_v32  ;;  %v11890_v48 = vcombine.low %v5142_v35, %v5146_v32  ;;  %v4666_v35 = vld [vmem:[#allocation10 + $0x8] sm:$0xff] }
 0x495   :  { %7044 = vmatpush1.bf16.msra.mxu1 %v11844_v6  ;;  %6923 = vmatprep.subr.bf16.mxu0 %v11851_v13  ;;  %v11893_v6 = vcombine.high %v5143_v55, %v5147_v49  ;;  %v5150_v13 = vld [vmem:[#allocation10 + $0xf10] sm:$0xff]  ;;  %v4670_v32 = vld [vmem:[#allocation10 + $0x28] sm:$0xff]  ;;  %v11924_v49 = vcombine.low %v5175_v44, %v5179_v26 }
 0x496   :  { %7045 = vmatprep.subr.bf16.mxu1 %v11853_v46  ;;  %v5154_v46 = vld [vmem:[#allocation10 + $0xf30] sm:$0xff] }
 0x497   :  { %v11898_v54 = vcombine.low %v5150_v13, %v5154_v46 }
 0x498   :  { %6924 = vmatpush1.bf16.msra.mxu0 %v11850_v5  ;;  %v11899_v5 = vcombine.high %v5150_v13, %v5154_v46  ;;  %v4674_v13 = vld [vmem:[#allocation10 + $0x48] sm:$0xff] }
 0x499   :  { %7046 = vmatpush1.bf16.msra.mxu1 %v11852_v42  ;;  %6925 = vmatprep.subr.bf16.mxu0 %v11859_v14  ;;  %v11901_v42 = vcombine.high %v5151_v15, %v5155_v25  ;;  %v5158_v14 = vld [vmem:[#allocation10 + $0xf50] sm:$0xff]  ;;  %v4678_v46 = vld [vmem:[#allocation10 + $0x68] sm:$0xff]  ;;  %v11932_v25 = vcombine.low %v4666_v35, %v4670_v32 }
 0x49a   :  { %7047 = vmatprep.subr.bf16.mxu1 %v11861_v50  ;;  %v5162_v50 = vld [vmem:[#allocation10 + $0xf70] sm:$0xff] }
 0x49b   :  { %v11906_v60 = vcombine.low %v5158_v14, %v5162_v50 }
 0x49c   :  { %6926 = vmatpush1.bf16.msra.mxu0 %v11858_v34  ;;  %v11907_v34 = vcombine.high %v5158_v14, %v5162_v50  ;;  %v4682_v14 = vld [vmem:[#allocation10 + $0x88] sm:$0xff] }
 0x49d   :  { %7048 = vmatpush1.bf16.msra.mxu1 %v11860_v29  ;;  %6927 = vmatprep.subr.bf16.mxu0 %v11867_v45  ;;  %v11909_v29 = vcombine.high %v5159_v38, %v5163_v39  ;;  %v5166_v45 = vld [vmem:[#allocation10 + $0xf90] sm:$0xff]  ;;  %v4686_v50 = vld [vmem:[#allocation10 + $0xa8] sm:$0xff]  ;;  %v11940_v39 = vcombine.low %v4674_v13, %v4678_v46 }
 0x49e   :  { %7049 = vmatprep.subr.bf16.mxu1 %v11869_v3  ;;  %v5170_v3 = vld [vmem:[#allocation10 + $0xfb0] sm:$0xff] }
 0x49f   :  { %v11914_v37 = vcombine.low %v5166_v45, %v5170_v3 }
 0x4a0   :  { %6928 = vmatpush1.bf16.msra.mxu0 %v11866_v59  ;;  %v11915_v59 = vcombine.high %v5166_v45, %v5170_v3  ;;  %v4690_v45 = vld [vmem:[#allocation10 + $0xc8] sm:$0xff] }
 0x4a1   :  { %7050 = vmatpush1.bf16.msra.mxu1 %v11868_v51  ;;  %6929 = vmatprep.subr.bf16.mxu0 %v11875_v61  ;;  %v11917_v51 = vcombine.high %v5167_v62, %v5171_v41  ;;  %v5174_v61 = vld [vmem:[#allocation10 + $0xfd0] sm:$0xff]  ;;  %v4694_v3 = vld [vmem:[#allocation10 + $0xe8] sm:$0xff]  ;;  %v11948_v62 = vcombine.low %v4682_v14, %v4686_v50 }
 0x4a2   :  { %7051 = vmatprep.subr.bf16.mxu1 %v11877_v58  ;;  %v5178_v58 = vld [vmem:[#allocation10 + $0xff0] sm:$0xff] }
 0x4a3   :  { %v11922_v55 = vcombine.low %v5174_v61, %v5178_v58 }
 0x4a4   :  { %6930 = vmatpush1.bf16.msra.mxu0 %v11874_v40  ;;  %v11923_v40 = vcombine.high %v5174_v61, %v5178_v58  ;;  %v11956_v58 = vcombine.low %v4690_v45, %v4694_v3 }
 0x4a5   :  { %7052 = vmatpush1.bf16.msra.mxu1 %v11876_v56  ;;  %6931 = vmatprep.subr.bf16.mxu0 %v11883_v47  ;;  %v11925_v56 = vcombine.high %v5175_v44, %v5179_v26  ;;  %v4665_v47 = vld [vmem:[#allocation10] sm:$0xff] }
 0x4a6   :  { %7053 = vmatprep.subr.bf16.mxu1 %v11885_v12  ;;  %v4669_v12 = vld [vmem:[#allocation10 + $0x20] sm:$0xff] }
 0x4a7   :  { %v11930_v15 = vcombine.low %v4665_v47, %v4669_v12 }
 0x4a8   :  { %6932 = vmatpush1.bf16.msra.mxu0 %v11882_v52  ;;  %v11931_v52 = vcombine.high %v4665_v47, %v4669_v12 }
 0x4a9   :  { %7054 = vmatpush1.bf16.msra.mxu1 %v11884_v1  ;;  %6933 = vmatprep.subr.bf16.mxu0 %v11891_v21  ;;  %v11933_v1 = vcombine.high %v4666_v35, %v4670_v32  ;;  %v4673_v21 = vld [vmem:[#allocation10 + $0x40] sm:$0xff] }
 0x4aa   :  { %7055 = vmatprep.subr.bf16.mxu1 %v11893_v6  ;;  %v4677_v6 = vld [vmem:[#allocation10 + $0x60] sm:$0xff] }
 0x4ab   :  { %v11938_v38 = vcombine.low %v4673_v21, %v4677_v6  ;;  %v4713_v35 = vld [vmem:[#allocation10 + $0x180] sm:$0xff] }
 0x4ac   :  { %6934 = vmatpush1.bf16.msra.mxu0 %v11890_v48  ;;  %v11939_v48 = vcombine.high %v4673_v21, %v4677_v6  ;;  %v4717_v32 = vld [vmem:[#allocation10 + $0x1a0] sm:$0xff] }
 0x4ad   :  { %7056 = vmatpush1.bf16.msra.mxu1 %v11892_v33  ;;  %6935 = vmatprep.subr.bf16.mxu0 %v11899_v5  ;;  %v11941_v33 = vcombine.high %v4674_v13, %v4678_v46  ;;  %v4681_v5 = vld [vmem:[#allocation10 + $0x80] sm:$0xff]  ;;  %v11979_v21 = vcombine.high %v4713_v35, %v4717_v32 }
 0x4ae   :  { %7057 = vmatprep.subr.bf16.mxu1 %v11901_v42  ;;  %v4685_v42 = vld [vmem:[#allocation10 + $0xa0] sm:$0xff] }
 0x4af   :  { %v4721_v13 = vld [vmem:[#allocation10 + $0x1c0] sm:$0xff] }
 0x4b0   :  { %6936 = vmatpush1.bf16.msra.mxu0 %v11898_v54  ;;  %v11947_v54 = vcombine.high %v4681_v5, %v4685_v42  ;;  %v4725_v46 = vld [vmem:[#allocation10 + $0x1e0] sm:$0xff] }
 0x4b1   :  { %7058 = vmatpush1.bf16.msra.mxu1 %v11900_v7  ;;  %6937 = vmatprep.subr.bf16.mxu0 %v11907_v34  ;;  %v11949_v7 = vcombine.high %v4682_v14, %v4686_v50  ;;  %v4689_v34 = vld [vmem:[#allocation10 + $0xc0] sm:$0xff]  ;;  %v4730_v50 = vld [vmem:[#allocation10 + $0x208] sm:$0xff] }
 0x4b2   :  { %7059 = vmatprep.subr.bf16.mxu1 %v11909_v29  ;;  %v4693_v29 = vld [vmem:[#allocation10 + $0xe0] sm:$0xff] }
 0x4b3   :  { %v11955_v41 = vcombine.high %v4689_v34, %v4693_v29  ;;  %v11954_v61 = vcombine.low %v4689_v34, %v4693_v29  ;;  %v4733_v14 = vld [vmem:[#allocation10 + $0x220] sm:$0xff] }
 0x4b4   :  { %6938 = vmatpush1.bf16.msra.mxu0 %v11906_v60  ;;  %v4697_v60 = vld [vmem:[#allocation10 + $0x100] sm:$0xff] }
 0x4b5   :  { %7060 = vmatpush1.bf16.msra.mxu1 %v11908_v17  ;;  %6939 = vmatprep.subr.bf16.mxu0 %v11915_v59  ;;  %v4701_v17 = vld [vmem:[#allocation10 + $0x120] sm:$0xff]  ;;  %v4698_v59 = vld [vmem:[#allocation10 + $0x108] sm:$0xff] }
 0x4b6   :  { %7061 = vmatprep.subr.bf16.mxu1 %v11917_v51  ;;  %v4702_v51 = vld [vmem:[#allocation10 + $0x128] sm:$0xff]  ;;  %v11963_v44 = vcombine.high %v4697_v60, %v4701_v17  ;;  %v4737_v29 = vld [vmem:[#allocation10 + $0x240] sm:$0xff] }
 0x4b7   :  { %v11965_v26 = vcombine.high %v4698_v59, %v4702_v51  ;;  %v11964_v47 = vcombine.low %v4698_v59, %v4702_v51  ;;  %v4749_v59 = vld [vmem:[#allocation10 + $0x2a0] sm:$0xff]  ;;  %v4746_v51 = vld [vmem:[#allocation10 + $0x288] sm:$0xff] }
 0x4b8   :  { %6940 = vmatpush1.bf16.msra.mxu0 %v11914_v37  ;;  %v4705_v37 = vld [vmem:[#allocation10 + $0x140] sm:$0xff] }
 0x4b9   :  { %7062 = vmatpush1.bf16.msra.mxu1 %v11916_v57  ;;  %6941 = vmatprep.subr.bf16.mxu0 %v11923_v40  ;;  %v4709_v57 = vld [vmem:[#allocation10 + $0x160] sm:$0xff]  ;;  %v4706_v40 = vld [vmem:[#allocation10 + $0x148] sm:$0xff] }
 0x4ba   :  { %7063 = vmatprep.subr.bf16.mxu1 %v11925_v56  ;;  %v4710_v56 = vld [vmem:[#allocation10 + $0x168] sm:$0xff]  ;;  %v11971_v12 = vcombine.high %v4705_v37, %v4709_v57 }
 0x4bc   :  { %6942 = vmatpush1.bf16.msra.mxu0 %v11922_v55  ;;  %v4714_v55 = vld [vmem:[#allocation10 + $0x188] sm:$0xff] }
 0x4bd   :  { %7064 = vmatpush1.bf16.msra.mxu1 %v11924_v49  ;;  %8396 = vmatprep.subr.bf16.mxu0 %v11931_v52  ;;  %v4718_v49 = vld [vmem:[#allocation10 + $0x1a8] sm:$0xff]  ;;  %v11970_v52 = vcombine.low %v4705_v37, %v4709_v57  ;;  %v4753_v57 = vld [vmem:[#allocation10 + $0x2c0] sm:$0xff] }
 0x4be   :  { %8518 = vmatprep.subr.bf16.mxu1 %v11933_v1  ;;  %v11972_v1 = vcombine.low %v4706_v40, %v4710_v56  ;;  %v11981_v6 = vcombine.high %v4714_v55, %v4718_v49 }
 0x4bf   :  { %6944 = vmatmul.mubr.bf16.vlgmr.msra.gmra.mrb[68].mxu0 %v14432_v0 }
 0x4c0   :  { %7066 = vmatmul.mubr.bf16.vlgmr.msra.gmra.mrb[68].mxu1 %v14432_v0  ;;  %6953 = vmatprep.mubr.bf16.mxu0 %v14438_v11  ;;  %v11946_v0 = vcombine.low %v4681_v5, %v4685_v42  ;;  %v4729_v42 = vld [vmem:[#allocation10 + $0x200] sm:$0xff] }
 0x4c1   :  { %7075 = vmatprep.mubr.bf16.mxu1 %v14438_v11  ;;  %8397 = vmatpush1.bf16.msra.mxu0 %v11930_v15  ;;  %v11957_v11 = vcombine.high %v4690_v45, %v4694_v3  ;;  %v4722_v15 = vld [vmem:[#allocation10 + $0x1c8] sm:$0xff]  ;;  %v4741_v45 = vld [vmem:[#allocation10 + $0x260] sm:$0xff] }
 0x4c2   :  { %8519 = vmatpush1.bf16.msra.mxu1 %v11932_v25  ;;  %8398 = vmatprep.subr.bf16.mxu0 %v11939_v48  ;;  %v4726_v25 = vld [vmem:[#allocation10 + $0x1e8] sm:$0xff]  ;;  %v11980_v48 = vcombine.low %v4714_v55, %v4718_v49  ;;  %v4765_v55 = vld [vmem:[#allocation10 + $0x320] sm:$0xff] }
 0x4c3   :  { %8520 = vmatprep.subr.bf16.mxu1 %v11941_v33  ;;  %v11987_v33 = vcombine.high %v4721_v13, %v4725_v46  ;;  %v11989_v5 = vcombine.high %v4722_v15, %v4726_v25  ;;  %v4738_v3 = vld [vmem:[#allocation10 + $0x248] sm:$0xff] }
 0x4c4   :  { %v4762_v49 = vld [vmem:[#allocation10 + $0x308] sm:$0xff] }
 0x4c5   :  { %8399 = vmatpush1.bf16.msra.mxu0 %v11938_v38  ;;  %v4734_v38 = vld [vmem:[#allocation10 + $0x228] sm:$0xff] }
 0x4c6   :  { %8521 = vmatpush1.bf16.msra.mxu1 %v11940_v39  ;;  %8400 = vmatprep.subr.bf16.mxu0 %v11947_v54  ;;  %v11986_v39 = vcombine.low %v4721_v13, %v4725_v46  ;;  %v11988_v54 = vcombine.low %v4722_v15, %v4726_v25  ;;  %v11997_v34 = vcombine.high %v4730_v50, %v4734_v38  ;;  %v4769_v46 = vld [vmem:[#allocation10 + $0x340] sm:$0xff] }
 0x4c7   :  { %6954 = vmatmul.mubr.bf16.gmra.mrb[72].mxu0 %v14445_v28  ;;  %8522 = vmatprep.subr.bf16.mxu1 %v11949_v7  ;;  %v11995_v7 = vcombine.high %v4729_v42, %v4733_v14  ;;  %v4773_v15 = vld [vmem:[#allocation10 + $0x360] sm:$0xff] }
 0x4c8   :  { %7076 = vmatmul.mubr.bf16.gmra.mrb[72].mxu1 %v14445_v28  ;;  %6963 = vmatprep.mubr.bf16.mxu0 %v14447_v53  ;;  %v11962_v28 = vcombine.low %v4697_v60, %v4701_v17  ;;  %v4745_v17 = vld [vmem:[#allocation10 + $0x280] sm:$0xff] }
 0x4c9   :  { %7085 = vmatprep.mubr.bf16.mxu1 %v14447_v53  ;;  %8401 = vmatpush1.bf16.msra.mxu0 %v11946_v0  ;;  %v11973_v53 = vcombine.high %v4706_v40, %v4710_v56  ;;  %v4742_v0 = vld [vmem:[#allocation10 + $0x268] sm:$0xff]  ;;  %v4757_v40 = vld [vmem:[#allocation10 + $0x2e0] sm:$0xff] }
 0x4ca   :  { %8523 = vmatpush1.bf16.msra.mxu1 %v11948_v62  ;;  %8402 = vmatprep.subr.bf16.mxu0 %v11955_v41  ;;  %v11994_v62 = vcombine.low %v4729_v42, %v4733_v14  ;;  %v11996_v41 = vcombine.low %v4730_v50, %v4734_v38  ;;  %v12005_v60 = vcombine.high %v4738_v3, %v4742_v0  ;;  %v4754_v56 = vld [vmem:[#allocation10 + $0x2c8] sm:$0xff] }
 0x4cb   :  { %8524 = vmatprep.subr.bf16.mxu1 %v11957_v11  ;;  %v12003_v11 = vcombine.high %v4737_v29, %v4741_v45 }
 0x4cd   :  { %8403 = vmatpush1.bf16.msra.mxu0 %v11954_v61  ;;  %v4750_v61 = vld [vmem:[#allocation10 + $0x2a8] sm:$0xff] }
 0x4ce   :  { %8525 = vmatpush1.bf16.msra.mxu1 %v11956_v58  ;;  %8404 = vmatprep.subr.bf16.mxu0 %v11963_v44  ;;  %v12002_v58 = vcombine.low %v4737_v29, %v4741_v45  ;;  %v12004_v44 = vcombine.low %v4738_v3, %v4742_v0  ;;  %v12013_v37 = vcombine.high %v4746_v51, %v4750_v61  ;;  %v4777_v45 = vld [vmem:[#allocation10 + $0x380] sm:$0xff]  ;;  %v4778_v0 = vld [vmem:[#allocation10 + $0x388] sm:$0xff] }
 0x4cf   :  { %6964 = vmatmul.mubr.bf16.gmra.mrb[80].mxu0 %v14454_v63  ;;  %8526 = vmatprep.subr.bf16.mxu1 %v11965_v26  ;;  %v12011_v26 = vcombine.high %v4745_v17, %v4749_v59  ;;  %v4781_v3 = vld [vmem:[#allocation10 + $0x3a0] sm:$0xff] }
 0x4d0   :  { %7086 = vmatmul.mubr.bf16.gmra.mrb[80].mxu1 %v14454_v63  ;;  %8428 = vmatprep.mubr.bf16.mxu0 %v14320_v8  ;;  %v11978_v63 = vcombine.low %v4713_v35, %v4717_v32  ;;  %v4761_v32 = vld [vmem:[#allocation10 + $0x300] sm:$0xff] }
 0x4d1   :  { %8405 = vmatpush1.bf16.msra.mxu0 %v11962_v28  ;;  %8550 = vmatprep.mubr.bf16.mxu1 %v14320_v8  ;;  %v4758_v28 = vld [vmem:[#allocation10 + $0x2e8] sm:$0xff]  ;;  %v12026_v14 = vcombine.low %v4761_v32, %v4765_v55 }
 0x4d2   :  { %8527 = vmatpush1.bf16.msra.mxu1 %v11964_v47  ;;  %8406 = vmatprep.subr.bf16.mxu0 %v11971_v12  ;;  %v12010_v47 = vcombine.low %v4745_v17, %v4749_v59  ;;  %v12012_v12 = vcombine.low %v4746_v51, %v4750_v61  ;;  %v12021_v35 = vcombine.high %v4754_v56, %v4758_v28  ;;  %v4785_v59 = vld [vmem:[#allocation10 + $0x3c0] sm:$0xff]  ;;  %v4786_v61 = vld [vmem:[#allocation10 + $0x3c8] sm:$0xff] }
 0x4d3   :  { %8528 = vmatprep.subr.bf16.mxu1 %v11973_v53  ;;  %v12019_v53 = vcombine.high %v4753_v57, %v4757_v40  ;;  %v4789_v51 = vld [vmem:[#allocation10 + $0x3e0] sm:$0xff] }
 0x4d5   :  { %8407 = vmatpush1.bf16.msra.mxu0 %v11970_v52  ;;  %v4766_v52 = vld [vmem:[#allocation10 + $0x328] sm:$0xff] }
 0x4d6   :  { %8529 = vmatpush1.bf16.msra.mxu1 %v11972_v1  ;;  %8408 = vmatprep.subr.bf16.mxu0 %v11979_v21  ;;  %v12018_v1 = vcombine.low %v4753_v57, %v4757_v40  ;;  %v12020_v21 = vcombine.low %v4754_v56, %v4758_v28  ;;  %v12029_v13 = vcombine.high %v4762_v49, %v4766_v52  ;;  %v4793_v40 = vld [vmem:[#allocation10 + $0x400] sm:$0xff]  ;;  %v4794_v28 = vld [vmem:[#allocation10 + $0x408] sm:$0xff] }
 0x4d7   :  { %8530 = vmatprep.subr.bf16.mxu1 %v11981_v6  ;;  %v12027_v6 = vcombine.high %v4761_v32, %v4765_v55  ;;  %v4797_v56 = vld [vmem:[#allocation10 + $0x420] sm:$0xff] }
 0x4d8   :  { %v4801_v55 = vld [vmem:[#allocation10 + $0x440] sm:$0xff] }
 0x4d9   :  { %8409 = vmatpush1.bf16.msra.mxu0 %v11978_v63 }
 0x4da   :  { %8531 = vmatpush1.bf16.msra.mxu1 %v11980_v48  ;;  %8410 = vmatprep.subr.bf16.mxu0 %v11987_v33  ;;  %v4770_v48 = vld [vmem:[#allocation10 + $0x348] sm:$0xff] }
 0x4db   :  { %8532 = vmatprep.subr.bf16.mxu1 %v11989_v5  ;;  %v4774_v33 = vld [vmem:[#allocation10 + $0x368] sm:$0xff] }
 0x4dc   :  { %v12037_v29 = vcombine.high %v4770_v48, %v4774_v33 }
 0x4dd   :  { %8411 = vmatpush1.bf16.msra.mxu0 %v11986_v39  ;;  %v12028_v39 = vcombine.low %v4762_v49, %v4766_v52  ;;  %v4805_v49 = vld [vmem:[#allocation10 + $0x460] sm:$0xff]  ;;  %v4802_v52 = vld [vmem:[#allocation10 + $0x448] sm:$0xff] }
 0x4de   :  { %8533 = vmatpush1.bf16.msra.mxu1 %v11988_v54  ;;  %8412 = vmatprep.subr.bf16.mxu0 %v11995_v7  ;;  %v12035_v54 = vcombine.high %v4769_v46, %v4773_v15 }
 0x4df   :  { %8534 = vmatprep.subr.bf16.mxu1 %v11997_v34 }
 0x4e1   :  { %8413 = vmatpush1.bf16.msra.mxu0 %v11994_v62  ;;  %v4782_v62 = vld [vmem:[#allocation10 + $0x3a8] sm:$0xff] }
 0x4e2   :  { %8535 = vmatpush1.bf16.msra.mxu1 %v11996_v41  ;;  %8414 = vmatprep.subr.bf16.mxu0 %v12003_v11  ;;  %v12034_v41 = vcombine.low %v4769_v46, %v4773_v15  ;;  %v12036_v11 = vcombine.low %v4770_v48, %v4774_v33  ;;  %v12045_v17 = vcombine.high %v4778_v0, %v4782_v62  ;;  %v4809_v15 = vld [vmem:[#allocation10 + $0x480] sm:$0xff]  ;;  %v4810_v33 = vld [vmem:[#allocation10 + $0x488] sm:$0xff] }
 0x4e3   :  { %8536 = vmatprep.subr.bf16.mxu1 %v12005_v60  ;;  %v12043_v60 = vcombine.high %v4777_v45, %v4781_v3  ;;  %v4813_v48 = vld [vmem:[#allocation10 + $0x4a0] sm:$0xff] }
 0x4e5   :  { %8415 = vmatpush1.bf16.msra.mxu0 %v12002_v58  ;;  %v4790_v58 = vld [vmem:[#allocation10 + $0x3e8] sm:$0xff] }
 0x4e6   :  { %8537 = vmatpush1.bf16.msra.mxu1 %v12004_v44  ;;  %8416 = vmatprep.subr.bf16.mxu0 %v12011_v26  ;;  %v12042_v44 = vcombine.low %v4777_v45, %v4781_v3  ;;  %v12044_v26 = vcombine.low %v4778_v0, %v4782_v62  ;;  %v12053_v57 = vcombine.high %v4786_v61, %v4790_v58  ;;  %v4818_v45 = vld [vmem:[#allocation10 + $0x4c8] sm:$0xff] }
 0x4e7   :  { %8538 = vmatprep.subr.bf16.mxu1 %v12013_v37  ;;  %v12051_v37 = vcombine.high %v4785_v59, %v4789_v51  ;;  %v4822_v3 = vld [vmem:[#allocation10 + $0x4e8] sm:$0xff]  ;;  %v12074_v0 = vcombine.low %v4809_v15, %v4813_v48 }
 0x4e9   :  { %8417 = vmatpush1.bf16.msra.mxu0 %v12010_v47  ;;  %v4798_v47 = vld [vmem:[#allocation10 + $0x428] sm:$0xff] }
 0x4ea   :  { %8539 = vmatpush1.bf16.msra.mxu1 %v12012_v12  ;;  %8418 = vmatprep.subr.bf16.mxu0 %v12019_v53  ;;  %v12050_v12 = vcombine.low %v4785_v59, %v4789_v51  ;;  %v12052_v53 = vcombine.low %v4786_v61, %v4790_v58  ;;  %v12061_v32 = vcombine.high %v4794_v28, %v4798_v47  ;;  %v4829_v59 = vld [vmem:[#allocation10 + $0x520] sm:$0xff]  ;;  %v4826_v51 = vld [vmem:[#allocation10 + $0x508] sm:$0xff] }
 0x4eb   :  { %8540 = vmatprep.subr.bf16.mxu1 %v12021_v35  ;;  %v12059_v35 = vcombine.high %v4793_v40, %v4797_v56  ;;  %v4830_v61 = vld [vmem:[#allocation10 + $0x528] sm:$0xff] }
 0x4ec   :  { %v14484_v25 = vpop.f32.mrb[60].mxu0  ;;  %v14486_v63 = vpop.f32.mrb[60].mxu1 }
 0x4ed   :  { %v14488_v5 = vpop.f32.mrb[61].mxu0  ;;  %v14490_v42 = vpop.f32.mrb[61].mxu1  ;;  %8419 = vmatpush1.bf16.msra.mxu0 %v12018_v1  ;;  %v4806_v1 = vld [vmem:[#allocation10 + $0x468] sm:$0xff] }
 0x4ee   :  { %v6664_v50 = vpop.f32.mrb[62].mxu0  ;;  %v6786_v38 = vpop.f32.mrb[62].mxu1  ;;  %8541 = vmatpush1.bf16.msra.mxu1 %v12020_v21  ;;  %8420 = vmatprep.subr.bf16.mxu0 %v12027_v6  ;;  %v12058_v21 = vcombine.low %v4793_v40, %v4797_v56  ;;  %v12060_v6 = vcombine.low %v4794_v28, %v4798_v47  ;;  %v12069_v46 = vcombine.high %v4802_v52, %v4806_v1  ;;  %v4837_v40 = vld [vmem:[#allocation10 + $0x560] sm:$0xff]  ;;  %v4834_v56 = vld [vmem:[#allocation10 + $0x548] sm:$0xff] }
 0x4ef   :  { %v6665_v7 = vpop.f32.mrb[63].mxu0  ;;  %v6787_v34 = vpop.f32.mrb[63].mxu1  ;;  %8542 = vmatprep.subr.bf16.mxu1 %v12029_v13  ;;  %v12067_v13 = vcombine.high %v4801_v55, %v4805_v49  ;;  %v12066_v50 = vcombine.low %v4801_v55, %v4805_v49  ;;  %v12068_v38 = vcombine.low %v4802_v52, %v4806_v1  ;;  %v4838_v28 = vld [vmem:[#allocation10 + $0x568] sm:$0xff]  ;;  %v4841_v55 = vld [vmem:[#allocation10 + $0x580] sm:$0xff] }
 0x4f0   :  { %v4663_v7 = vld [vmem:[#allocation3 + $0x40] sm:$0x33]  ;;  %v4842_v52 = vld [vmem:[#allocation10 + $0x588] sm:$0xff] }
 0x4f1   :  { %8421 = vmatpush1.bf16.msra.mxu0 %v12026_v14  ;;  %v4814_v14 = vld [vmem:[#allocation10 + $0x4a8] sm:$0xff]  ;;  %v4817_v34 = vld [vmem:[#allocation10 + $0x4c0] sm:$0xff]  ;;  %v14502_v47 = vcombine.low %v4663_v7, %v4663_v7 }
 0x4f2   :  { %8543 = vmatpush1.bf16.msra.mxu1 %v12028_v39  ;;  %8422 = vmatprep.subr.bf16.mxu0 %v12035_v54  ;;  %v12075_v39 = vcombine.high %v4809_v15, %v4813_v48  ;;  %v12077_v54 = vcombine.high %v4810_v33, %v4814_v14  ;;  %v12076_v62 = vcombine.low %v4810_v33, %v4814_v14  ;;  %v4845_v49 = vld [vmem:[#allocation10 + $0x5a0] sm:$0xff]  ;;  %v4846_v1 = vld [vmem:[#allocation10 + $0x5a8] sm:$0xff] }
 0x4f3   :  { %8544 = vmatprep.subr.bf16.mxu1 %v12037_v29  ;;  %v4821_v29 = vld [vmem:[#allocation10 + $0x4e0] sm:$0xff]  ;;  %v4850_v33 = vld [vmem:[#allocation10 + $0x5c8] sm:$0xff] }
 0x4f4   :  { %v12082_v58 = vcombine.low %v4817_v34, %v4821_v29  ;;  %v4849_v15 = vld [vmem:[#allocation10 + $0x5c0] sm:$0xff]  ;;  %v4854_v14 = vld [vmem:[#allocation10 + $0x5e8] sm:$0xff] }
 0x4f5   :  { %8423 = vmatpush1.bf16.msra.mxu0 %v12034_v41  ;;  %v14496_v41 = vcombine.high %v4663_v7, %v4663_v7  ;;  %v4853_v48 = vld [vmem:[#allocation10 + $0x5e0] sm:$0xff] }
 0x4f6   :  { %8545 = vmatpush1.bf16.msra.mxu1 %v12036_v11  ;;  %8424 = vmatprep.subr.bf16.mxu0 %v12043_v60  ;;  %v12083_v11 = vcombine.high %v4817_v34, %v4821_v29  ;;  %v12085_v60 = vcombine.high %v4818_v45, %v4822_v3  ;;  %v4857_v7 = vld [vmem:[#allocation10 + $0x600] sm:$0xff]  ;;  %v4858_v29 = vld [vmem:[#allocation10 + $0x608] sm:$0xff] }
 0x4f7   :  { %8546 = vmatprep.subr.bf16.mxu1 %v12045_v17  ;;  %v4825_v17 = vld [vmem:[#allocation10 + $0x500] sm:$0xff] }
 0x4f8   :  { %v4861_v34 = vld [vmem:[#allocation10 + $0x620] sm:$0xff] }
 0x4f9   :  { %8425 = vmatpush1.bf16.msra.mxu0 %v12042_v44  ;;  %v12084_v44 = vcombine.low %v4818_v45, %v4822_v3  ;;  %v4862_v45 = vld [vmem:[#allocation10 + $0x628] sm:$0xff]  ;;  %v12114_v3 = vcombine.low %v4849_v15, %v4853_v48 }
 0x4fa   :  { %8547 = vmatpush1.bf16.msra.mxu1 %v12044_v26  ;;  %8426 = vmatprep.subr.bf16.mxu0 %v12051_v37  ;;  %v12091_v26 = vcombine.high %v4825_v17, %v4829_v59  ;;  %v12093_v37 = vcombine.high %v4826_v51, %v4830_v61 }
 0x4fb   :  { %8548 = vmatprep.subr.bf16.mxu1 %v12053_v57  ;;  %v4833_v57 = vld [vmem:[#allocation10 + $0x540] sm:$0xff] }
 0x4fd   :  { %8427 = vmatpush1.bf16.msra.mxu0 %v12050_v12  ;;  %v12090_v12 = vcombine.low %v4825_v17, %v4829_v59  ;;  %v4869_v17 = vld [vmem:[#allocation10 + $0x660] sm:$0xff]  ;;  %v4866_v59 = vld [vmem:[#allocation10 + $0x648] sm:$0xff] }
 0x4fe   :  { %8549 = vmatpush1.bf16.msra.mxu1 %v12052_v53  ;;  %8457 = vmatprep.subr.bf16.mxu0 %v12059_v35  ;;  %v12092_v53 = vcombine.low %v4826_v51, %v4830_v61  ;;  %v12099_v35 = vcombine.high %v4833_v57, %v4837_v40  ;;  %v4870_v51 = vld [vmem:[#allocation10 + $0x668] sm:$0xff]  ;;  %v12122_v61 = vcombine.low %v4857_v7, %v4861_v34 }
 0x4ff   :  { %8579 = vmatprep.subr.bf16.mxu1 %v12061_v32  ;;  %v12101_v32 = vcombine.high %v4834_v56, %v4838_v28 }
 0x500   :  { %8429 = vmatmul.mubr.bf16.vlgmr.msra.gmra.mrb[52].mxu0 %v14309_v20 }
 0x501   :  { %8551 = vmatmul.mubr.bf16.vlgmr.msra.gmra.mrb[52].mxu1 %v14309_v20  ;;  %8438 = vmatprep.mubr.bf16.mxu0 %v14327_v18 }
 0x502   :  { %8458 = vmatpush1.bf16.msra.mxu0 %v12058_v21  ;;  %8560 = vmatprep.mubr.bf16.mxu1 %v14327_v18  ;;  %v12098_v21 = vcombine.low %v4833_v57, %v4837_v40  ;;  %v4877_v57 = vld [vmem:[#allocation10 + $0x6a0] sm:$0xff] }
 0x503   :  { %8580 = vmatpush1.bf16.msra.mxu1 %v12060_v6  ;;  %8459 = vmatprep.subr.bf16.mxu0 %v12067_v13  ;;  %v12100_v6 = vcombine.low %v4834_v56, %v4838_v28  ;;  %v12107_v13 = vcombine.high %v4841_v55, %v4845_v49  ;;  %v4874_v28 = vld [vmem:[#allocation10 + $0x688] sm:$0xff] }
 0x504   :  { %8581 = vmatprep.subr.bf16.mxu1 %v12069_v46  ;;  %v12109_v46 = vcombine.high %v4842_v52, %v4846_v1 }
 0x506   :  { %8460 = vmatpush1.bf16.msra.mxu0 %v12066_v50  ;;  %v12106_v50 = vcombine.low %v4841_v55, %v4845_v49 }
 0x507   :  { %8582 = vmatpush1.bf16.msra.mxu1 %v12068_v38  ;;  %8461 = vmatprep.subr.bf16.mxu0 %v12075_v39  ;;  %v12108_v38 = vcombine.low %v4842_v52, %v4846_v1  ;;  %v12115_v39 = vcombine.high %v4849_v15, %v4853_v48  ;;  %v12132_v52 = vcombine.low %v4866_v59, %v4870_v51  ;;  %v4881_v48 = vld [vmem:[#allocation10 + $0x6c0] sm:$0xff] }
 0x508   :  { %8439 = vmatmul.mubr.bf16.gmra.mrb[56].mxu0 %v14325_v4  ;;  %8583 = vmatprep.subr.bf16.mxu1 %v12077_v54  ;;  %v12117_v54 = vcombine.high %v4850_v33, %v4854_v14 }
 0x509   :  { %8561 = vmatmul.mubr.bf16.gmra.mrb[56].mxu1 %v14325_v4  ;;  %8448 = vmatprep.mubr.bf16.mxu0 %v14496_v41 }
 0x50a   :  { %8462 = vmatpush1.bf16.msra.mxu0 %v12074_v0  ;;  %8570 = vmatprep.mubr.bf16.mxu1 %v14496_v41  ;;  %v12116_v0 = vcombine.low %v4850_v33, %v4854_v14  ;;  %v4885_v33 = vld [vmem:[#allocation10 + $0x6e0] sm:$0xff]  ;;  %v4882_v14 = vld [vmem:[#allocation10 + $0x6c8] sm:$0xff] }
 0x50b   :  { %8584 = vmatpush1.bf16.msra.mxu1 %v12076_v62  ;;  %8463 = vmatprep.subr.bf16.mxu0 %v12083_v11  ;;  %v12123_v62 = vcombine.high %v4857_v7, %v4861_v34  ;;  %v12125_v11 = vcombine.high %v4858_v29, %v4862_v45  ;;  %v4893_v7 = vld [vmem:[#allocation10 + $0x720] sm:$0xff]  ;;  %v4890_v34 = vld [vmem:[#allocation10 + $0x708] sm:$0xff] }
 0x50c   :  { %8585 = vmatprep.subr.bf16.mxu1 %v12085_v60  ;;  %v4865_v60 = vld [vmem:[#allocation10 + $0x640] sm:$0xff] }
 0x50d   :  { %v12130_v49 = vcombine.low %v4865_v60, %v4869_v17 }
 0x50e   :  { %8464 = vmatpush1.bf16.msra.mxu0 %v12082_v58  ;;  %v12124_v58 = vcombine.low %v4858_v29, %v4862_v45  ;;  %v4894_v29 = vld [vmem:[#allocation10 + $0x728] sm:$0xff]  ;;  %v12146_v45 = vcombine.low %v4881_v48, %v4885_v33 }
 0x50f   :  { %8586 = vmatpush1.bf16.msra.mxu1 %v12084_v44  ;;  %8465 = vmatprep.subr.bf16.mxu0 %v12091_v26  ;;  %v12131_v44 = vcombine.high %v4865_v60, %v4869_v17  ;;  %v12133_v26 = vcombine.high %v4866_v59, %v4870_v51  ;;  %v4901_v60 = vld [vmem:[#allocation10 + $0x760] sm:$0xff]  ;;  %v4898_v17 = vld [vmem:[#allocation10 + $0x748] sm:$0xff] }
 0x510   :  { %8449 = vmatmul.mubr.bf16.gmra.mrb[84].mxu0 %v14502_v47  ;;  %8587 = vmatprep.subr.bf16.mxu1 %v12093_v37  ;;  %v4873_v37 = vld [vmem:[#allocation10 + $0x680] sm:$0xff]  ;;  %v4902_v59 = vld [vmem:[#allocation10 + $0x768] sm:$0xff] }
 0x511   :  { %8571 = vmatmul.mubr.bf16.gmra.mrb[84].mxu1 %v14502_v47  ;;  %8489 = vmatprep.mubr.bf16.mxu0 %v14346_v22 }
 0x512   :  { %8466 = vmatpush1.bf16.msra.mxu0 %v12090_v12  ;;  %8611 = vmatprep.mubr.bf16.mxu1 %v14346_v22  ;;  %v4878_v12 = vld [vmem:[#allocation10 + $0x6a8] sm:$0xff] }
 0x513   :  { %8588 = vmatpush1.bf16.msra.mxu1 %v12092_v53  ;;  %8467 = vmatprep.subr.bf16.mxu0 %v12099_v35 }
 0x514   :  { %8589 = vmatprep.subr.bf16.mxu1 %v12101_v32 }
 0x516   :  { %8468 = vmatpush1.bf16.msra.mxu0 %v12098_v21 }
 0x517   :  { %8590 = vmatpush1.bf16.msra.mxu1 %v12100_v6  ;;  %8469 = vmatprep.subr.bf16.mxu0 %v12107_v13 }
 0x518   :  { %8591 = vmatprep.subr.bf16.mxu1 %v12109_v46  ;;  %v12139_v46 = vcombine.high %v4873_v37, %v4877_v57 }
 0x51a   :  { %8470 = vmatpush1.bf16.msra.mxu0 %v12106_v50  ;;  %v4886_v50 = vld [vmem:[#allocation10 + $0x6e8] sm:$0xff] }
 0x51b   :  { %8592 = vmatpush1.bf16.msra.mxu1 %v12108_v38  ;;  %8471 = vmatprep.subr.bf16.mxu0 %v12115_v39  ;;  %v12138_v38 = vcombine.low %v4873_v37, %v4877_v57  ;;  %v12147_v39 = vcombine.high %v4881_v48, %v4885_v33  ;;  %v4909_v37 = vld [vmem:[#allocation10 + $0x7a0] sm:$0xff]  ;;  %v4906_v57 = vld [vmem:[#allocation10 + $0x788] sm:$0xff]  ;;  %v4671_v48 = vld [vmem:[#allocation10 + $0x30] sm:$0xff] }
 0x51c   :  { %8593 = vmatprep.subr.bf16.mxu1 %v12117_v54  ;;  %v4889_v54 = vld [vmem:[#allocation10 + $0x700] sm:$0xff]  ;;  %v4668_v33 = vld [vmem:[#allocation10 + $0x18] sm:$0xff] }
 0x51d   :  { %v12154_v51 = vcombine.low %v4889_v54, %v4893_v7 }
 0x51e   :  { %8472 = vmatpush1.bf16.msra.mxu0 %v12114_v3  ;;  %v12148_v3 = vcombine.low %v4882_v14, %v4886_v50 }
 0x51f   :  { %8594 = vmatpush1.bf16.msra.mxu1 %v12116_v0  ;;  %8473 = vmatprep.subr.bf16.mxu0 %v12123_v62  ;;  %v12155_v0 = vcombine.high %v4889_v54, %v4893_v7  ;;  %v12157_v62 = vcombine.high %v4890_v34, %v4894_v29  ;;  %v4679_v54 = vld [vmem:[#allocation10 + $0x70] sm:$0xff]  ;;  %v4676_v7 = vld [vmem:[#allocation10 + $0x58] sm:$0xff] }
 0x520   :  { %8595 = vmatprep.subr.bf16.mxu1 %v12125_v11  ;;  %v4897_v11 = vld [vmem:[#allocation10 + $0x740] sm:$0xff] }
 0x521   :  { %v6721_v40 = vpop.f32.mrb[64].mxu0  ;;  %v6843_v56 = vpop.f32.mrb[64].mxu1 }
 0x522   :  { %8474 = vmatpush1.bf16.msra.mxu0 %v12122_v61  ;;  %v14509_v53 = vadd.f32 %v6721_v40, %v14484_v25  ;;  %v14512_v35 = vadd.f32 %v6843_v56, %v14486_v63  ;;  %v6723_v32 = vpop.f32.mrb[65].mxu0  ;;  %v6845_v55 = vpop.f32.mrb[65].mxu1  ;;  %v12141_v63 = vcombine.high %v4874_v28, %v4878_v12  ;;  %v12156_v61 = vcombine.low %v4890_v34, %v4894_v29  ;;  %v4910_v40 = vld [vmem:[#allocation10 + $0x7a8] sm:$0xff]  ;;  %v4680_v34 = vld [vmem:[#allocation10 + $0x78] sm:$0xff] }
 0x523   :  { %8596 = vmatpush1.bf16.msra.mxu1 %v12124_v58  ;;  %v14515_v1 = vadd.f32 %v6723_v32, %v14488_v5  ;;  %v14518_v21 = vadd.f32 %v6845_v55, %v14490_v42  ;;  %8475 = vmatprep.subr.bf16.mxu0 %v12131_v44  ;;  %v6725_v6 = vpop.f32.mrb[66].mxu0  ;;  %v6847_v13 = vpop.f32.mrb[66].mxu1  ;;  %v12140_v5 = vcombine.low %v4874_v28, %v4878_v12  ;;  %v4913_v55 = vld [vmem:[#allocation10 + $0x7c0] sm:$0xff] }
 0x524   :  { %8597 = vmatprep.subr.bf16.mxu1 %v12133_v26  ;;  %v6726_v25 = vpop.f32.mrb[67].mxu0  ;;  %v6848_v15 = vpop.f32.mrb[67].mxu1  ;;  %v12149_v42 = vcombine.high %v4882_v14, %v4886_v50  ;;  %v12163_v58 = vcombine.high %v4897_v11, %v4901_v60  ;;  %v12165_v44 = vcombine.high %v4898_v17, %v4902_v59  ;;  %v4905_v26 = vld [vmem:[#allocation10 + $0x780] sm:$0xff]  ;;  %v12162_v56 = vcombine.low %v4897_v11, %v4901_v60  ;;  %v4918_v6 = vld [vmem:[#allocation10 + $0x7e8] sm:$0xff]  ;;  %v4672_v14 = vld [vmem:[#allocation10 + $0x38] sm:$0xff] }
 0x525   :  { %v12164_v28 = vcombine.low %v4898_v17, %v4902_v59  ;;  %v12171_v12 = vcombine.high %v4905_v26, %v4909_v37  ;;  %v12173_v32 = vcombine.high %v4906_v57, %v4910_v40  ;;  %v12170_v13 = vcombine.low %v4905_v26, %v4909_v37  ;;  %v4687_v11 = vld [vmem:[#allocation10 + $0xb0] sm:$0xff]  ;;  %v4684_v60 = vld [vmem:[#allocation10 + $0x98] sm:$0xff] }
 0x526   :  { %8476 = vmatpush1.bf16.msra.mxu0 %v12130_v49  ;;  %v4917_v49 = vld [vmem:[#allocation10 + $0x7e0] sm:$0xff]  ;;  %v4688_v17 = vld [vmem:[#allocation10 + $0xb8] sm:$0xff]  ;;  %v4691_v26 = vld [vmem:[#allocation10 + $0xd0] sm:$0xff] }
 0x527   :  { %8598 = vmatpush1.bf16.msra.mxu1 %v12132_v52  ;;  %8477 = vmatprep.subr.bf16.mxu0 %v12139_v46  ;;  %v4914_v52 = vld [vmem:[#allocation10 + $0x7c8] sm:$0xff]  ;;  %v12172_v46 = vcombine.low %v4906_v57, %v4910_v40  ;;  %v12179_v25 = vcombine.high %v4913_v55, %v4917_v49  ;;  %v12178_v50 = vcombine.low %v4913_v55, %v4917_v49  ;;  %v4695_v37 = vld [vmem:[#allocation10 + $0xf0] sm:$0xff]  ;;  %v4692_v57 = vld [vmem:[#allocation10 + $0xd8] sm:$0xff] }
 0x528   :  { %8599 = vmatprep.subr.bf16.mxu1 %v12141_v63  ;;  %v12181_v15 = vcombine.high %v4914_v52, %v4918_v6  ;;  %v4667_v63 = vld [vmem:[#allocation10 + $0x10] sm:$0xff]  ;;  %v4696_v40 = vld [vmem:[#allocation10 + $0xf8] sm:$0xff] }
 0x529   :  { %v11934_v29 = vcombine.low %v4667_v63, %v4671_v48  ;;  %v11961_v55 = vcombine.high %v4692_v57, %v4696_v40  ;;  %v4699_v49 = vld [vmem:[#allocation10 + $0x110] sm:$0xff] }
 0x52a   :  { %8478 = vmatpush1.bf16.msra.mxu0 %v12138_v38  ;;  %v12180_v38 = vcombine.low %v4914_v52, %v4918_v6  ;;  %v4703_v52 = vld [vmem:[#allocation10 + $0x130] sm:$0xff]  ;;  %v4700_v6 = vld [vmem:[#allocation10 + $0x118] sm:$0xff] }
 0x52b   :  { %8600 = vmatpush1.bf16.msra.mxu1 %v12140_v5  ;;  %8479 = vmatprep.subr.bf16.mxu0 %v12147_v39  ;;  %v11935_v5 = vcombine.high %v4667_v63, %v4671_v48  ;;  %v11937_v39 = vcombine.high %v4668_v33, %v4672_v14  ;;  %v4707_v48 = vld [vmem:[#allocation10 + $0x150] sm:$0xff] }
 0x52c   :  { %8601 = vmatprep.subr.bf16.mxu1 %v12149_v42  ;;  %v4675_v42 = vld [vmem:[#allocation10 + $0x50] sm:$0xff] }
 0x52d   :  { %v11942_v59 = vcombine.low %v4675_v42, %v4679_v54 }
 0x52e   :  { %8480 = vmatpush1.bf16.msra.mxu0 %v12146_v45  ;;  %v11936_v45 = vcombine.low %v4668_v33, %v4672_v14  ;;  %v4711_v33 = vld [vmem:[#allocation10 + $0x170] sm:$0xff]  ;;  %v4708_v14 = vld [vmem:[#allocation10 + $0x158] sm:$0xff] }
 0x52f   :  { %8602 = vmatpush1.bf16.msra.mxu1 %v12148_v3  ;;  %8481 = vmatprep.subr.bf16.mxu0 %v12155_v0  ;;  %v11943_v3 = vcombine.high %v4675_v42, %v4679_v54  ;;  %v11945_v0 = vcombine.high %v4676_v7, %v4680_v34  ;;  %v11975_v42 = vcombine.high %v4707_v48, %v4711_v33 }
 0x530   :  { %8603 = vmatprep.subr.bf16.mxu1 %v12157_v62  ;;  %v4683_v62 = vld [vmem:[#allocation10 + $0x90] sm:$0xff] }
 0x532   :  { %8482 = vmatpush1.bf16.msra.mxu0 %v12154_v51  ;;  %v11944_v51 = vcombine.low %v4676_v7, %v4680_v34  ;;  %v4715_v7 = vld [vmem:[#allocation10 + $0x190] sm:$0xff] }
 0x533   :  { %8604 = vmatpush1.bf16.msra.mxu1 %v12156_v61  ;;  %8483 = vmatprep.subr.bf16.mxu0 %v12163_v58  ;;  %v11951_v61 = vcombine.high %v4683_v62, %v4687_v11  ;;  %v11953_v58 = vcombine.high %v4684_v60, %v4688_v17  ;;  %v4719_v34 = vld [vmem:[#allocation10 + $0x1b0] sm:$0xff] }
 0x534   :  { %8605 = vmatprep.subr.bf16.mxu1 %v12165_v44  ;;  %v4664_v44 = vld [vmem:[#allocation3 + $0x48] sm:$0x33] }
 0x536   :  { %8484 = vmatpush1.bf16.msra.mxu0 %v12162_v56  ;;  %v11950_v56 = vcombine.low %v4683_v62, %v4687_v11  ;;  %v11983_v62 = vcombine.high %v4715_v7, %v4719_v34 }
 0x537   :  { %8606 = vmatpush1.bf16.msra.mxu1 %v12164_v28  ;;  %8485 = vmatprep.subr.bf16.mxu0 %v12171_v12  ;;  %v11952_v28 = vcombine.low %v4684_v60, %v4688_v17  ;;  %v14524_v12 = vcombine.high %v4664_v44, %v4664_v44  ;;  %v4723_v60 = vld [vmem:[#allocation10 + $0x1d0] sm:$0xff] }
 0x538   :  { %8607 = vmatprep.subr.bf16.mxu1 %v12173_v32  ;;  %v11959_v32 = vcombine.high %v4691_v26, %v4695_v37  ;;  %v4727_v17 = vld [vmem:[#allocation10 + $0x1f0] sm:$0xff] }
 0x53a   :  { %8486 = vmatpush1.bf16.msra.mxu0 %v12170_v13  ;;  %v4704_v13 = vld [vmem:[#allocation10 + $0x138] sm:$0xff] }
 0x53b   :  { %8608 = vmatpush1.bf16.msra.mxu1 %v12172_v46  ;;  %8487 = vmatprep.subr.bf16.mxu0 %v12179_v25  ;;  %v11958_v46 = vcombine.low %v4691_v26, %v4695_v37  ;;  %v11960_v25 = vcombine.low %v4692_v57, %v4696_v40  ;;  %v11969_v63 = vcombine.high %v4700_v6, %v4704_v13  ;;  %v4735_v37 = vld [vmem:[#allocation10 + $0x230] sm:$0xff]  ;;  %v4732_v57 = vld [vmem:[#allocation10 + $0x218] sm:$0xff] }
 0x53c   :  { %8609 = vmatprep.subr.bf16.mxu1 %v12181_v15  ;;  %v11967_v15 = vcombine.high %v4699_v49, %v4703_v52  ;;  %v4736_v40 = vld [vmem:[#allocation10 + $0x238] sm:$0xff] }
 0x53e   :  { %8488 = vmatpush1.bf16.msra.mxu0 %v12178_v50  ;;  %v4712_v50 = vld [vmem:[#allocation10 + $0x178] sm:$0xff] }
 0x53f   :  { %8610 = vmatpush1.bf16.msra.mxu1 %v12180_v38  ;;  %8640 = vmatprep.subr.bf16.mxu0 %v11935_v5  ;;  %v14530_v38 = vcombine.low %v4664_v44, %v4664_v44  ;;  %v11966_v5 = vcombine.low %v4699_v49, %v4703_v52  ;;  %v11977_v54 = vcombine.high %v4708_v14, %v4712_v50  ;;  %v4739_v49 = vld [vmem:[#allocation10 + $0x250] sm:$0xff] }
 0x540   :  { %8762 = vmatprep.subr.bf16.mxu1 %v11937_v39  ;;  %v11968_v39 = vcombine.low %v4700_v6, %v4704_v13  ;;  %v11991_v44 = vcombine.high %v4723_v60, %v4727_v17  ;;  %v4743_v52 = vld [vmem:[#allocation10 + $0x270] sm:$0xff]  ;;  %v4740_v6 = vld [vmem:[#allocation10 + $0x258] sm:$0xff] }
 0x541   :  { %8490 = vmatmul.mubr.bf16.vlgmr.msra.gmra.mrb[52].mxu0 %v14340_v27  ;;  %v4744_v13 = vld [vmem:[#allocation10 + $0x278] sm:$0xff] }
 0x542   :  { %8612 = vmatmul.mubr.bf16.vlgmr.msra.gmra.mrb[52].mxu1 %v14340_v27  ;;  %8499 = vmatprep.mubr.bf16.mxu0 %v14360_v9 }
 0x543   :  { %8621 = vmatprep.mubr.bf16.mxu1 %v14360_v9  ;;  %8641 = vmatpush1.bf16.msra.mxu0 %v11934_v29  ;;  %v4716_v29 = vld [vmem:[#allocation10 + $0x198] sm:$0xff] }
 0x544   :  { %8763 = vmatpush1.bf16.msra.mxu1 %v11936_v45  ;;  %8642 = vmatprep.subr.bf16.mxu0 %v11943_v3  ;;  %v4720_v45 = vld [vmem:[#allocation10 + $0x1b8] sm:$0xff]  ;;  %v11974_v3 = vcombine.low %v4707_v48, %v4711_v33  ;;  %v4747_v48 = vld [vmem:[#allocation10 + $0x290] sm:$0xff] }
 0x545   :  { %8764 = vmatprep.subr.bf16.mxu1 %v11945_v0  ;;  %v11976_v0 = vcombine.low %v4708_v14, %v4712_v50  ;;  %v11985_v11 = vcombine.high %v4716_v29, %v4720_v45  ;;  %v4751_v33 = vld [vmem:[#allocation10 + $0x2b0] sm:$0xff] }
 0x547   :  { %8643 = vmatpush1.bf16.msra.mxu0 %v11942_v59  ;;  %v4724_v59 = vld [vmem:[#allocation10 + $0x1d8] sm:$0xff] }
 0x548   :  { %8765 = vmatpush1.bf16.msra.mxu1 %v11944_v51  ;;  %8644 = vmatprep.subr.bf16.mxu0 %v11951_v61  ;;  %v4728_v51 = vld [vmem:[#allocation10 + $0x1f8] sm:$0xff]  ;;  %v11982_v61 = vcombine.low %v4715_v7, %v4719_v34  ;;  %v12006_v7 = vcombine.low %v4739_v49, %v4743_v52  ;;  %v12008_v34 = vcombine.low %v4740_v6, %v4744_v13 }
 0x549   :  { %8500 = vmatmul.mubr.bf16.gmra.mrb[56].mxu0 %v14348_v36  ;;  %8766 = vmatprep.subr.bf16.mxu1 %v11953_v58  ;;  %v11984_v58 = vcombine.low %v4716_v29, %v4720_v45  ;;  %v11993_v26 = vcombine.high %v4724_v59, %v4728_v51 }
 0x54a   :  { %8622 = vmatmul.mubr.bf16.gmra.mrb[56].mxu1 %v14348_v36  ;;  %8509 = vmatprep.mubr.bf16.mxu0 %v14524_v12 }
 0x54b   :  { %8631 = vmatprep.mubr.bf16.mxu1 %v14524_v12  ;;  %8645 = vmatpush1.bf16.msra.mxu0 %v11950_v56  ;;  %v11990_v56 = vcombine.low %v4723_v60, %v4727_v17  ;;  %v4755_v60 = vld [vmem:[#allocation10 + $0x2d0] sm:$0xff] }
 0x54c   :  { %8767 = vmatpush1.bf16.msra.mxu1 %v11952_v28  ;;  %8646 = vmatprep.subr.bf16.mxu0 %v11959_v32  ;;  %v11992_v28 = vcombine.low %v4724_v59, %v4728_v51  ;;  %v4759_v17 = vld [vmem:[#allocation10 + $0x2f0] sm:$0xff]  ;;  %v4756_v59 = vld [vmem:[#allocation10 + $0x2d8] sm:$0xff] }
 0x54d   :  { %8768 = vmatprep.subr.bf16.mxu1 %v11961_v55  ;;  %v12001_v55 = vcombine.high %v4732_v57, %v4736_v40  ;;  %v4760_v51 = vld [vmem:[#allocation10 + $0x2f8] sm:$0xff] }
 0x54f   :  { %8647 = vmatpush1.bf16.msra.mxu0 %v11958_v46 }
 0x550   :  { %8769 = vmatpush1.bf16.msra.mxu1 %v11960_v25  ;;  %8648 = vmatprep.subr.bf16.mxu0 %v11967_v15  ;;  %v12000_v25 = vcombine.low %v4732_v57, %v4736_v40  ;;  %v12007_v15 = vcombine.high %v4739_v49, %v4743_v52  ;;  %v4764_v57 = vld [vmem:[#allocation10 + $0x318] sm:$0xff]  ;;  %v4771_v49 = vld [vmem:[#allocation10 + $0x350] sm:$0xff] }
 0x551   :  { %8510 = vmatmul.mubr.bf16.gmra.mrb[88].mxu0 %v14530_v38  ;;  %8770 = vmatprep.subr.bf16.mxu1 %v11969_v63  ;;  %v12009_v63 = vcombine.high %v4740_v6, %v4744_v13  ;;  %v4768_v40 = vld [vmem:[#allocation10 + $0x338] sm:$0xff]  ;;  %v4775_v52 = vld [vmem:[#allocation10 + $0x370] sm:$0xff] }
 0x552   :  { %8632 = vmatmul.mubr.bf16.gmra.mrb[88].mxu1 %v14530_v38  ;;  %8672 = vmatprep.mubr.bf16.mxu0 %v14320_v8  ;;  %v4772_v6 = vld [vmem:[#allocation10 + $0x358] sm:$0xff] }
 0x553   :  { %8649 = vmatpush1.bf16.msra.mxu0 %v11966_v5  ;;  %8794 = vmatprep.mubr.bf16.mxu1 %v14320_v8  ;;  %v4731_v8 = vld [vmem:[#allocation10 + $0x210] sm:$0xff]  ;;  %v4748_v5 = vld [vmem:[#allocation10 + $0x298] sm:$0xff] }
 0x554   :  { %8771 = vmatpush1.bf16.msra.mxu1 %v11968_v39  ;;  %8650 = vmatprep.subr.bf16.mxu0 %v11975_v42  ;;  %v11999_v32 = vcombine.high %v4731_v8, %v4735_v37  ;;  %v11998_v46 = vcombine.low %v4731_v8, %v4735_v37  ;;  %v4752_v39 = vld [vmem:[#allocation10 + $0x2b8] sm:$0xff]  ;;  %v4763_v8 = vld [vmem:[#allocation10 + $0x310] sm:$0xff] }
 0x555   :  { %8772 = vmatprep.subr.bf16.mxu1 %v11977_v54  ;;  %v4767_v37 = vld [vmem:[#allocation10 + $0x330] sm:$0xff]  ;;  %v4776_v13 = vld [vmem:[#allocation10 + $0x378] sm:$0xff] }
 0x557   :  { %8651 = vmatpush1.bf16.msra.mxu0 %v11974_v3  ;;  %v12015_v3 = vcombine.high %v4747_v48, %v4751_v33 }
 0x558   :  { %8773 = vmatpush1.bf16.msra.mxu1 %v11976_v0  ;;  %8652 = vmatprep.subr.bf16.mxu0 %v11983_v62 }
 0x559   :  { %8774 = vmatprep.subr.bf16.mxu1 %v11985_v11  ;;  %v12017_v11 = vcombine.high %v4748_v5, %v4752_v39 }
 0x55b   :  { %8653 = vmatpush1.bf16.msra.mxu0 %v11982_v61  ;;  %v12014_v61 = vcombine.low %v4747_v48, %v4751_v33  ;;  %v4779_v48 = vld [vmem:[#allocation10 + $0x390] sm:$0xff] }
 0x55c   :  { %8775 = vmatpush1.bf16.msra.mxu1 %v11984_v58  ;;  %8654 = vmatprep.subr.bf16.mxu0 %v11991_v44  ;;  %v12016_v58 = vcombine.low %v4748_v5, %v4752_v39  ;;  %v12023_v44 = vcombine.high %v4755_v60, %v4759_v17  ;;  %v4783_v33 = vld [vmem:[#allocation10 + $0x3b0] sm:$0xff]  ;;  %v4780_v5 = vld [vmem:[#allocation10 + $0x398] sm:$0xff] }
 0x55d   :  { %8776 = vmatprep.subr.bf16.mxu1 %v11993_v26  ;;  %v12025_v26 = vcombine.high %v4756_v59, %v4760_v51  ;;  %v4784_v39 = vld [vmem:[#allocation10 + $0x3b8] sm:$0xff] }
 0x55f   :  { %8655 = vmatpush1.bf16.msra.mxu0 %v11990_v56  ;;  %v12022_v56 = vcombine.low %v4755_v60, %v4759_v17  ;;  %v12046_v60 = vcombine.low %v4779_v48, %v4783_v33  ;;  %v12048_v17 = vcombine.low %v4780_v5, %v4784_v39 }
 0x560   :  { %8777 = vmatpush1.bf16.msra.mxu1 %v11992_v28  ;;  %8656 = vmatprep.subr.bf16.mxu0 %v11999_v32  ;;  %v12024_v28 = vcombine.low %v4756_v59, %v4760_v51  ;;  %v12031_v32 = vcombine.high %v4763_v8, %v4767_v37 }
 0x561   :  { %8778 = vmatprep.subr.bf16.mxu1 %v12001_v55  ;;  %v12033_v55 = vcombine.high %v4764_v57, %v4768_v40 }
 0x562   :  { %v14536_v14 = vpop.f32.mrb[76].mxu0  ;;  %v14538_v50 = vpop.f32.mrb[76].mxu1 }
 0x563   :  { %8657 = vmatpush1.bf16.msra.mxu0 %v11998_v46  ;;  %v14540_v42 = vpop.f32.mrb[77].mxu0  ;;  %v14542_v54 = vpop.f32.mrb[77].mxu1  ;;  %v12030_v46 = vcombine.low %v4763_v8, %v4767_v37 }
 0x564   :  { %8779 = vmatpush1.bf16.msra.mxu1 %v12000_v25  ;;  %8658 = vmatprep.subr.bf16.mxu0 %v12007_v15  ;;  %v6908_v29 = vpop.f32.mrb[78].mxu0  ;;  %v7030_v45 = vpop.f32.mrb[78].mxu1  ;;  %v12032_v25 = vcombine.low %v4764_v57, %v4768_v40  ;;  %v12039_v15 = vcombine.high %v4771_v49, %v4775_v52 }
 0x565   :  { %8780 = vmatprep.subr.bf16.mxu1 %v12009_v63  ;;  %v6909_v0 = vpop.f32.mrb[79].mxu0  ;;  %v7031_v62 = vpop.f32.mrb[79].mxu1  ;;  %v12041_v63 = vcombine.high %v4772_v6, %v4776_v13  ;;  %v12047_v29 = vcombine.high %v4779_v48, %v4783_v33  ;;  %v12049_v45 = vcombine.high %v4780_v5, %v4784_v39 }
 0x566   :  { %v4791_v0 = vld [vmem:[#allocation10 + $0x3f0] sm:$0xff]  ;;  %v4788_v62 = vld [vmem:[#allocation10 + $0x3d8] sm:$0xff] }
 0x567   :  { %8659 = vmatpush1.bf16.msra.mxu0 %v12006_v7  ;;  %v12038_v7 = vcombine.low %v4771_v49, %v4775_v52 }
 0x568   :  { %8781 = vmatpush1.bf16.msra.mxu1 %v12008_v34  ;;  %8660 = vmatprep.subr.bf16.mxu0 %v12015_v3  ;;  %v12040_v34 = vcombine.low %v4772_v6, %v4776_v13  ;;  %v4787_v3 = vld [vmem:[#allocation10 + $0x3d0] sm:$0xff] }
 0x569   :  { %8782 = vmatprep.subr.bf16.mxu1 %v12017_v11  ;;  %v4792_v11 = vld [vmem:[#allocation10 + $0x3f8] sm:$0xff]  ;;  %v12055_v59 = vcombine.high %v4787_v3, %v4791_v0  ;;  %v12054_v8 = vcombine.low %v4787_v3, %v4791_v0 }
 0x56a   :  { %v12057_v51 = vcombine.high %v4788_v62, %v4792_v11  ;;  %v12056_v37 = vcombine.low %v4788_v62, %v4792_v11  ;;  %v4827_v11 = vld [vmem:[#allocation10 + $0x510] sm:$0xff] }
 0x56b   :  { %8661 = vmatpush1.bf16.msra.mxu0 %v12014_v61  ;;  %v4795_v61 = vld [vmem:[#allocation10 + $0x410] sm:$0xff] }
 0x56c   :  { %8783 = vmatpush1.bf16.msra.mxu1 %v12016_v58  ;;  %8662 = vmatprep.subr.bf16.mxu0 %v12023_v44  ;;  %v4799_v58 = vld [vmem:[#allocation10 + $0x430] sm:$0xff]  ;;  %v4796_v44 = vld [vmem:[#allocation10 + $0x418] sm:$0xff] }
 0x56d   :  { %8784 = vmatprep.subr.bf16.mxu1 %v12025_v26  ;;  %v4800_v26 = vld [vmem:[#allocation10 + $0x438] sm:$0xff]  ;;  %v12063_v57 = vcombine.high %v4795_v61, %v4799_v58  ;;  %v12062_v49 = vcombine.low %v4795_v61, %v4799_v58 }
 0x56e   :  { %v12065_v40 = vcombine.high %v4796_v44, %v4800_v26  ;;  %v12064_v52 = vcombine.low %v4796_v44, %v4800_v26  ;;  %v4835_v26 = vld [vmem:[#allocation10 + $0x550] sm:$0xff] }
 0x56f   :  { %8663 = vmatpush1.bf16.msra.mxu0 %v12022_v56  ;;  %v4803_v56 = vld [vmem:[#allocation10 + $0x450] sm:$0xff] }
 0x570   :  { %8785 = vmatpush1.bf16.msra.mxu1 %v12024_v28  ;;  %8664 = vmatprep.subr.bf16.mxu0 %v12031_v32  ;;  %v4807_v28 = vld [vmem:[#allocation10 + $0x470] sm:$0xff]  ;;  %v4804_v32 = vld [vmem:[#allocation10 + $0x458] sm:$0xff] }
 0x571   :  { %8786 = vmatprep.subr.bf16.mxu1 %v12033_v55  ;;  %v4808_v55 = vld [vmem:[#allocation10 + $0x478] sm:$0xff]  ;;  %v12071_v6 = vcombine.high %v4803_v56, %v4807_v28  ;;  %v12070_v48 = vcombine.low %v4803_v56, %v4807_v28 }
 0x572   :  { %v12073_v13 = vcombine.high %v4804_v32, %v4808_v55  ;;  %v12072_v33 = vcombine.low %v4804_v32, %v4808_v55  ;;  %v4843_v32 = vld [vmem:[#allocation10 + $0x590] sm:$0xff] }
 0x573   :  { %8665 = vmatpush1.bf16.msra.mxu0 %v12030_v46  ;;  %v4811_v46 = vld [vmem:[#allocation10 + $0x490] sm:$0xff] }
 0x574   :  { %8787 = vmatpush1.bf16.msra.mxu1 %v12032_v25  ;;  %8666 = vmatprep.subr.bf16.mxu0 %v12039_v15  ;;  %v4815_v25 = vld [vmem:[#allocation10 + $0x4b0] sm:$0xff]  ;;  %v4812_v15 = vld [vmem:[#allocation10 + $0x498] sm:$0xff] }
 0x575   :  { %8788 = vmatprep.subr.bf16.mxu1 %v12041_v63  ;;  %v4816_v63 = vld [vmem:[#allocation10 + $0x4b8] sm:$0xff]  ;;  %v12079_v5 = vcombine.high %v4811_v46, %v4815_v25  ;;  %v4847_v55 = vld [vmem:[#allocation10 + $0x5b0] sm:$0xff] }
 0x576   :  { %v12081_v39 = vcombine.high %v4812_v15, %v4816_v63  ;;  %v12080_v3 = vcombine.low %v4812_v15, %v4816_v63  ;;  %v4851_v15 = vld [vmem:[#allocation10 + $0x5d0] sm:$0xff] }
 0x577   :  { %8667 = vmatpush1.bf16.msra.mxu0 %v12038_v7  ;;  %v4819_v7 = vld [vmem:[#allocation10 + $0x4d0] sm:$0xff] }
 0x578   :  { %8789 = vmatpush1.bf16.msra.mxu1 %v12040_v34  ;;  %8668 = vmatprep.subr.bf16.mxu0 %v12047_v29  ;;  %v4823_v34 = vld [vmem:[#allocation10 + $0x4f0] sm:$0xff]  ;;  %v4820_v29 = vld [vmem:[#allocation10 + $0x4d8] sm:$0xff] }
 0x579   :  { %8790 = vmatprep.subr.bf16.mxu1 %v12049_v45  ;;  %v4824_v45 = vld [vmem:[#allocation10 + $0x4f8] sm:$0xff]  ;;  %v12087_v0 = vcombine.high %v4819_v7, %v4823_v34  ;;  %v4855_v63 = vld [vmem:[#allocation10 + $0x5f0] sm:$0xff] }
 0x57a   :  { %v12089_v62 = vcombine.high %v4820_v29, %v4824_v45  ;;  %v12088_v61 = vcombine.low %v4820_v29, %v4824_v45  ;;  %v4860_v29 = vld [vmem:[#allocation10 + $0x618] sm:$0xff] }
 0x57b   :  { %8669 = vmatpush1.bf16.msra.mxu0 %v12046_v60  ;;  %v4831_v60 = vld [vmem:[#allocation10 + $0x530] sm:$0xff]  ;;  %v4864_v45 = vld [vmem:[#allocation10 + $0x638] sm:$0xff] }
 0x57c   :  { %8791 = vmatpush1.bf16.msra.mxu1 %v12048_v17  ;;  %8670 = vmatprep.subr.bf16.mxu0 %v12055_v59  ;;  %v4828_v17 = vld [vmem:[#allocation10 + $0x518] sm:$0xff]  ;;  %v12095_v58 = vcombine.high %v4827_v11, %v4831_v60 }
 0x57d   :  { %8792 = vmatprep.subr.bf16.mxu1 %v12057_v51  ;;  %v4832_v59 = vld [vmem:[#allocation10 + $0x538] sm:$0xff]  ;;  %v12086_v51 = vcombine.low %v4819_v7, %v4823_v34  ;;  %v4863_v34 = vld [vmem:[#allocation10 + $0x630] sm:$0xff] }
 0x57e   :  { %v12097_v44 = vcombine.high %v4828_v17, %v4832_v59  ;;  %v12096_v56 = vcombine.low %v4828_v17, %v4832_v59  ;;  %v4868_v17 = vld [vmem:[#allocation10 + $0x658] sm:$0xff] }
 0x57f   :  { %8671 = vmatpush1.bf16.msra.mxu0 %v12054_v8  ;;  %v4839_v8 = vld [vmem:[#allocation10 + $0x570] sm:$0xff]  ;;  %v4872_v59 = vld [vmem:[#allocation10 + $0x678] sm:$0xff] }
 0x580   :  { %8793 = vmatpush1.bf16.msra.mxu1 %v12056_v37  ;;  %8701 = vmatprep.subr.bf16.mxu0 %v12063_v57  ;;  %v4836_v37 = vld [vmem:[#allocation10 + $0x558] sm:$0xff]  ;;  %v12103_v28 = vcombine.high %v4835_v26, %v4839_v8 }
 0x581   :  { %8823 = vmatprep.subr.bf16.mxu1 %v12065_v40  ;;  %v4840_v57 = vld [vmem:[#allocation10 + $0x578] sm:$0xff]  ;;  %v12094_v40 = vcombine.low %v4827_v11, %v4831_v60  ;;  %v4867_v11 = vld [vmem:[#allocation10 + $0x650] sm:$0xff] }
 0x582   :  { %8673 = vmatmul.mubr.bf16.vlgmr.msra.gmra.mrb[68].mxu0 %v14309_v20  ;;  %v4871_v60 = vld [vmem:[#allocation10 + $0x670] sm:$0xff] }
 0x583   :  { %8795 = vmatmul.mubr.bf16.vlgmr.msra.gmra.mrb[68].mxu1 %v14309_v20  ;;  %8682 = vmatprep.mubr.bf16.mxu0 %v14327_v18  ;;  %v12078_v20 = vcombine.low %v4811_v46, %v4815_v25  ;;  %v12111_v46 = vcombine.high %v4843_v32, %v4847_v55 }
 0x584   :  { %8702 = vmatpush1.bf16.msra.mxu0 %v12062_v49  ;;  %8804 = vmatprep.mubr.bf16.mxu1 %v14327_v18  ;;  %v4844_v49 = vld [vmem:[#allocation10 + $0x598] sm:$0xff] }
 0x585   :  { %8824 = vmatpush1.bf16.msra.mxu1 %v12064_v52  ;;  %8703 = vmatprep.subr.bf16.mxu0 %v12071_v6  ;;  %v4848_v52 = vld [vmem:[#allocation10 + $0x5b8] sm:$0xff]  ;;  %v12102_v6 = vcombine.low %v4835_v26, %v4839_v8  ;;  %v12137_v26 = vcombine.high %v4868_v17, %v4872_v59  ;;  %v4875_v8 = vld [vmem:[#allocation10 + $0x690] sm:$0xff] }
 0x586   :  { %8825 = vmatprep.subr.bf16.mxu1 %v12073_v13  ;;  %v12104_v13 = vcombine.low %v4836_v37, %v4840_v57  ;;  %v12113_v25 = vcombine.high %v4844_v49, %v4848_v52 }
 0x588   :  { %8704 = vmatpush1.bf16.msra.mxu0 %v12070_v48  ;;  %v4852_v48 = vld [vmem:[#allocation10 + $0x5d8] sm:$0xff] }
 0x589   :  { %8826 = vmatpush1.bf16.msra.mxu1 %v12072_v33  ;;  %8705 = vmatprep.subr.bf16.mxu0 %v12079_v5  ;;  %v4856_v33 = vld [vmem:[#allocation10 + $0x5f8] sm:$0xff]  ;;  %v12112_v5 = vcombine.low %v4844_v49, %v4848_v52  ;;  %v12134_v52 = vcombine.low %v4867_v11, %v4871_v60 }
 0x58a   :  { %8683 = vmatmul.mubr.bf16.gmra.mrb[72].mxu0 %v14325_v4  ;;  %8827 = vmatprep.subr.bf16.mxu1 %v12081_v39  ;;  %v12119_v39 = vcombine.high %v4851_v15, %v4855_v63  ;;  %v12121_v7 = vcombine.high %v4852_v48, %v4856_v33 }
 0x58b   :  { %8805 = vmatmul.mubr.bf16.gmra.mrb[72].mxu1 %v14325_v4  ;;  %8692 = vmatprep.mubr.bf16.mxu0 %v14496_v41 }
 0x58c   :  { %8706 = vmatpush1.bf16.msra.mxu0 %v12078_v20  ;;  %8814 = vmatprep.mubr.bf16.mxu1 %v14496_v41  ;;  %v12105_v41 = vcombine.high %v4836_v37, %v4840_v57  ;;  %v12118_v20 = vcombine.low %v4851_v15, %v4855_v63  ;;  %v4879_v37 = vld [vmem:[#allocation10 + $0x6b0] sm:$0xff] }
 0x58d   :  { %8828 = vmatpush1.bf16.msra.mxu1 %v12080_v3  ;;  %8707 = vmatprep.subr.bf16.mxu0 %v12087_v0  ;;  %v12120_v3 = vcombine.low %v4852_v48, %v4856_v33  ;;  %v12143_v15 = vcombine.high %v4875_v8, %v4879_v37  ;;  %v4887_v33 = vld [vmem:[#allocation10 + $0x6f0] sm:$0xff] }
 0x58e   :  { %8829 = vmatprep.subr.bf16.mxu1 %v12089_v62  ;;  %v12129_v62 = vcombine.high %v4860_v29, %v4864_v45 }
 0x590   :  { %8708 = vmatpush1.bf16.msra.mxu0 %v12086_v51 }
 0x591   :  { %8830 = vmatpush1.bf16.msra.mxu1 %v12088_v61  ;;  %8709 = vmatprep.subr.bf16.mxu0 %v12095_v58  ;;  %v12128_v61 = vcombine.low %v4860_v29, %v4864_v45  ;;  %v12135_v58 = vcombine.high %v4867_v11, %v4871_v60  ;;  %v4892_v29 = vld [vmem:[#allocation10 + $0x718] sm:$0xff]  ;;  %v4899_v11 = vld [vmem:[#allocation10 + $0x750] sm:$0xff] }
 0x592   :  { %8693 = vmatmul.mubr.bf16.gmra.mrb[92].mxu0 %v14502_v47  ;;  %8831 = vmatprep.subr.bf16.mxu1 %v12097_v44  ;;  %v4896_v45 = vld [vmem:[#allocation10 + $0x738] sm:$0xff]  ;;  %v4903_v60 = vld [vmem:[#allocation10 + $0x770] sm:$0xff] }
 0x593   :  { %8815 = vmatmul.mubr.bf16.gmra.mrb[92].mxu1 %v14502_v47  ;;  %8733 = vmatprep.mubr.bf16.mxu0 %v14346_v22  ;;  %v12110_v47 = vcombine.low %v4843_v32, %v4847_v55 }
 0x594   :  { %8710 = vmatpush1.bf16.msra.mxu0 %v12094_v40  ;;  %8855 = vmatprep.mubr.bf16.mxu1 %v14346_v22  ;;  %v4859_v22 = vld [vmem:[#allocation10 + $0x610] sm:$0xff] }
 0x595   :  { %8832 = vmatpush1.bf16.msra.mxu1 %v12096_v56  ;;  %8711 = vmatprep.subr.bf16.mxu0 %v12103_v28  ;;  %v12127_v0 = vcombine.high %v4859_v22, %v4863_v34  ;;  %v12126_v51 = vcombine.low %v4859_v22, %v4863_v34  ;;  %v4876_v28 = vld [vmem:[#allocation10 + $0x698] sm:$0xff]  ;;  %v4891_v22 = vld [vmem:[#allocation10 + $0x710] sm:$0xff] }
 0x596   :  { %8833 = vmatprep.subr.bf16.mxu1 %v12105_v41  ;;  %v4880_v41 = vld [vmem:[#allocation10 + $0x6b8] sm:$0xff]  ;;  %v4895_v34 = vld [vmem:[#allocation10 + $0x730] sm:$0xff] }
 0x597   :  { %v12145_v48 = vcombine.high %v4876_v28, %v4880_v41 }
 0x598   :  { %8712 = vmatpush1.bf16.msra.mxu0 %v12102_v6 }
 0x599   :  { %8834 = vmatpush1.bf16.msra.mxu1 %v12104_v13  ;;  %8713 = vmatprep.subr.bf16.mxu0 %v12111_v46 }
 0x59a   :  { %8835 = vmatprep.subr.bf16.mxu1 %v12113_v25 }
 0x59c   :  { %8714 = vmatpush1.bf16.msra.mxu0 %v12110_v47  ;;  %v4884_v47 = vld [vmem:[#allocation10 + $0x6d8] sm:$0xff] }
 0x59d   :  { %8836 = vmatpush1.bf16.msra.mxu1 %v12112_v5  ;;  %8715 = vmatprep.subr.bf16.mxu0 %v12119_v39  ;;  %v12142_v5 = vcombine.low %v4875_v8, %v4879_v37  ;;  %v12144_v39 = vcombine.low %v4876_v28, %v4880_v41  ;;  %v4911_v8 = vld [vmem:[#allocation10 + $0x7b0] sm:$0xff]  ;;  %v4908_v37 = vld [vmem:[#allocation10 + $0x798] sm:$0xff] }
 0x59e   :  { %8837 = vmatprep.subr.bf16.mxu1 %v12121_v7 }
 0x5a0   :  { %8716 = vmatpush1.bf16.msra.mxu0 %v12118_v20 }
 0x5a1   :  { %8838 = vmatpush1.bf16.msra.mxu1 %v12120_v3  ;;  %8717 = vmatprep.subr.bf16.mxu0 %v12127_v0  ;;  %v12159_v0 = vcombine.high %v4891_v22, %v4895_v34 }
 0x5a2   :  { %8839 = vmatprep.subr.bf16.mxu1 %v12129_v62  ;;  %v6965_v44 = vpop.f32.mrb[80].mxu0  ;;  %v12161_v62 = vcombine.high %v4892_v29, %v4896_v45 }
 0x5a3   :  { %v14557_v57 = vadd.f32 %v6965_v44, %v14536_v14  ;;  %v7087_v40 = vpop.f32.mrb[80].mxu1  ;;  %v6967_v56 = vpop.f32.mrb[81].mxu0  ;;  %v12136_v14 = vcombine.low %v4868_v17, %v4872_v59  ;;  %v4900_v17 = vld [vmem:[#allocation10 + $0x758] sm:$0xff] }
 0x5a4   :  { %8718 = vmatpush1.bf16.msra.mxu0 %v12126_v51  ;;  %v14560_v32 = vadd.f32 %v7087_v40, %v14538_v50  ;;  %v14563_v55 = vadd.f32 %v6967_v56, %v14540_v42  ;;  %v7089_v49 = vpop.f32.mrb[81].mxu1  ;;  %v6969_v6 = vpop.f32.mrb[82].mxu0  ;;  %v4883_v50 = vld [vmem:[#allocation10 + $0x6d0] sm:$0xff]  ;;  %v4888_v42 = vld [vmem:[#allocation10 + $0x6f8] sm:$0xff]  ;;  %v12158_v51 = vcombine.low %v4891_v22, %v4895_v34  ;;  %v12166_v56 = vcombine.low %v4899_v11, %v4903_v60  ;;  %v8895_v22 = vld [vmem:[#allocation10 + $0x1040] sm:$0xff] }
 0x5a5   :  { %8840 = vmatpush1.bf16.msra.mxu1 %v12128_v61  ;;  %v14566_v13 = vadd.f32 %v7089_v49, %v14542_v54  ;;  %8719 = vmatprep.subr.bf16.mxu0 %v12135_v58  ;;  %v7091_v46 = vpop.f32.mrb[82].mxu1  ;;  %v6970_v25 = vpop.f32.mrb[83].mxu0  ;;  %v12151_v7 = vcombine.high %v4883_v50, %v4887_v33  ;;  %v12153_v54 = vcombine.high %v4884_v47, %v4888_v42  ;;  %v4904_v59 = vld [vmem:[#allocation10 + $0x778] sm:$0xff]  ;;  %v4919_v6 = vld [vmem:[#allocation10 + $0x7f0] sm:$0xff]  ;;  %v8899_v34 = vld [vmem:[#allocation10 + $0x1060] sm:$0xff] }
 0x5a6   :  { %8841 = vmatprep.subr.bf16.mxu1 %v12137_v26  ;;  %v7092_v63 = vpop.f32.mrb[83].mxu1  ;;  %v12150_v20 = vcombine.low %v4883_v50, %v4887_v33  ;;  %v12152_v3 = vcombine.low %v4884_v47, %v4888_v42  ;;  %v12160_v61 = vcombine.low %v4892_v29, %v4896_v45  ;;  %v12167_v58 = vcombine.high %v4899_v11, %v4903_v60  ;;  %v4907_v26 = vld [vmem:[#allocation10 + $0x790] sm:$0xff]  ;;  %v4912_v40 = vld [vmem:[#allocation10 + $0x7b8] sm:$0xff]  ;;  %v8887_v50 = vld [vmem:[#allocation10 + $0x1000] sm:$0xff] }
 0x5a7   :  { %v12169_v44 = vcombine.high %v4900_v17, %v4904_v59  ;;  %v12168_v28 = vcombine.low %v4900_v17, %v4904_v59  ;;  %v12175_v41 = vcombine.high %v4907_v26, %v4911_v8  ;;  %v12177_v49 = vcombine.high %v4908_v37, %v4912_v40  ;;  %v4920_v46 = vld [vmem:[#allocation10 + $0x7f8] sm:$0xff]  ;;  %v8891_v33 = vld [vmem:[#allocation10 + $0x1020] sm:$0xff]  ;;  %v8888_v47 = vld [vmem:[#allocation10 + $0x1008] sm:$0xff] }
 0x5a8   :  { %8720 = vmatpush1.bf16.msra.mxu0 %v12134_v52  ;;  %v4915_v52 = vld [vmem:[#allocation10 + $0x7d0] sm:$0xff]  ;;  %v12174_v25 = vcombine.low %v4907_v26, %v4911_v8  ;;  %v8892_v42 = vld [vmem:[#allocation10 + $0x1028] sm:$0xff]  ;;  %v8903_v11 = vld [vmem:[#allocation10 + $0x1080] sm:$0xff] }
 0x5a9   :  { %8842 = vmatpush1.bf16.msra.mxu1 %v12136_v14  ;;  %8721 = vmatprep.subr.bf16.mxu0 %v12143_v15  ;;  %v4916_v14 = vld [vmem:[#allocation10 + $0x7d8] sm:$0xff]  ;;  %v12176_v15 = vcombine.low %v4908_v37, %v4912_v40  ;;  %v12183_v63 = vcombine.high %v4915_v52, %v4919_v6  ;;  %v8896_v29 = vld [vmem:[#allocation10 + $0x1048] sm:$0xff]  ;;  %v8907_v60 = vld [vmem:[#allocation10 + $0x10a0] sm:$0xff] }
 0x5aa   :  { %8843 = vmatprep.subr.bf16.mxu1 %v12145_v48  ;;  %v12185_v48 = vcombine.high %v4916_v14, %v4920_v46  ;;  %v8900_v45 = vld [vmem:[#allocation10 + $0x1068] sm:$0xff]  ;;  %v8911_v26 = vld [vmem:[#allocation10 + $0x10c0] sm:$0xff] }
 0x5ab   :  { %v8904_v17 = vld [vmem:[#allocation10 + $0x1088] sm:$0xff]  ;;  %v8915_v8 = vld [vmem:[#allocation10 + $0x10e0] sm:$0xff] }
 0x5ac   :  { %8722 = vmatpush1.bf16.msra.mxu0 %v12142_v5  ;;  %v12182_v5 = vcombine.low %v4915_v52, %v4919_v6  ;;  %v8908_v59 = vld [vmem:[#allocation10 + $0x10a8] sm:$0xff]  ;;  %v8919_v52 = vld [vmem:[#allocation10 + $0x1100] sm:$0xff] }
 0x5ad   :  { %8844 = vmatpush1.bf16.msra.mxu1 %v12144_v39  ;;  %8723 = vmatprep.subr.bf16.mxu0 %v12151_v7  ;;  %v12184_v39 = vcombine.low %v4916_v14, %v4920_v46  ;;  %v12191_v7 = vcombine.high %v8887_v50, %v8891_v33  ;;  %v8912_v37 = vld [vmem:[#allocation10 + $0x10c8] sm:$0xff]  ;;  %v8923_v6 = vld [vmem:[#allocation10 + $0x1120] sm:$0xff] }
 0x5ae   :  { %8845 = vmatprep.subr.bf16.mxu1 %v12153_v54  ;;  %v12193_v54 = vcombine.high %v8888_v47, %v8892_v42  ;;  %v8916_v40 = vld [vmem:[#allocation10 + $0x10e8] sm:$0xff] }
 0x5af   :  { %v8920_v14 = vld [vmem:[#allocation10 + $0x1108] sm:$0xff] }
 0x5b0   :  { %8724 = vmatpush1.bf16.msra.mxu0 %v12150_v20  ;;  %v12190_v20 = vcombine.low %v8887_v50, %v8891_v33  ;;  %v8924_v46 = vld [vmem:[#allocation10 + $0x1128] sm:$0xff]  ;;  %v12223_v50 = vcombine.high %v8919_v52, %v8923_v6 }
 0x5b1   :  { %8846 = vmatpush1.bf16.msra.mxu1 %v12152_v3  ;;  %8725 = vmatprep.subr.bf16.mxu0 %v12159_v0  ;;  %v12192_v3 = vcombine.low %v8888_v47, %v8892_v42  ;;  %v12199_v0 = vcombine.high %v8895_v22, %v8899_v34  ;;  %v12225_v33 = vcombine.high %v8920_v14, %v8924_v46  ;;  %v9157_v47 = vrot.slane %v14327_v18, 1  ;;  %v8927_v42 = vld [vmem:[#allocation10 + $0x1140] sm:$0xff] }
 0x5b2   :  { %8847 = vmatprep.subr.bf16.mxu1 %v12161_v62  ;;  %v12201_v62 = vcombine.high %v8896_v29, %v8900_v45  ;;  %v14624_v18 = vrot.slane %v14382_v2, 1 }
 0x5b4   :  { %8726 = vmatpush1.bf16.msra.mxu0 %v12158_v51  ;;  %v12198_v51 = vcombine.low %v8895_v22, %v8899_v34  ;;  %v12224_v22 = vcombine.low %v8920_v14, %v8924_v46  ;;  %v8959_v46 = vld [vmem:[#allocation10 + $0x1240] sm:$0xff] }
 0x5b5   :  { %8848 = vmatpush1.bf16.msra.mxu1 %v12160_v61  ;;  %8727 = vmatprep.subr.bf16.mxu0 %v12167_v58  ;;  %v12200_v61 = vcombine.low %v8896_v29, %v8900_v45  ;;  %v12207_v58 = vcombine.high %v8903_v11, %v8907_v60 }
 0x5b6   :  { %8849 = vmatprep.subr.bf16.mxu1 %v12169_v44  ;;  %v12209_v44 = vcombine.high %v8904_v17, %v8908_v59 }
 0x5b8   :  { %8728 = vmatpush1.bf16.msra.mxu0 %v12166_v56  ;;  %v12208_v56 = vcombine.low %v8904_v17, %v8908_v59 }
 0x5b9   :  { %8850 = vmatpush1.bf16.msra.mxu1 %v12168_v28  ;;  %8729 = vmatprep.subr.bf16.mxu0 %v12175_v41  ;;  %v12215_v28 = vcombine.high %v8911_v26, %v8915_v8  ;;  %v14572_v41 = vld [vmem:[#allocation3] sm:$0xee] }
 0x5ba   :  { %8851 = vmatprep.subr.bf16.mxu1 %v12177_v49  ;;  %v12217_v49 = vcombine.high %v8912_v37, %v8916_v40 }
 0x5bc   :  { %8730 = vmatpush1.bf16.msra.mxu0 %v12174_v25  ;;  %v12214_v25 = vcombine.low %v8911_v26, %v8915_v8 }
 0x5bd   :  { %8852 = vmatpush1.bf16.msra.mxu1 %v12176_v15  ;;  %8731 = vmatprep.subr.bf16.mxu0 %v12183_v63  ;;  %v14578_v15 = vld [vmem:[#allocation3 + $0x10] sm:$0xff] }
 0x5be   :  { %8853 = vmatprep.subr.bf16.mxu1 %v12185_v48  ;;  %v12187_v63 = vcombine.high %v14572_v41, %v14578_v15  ;;  %v12216_v48 = vcombine.low %v8912_v37, %v8916_v40  ;;  %v8951_v40 = vld [vmem:[#allocation10 + $0x1200] sm:$0xff] }
 0x5c0   :  { %8732 = vmatpush1.bf16.msra.mxu0 %v12182_v5  ;;  %v8931_v5 = vld [vmem:[#allocation10 + $0x1160] sm:$0xff] }
 0x5c1   :  { %8854 = vmatpush1.bf16.msra.mxu1 %v12184_v39  ;;  %10465 = vmatprep.subr.bf16.mxu0 %v12191_v7  ;;  %v8928_v39 = vld [vmem:[#allocation10 + $0x1148] sm:$0xff]  ;;  %v12231_v34 = vcombine.high %v8927_v42, %v8931_v5 }
 0x5c2   :  { %10587 = vmatprep.subr.bf16.mxu1 %v12193_v54  ;;  %v8932_v7 = vld [vmem:[#allocation10 + $0x1168] sm:$0xff]  ;;  %v9156_v54 = vrot.slane %v12187_v63, 1 }
 0x5c3   :  { %8734 = vmatmul.mubr.bf16.vlgmr.msra.gmra.mrb[68].mxu0 %v14340_v27  ;;  %v12233_v45 = vcombine.high %v8928_v39, %v8932_v7  ;;  %v8960_v63 = vld [vmem:[#allocation10 + $0x1248] sm:$0xff] }
 0x5c4   :  { %8856 = vmatmul.mubr.bf16.vlgmr.msra.gmra.mrb[68].mxu1 %v14340_v27  ;;  %8743 = vmatprep.mubr.bf16.mxu0 %v14360_v9  ;;  %v12206_v27 = vcombine.low %v8903_v11, %v8907_v60  ;;  %v14587_v29 = vsel %vm614_vm2, %v9156_v54, %v9157_v47  ;;  %v12230_v11 = vcombine.low %v8927_v42, %v8931_v5 }
 0x5c5   :  { %8865 = vmatprep.mubr.bf16.mxu1 %v14360_v9  ;;  %10466 = vmatpush1.bf16.msra.mxu0 %v12190_v20  ;;  %v8935_v20 = vld [vmem:[#allocation10 + $0x1180] sm:$0xff]  ;;  %v12232_v60 = vcombine.low %v8928_v39, %v8932_v7 }
 0x5c6   :  { %10588 = vmatpush1.bf16.msra.mxu1 %v12192_v3  ;;  %10467 = vmatprep.subr.bf16.mxu0 %v12199_v0  ;;  %v8939_v3 = vld [vmem:[#allocation10 + $0x11a0] sm:$0xff]  ;;  %v8936_v0 = vld [vmem:[#allocation10 + $0x1188] sm:$0xff] }
 0x5c7   :  { %10589 = vmatprep.subr.bf16.mxu1 %v12201_v62  ;;  %v8940_v62 = vld [vmem:[#allocation10 + $0x11a8] sm:$0xff]  ;;  %v12239_v17 = vcombine.high %v8935_v20, %v8939_v3  ;;  %v8967_v7 = vld [vmem:[#allocation10 + $0x1280] sm:$0xff] }
 0x5c8   :  { %v12241_v59 = vcombine.high %v8936_v0, %v8940_v62  ;;  %v12240_v26 = vcombine.low %v8936_v0, %v8940_v62 }
 0x5c9   :  { %10468 = vmatpush1.bf16.msra.mxu0 %v12198_v51  ;;  %v8943_v51 = vld [vmem:[#allocation10 + $0x11c0] sm:$0xff] }
 0x5ca   :  { %10590 = vmatpush1.bf16.msra.mxu1 %v12200_v61  ;;  %10469 = vmatprep.subr.bf16.mxu0 %v12207_v58  ;;  %v8947_v61 = vld [vmem:[#allocation10 + $0x11e0] sm:$0xff]  ;;  %v8944_v58 = vld [vmem:[#allocation10 + $0x11c8] sm:$0xff] }
 0x5cb   :  { %8744 = vmatmul.mubr.bf16.gmra.mrb[72].mxu0 %v14348_v36  ;;  %10591 = vmatprep.subr.bf16.mxu1 %v12209_v44  ;;  %v8948_v44 = vld [vmem:[#allocation10 + $0x11e8] sm:$0xff]  ;;  %v12247_v8 = vcombine.high %v8943_v51, %v8947_v61 }
 0x5cc   :  { %8866 = vmatmul.mubr.bf16.gmra.mrb[72].mxu1 %v14348_v36  ;;  %8753 = vmatprep.mubr.bf16.mxu0 %v14524_v12  ;;  %v12249_v37 = vcombine.high %v8944_v58, %v8948_v44 }
 0x5cd   :  { %8875 = vmatprep.mubr.bf16.mxu1 %v14524_v12  ;;  %10470 = vmatpush1.bf16.msra.mxu0 %v12206_v27  ;;  %v12222_v12 = vcombine.low %v8919_v52, %v8923_v6  ;;  %v8955_v27 = vld [vmem:[#allocation10 + $0x1220] sm:$0xff]  ;;  %v12248_v52 = vcombine.low %v8944_v58, %v8948_v44 }
 0x5ce   :  { %10592 = vmatpush1.bf16.msra.mxu1 %v12208_v56  ;;  %10471 = vmatprep.subr.bf16.mxu0 %v12215_v28  ;;  %v8952_v56 = vld [vmem:[#allocation10 + $0x1208] sm:$0xff]  ;;  %v12255_v6 = vcombine.high %v8951_v40, %v8955_v27 }
 0x5cf   :  { %10593 = vmatprep.subr.bf16.mxu1 %v12217_v49  ;;  %v8956_v28 = vld [vmem:[#allocation10 + $0x1228] sm:$0xff]  ;;  %v12246_v49 = vcombine.low %v8943_v51, %v8947_v61 }
 0x5d0   :  { %v12257_v14 = vcombine.high %v8952_v56, %v8956_v28 }
 0x5d1   :  { %10472 = vmatpush1.bf16.msra.mxu0 %v12214_v25  ;;  %v8963_v25 = vld [vmem:[#allocation10 + $0x1260] sm:$0xff] }
 0x5d2   :  { %10594 = vmatpush1.bf16.msra.mxu1 %v12216_v48  ;;  %10473 = vmatprep.subr.bf16.mxu0 %v12223_v50  ;;  %v8964_v48 = vld [vmem:[#allocation10 + $0x1268] sm:$0xff]  ;;  %v12254_v50 = vcombine.low %v8951_v40, %v8955_v27  ;;  %v12263_v42 = vcombine.high %v8959_v46, %v8963_v25  ;;  %v8983_v27 = vld [vmem:[#allocation10 + $0x1300] sm:$0xff] }
 0x5d3   :  { %8754 = vmatmul.mubr.bf16.gmra.mrb[96].mxu0 %v14530_v38  ;;  %10595 = vmatprep.subr.bf16.mxu1 %v12225_v33  ;;  %v12256_v33 = vcombine.low %v8952_v56, %v8956_v28  ;;  %v12265_v39 = vcombine.high %v8960_v63, %v8964_v48  ;;  %v8987_v56 = vld [vmem:[#allocation10 + $0x1320] sm:$0xff]  ;;  %v8984_v28 = vld [vmem:[#allocation10 + $0x1308] sm:$0xff] }
 0x5d4   :  { %8876 = vmatmul.mubr.bf16.gmra.mrb[96].mxu1 %v14530_v38  ;;  %10497 = vmatprep.mubr.bf16.mxu0 %v14587_v29  ;;  %v12238_v38 = vcombine.low %v8935_v20, %v8939_v3  ;;  %v8972_v20 = vld [vmem:[#allocation10 + $0x12a8] sm:$0xff] }
 0x5d5   :  { %10474 = vmatpush1.bf16.msra.mxu0 %v12222_v12  ;;  %10619 = vmatprep.mubr.bf16.mxu1 %v14587_v29  ;;  %v8971_v12 = vld [vmem:[#allocation10 + $0x12a0] sm:$0xff] }
 0x5d6   :  { %10596 = vmatpush1.bf16.msra.mxu1 %v12224_v22  ;;  %10475 = vmatprep.subr.bf16.mxu0 %v12231_v34  ;;  %v12271_v61 = vcombine.high %v8967_v7, %v8971_v12 }
 0x5d7   :  { %10597 = vmatprep.subr.bf16.mxu1 %v12233_v45  ;;  %v8968_v45 = vld [vmem:[#allocation10 + $0x1288] sm:$0xff] }
 0x5d8   :  { %v12273_v44 = vcombine.high %v8968_v45, %v8972_v20 }
 0x5d9   :  { %10476 = vmatpush1.bf16.msra.mxu0 %v12230_v11  ;;  %v12262_v11 = vcombine.low %v8959_v46, %v8963_v25  ;;  %v8991_v25 = vld [vmem:[#allocation10 + $0x1340] sm:$0xff] }
 0x5da   :  { %10598 = vmatpush1.bf16.msra.mxu1 %v12232_v60  ;;  %10477 = vmatprep.subr.bf16.mxu0 %v12239_v17 }
 0x5db   :  { %10599 = vmatprep.subr.bf16.mxu1 %v12241_v59 }
 0x5dd   :  { %10478 = vmatpush1.bf16.msra.mxu0 %v12238_v38  ;;  %v8979_v38 = vld [vmem:[#allocation10 + $0x12e0] sm:$0xff] }
 0x5de   :  { %10600 = vmatpush1.bf16.msra.mxu1 %v12240_v26  ;;  %10479 = vmatprep.subr.bf16.mxu0 %v12247_v8  ;;  %v8976_v26 = vld [vmem:[#allocation10 + $0x12c8] sm:$0xff]  ;;  %v12270_v8 = vcombine.low %v8967_v7, %v8971_v12  ;;  %v8999_v7 = vld [vmem:[#allocation10 + $0x1380] sm:$0xff] }
 0x5df   :  { %10601 = vmatprep.subr.bf16.mxu1 %v12249_v37  ;;  %v12272_v37 = vcombine.low %v8968_v45, %v8972_v20  ;;  %v9003_v12 = vld [vmem:[#allocation10 + $0x13a0] sm:$0xff] }
 0x5e1   :  { %10480 = vmatpush1.bf16.msra.mxu0 %v12246_v49  ;;  %v8988_v49 = vld [vmem:[#allocation10 + $0x1328] sm:$0xff] }
 0x5e2   :  { %10602 = vmatpush1.bf16.msra.mxu1 %v12248_v52  ;;  %10481 = vmatprep.subr.bf16.mxu0 %v12255_v6  ;;  %v12289_v46 = vcombine.high %v8984_v28, %v8988_v49 }
 0x5e3   :  { %10603 = vmatprep.subr.bf16.mxu1 %v12257_v14  ;;  %v8450_v5 = vpop.f32.mrb[84].mxu0  ;;  %v12287_v14 = vcombine.high %v8983_v27, %v8987_v56 }
 0x5e4   :  { %v14593_v54 = vadd.f32 %v8450_v5, %v14509_v53  ;;  %v8572_v22 = vpop.f32.mrb[84].mxu1  ;;  %v8452_v34 = vpop.f32.mrb[85].mxu0  ;;  %v12264_v53 = vcombine.low %v8960_v63, %v8964_v48  ;;  %v8995_v63 = vld [vmem:[#allocation10 + $0x1360] sm:$0xff]  ;;  %v8992_v48 = vld [vmem:[#allocation10 + $0x1348] sm:$0xff] }
 0x5e5   :  { %10482 = vmatpush1.bf16.msra.mxu0 %v12254_v50  ;;  %v14596_v3 = vadd.f32 %v8572_v22, %v14512_v35  ;;  %v14599_v0 = vadd.f32 %v8452_v34, %v14515_v1  ;;  %v8574_v62 = vpop.f32.mrb[85].mxu1  ;;  %v8454_v60 = vpop.f32.mrb[86].mxu0  ;;  %v8975_v35 = vld [vmem:[#allocation10 + $0x12c0] sm:$0xff]  ;;  %v8980_v1 = vld [vmem:[#allocation10 + $0x12e8] sm:$0xff]  ;;  %v12295_v5 = vcombine.high %v8991_v25, %v8995_v63  ;;  %v12294_v45 = vcombine.low %v8991_v25, %v8995_v63 }
 0x5e6   :  { %10604 = vmatpush1.bf16.msra.mxu1 %v12256_v33  ;;  %v14602_v17 = vadd.f32 %v8574_v62, %v14518_v21  ;;  %10483 = vmatprep.subr.bf16.mxu0 %v12263_v42  ;;  %v8576_v59 = vpop.f32.mrb[86].mxu1  ;;  %v8455_v51 = vpop.f32.mrb[87].mxu0  ;;  %v12279_v40 = vcombine.high %v8975_v35, %v8979_v38  ;;  %v12281_v21 = vcombine.high %v8976_v26, %v8980_v1  ;;  %v8996_v50 = vld [vmem:[#allocation10 + $0x1368] sm:$0xff]  ;;  %v9007_v60 = vld [vmem:[#allocation10 + $0x13c0] sm:$0xff] }
 0x5e7   :  { %10605 = vmatprep.subr.bf16.mxu1 %v12265_v39  ;;  %v8577_v58 = vpop.f32.mrb[87].mxu1  ;;  %v12278_v52 = vcombine.low %v8975_v35, %v8979_v38  ;;  %v12280_v6 = vcombine.low %v8976_v26, %v8980_v1  ;;  %v12286_v33 = vcombine.low %v8983_v27, %v8987_v56  ;;  %v12288_v42 = vcombine.low %v8984_v28, %v8988_v49  ;;  %v9000_v22 = vld [vmem:[#allocation10 + $0x1388] sm:$0xff]  ;;  %v9015_v38 = vld [vmem:[#allocation10 + $0x1400] sm:$0xff] }
 0x5e8   :  { %v12297_v39 = vcombine.high %v8992_v48, %v8996_v50  ;;  %v9004_v34 = vld [vmem:[#allocation10 + $0x13a8] sm:$0xff]  ;;  %v12296_v20 = vcombine.low %v8992_v48, %v8996_v50  ;;  %v12303_v62 = vcombine.high %v8999_v7, %v9003_v12  ;;  %v9019_v26 = vld [vmem:[#allocation10 + $0x1420] sm:$0xff]  ;;  %v9154_v56 = vrot.slane %v14325_v4, 1 }
 0x5e9   :  { %10484 = vmatpush1.bf16.msra.mxu0 %v12262_v11  ;;  %v12305_v11 = vcombine.high %v9000_v22, %v9004_v34  ;;  %v9008_v59 = vld [vmem:[#allocation10 + $0x13c8] sm:$0xff]  ;;  %v12304_v58 = vcombine.low %v9000_v22, %v9004_v34  ;;  %v12319_v27 = vcombine.high %v9015_v38, %v9019_v26  ;;  %v14608_v49 = vrot.slane %v14380_v10, 1  ;;  %v9031_v50 = vld [vmem:[#allocation10 + $0x1480] sm:$0xff] }
 0x5ea   :  { %10606 = vmatpush1.bf16.msra.mxu1 %v12264_v53  ;;  %10485 = vmatprep.subr.bf16.mxu0 %v12271_v61  ;;  %v9011_v53 = vld [vmem:[#allocation10 + $0x13e0] sm:$0xff]  ;;  %v9012_v51 = vld [vmem:[#allocation10 + $0x13e8] sm:$0xff]  ;;  %v12302_v61 = vcombine.low %v8999_v7, %v9003_v12 }
 0x5eb   :  { %10607 = vmatprep.subr.bf16.mxu1 %v12273_v44  ;;  %v12311_v44 = vcombine.high %v9007_v60, %v9011_v53  ;;  %v12313_v35 = vcombine.high %v9008_v59, %v9012_v51  ;;  %v9016_v1 = vld [vmem:[#allocation10 + $0x1408] sm:$0xff]  ;;  %v14618_v4 = vsel %vm614_vm2, %v9157_v47, %v14608_v49  ;;  %v9039_v22 = vld [vmem:[#allocation10 + $0x14c0] sm:$0xff] }
 0x5ec   :  { %v9028_v25 = vld [vmem:[#allocation10 + $0x1468] sm:$0xff]  ;;  %v9043_v34 = vld [vmem:[#allocation10 + $0x14e0] sm:$0xff] }
 0x5ed   :  { %10486 = vmatpush1.bf16.msra.mxu0 %v12270_v8  ;;  %v9020_v8 = vld [vmem:[#allocation10 + $0x1428] sm:$0xff] }
 0x5ee   :  { %10608 = vmatpush1.bf16.msra.mxu1 %v12272_v37  ;;  %10487 = vmatprep.subr.bf16.mxu0 %v12279_v40  ;;  %v12186_v37 = vcombine.low %v14572_v41, %v14578_v15  ;;  %v12310_v40 = vcombine.low %v9007_v60, %v9011_v53  ;;  %v12321_v28 = vcombine.high %v9016_v1, %v9020_v8 }
 0x5ef   :  { %10609 = vmatprep.subr.bf16.mxu1 %v12281_v21  ;;  %v12312_v21 = vcombine.low %v9008_v59, %v9012_v51  ;;  %v12318_v41 = vcombine.low %v9015_v38, %v9019_v26  ;;  %v12320_v63 = vcombine.low %v9016_v1, %v9020_v8  ;;  %v12343_v53 = vcombine.high %v9039_v22, %v9043_v34  ;;  %v14630_v59 = vld [vmem:[#allocation3 + $0x8] sm:$0xee]  ;;  %v14636_v38 = vld [vmem:[#allocation3 + $0x18] sm:$0xff] }
 0x5f0   :  { %v9047_v51 = vld [vmem:[#allocation10 + $0x1500] sm:$0xff]  ;;  %v12189_v26 = vcombine.high %v14630_v59, %v14636_v38 }
 0x5f1   :  { %10488 = vmatpush1.bf16.msra.mxu0 %v12278_v52  ;;  %v9023_v52 = vld [vmem:[#allocation10 + $0x1440] sm:$0xff] }
 0x5f2   :  { %10610 = vmatpush1.bf16.msra.mxu1 %v12280_v6  ;;  %10489 = vmatprep.subr.bf16.mxu0 %v12287_v14  ;;  %v9027_v6 = vld [vmem:[#allocation10 + $0x1460] sm:$0xff]  ;;  %v9153_v14 = vrot.slane %v12186_v37, 1 }
 0x5f3   :  { %10611 = vmatprep.subr.bf16.mxu1 %v12289_v46  ;;  %v9024_v46 = vld [vmem:[#allocation10 + $0x1448] sm:$0xff]  ;;  %v12327_v48 = vcombine.high %v9023_v52, %v9027_v6 }
 0x5f4   :  { %v14611_v15 = vsel %vm614_vm2, %v9153_v14, %v9154_v56  ;;  %v12329_v10 = vcombine.high %v9024_v46, %v9028_v25  ;;  %v12328_v7 = vcombine.low %v9024_v46, %v9028_v25 }
 0x5f5   :  { %10490 = vmatpush1.bf16.msra.mxu0 %v12286_v33  ;;  %v9035_v33 = vld [vmem:[#allocation10 + $0x14a0] sm:$0xff] }
 0x5f6   :  { %10612 = vmatpush1.bf16.msra.mxu1 %v12288_v42  ;;  %10491 = vmatprep.subr.bf16.mxu0 %v12295_v5  ;;  %v9032_v42 = vld [vmem:[#allocation10 + $0x1488] sm:$0xff]  ;;  %v12335_v47 = vcombine.high %v9031_v50, %v9035_v33 }
 0x5f7   :  { %10613 = vmatprep.subr.bf16.mxu1 %v12297_v39  ;;  %v9036_v5 = vld [vmem:[#allocation10 + $0x14a8] sm:$0xff]  ;;  %v12326_v39 = vcombine.low %v9023_v52, %v9027_v6  ;;  %v9162_v6 = vrot.slane %v12189_v26, 1  ;;  %v9087_v26 = vld [vmem:[#allocation10 + $0x1640] sm:$0xff] }
 0x5f8   :  { %v12337_v12 = vcombine.high %v9032_v42, %v9036_v5  ;;  %v12336_v60 = vcombine.low %v9032_v42, %v9036_v5 }
 0x5f9   :  { %10492 = vmatpush1.bf16.msra.mxu0 %v12294_v45  ;;  %v9040_v45 = vld [vmem:[#allocation10 + $0x14c8] sm:$0xff] }
 0x5fa   :  { %10614 = vmatpush1.bf16.msra.mxu1 %v12296_v20  ;;  %10493 = vmatprep.subr.bf16.mxu0 %v12303_v62  ;;  %v9044_v20 = vld [vmem:[#allocation10 + $0x14e8] sm:$0xff]  ;;  %v12334_v62 = vcombine.low %v9031_v50, %v9035_v33 }
 0x5fb   :  { %10615 = vmatprep.subr.bf16.mxu1 %v12305_v11  ;;  %v14628_v11 = vsel %vm614_vm2, %v9154_v56, %v14624_v18  ;;  %v12345_v2 = vcombine.high %v9040_v45, %v9044_v20  ;;  %v12344_v1 = vcombine.low %v9040_v45, %v9044_v20  ;;  %v9056_v56 = vld [vmem:[#allocation10 + $0x1548] sm:$0xff] }
 0x5fc   :  { %v9068_v50 = vld [vmem:[#allocation10 + $0x15a8] sm:$0xff] }
 0x5fd   :  { %10494 = vmatpush1.bf16.msra.mxu0 %v12302_v61  ;;  %v9051_v61 = vld [vmem:[#allocation10 + $0x1520] sm:$0xff] }
 0x5fe   :  { %10616 = vmatpush1.bf16.msra.mxu1 %v12304_v58  ;;  %10495 = vmatprep.subr.bf16.mxu0 %v12311_v44  ;;  %v9048_v58 = vld [vmem:[#allocation10 + $0x1508] sm:$0xff]  ;;  %v12351_v8 = vcombine.high %v9047_v51, %v9051_v61  ;;  %v12350_v52 = vcombine.low %v9047_v51, %v9051_v61 }
 0x5ff   :  { %10617 = vmatprep.subr.bf16.mxu1 %v12313_v35  ;;  %v9052_v44 = vld [vmem:[#allocation10 + $0x1528] sm:$0xff]  ;;  %v12342_v35 = vcombine.low %v9039_v22, %v9043_v34 }
 0x600   :  { %v12353_v37 = vcombine.high %v9048_v58, %v9052_v44  ;;  %v12352_v14 = vcombine.low %v9048_v58, %v9052_v44  ;;  %v9076_v22 = vld [vmem:[#allocation10 + $0x15e8] sm:$0xff] }
 0x601   :  { %10496 = vmatpush1.bf16.msra.mxu0 %v12310_v40  ;;  %v9163_v40 = vrot.slane %v14360_v9, 1  ;;  %v9084_v51 = vld [vmem:[#allocation10 + $0x1628] sm:$0xff]  ;;  %v14682_v9 = vrot.slane %v14427_v43, 1 }
 0x602   :  { %10618 = vmatpush1.bf16.msra.mxu1 %v12312_v21  ;;  %10526 = vmatprep.subr.bf16.mxu0 %v12319_v27  ;;  %v9055_v21 = vld [vmem:[#allocation10 + $0x1540] sm:$0xff] }
 0x603   :  { %10648 = vmatprep.subr.bf16.mxu1 %v12321_v28  ;;  %v9059_v27 = vld [vmem:[#allocation10 + $0x1560] sm:$0xff]  ;;  %v9060_v28 = vld [vmem:[#allocation10 + $0x1568] sm:$0xff]  ;;  %v14645_v25 = vsel %vm614_vm2, %v9162_v6, %v9163_v40 }
 0x604   :  { %10498 = vmatmul.mubr.bf16.vlgmr.msra.gmra.mrb[52].mxu0 %v14611_v15  ;;  %v12359_v46 = vcombine.high %v9055_v21, %v9059_v27  ;;  %v12358_v33 = vcombine.low %v9055_v21, %v9059_v27  ;;  %v12360_v42 = vcombine.low %v9056_v56, %v9060_v28  ;;  %v9095_v6 = vld [vmem:[#allocation10 + $0x1680] sm:$0xff] }
 0x605   :  { %10620 = vmatmul.mubr.bf16.vlgmr.msra.gmra.mrb[52].mxu1 %v14611_v15  ;;  %10507 = vmatprep.mubr.bf16.mxu0 %v14618_v4 }
 0x606   :  { %10527 = vmatpush1.bf16.msra.mxu0 %v12318_v41  ;;  %10629 = vmatprep.mubr.bf16.mxu1 %v14618_v4  ;;  %v12361_v41 = vcombine.high %v9056_v56, %v9060_v28 }
 0x607   :  { %10649 = vmatpush1.bf16.msra.mxu1 %v12320_v63  ;;  %10528 = vmatprep.subr.bf16.mxu0 %v12327_v48  ;;  %v9063_v63 = vld [vmem:[#allocation10 + $0x1580] sm:$0xff] }
 0x608   :  { %10650 = vmatprep.subr.bf16.mxu1 %v12329_v10  ;;  %v9067_v48 = vld [vmem:[#allocation10 + $0x15a0] sm:$0xff]  ;;  %v9064_v10 = vld [vmem:[#allocation10 + $0x1588] sm:$0xff] }
 0x609   :  { %v12367_v5 = vcombine.high %v9063_v63, %v9067_v48  ;;  %v12366_v34 = vcombine.low %v9063_v63, %v9067_v48  ;;  %v12368_v45 = vcombine.low %v9064_v10, %v9068_v50  ;;  %v9096_v48 = vld [vmem:[#allocation10 + $0x1688] sm:$0xff] }
 0x60a   :  { %10529 = vmatpush1.bf16.msra.mxu0 %v12326_v39  ;;  %v12369_v39 = vcombine.high %v9064_v10, %v9068_v50  ;;  %v9100_v10 = vld [vmem:[#allocation10 + $0x16a8] sm:$0xff] }
 0x60b   :  { %10651 = vmatpush1.bf16.msra.mxu1 %v12328_v7  ;;  %10530 = vmatprep.subr.bf16.mxu0 %v12335_v47  ;;  %v9071_v7 = vld [vmem:[#allocation10 + $0x15c0] sm:$0xff] }
 0x60c   :  { %10508 = vmatmul.mubr.bf16.gmra.mrb[56].mxu0 %v14628_v11  ;;  %10652 = vmatprep.subr.bf16.mxu1 %v12337_v12  ;;  %v9075_v47 = vld [vmem:[#allocation10 + $0x15e0] sm:$0xff]  ;;  %v9072_v12 = vld [vmem:[#allocation10 + $0x15c8] sm:$0xff] }
 0x60d   :  { %10630 = vmatmul.mubr.bf16.gmra.mrb[56].mxu1 %v14628_v11  ;;  %10517 = vmatprep.mubr.bf16.mxu0 %v14608_v49  ;;  %v12375_v20 = vcombine.high %v9071_v7, %v9075_v47  ;;  %v12374_v61 = vcombine.low %v9071_v7, %v9075_v47  ;;  %v12376_v58 = vcombine.low %v9072_v12, %v9076_v22 }
 0x60e   :  { %10531 = vmatpush1.bf16.msra.mxu0 %v12334_v62  ;;  %10639 = vmatprep.mubr.bf16.mxu1 %v14608_v49  ;;  %v12377_v62 = vcombine.high %v9072_v12, %v9076_v22 }
 0x60f   :  { %10653 = vmatpush1.bf16.msra.mxu1 %v12336_v60  ;;  %10532 = vmatprep.subr.bf16.mxu0 %v12343_v53  ;;  %v9079_v60 = vld [vmem:[#allocation10 + $0x1600] sm:$0xff] }
 0x610   :  { %10654 = vmatprep.subr.bf16.mxu1 %v12345_v2  ;;  %v9083_v53 = vld [vmem:[#allocation10 + $0x1620] sm:$0xff]  ;;  %v9080_v2 = vld [vmem:[#allocation10 + $0x1608] sm:$0xff] }
 0x611   :  { %v12383_v44 = vcombine.high %v9079_v60, %v9083_v53  ;;  %v12382_v21 = vcombine.low %v9079_v60, %v9083_v53  ;;  %v12384_v27 = vcombine.low %v9080_v2, %v9084_v51  ;;  %v12400_v53 = vcombine.low %v9096_v48, %v9100_v10 }
 0x612   :  { %10533 = vmatpush1.bf16.msra.mxu0 %v12342_v35  ;;  %v12385_v35 = vcombine.high %v9080_v2, %v9084_v51  ;;  %v9111_v51 = vld [vmem:[#allocation10 + $0x1700] sm:$0xff] }
 0x613   :  { %10655 = vmatpush1.bf16.msra.mxu1 %v12344_v1  ;;  %10534 = vmatprep.subr.bf16.mxu0 %v12351_v8  ;;  %v9091_v1 = vld [vmem:[#allocation10 + $0x1660] sm:$0xff]  ;;  %v9088_v8 = vld [vmem:[#allocation10 + $0x1648] sm:$0xff] }
 0x614   :  { %10518 = vmatmul.mubr.bf16.gmra.mrb[100].mxu0 %v14624_v18  ;;  %10656 = vmatprep.subr.bf16.mxu1 %v12353_v37  ;;  %v9092_v37 = vld [vmem:[#allocation10 + $0x1668] sm:$0xff]  ;;  %v12391_v56 = vcombine.high %v9087_v26, %v9091_v1 }
 0x615   :  { %10640 = vmatmul.mubr.bf16.gmra.mrb[100].mxu1 %v14624_v18  ;;  %10558 = vmatprep.mubr.bf16.mxu0 %v14645_v25 }
 0x616   :  { %10535 = vmatpush1.bf16.msra.mxu0 %v12350_v52  ;;  %10680 = vmatprep.mubr.bf16.mxu1 %v14645_v25  ;;  %v12393_v52 = vcombine.high %v9088_v8, %v9092_v37 }
 0x617   :  { %10657 = vmatpush1.bf16.msra.mxu1 %v12352_v14  ;;  %10536 = vmatprep.subr.bf16.mxu0 %v12359_v46  ;;  %v9099_v14 = vld [vmem:[#allocation10 + $0x16a0] sm:$0xff] }
 0x618   :  { %10658 = vmatprep.subr.bf16.mxu1 %v12361_v41  ;;  %v12399_v22 = vcombine.high %v9095_v6, %v9099_v14  ;;  %v12398_v60 = vcombine.low %v9095_v6, %v9099_v14 }
 0x61a   :  { %10537 = vmatpush1.bf16.msra.mxu0 %v12358_v33 }
 0x61b   :  { %10659 = vmatpush1.bf16.msra.mxu1 %v12360_v42  ;;  %10538 = vmatprep.subr.bf16.mxu0 %v12367_v5  ;;  %v12390_v5 = vcombine.low %v9087_v26, %v9091_v1 }
 0x61c   :  { %10660 = vmatprep.subr.bf16.mxu1 %v12369_v39 }
 0x61e   :  { %10539 = vmatpush1.bf16.msra.mxu0 %v12366_v34 }
 0x61f   :  { %10661 = vmatpush1.bf16.msra.mxu1 %v12368_v45  ;;  %10540 = vmatprep.subr.bf16.mxu0 %v12375_v20  ;;  %v12401_v45 = vcombine.high %v9096_v48, %v9100_v10  ;;  %v9107_v20 = vld [vmem:[#allocation10 + $0x16e0] sm:$0xff]  ;;  %v9128_v48 = vld [vmem:[#allocation10 + $0x1788] sm:$0xff] }
 0x620   :  { %10662 = vmatprep.subr.bf16.mxu1 %v12377_v62  ;;  %v9104_v62 = vld [vmem:[#allocation10 + $0x16c8] sm:$0xff] }
 0x621   :  { %v9132_v10 = vld [vmem:[#allocation10 + $0x17a8] sm:$0xff] }
 0x622   :  { %10541 = vmatpush1.bf16.msra.mxu0 %v12374_v61  ;;  %v9115_v61 = vld [vmem:[#allocation10 + $0x1720] sm:$0xff] }
 0x623   :  { %10663 = vmatpush1.bf16.msra.mxu1 %v12376_v58  ;;  %10542 = vmatprep.subr.bf16.mxu0 %v12383_v44  ;;  %v9112_v58 = vld [vmem:[#allocation10 + $0x1708] sm:$0xff]  ;;  %v12415_v1 = vcombine.high %v9111_v51, %v9115_v61 }
 0x624   :  { %10664 = vmatprep.subr.bf16.mxu1 %v12385_v35  ;;  %v8511_v28 = vpop.f32.mrb[88].mxu0  ;;  %v9116_v44 = vld [vmem:[#allocation10 + $0x1728] sm:$0xff] }
 0x625   :  { %v14651_v46 = vadd.f32 %v8511_v28, %v14593_v54  ;;  %v8633_v41 = vpop.f32.mrb[88].mxu1  ;;  %v8513_v63 = vpop.f32.mrb[89].mxu0  ;;  %v12392_v54 = vcombine.low %v9088_v8, %v9092_v37  ;;  %v12417_v8 = vcombine.high %v9112_v58, %v9116_v44  ;;  %v9119_v37 = vld [vmem:[#allocation10 + $0x1740] sm:$0xff]  ;;  %v12414_v28 = vcombine.low %v9111_v51, %v9115_v61 }
 0x626   :  { %10543 = vmatpush1.bf16.msra.mxu0 %v12382_v21  ;;  %v14654_v50 = vadd.f32 %v8633_v41, %v14596_v3  ;;  %v14657_v33 = vadd.f32 %v8513_v63, %v14599_v0  ;;  %v8635_v42 = vpop.f32.mrb[89].mxu1  ;;  %v8515_v39 = vpop.f32.mrb[90].mxu0  ;;  %v9103_v3 = vld [vmem:[#allocation10 + $0x16c0] sm:$0xff]  ;;  %v9108_v0 = vld [vmem:[#allocation10 + $0x16e8] sm:$0xff] }
 0x627   :  { %10665 = vmatpush1.bf16.msra.mxu1 %v12384_v27  ;;  %v14660_v7 = vadd.f32 %v8635_v42, %v14602_v17  ;;  %10544 = vmatprep.subr.bf16.mxu0 %v12391_v56  ;;  %v8637_v47 = vpop.f32.mrb[90].mxu1  ;;  %v8516_v12 = vpop.f32.mrb[91].mxu0  ;;  %v12407_v2 = vcombine.high %v9103_v3, %v9107_v20  ;;  %v12409_v17 = vcombine.high %v9104_v62, %v9108_v0  ;;  %v9123_v21 = vld [vmem:[#allocation10 + $0x1760] sm:$0xff]  ;;  %v9120_v27 = vld [vmem:[#allocation10 + $0x1748] sm:$0xff] }
 0x628   :  { %10666 = vmatprep.subr.bf16.mxu1 %v12393_v52  ;;  %v8638_v34 = vpop.f32.mrb[91].mxu1  ;;  %v12406_v35 = vcombine.low %v9103_v3, %v9107_v20  ;;  %v12408_v26 = vcombine.low %v9104_v62, %v9108_v0  ;;  %v9124_v56 = vld [vmem:[#allocation10 + $0x1768] sm:$0xff]  ;;  %v12416_v52 = vcombine.low %v9112_v58, %v9116_v44  ;;  %v12423_v6 = vcombine.high %v9119_v37, %v9123_v21  ;;  %v9127_v41 = vld [vmem:[#allocation10 + $0x1780] sm:$0xff]  ;;  %v8889_v0 = vld [vmem:[#allocation10 + $0x1010] sm:$0xff] }
 0x629   :  { %v12425_v14 = vcombine.high %v9120_v27, %v9124_v56  ;;  %v9131_v63 = vld [vmem:[#allocation10 + $0x17a0] sm:$0xff]  ;;  %v12422_v42 = vcombine.low %v9119_v37, %v9123_v21  ;;  %v9140_v34 = vld [vmem:[#allocation10 + $0x17e8] sm:$0xff]  ;;  %v12432_v3 = vcombine.low %v9128_v48, %v9132_v10  ;;  %v9160_v44 = vrot.slane %v14348_v36, 1  ;;  %v8898_v21 = vld [vmem:[#allocation10 + $0x1058] sm:$0xff] }
 0x62a   :  { %10545 = vmatpush1.bf16.msra.mxu0 %v12390_v5  ;;  %v12424_v5 = vcombine.low %v9120_v27, %v9124_v56  ;;  %v12431_v39 = vcombine.high %v9127_v41, %v9131_v63  ;;  %v9135_v47 = vld [vmem:[#allocation10 + $0x17c0] sm:$0xff]  ;;  %v8902_v27 = vld [vmem:[#allocation10 + $0x1078] sm:$0xff] }
 0x62b   :  { %10667 = vmatpush1.bf16.msra.mxu1 %v12392_v54  ;;  %10546 = vmatprep.subr.bf16.mxu0 %v12399_v22  ;;  %v12433_v54 = vcombine.high %v9128_v48, %v9132_v10  ;;  %v9139_v12 = vld [vmem:[#allocation10 + $0x17e0] sm:$0xff]  ;;  %v9136_v22 = vld [vmem:[#allocation10 + $0x17c8] sm:$0xff]  ;;  %v12204_v48 = vcombine.low %v8898_v21, %v8902_v27 }
 0x62c   :  { %10668 = vmatprep.subr.bf16.mxu1 %v12401_v45  ;;  %v12430_v45 = vcombine.low %v9127_v41, %v9131_v63  ;;  %v12439_v20 = vcombine.high %v9135_v47, %v9139_v12  ;;  %v12441_v62 = vcombine.high %v9136_v22, %v9140_v34  ;;  %v12438_v51 = vcombine.low %v9135_v47, %v9139_v12  ;;  %v8910_v41 = vld [vmem:[#allocation10 + $0x10b8] sm:$0xff] }
 0x62d   :  { %v12440_v61 = vcombine.low %v9136_v22, %v9140_v34  ;;  %v14686_v12 = vsel %vm614_vm2, %v9160_v44, %v14682_v9 }
 0x62e   :  { %10547 = vmatpush1.bf16.msra.mxu0 %v12398_v60  ;;  %v8893_v60 = vld [vmem:[#allocation10 + $0x1030] sm:$0xff] }
 0x62f   :  { %10669 = vmatpush1.bf16.msra.mxu1 %v12400_v53  ;;  %10548 = vmatprep.subr.bf16.mxu0 %v12407_v2  ;;  %v8890_v53 = vld [vmem:[#allocation10 + $0x1018] sm:$0xff]  ;;  %v12195_v58 = vcombine.high %v8889_v0, %v8893_v60 }
 0x630   :  { %10670 = vmatprep.subr.bf16.mxu1 %v12409_v17  ;;  %v8894_v2 = vld [vmem:[#allocation10 + $0x1038] sm:$0xff]  ;;  %v12188_v17 = vcombine.low %v14630_v59, %v14636_v38  ;;  %v12194_v59 = vcombine.low %v8889_v0, %v8893_v60 }
 0x631   :  { %v12196_v56 = vcombine.low %v8890_v53, %v8894_v2 }
 0x632   :  { %10549 = vmatpush1.bf16.msra.mxu0 %v12406_v35  ;;  %v12197_v35 = vcombine.high %v8890_v53, %v8894_v2  ;;  %v9159_v37 = vrot.slane %v12188_v17, 1  ;;  %v8929_v17 = vld [vmem:[#allocation10 + $0x1150] sm:$0xff] }
 0x633   :  { %10671 = vmatpush1.bf16.msra.mxu1 %v12408_v26  ;;  %10550 = vmatprep.subr.bf16.mxu0 %v12415_v1  ;;  %v14666_v26 = vrot.slane %v14421_v19, 1  ;;  %v8897_v1 = vld [vmem:[#allocation10 + $0x1050] sm:$0xff]  ;;  %v12205_v19 = vcombine.high %v8898_v21, %v8902_v27  ;;  %v8938_v27 = vld [vmem:[#allocation10 + $0x1198] sm:$0xff] }
 0x634   :  { %10672 = vmatprep.subr.bf16.mxu1 %v12417_v8  ;;  %v8901_v8 = vld [vmem:[#allocation10 + $0x1070] sm:$0xff]  ;;  %v14669_v38 = vsel %vm614_vm2, %v9159_v37, %v9160_v44 }
 0x635   :  { %v14676_v36 = vsel %vm614_vm2, %v9163_v40, %v14666_v26  ;;  %v12202_v63 = vcombine.low %v8897_v1, %v8901_v8  ;;  %v8937_v37 = vld [vmem:[#allocation10 + $0x1190] sm:$0xff] }
 0x636   :  { %10551 = vmatpush1.bf16.msra.mxu0 %v12414_v28  ;;  %v12203_v28 = vcombine.high %v8897_v1, %v8901_v8  ;;  %v8941_v21 = vld [vmem:[#allocation10 + $0x11b0] sm:$0xff] }
 0x637   :  { %10673 = vmatpush1.bf16.msra.mxu1 %v12416_v52  ;;  %10552 = vmatprep.subr.bf16.mxu0 %v12423_v6  ;;  %v8905_v52 = vld [vmem:[#allocation10 + $0x1090] sm:$0xff] }
 0x638   :  { %10674 = vmatprep.subr.bf16.mxu1 %v12425_v14  ;;  %v8909_v6 = vld [vmem:[#allocation10 + $0x10b0] sm:$0xff]  ;;  %v8906_v14 = vld [vmem:[#allocation10 + $0x1098] sm:$0xff] }
 0x639   :  { %v12211_v40 = vcombine.high %v8905_v52, %v8909_v6  ;;  %v12213_v10 = vcombine.high %v8906_v14, %v8910_v41  ;;  %v12210_v47 = vcombine.low %v8905_v52, %v8909_v6  ;;  %v12212_v22 = vcombine.low %v8906_v14, %v8910_v41  ;;  %v8945_v6 = vld [vmem:[#allocation10 + $0x11d0] sm:$0xff]  ;;  %v8946_v41 = vld [vmem:[#allocation10 + $0x11d8] sm:$0xff] }
 0x63a   :  { %10553 = vmatpush1.bf16.msra.mxu0 %v12422_v42  ;;  %v8913_v42 = vld [vmem:[#allocation10 + $0x10d0] sm:$0xff] }
 0x63b   :  { %10675 = vmatpush1.bf16.msra.mxu1 %v12424_v5  ;;  %10554 = vmatprep.subr.bf16.mxu0 %v12431_v39  ;;  %v8917_v5 = vld [vmem:[#allocation10 + $0x10f0] sm:$0xff]  ;;  %v8914_v39 = vld [vmem:[#allocation10 + $0x10d8] sm:$0xff] }
 0x63c   :  { %10676 = vmatprep.subr.bf16.mxu1 %v12433_v54  ;;  %v8918_v54 = vld [vmem:[#allocation10 + $0x10f8] sm:$0xff]  ;;  %v12219_v34 = vcombine.high %v8913_v42, %v8917_v5  ;;  %v12218_v0 = vcombine.low %v8913_v42, %v8917_v5  ;;  %v8949_v14 = vld [vmem:[#allocation10 + $0x11f0] sm:$0xff] }
 0x63d   :  { %v12221_v43 = vcombine.high %v8914_v39, %v8918_v54  ;;  %v12220_v60 = vcombine.low %v8914_v39, %v8918_v54  ;;  %v8957_v5 = vld [vmem:[#allocation10 + $0x1230] sm:$0xff]  ;;  %v8954_v39 = vld [vmem:[#allocation10 + $0x1218] sm:$0xff] }
 0x63e   :  { %10555 = vmatpush1.bf16.msra.mxu0 %v12430_v45  ;;  %v8921_v45 = vld [vmem:[#allocation10 + $0x1110] sm:$0xff]  ;;  %v8958_v54 = vld [vmem:[#allocation10 + $0x1238] sm:$0xff] }
 0x63f   :  { %10677 = vmatpush1.bf16.msra.mxu1 %v12432_v3  ;;  %10556 = vmatprep.subr.bf16.mxu0 %v12439_v20  ;;  %v8925_v3 = vld [vmem:[#allocation10 + $0x1130] sm:$0xff]  ;;  %v8922_v20 = vld [vmem:[#allocation10 + $0x1118] sm:$0xff] }
 0x640   :  { %10678 = vmatprep.subr.bf16.mxu1 %v12441_v62  ;;  %v8926_v62 = vld [vmem:[#allocation10 + $0x1138] sm:$0xff]  ;;  %v12227_v53 = vcombine.high %v8921_v45, %v8925_v3  ;;  %v12226_v44 = vcombine.low %v8921_v45, %v8925_v3  ;;  %v8961_v45 = vld [vmem:[#allocation10 + $0x1250] sm:$0xff] }
 0x641   :  { %v12229_v2 = vcombine.high %v8922_v20, %v8926_v62  ;;  %v8965_v3 = vld [vmem:[#allocation10 + $0x1270] sm:$0xff] }
 0x642   :  { %10557 = vmatpush1.bf16.msra.mxu0 %v12438_v51  ;;  %v8933_v51 = vld [vmem:[#allocation10 + $0x1170] sm:$0xff] }
 0x643   :  { %10679 = vmatpush1.bf16.msra.mxu1 %v12440_v61  ;;  %10709 = vmatprep.subr.bf16.mxu0 %v12195_v58  ;;  %v8930_v61 = vld [vmem:[#allocation10 + $0x1158] sm:$0xff]  ;;  %v12235_v1 = vcombine.high %v8929_v17, %v8933_v51 }
 0x644   :  { %10831 = vmatprep.subr.bf16.mxu1 %v12197_v35  ;;  %v8934_v58 = vld [vmem:[#allocation10 + $0x1178] sm:$0xff]  ;;  %v12228_v35 = vcombine.low %v8922_v20, %v8926_v62 }
 0x645   :  { %10559 = vmatmul.mubr.bf16.vlgmr.msra.gmra.mrb[52].mxu0 %v14669_v38  ;;  %v12237_v8 = vcombine.high %v8930_v61, %v8934_v58  ;;  %v8962_v20 = vld [vmem:[#allocation10 + $0x1258] sm:$0xff] }
 0x646   :  { %10681 = vmatmul.mubr.bf16.vlgmr.msra.gmra.mrb[52].mxu1 %v14669_v38  ;;  %10568 = vmatprep.mubr.bf16.mxu0 %v14676_v36  ;;  %v8966_v62 = vld [vmem:[#allocation10 + $0x1278] sm:$0xff] }
 0x647   :  { %10690 = vmatprep.mubr.bf16.mxu1 %v14676_v36  ;;  %10710 = vmatpush1.bf16.msra.mxu0 %v12194_v59  ;;  %v8942_v59 = vld [vmem:[#allocation10 + $0x11b8] sm:$0xff] }
 0x648   :  { %10832 = vmatpush1.bf16.msra.mxu1 %v12196_v56  ;;  %10711 = vmatprep.subr.bf16.mxu0 %v12203_v28  ;;  %v12234_v56 = vcombine.low %v8929_v17, %v8933_v51  ;;  %v12236_v28 = vcombine.low %v8930_v61, %v8934_v58  ;;  %v12245_v52 = vcombine.high %v8938_v27, %v8942_v59  ;;  %v8969_v51 = vld [vmem:[#allocation10 + $0x1290] sm:$0xff] }
 0x649   :  { %10833 = vmatprep.subr.bf16.mxu1 %v12205_v19  ;;  %v12243_v19 = vcombine.high %v8937_v37, %v8941_v21  ;;  %v12269_v17 = vcombine.high %v8962_v20, %v8966_v62  ;;  %v8973_v61 = vld [vmem:[#allocation10 + $0x12b0] sm:$0xff] }
 0x64b   :  { %10712 = vmatpush1.bf16.msra.mxu0 %v12202_v63  ;;  %v8950_v63 = vld [vmem:[#allocation10 + $0x11f8] sm:$0xff] }
 0x64c   :  { %10834 = vmatpush1.bf16.msra.mxu1 %v12204_v48  ;;  %10713 = vmatprep.subr.bf16.mxu0 %v12211_v40  ;;  %v12242_v48 = vcombine.low %v8937_v37, %v8941_v21  ;;  %v12244_v40 = vcombine.low %v8938_v27, %v8942_v59  ;;  %v12253_v42 = vcombine.high %v8946_v41, %v8950_v63 }
 0x64d   :  { %10569 = vmatmul.mubr.bf16.gmra.mrb[56].mxu0 %v14686_v12  ;;  %10835 = vmatprep.subr.bf16.mxu1 %v12213_v10  ;;  %v12251_v10 = vcombine.high %v8945_v6, %v8949_v14  ;;  %v12266_v59 = vcombine.low %v8961_v45, %v8965_v3 }
 0x64e   :  { %10691 = vmatmul.mubr.bf16.gmra.mrb[56].mxu1 %v14686_v12  ;;  %10578 = vmatprep.mubr.bf16.mxu0 %v14666_v26 }
 0x64f   :  { %10700 = vmatprep.mubr.bf16.mxu1 %v14666_v26  ;;  %10714 = vmatpush1.bf16.msra.mxu0 %v12210_v47  ;;  %v12250_v47 = vcombine.low %v8945_v6, %v8949_v14  ;;  %v12275_v6 = vcombine.high %v8969_v51, %v8973_v61 }
 0x650   :  { %10836 = vmatpush1.bf16.msra.mxu1 %v12212_v22  ;;  %10715 = vmatprep.subr.bf16.mxu0 %v12219_v34  ;;  %v12252_v22 = vcombine.low %v8946_v41, %v8950_v63  ;;  %v8981_v63 = vld [vmem:[#allocation10 + $0x12f0] sm:$0xff] }
 0x651   :  { %10837 = vmatprep.subr.bf16.mxu1 %v12221_v43  ;;  %v12261_v43 = vcombine.high %v8954_v39, %v8958_v54 }
 0x653   :  { %10716 = vmatpush1.bf16.msra.mxu0 %v12218_v0 }
 0x654   :  { %10838 = vmatpush1.bf16.msra.mxu1 %v12220_v60  ;;  %10717 = vmatprep.subr.bf16.mxu0 %v12227_v53  ;;  %v12260_v60 = vcombine.low %v8954_v39, %v8958_v54  ;;  %v12267_v53 = vcombine.high %v8961_v45, %v8965_v3  ;;  %v8986_v39 = vld [vmem:[#allocation10 + $0x1318] sm:$0xff]  ;;  %v8993_v45 = vld [vmem:[#allocation10 + $0x1350] sm:$0xff] }
 0x655   :  { %10579 = vmatmul.mubr.bf16.gmra.mrb[104].mxu0 %v14682_v9  ;;  %10839 = vmatprep.subr.bf16.mxu1 %v12229_v2  ;;  %v8990_v54 = vld [vmem:[#allocation10 + $0x1338] sm:$0xff]  ;;  %v8997_v3 = vld [vmem:[#allocation10 + $0x1370] sm:$0xff] }
 0x656   :  { %10701 = vmatmul.mubr.bf16.gmra.mrb[104].mxu1 %v14682_v9  ;;  %10741 = vmatprep.mubr.bf16.mxu0 %v14587_v29 }
 0x657   :  { %10718 = vmatpush1.bf16.msra.mxu0 %v12226_v44  ;;  %10863 = vmatprep.mubr.bf16.mxu1 %v14587_v29  ;;  %v8953_v29 = vld [vmem:[#allocation10 + $0x1210] sm:$0xff] }
 0x658   :  { %10840 = vmatpush1.bf16.msra.mxu1 %v12228_v35  ;;  %10719 = vmatprep.subr.bf16.mxu0 %v12235_v1  ;;  %v12259_v34 = vcombine.high %v8953_v29, %v8957_v5  ;;  %v12258_v0 = vcombine.low %v8953_v29, %v8957_v5  ;;  %v8970_v1 = vld [vmem:[#allocation10 + $0x1298] sm:$0xff]  ;;  %v8985_v29 = vld [vmem:[#allocation10 + $0x1310] sm:$0xff] }
 0x659   :  { %10841 = vmatprep.subr.bf16.mxu1 %v12237_v8  ;;  %v8974_v8 = vld [vmem:[#allocation10 + $0x12b8] sm:$0xff]  ;;  %v8989_v5 = vld [vmem:[#allocation10 + $0x1330] sm:$0xff] }
 0x65a   :  { %v12277_v41 = vcombine.high %v8970_v1, %v8974_v8 }
 0x65b   :  { %10720 = vmatpush1.bf16.msra.mxu0 %v12234_v56 }
 0x65c   :  { %10842 = vmatpush1.bf16.msra.mxu1 %v12236_v28  ;;  %10721 = vmatprep.subr.bf16.mxu0 %v12243_v19 }
 0x65d   :  { %10843 = vmatprep.subr.bf16.mxu1 %v12245_v52 }
 0x65f   :  { %10722 = vmatpush1.bf16.msra.mxu0 %v12242_v48  ;;  %v8978_v48 = vld [vmem:[#allocation10 + $0x12d8] sm:$0xff] }
 0x660   :  { %10844 = vmatpush1.bf16.msra.mxu1 %v12244_v40  ;;  %10723 = vmatprep.subr.bf16.mxu0 %v12251_v10  ;;  %v12274_v40 = vcombine.low %v8969_v51, %v8973_v61  ;;  %v12276_v10 = vcombine.low %v8970_v1, %v8974_v8  ;;  %v9005_v51 = vld [vmem:[#allocation10 + $0x13b0] sm:$0xff]  ;;  %v9002_v61 = vld [vmem:[#allocation10 + $0x1398] sm:$0xff] }
 0x661   :  { %10845 = vmatprep.subr.bf16.mxu1 %v12253_v42 }
 0x663   :  { %10724 = vmatpush1.bf16.msra.mxu0 %v12250_v47 }
 0x664   :  { %10846 = vmatpush1.bf16.msra.mxu1 %v12252_v22  ;;  %10725 = vmatprep.subr.bf16.mxu0 %v12259_v34  ;;  %v12291_v34 = vcombine.high %v8985_v29, %v8989_v5 }
 0x665   :  { %10847 = vmatprep.subr.bf16.mxu1 %v12261_v43  ;;  %v8694_v2 = vpop.f32.mrb[92].mxu0  ;;  %v12293_v43 = vcombine.high %v8986_v39, %v8990_v54 }
 0x666   :  { %v14697_v58 = vadd.f32 %v8694_v2, %v14557_v57  ;;  %v8816_v44 = vpop.f32.mrb[92].mxu1  ;;  %v8696_v35 = vpop.f32.mrb[93].mxu0  ;;  %v12268_v57 = vcombine.low %v8962_v20, %v8966_v62  ;;  %v8994_v20 = vld [vmem:[#allocation10 + $0x1358] sm:$0xff] }
 0x667   :  { %10726 = vmatpush1.bf16.msra.mxu0 %v12258_v0  ;;  %v14700_v37 = vadd.f32 %v8816_v44, %v14560_v32  ;;  %v14703_v21 = vadd.f32 %v8696_v35, %v14563_v55  ;;  %v8818_v27 = vpop.f32.mrb[93].mxu1  ;;  %v8698_v56 = vpop.f32.mrb[94].mxu0  ;;  %v8977_v32 = vld [vmem:[#allocation10 + $0x12d0] sm:$0xff]  ;;  %v8982_v55 = vld [vmem:[#allocation10 + $0x12f8] sm:$0xff]  ;;  %v12290_v0 = vcombine.low %v8985_v29, %v8989_v5  ;;  %v12298_v35 = vcombine.low %v8993_v45, %v8997_v3 }
 0x668   :  { %10848 = vmatpush1.bf16.msra.mxu1 %v12260_v60  ;;  %v14706_v28 = vadd.f32 %v8818_v27, %v14566_v13  ;;  %10727 = vmatprep.subr.bf16.mxu0 %v12267_v53  ;;  %v8820_v19 = vpop.f32.mrb[94].mxu1  ;;  %v8699_v52 = vpop.f32.mrb[95].mxu0  ;;  %v12283_v42 = vcombine.high %v8977_v32, %v8981_v63  ;;  %v12285_v13 = vcombine.high %v8978_v48, %v8982_v55  ;;  %v8998_v62 = vld [vmem:[#allocation10 + $0x1378] sm:$0xff]  ;;  %v9013_v56 = vld [vmem:[#allocation10 + $0x13f0] sm:$0xff] }
 0x669   :  { %10849 = vmatprep.subr.bf16.mxu1 %v12269_v17  ;;  %v8821_v14 = vpop.f32.mrb[95].mxu1  ;;  %v12282_v47 = vcombine.low %v8977_v32, %v8981_v63  ;;  %v12284_v22 = vcombine.low %v8978_v48, %v8982_v55  ;;  %v12292_v60 = vcombine.low %v8986_v39, %v8990_v54  ;;  %v12299_v53 = vcombine.high %v8993_v45, %v8997_v3  ;;  %v9001_v17 = vld [vmem:[#allocation10 + $0x1390] sm:$0xff]  ;;  %v9006_v44 = vld [vmem:[#allocation10 + $0x13b8] sm:$0xff] }
 0x66a   :  { %v12301_v2 = vcombine.high %v8994_v20, %v8998_v62  ;;  %v12300_v1 = vcombine.low %v8994_v20, %v8998_v62  ;;  %v12307_v8 = vcombine.high %v9001_v17, %v9005_v51  ;;  %v12309_v27 = vcombine.high %v9002_v61, %v9006_v44  ;;  %v9014_v19 = vld [vmem:[#allocation10 + $0x13f8] sm:$0xff]  ;;  %v9017_v32 = vld [vmem:[#allocation10 + $0x1410] sm:$0xff] }
 0x66b   :  { %10728 = vmatpush1.bf16.msra.mxu0 %v12266_v59  ;;  %v9009_v59 = vld [vmem:[#allocation10 + $0x13d0] sm:$0xff]  ;;  %v12306_v52 = vcombine.low %v9001_v17, %v9005_v51  ;;  %v9018_v48 = vld [vmem:[#allocation10 + $0x1418] sm:$0xff] }
 0x66c   :  { %10850 = vmatpush1.bf16.msra.mxu1 %v12268_v57  ;;  %10729 = vmatprep.subr.bf16.mxu0 %v12275_v6  ;;  %v9010_v57 = vld [vmem:[#allocation10 + $0x13d8] sm:$0xff]  ;;  %v12308_v6 = vcombine.low %v9002_v61, %v9006_v44  ;;  %v12315_v14 = vcombine.high %v9009_v59, %v9013_v56  ;;  %v9021_v63 = vld [vmem:[#allocation10 + $0x1430] sm:$0xff] }
 0x66d   :  { %10851 = vmatprep.subr.bf16.mxu1 %v12277_v41  ;;  %v12317_v41 = vcombine.high %v9010_v57, %v9014_v19  ;;  %v9022_v55 = vld [vmem:[#allocation10 + $0x1438] sm:$0xff]  ;;  %v9025_v29 = vld [vmem:[#allocation10 + $0x1450] sm:$0xff] }
 0x66e   :  { %v9029_v5 = vld [vmem:[#allocation10 + $0x1470] sm:$0xff]  ;;  %v9026_v39 = vld [vmem:[#allocation10 + $0x1458] sm:$0xff] }
 0x66f   :  { %10730 = vmatpush1.bf16.msra.mxu0 %v12274_v40  ;;  %v12314_v40 = vcombine.low %v9009_v59, %v9013_v56  ;;  %v9030_v54 = vld [vmem:[#allocation10 + $0x1478] sm:$0xff]  ;;  %v9033_v45 = vld [vmem:[#allocation10 + $0x1490] sm:$0xff] }
 0x670   :  { %10852 = vmatpush1.bf16.msra.mxu1 %v12276_v10  ;;  %10731 = vmatprep.subr.bf16.mxu0 %v12283_v42  ;;  %v12316_v10 = vcombine.low %v9010_v57, %v9014_v19  ;;  %v12323_v42 = vcombine.high %v9017_v32, %v9021_v63  ;;  %v9037_v3 = vld [vmem:[#allocation10 + $0x14b0] sm:$0xff]  ;;  %v9034_v20 = vld [vmem:[#allocation10 + $0x1498] sm:$0xff] }
 0x671   :  { %10853 = vmatprep.subr.bf16.mxu1 %v12285_v13  ;;  %v12325_v13 = vcombine.high %v9018_v48, %v9022_v55  ;;  %v9038_v62 = vld [vmem:[#allocation10 + $0x14b8] sm:$0xff]  ;;  %v9041_v17 = vld [vmem:[#allocation10 + $0x14d0] sm:$0xff] }
 0x672   :  { %v9045_v51 = vld [vmem:[#allocation10 + $0x14f0] sm:$0xff]  ;;  %v9042_v61 = vld [vmem:[#allocation10 + $0x14d8] sm:$0xff] }
 0x673   :  { %10732 = vmatpush1.bf16.msra.mxu0 %v12282_v47  ;;  %v12322_v47 = vcombine.low %v9017_v32, %v9021_v63  ;;  %v9046_v44 = vld [vmem:[#allocation10 + $0x14f8] sm:$0xff]  ;;  %v12346_v57 = vcombine.low %v9041_v17, %v9045_v51 }
 0x674   :  { %10854 = vmatpush1.bf16.msra.mxu1 %v12284_v22  ;;  %10733 = vmatprep.subr.bf16.mxu0 %v12291_v34  ;;  %v12324_v22 = vcombine.low %v9018_v48, %v9022_v55  ;;  %v12331_v34 = vcombine.high %v9025_v29, %v9029_v5  ;;  %v9050_v59 = vld [vmem:[#allocation10 + $0x1518] sm:$0xff]  ;;  %v12348_v19 = vcombine.low %v9042_v61, %v9046_v44 }
 0x675   :  { %10855 = vmatprep.subr.bf16.mxu1 %v12293_v43  ;;  %v12333_v43 = vcombine.high %v9026_v39, %v9030_v54  ;;  %v9054_v56 = vld [vmem:[#allocation10 + $0x1538] sm:$0xff] }
 0x676   :  { %v9058_v32 = vld [vmem:[#allocation10 + $0x1558] sm:$0xff]  ;;  %v12356_v48 = vcombine.low %v9050_v59, %v9054_v56 }
 0x677   :  { %10734 = vmatpush1.bf16.msra.mxu0 %v12290_v0  ;;  %v12330_v0 = vcombine.low %v9025_v29, %v9029_v5  ;;  %v9062_v63 = vld [vmem:[#allocation10 + $0x1578] sm:$0xff] }
 0x678   :  { %10856 = vmatpush1.bf16.msra.mxu1 %v12292_v60  ;;  %10735 = vmatprep.subr.bf16.mxu0 %v12299_v53  ;;  %v12332_v60 = vcombine.low %v9026_v39, %v9030_v54  ;;  %v12339_v53 = vcombine.high %v9033_v45, %v9037_v3  ;;  %v12364_v5 = vcombine.low %v9058_v32, %v9062_v63 }
 0x679   :  { %10857 = vmatprep.subr.bf16.mxu1 %v12301_v2  ;;  %v12341_v2 = vcombine.high %v9034_v20, %v9038_v62 }
 0x67b   :  { %10736 = vmatpush1.bf16.msra.mxu0 %v12298_v35  ;;  %v12340_v35 = vcombine.low %v9034_v20, %v9038_v62  ;;  %v9085_v62 = vld [vmem:[#allocation10 + $0x1630] sm:$0xff] }
 0x67c   :  { %10858 = vmatpush1.bf16.msra.mxu1 %v12300_v1  ;;  %10737 = vmatprep.subr.bf16.mxu0 %v12307_v8  ;;  %v12347_v1 = vcombine.high %v9041_v17, %v9045_v51  ;;  %v9049_v8 = vld [vmem:[#allocation10 + $0x1510] sm:$0xff] }
 0x67d   :  { %10859 = vmatprep.subr.bf16.mxu1 %v12309_v27  ;;  %v9053_v27 = vld [vmem:[#allocation10 + $0x1530] sm:$0xff] }
 0x67f   :  { %10738 = vmatpush1.bf16.msra.mxu0 %v12306_v52  ;;  %v12355_v52 = vcombine.high %v9049_v8, %v9053_v27 }
 0x680   :  { %10860 = vmatpush1.bf16.msra.mxu1 %v12308_v6  ;;  %10739 = vmatprep.subr.bf16.mxu0 %v12315_v14  ;;  %v12357_v6 = vcombine.high %v9050_v59, %v9054_v56  ;;  %v9057_v14 = vld [vmem:[#allocation10 + $0x1550] sm:$0xff] }
 0x681   :  { %10861 = vmatprep.subr.bf16.mxu1 %v12317_v41  ;;  %v9061_v41 = vld [vmem:[#allocation10 + $0x1570] sm:$0xff] }
 0x682   :  { %v12363_v55 = vcombine.high %v9057_v14, %v9061_v41  ;;  %v12362_v29 = vcombine.low %v9057_v14, %v9061_v41  ;;  %v9097_v56 = vld [vmem:[#allocation10 + $0x1690] sm:$0xff]  ;;  %v9098_v14 = vld [vmem:[#allocation10 + $0x1698] sm:$0xff] }
 0x683   :  { %10740 = vmatpush1.bf16.msra.mxu0 %v12314_v40  ;;  %v9065_v40 = vld [vmem:[#allocation10 + $0x1590] sm:$0xff]  ;;  %v9102_v41 = vld [vmem:[#allocation10 + $0x16b8] sm:$0xff] }
 0x684   :  { %10862 = vmatpush1.bf16.msra.mxu1 %v12316_v10  ;;  %10770 = vmatprep.subr.bf16.mxu0 %v12323_v42  ;;  %v9069_v10 = vld [vmem:[#allocation10 + $0x15b0] sm:$0xff]  ;;  %v9066_v42 = vld [vmem:[#allocation10 + $0x1598] sm:$0xff] }
 0x685   :  { %10892 = vmatprep.subr.bf16.mxu1 %v12325_v13  ;;  %v9070_v13 = vld [vmem:[#allocation10 + $0x15b8] sm:$0xff]  ;;  %v12371_v39 = vcombine.high %v9065_v40, %v9069_v10 }
 0x686   :  { %10742 = vmatmul.mubr.bf16.vlgmr.msra.gmra.mrb[68].mxu0 %v14611_v15  ;;  %v12373_v54 = vcombine.high %v9066_v42, %v9070_v13 }
 0x687   :  { %10864 = vmatmul.mubr.bf16.vlgmr.msra.gmra.mrb[68].mxu1 %v14611_v15  ;;  %10751 = vmatprep.mubr.bf16.mxu0 %v14618_v4  ;;  %v12338_v15 = vcombine.low %v9033_v45, %v9037_v3  ;;  %v12372_v45 = vcombine.low %v9066_v42, %v9070_v13 }
 0x688   :  { %10771 = vmatpush1.bf16.msra.mxu0 %v12322_v47  ;;  %10873 = vmatprep.mubr.bf16.mxu1 %v14618_v4  ;;  %v12349_v4 = vcombine.high %v9042_v61, %v9046_v44  ;;  %v9073_v47 = vld [vmem:[#allocation10 + $0x15d0] sm:$0xff] }
 0x689   :  { %10893 = vmatpush1.bf16.msra.mxu1 %v12324_v22  ;;  %10772 = vmatprep.subr.bf16.mxu0 %v12331_v34  ;;  %v9077_v22 = vld [vmem:[#allocation10 + $0x15f0] sm:$0xff]  ;;  %v9074_v34 = vld [vmem:[#allocation10 + $0x15d8] sm:$0xff] }
 0x68a   :  { %10894 = vmatprep.subr.bf16.mxu1 %v12333_v43  ;;  %v9078_v43 = vld [vmem:[#allocation10 + $0x15f8] sm:$0xff]  ;;  %v12379_v3 = vcombine.high %v9073_v47, %v9077_v22  ;;  %v9089_v61 = vld [vmem:[#allocation10 + $0x1650] sm:$0xff] }
 0x68b   :  { %v12381_v20 = vcombine.high %v9074_v34, %v9078_v43  ;;  %v9093_v44 = vld [vmem:[#allocation10 + $0x1670] sm:$0xff] }
 0x68c   :  { %10773 = vmatpush1.bf16.msra.mxu0 %v12330_v0  ;;  %v9082_v0 = vld [vmem:[#allocation10 + $0x1618] sm:$0xff] }
 0x68d   :  { %10895 = vmatpush1.bf16.msra.mxu1 %v12332_v60  ;;  %10774 = vmatprep.subr.bf16.mxu0 %v12339_v53  ;;  %v9086_v60 = vld [vmem:[#allocation10 + $0x1638] sm:$0xff]  ;;  %v12378_v53 = vcombine.low %v9073_v47, %v9077_v22  ;;  %v12404_v47 = vcombine.low %v9098_v14, %v9102_v41 }
 0x68e   :  { %10752 = vmatmul.mubr.bf16.gmra.mrb[72].mxu0 %v14628_v11  ;;  %10896 = vmatprep.subr.bf16.mxu1 %v12341_v2  ;;  %v12380_v2 = vcombine.low %v9074_v34, %v9078_v43  ;;  %v12389_v51 = vcombine.high %v9082_v0, %v9086_v60  ;;  %v9113_v34 = vld [vmem:[#allocation10 + $0x1710] sm:$0xff] }
 0x68f   :  { %10874 = vmatmul.mubr.bf16.gmra.mrb[72].mxu1 %v14628_v11  ;;  %10761 = vmatprep.mubr.bf16.mxu0 %v14608_v49  ;;  %v12354_v11 = vcombine.low %v9049_v8, %v9053_v27  ;;  %v12395_v8 = vcombine.high %v9089_v61, %v9093_v44  ;;  %v9117_v43 = vld [vmem:[#allocation10 + $0x1730] sm:$0xff] }
 0x690   :  { %10775 = vmatpush1.bf16.msra.mxu0 %v12338_v15  ;;  %10883 = vmatprep.mubr.bf16.mxu1 %v14608_v49  ;;  %v12365_v49 = vcombine.high %v9058_v32, %v9062_v63  ;;  %v9090_v15 = vld [vmem:[#allocation10 + $0x1658] sm:$0xff] }
 0x691   :  { %10897 = vmatpush1.bf16.msra.mxu1 %v12340_v35  ;;  %10776 = vmatprep.subr.bf16.mxu0 %v12347_v1  ;;  %v9094_v35 = vld [vmem:[#allocation10 + $0x1678] sm:$0xff] }
 0x692   :  { %10898 = vmatprep.subr.bf16.mxu1 %v12349_v4  ;;  %v12388_v4 = vcombine.low %v9082_v0, %v9086_v60  ;;  %v12397_v59 = vcombine.high %v9090_v15, %v9094_v35  ;;  %v9121_v0 = vld [vmem:[#allocation10 + $0x1750] sm:$0xff] }
 0x693   :  { %v9125_v60 = vld [vmem:[#allocation10 + $0x1770] sm:$0xff] }
 0x694   :  { %10777 = vmatpush1.bf16.msra.mxu0 %v12346_v57  ;;  %v9101_v57 = vld [vmem:[#allocation10 + $0x16b0] sm:$0xff] }
 0x695   :  { %10899 = vmatpush1.bf16.msra.mxu1 %v12348_v19  ;;  %10778 = vmatprep.subr.bf16.mxu0 %v12355_v52  ;;  %v12403_v42 = vcombine.high %v9097_v56, %v9101_v57 }
 0x696   :  { %10762 = vmatmul.mubr.bf16.gmra.mrb[108].mxu0 %v14624_v18  ;;  %10900 = vmatprep.subr.bf16.mxu1 %v12357_v6 }
 0x697   :  { %10884 = vmatmul.mubr.bf16.gmra.mrb[108].mxu1 %v14624_v18  ;;  %10802 = vmatprep.mubr.bf16.mxu0 %v14645_v25  ;;  %v12370_v18 = vcombine.low %v9065_v40, %v9069_v10 }
 0x698   :  { %10779 = vmatpush1.bf16.msra.mxu0 %v12354_v11  ;;  %10924 = vmatprep.mubr.bf16.mxu1 %v14645_v25  ;;  %v9081_v25 = vld [vmem:[#allocation10 + $0x1610] sm:$0xff] }
 0x699   :  { %10901 = vmatpush1.bf16.msra.mxu1 %v12356_v48  ;;  %10780 = vmatprep.subr.bf16.mxu0 %v12363_v55  ;;  %v12387_v17 = vcombine.high %v9081_v25, %v9085_v62  ;;  %v12386_v1 = vcombine.low %v9081_v25, %v9085_v62  ;;  %v12394_v48 = vcombine.low %v9089_v61, %v9093_v44 }
 0x69a   :  { %10902 = vmatprep.subr.bf16.mxu1 %v12365_v49  ;;  %v12419_v25 = vcombine.high %v9113_v34, %v9117_v43  ;;  %v12427_v61 = vcombine.high %v9121_v0, %v9125_v60 }
 0x69c   :  { %10781 = vmatpush1.bf16.msra.mxu0 %v12362_v29  ;;  %v12405_v29 = vcombine.high %v9098_v14, %v9102_v41  ;;  %v9142_v14 = vld [vmem:[#allocation10 + $0x17f8] sm:$0xff] }
 0x69d   :  { %10903 = vmatpush1.bf16.msra.mxu1 %v12364_v5  ;;  %10782 = vmatprep.subr.bf16.mxu0 %v12371_v39  ;;  %v9109_v5 = vld [vmem:[#allocation10 + $0x16f0] sm:$0xff]  ;;  %v9106_v39 = vld [vmem:[#allocation10 + $0x16d8] sm:$0xff] }
 0x69e   :  { %10904 = vmatprep.subr.bf16.mxu1 %v12373_v54  ;;  %v12402_v54 = vcombine.low %v9097_v56, %v9101_v57  ;;  %v9137_v57 = vld [vmem:[#allocation10 + $0x17d0] sm:$0xff] }
 0x6a0   :  { %10783 = vmatpush1.bf16.msra.mxu0 %v12370_v18  ;;  %v9114_v18 = vld [vmem:[#allocation10 + $0x1718] sm:$0xff] }
 0x6a1   :  { %10905 = vmatpush1.bf16.msra.mxu1 %v12372_v45  ;;  %10784 = vmatprep.subr.bf16.mxu0 %v12379_v3  ;;  %v9118_v45 = vld [vmem:[#allocation10 + $0x1738] sm:$0xff] }
 0x6a2   :  { %10906 = vmatprep.subr.bf16.mxu1 %v12381_v20  ;;  %v12421_v62 = vcombine.high %v9114_v18, %v9118_v45 }
 0x6a4   :  { %10785 = vmatpush1.bf16.msra.mxu0 %v12378_v53  ;;  %v9122_v53 = vld [vmem:[#allocation10 + $0x1758] sm:$0xff] }
 0x6a5   :  { %10907 = vmatpush1.bf16.msra.mxu1 %v12380_v2  ;;  %10786 = vmatprep.subr.bf16.mxu0 %v12387_v17  ;;  %v9126_v2 = vld [vmem:[#allocation10 + $0x1778] sm:$0xff]  ;;  %v12418_v17 = vcombine.low %v9113_v34, %v9117_v43 }
 0x6a6   :  { %10908 = vmatprep.subr.bf16.mxu1 %v12389_v51  ;;  %v8755_v27 = vpop.f32.mrb[96].mxu0  ;;  %v12420_v51 = vcombine.low %v9114_v18, %v9118_v45  ;;  %v12429_v44 = vcombine.high %v9122_v53, %v9126_v2 }
 0x6a7   :  { %v14721_v19 = vadd.f32 %v8755_v27, %v14697_v58  ;;  %v8877_v52 = vpop.f32.mrb[96].mxu1  ;;  %v8757_v6 = vpop.f32.mrb[97].mxu0  ;;  %v12396_v58 = vcombine.low %v9090_v15, %v9094_v35  ;;  %v9129_v15 = vld [vmem:[#allocation10 + $0x1790] sm:$0xff]  ;;  %v12428_v27 = vcombine.low %v9122_v53, %v9126_v2 }
 0x6a8   :  { %10787 = vmatpush1.bf16.msra.mxu0 %v12386_v1  ;;  %v14724_v32 = vadd.f32 %v8877_v52, %v14700_v37  ;;  %v14727_v63 = vadd.f32 %v8757_v6, %v14703_v21  ;;  %v8879_v11 = vpop.f32.mrb[97].mxu1  ;;  %v8759_v55 = vpop.f32.mrb[98].mxu0  ;;  %v9105_v37 = vld [vmem:[#allocation10 + $0x16d0] sm:$0xff]  ;;  %v9110_v21 = vld [vmem:[#allocation10 + $0x16f8] sm:$0xff] }
 0x6a9   :  { %10909 = vmatpush1.bf16.msra.mxu1 %v12388_v4  ;;  %v14730_v49 = vadd.f32 %v8879_v11, %v14706_v28  ;;  %10788 = vmatprep.subr.bf16.mxu0 %v12395_v8  ;;  %v8881_v40 = vpop.f32.mrb[98].mxu1  ;;  %v8760_v10 = vpop.f32.mrb[99].mxu0  ;;  %v12411_v22 = vcombine.high %v9105_v37, %v9109_v5  ;;  %v12413_v28 = vcombine.high %v9106_v39, %v9110_v21  ;;  %v9133_v35 = vld [vmem:[#allocation10 + $0x17b0] sm:$0xff]  ;;  %v9130_v1 = vld [vmem:[#allocation10 + $0x1798] sm:$0xff] }
 0x6aa   :  { %10910 = vmatprep.subr.bf16.mxu1 %v12397_v59  ;;  %v8882_v13 = vpop.f32.mrb[99].mxu1  ;;  %v12410_v3 = vcombine.low %v9105_v37, %v9109_v5  ;;  %v12412_v20 = vcombine.low %v9106_v39, %v9110_v21  ;;  %v9134_v4 = vld [vmem:[#allocation10 + $0x17b8] sm:$0xff]  ;;  %v12426_v8 = vcombine.low %v9121_v0, %v9125_v60  ;;  %v12435_v59 = vcombine.high %v9129_v15, %v9133_v35  ;;  %v9141_v52 = vld [vmem:[#allocation10 + $0x17f0] sm:$0xff]  ;;  %v14750_v5 = vld [vmem:[#allocation15] sm:$0xff] }
 0x6ab   :  { %v12437_v56 = vcombine.high %v9130_v1, %v9134_v4  ;;  %v9138_v6 = vld [vmem:[#allocation10 + $0x17d8] sm:$0xff]  ;;  %v12434_v41 = vcombine.low %v9129_v15, %v9133_v35  ;;  %v12436_v11 = vcombine.low %v9130_v1, %v9134_v4  ;;  %v14762_v39 = vrot.slane %v14750_v5, %v13857_v30 }
 0x6ac   :  { %10789 = vmatpush1.bf16.msra.mxu0 %v12394_v48  ;;  %v12443_v48 = vcombine.high %v9137_v57, %v9141_v52  ;;  %v12445_v55 = vcombine.high %v9138_v6, %v9142_v14  ;;  %v12444_v40 = vcombine.low %v9138_v6, %v9142_v14  ;;  %v14766_v21 = vrot.slane %v14750_v5, %v13860_v31 }
 0x6ad   :  { %10911 = vmatpush1.bf16.msra.mxu1 %v12396_v58  ;;  %10790 = vmatprep.subr.bf16.mxu0 %v12403_v42  ;;  %v12442_v58 = vcombine.low %v9137_v57, %v9141_v52 }
 0x6ae   :  { %10912 = vmatprep.subr.bf16.mxu1 %v12405_v29 }
 0x6b0   :  { %10791 = vmatpush1.bf16.msra.mxu0 %v12402_v54 }
 0x6b1   :  { %10913 = vmatpush1.bf16.msra.mxu1 %v12404_v47  ;;  %10792 = vmatprep.subr.bf16.mxu0 %v12411_v22 }
 0x6b2   :  { %10914 = vmatprep.subr.bf16.mxu1 %v12413_v28 }
 0x6b4   :  { %10793 = vmatpush1.bf16.msra.mxu0 %v12410_v3 }
 0x6b5   :  { %10915 = vmatpush1.bf16.msra.mxu1 %v12412_v20  ;;  %10794 = vmatprep.subr.bf16.mxu0 %v12419_v25 }
 0x6b6   :  { %10916 = vmatprep.subr.bf16.mxu1 %v12421_v62 }
 0x6b8   :  { %10795 = vmatpush1.bf16.msra.mxu0 %v12418_v17 }
 0x6b9   :  { %10917 = vmatpush1.bf16.msra.mxu1 %v12420_v51  ;;  %10796 = vmatprep.subr.bf16.mxu0 %v12427_v61 }
 0x6ba   :  { %10918 = vmatprep.subr.bf16.mxu1 %v12429_v44 }
 0x6bc   :  { %10797 = vmatpush1.bf16.msra.mxu0 %v12426_v8 }
 0x6bd   :  { %10919 = vmatpush1.bf16.msra.mxu1 %v12428_v27  ;;  %10798 = vmatprep.subr.bf16.mxu0 %v12435_v59 }
 0x6be   :  { %10920 = vmatprep.subr.bf16.mxu1 %v12437_v56 }
 0x6c0   :  { %10799 = vmatpush1.bf16.msra.mxu0 %v12434_v41 }
 0x6c1   :  { %10921 = vmatpush1.bf16.msra.mxu1 %v12436_v11  ;;  %10800 = vmatprep.subr.bf16.mxu0 %v12443_v48 }
 0x6c2   :  { %10922 = vmatprep.subr.bf16.mxu1 %v12445_v55 }
 0x6c4   :  { %10801 = vmatpush1.bf16.msra.mxu0 %v12442_v58 }
 0x6c5   :  { %10923 = vmatpush1.bf16.msra.mxu1 %v12444_v40 }
 0x6c7   :  { %10803 = vmatmul.mubr.bf16.vlgmr.msra.gmra.mrb[68].mxu0 %v14669_v38 }
 0x6c8   :  { %10925 = vmatmul.mubr.bf16.vlgmr.msra.gmra.mrb[68].mxu1 %v14669_v38  ;;  %10812 = vmatprep.mubr.bf16.mxu0 %v14676_v36 }
 0x6c9   :  { %10934 = vmatprep.mubr.bf16.mxu1 %v14676_v36 }
 0x6cf   :  { %10813 = vmatmul.mubr.bf16.gmra.mrb[72].mxu0 %v14686_v12 }
 0x6d0   :  { %10935 = vmatmul.mubr.bf16.gmra.mrb[72].mxu1 %v14686_v12  ;;  %10822 = vmatprep.mubr.bf16.mxu0 %v14666_v26 }
 0x6d1   :  { %10944 = vmatprep.mubr.bf16.mxu1 %v14666_v26  ;;  %v14754_v26 = vrot.slane %v14750_v5, %v13847_v23 }
 0x6d7   :  { %10823 = vmatmul.mubr.bf16.gmra.mrb[112].mxu0 %v14682_v9 }
 0x6d8   :  { %10945 = vmatmul.mubr.bf16.gmra.mrb[112].mxu1 %v14682_v9  ;;  %v14758_v9 = vrot.slane %v14750_v5, %v13850_v24 }
 0x6e7   :  { %v14742_v10 = vpop.f32.mrb[100].mxu0 }
 0x6e8   :  { %v14744_v42 = vpop.f32.mrb[100].mxu1  ;;  %v14746_v38 = vpop.f32.mrb[101].mxu0 }
 0x6e9   :  { %v14748_v13 = vpop.f32.mrb[101].mxu1  ;;  %v10523_v36 = vpop.f32.mrb[102].mxu0 }
 0x6ea   :  { %v10645_v29 = vpop.f32.mrb[102].mxu1  ;;  %v10524_v37 = vpop.f32.mrb[103].mxu0 }
 0x6eb   :  { %v10646_v12 = vpop.f32.mrb[103].mxu1 }
 0x718   :  { %v10560_v54 = vpop.f32.mrb[52].mxu0 }
 0x719   :  { %v11035_v47 = vadd.f32 %v14754_v26, %v10560_v54  ;;  %v10682_v22 = vpop.f32.mrb[52].mxu1  ;;  %v10562_v28 = vpop.f32.mrb[53].mxu0 }
 0x71a   :  { %v11037_v23 = vadd.f32 %v14758_v9, %v10682_v22  ;;  %v11036_v34 = vadd.f32 %v14762_v39, %v10562_v28  ;;  %v10684_v43 = vpop.f32.mrb[53].mxu1  ;;  %v10564_v24 = vpop.f32.mrb[54].mxu0 }
 0x71b   :  { %v11075_v18 = vmax.f32 %v11035_v47, 0.0  ;;  %v11038_v45 = vadd.f32 %v14766_v21, %v10684_v43  ;;  %v11043_v30 = vadd.f32 %v14754_v26, %v10564_v24  ;;  %v10686_v3 = vpop.f32.mrb[54].mxu1  ;;  %v10566_v20 = vpop.f32.mrb[55].mxu0 }
 0x71c   :  { %v11077_v31 = vmax.f32 %v11037_v23, 0.0  ;;  %v11076_v25 = vmax.f32 %v11036_v34, 0.0  ;;  %v11045_v62 = vadd.f32 %v14758_v9, %v10686_v3  ;;  %v11044_v0 = vadd.f32 %v14762_v39, %v10566_v20  ;;  %v10688_v60 = vpop.f32.mrb[55].mxu1 }
 0x71d   :  { %11115 = vst [vmem:[#allocation16] sm:$0xff] %v11075_v18  ;;  %v11078_v53 = vmax.f32 %v11038_v45, 0.0  ;;  %v11083_v2 = vmax.f32 %v11043_v30, 0.0  ;;  %v11046_v17 = vadd.f32 %v14766_v21, %v10688_v60 }
 0x71e   :  { %11117 = vst [vmem:[#allocation16 + $0x10] sm:$0xff] %v11077_v31  ;;  %11116 = vst [vmem:[#allocation16 + $0x8] sm:$0xff] %v11076_v25  ;;  %v11085_v51 = vmax.f32 %v11045_v62, 0.0  ;;  %v11084_v61 = vmax.f32 %v11044_v0, 0.0 }
 0x71f   :  { %11118 = vst [vmem:[#allocation16 + $0x18] sm:$0xff] %v11078_v53  ;;  %11123 = vst [vmem:[#allocation16 + $0x40] sm:$0xff] %v11083_v2  ;;  %v11086_v44 = vmax.f32 %v11046_v17, 0.0 }
 0x720   :  { %11125 = vst [vmem:[#allocation16 + $0x50] sm:$0xff] %v11085_v51  ;;  %11124 = vst [vmem:[#allocation16 + $0x48] sm:$0xff] %v11084_v61  ;;  %v10570_v15 = vpop.f32.mrb[56].mxu0 }
 0x721   :  { %11126 = vst [vmem:[#allocation16 + $0x58] sm:$0xff] %v11086_v44  ;;  %v11051_v35 = vadd.f32 %v14754_v26, %v10570_v15  ;;  %v10692_v1 = vpop.f32.mrb[56].mxu1  ;;  %v10572_v4 = vpop.f32.mrb[57].mxu0  ;;  %v11021_v44 = vsub.s32 6, %v13840_v16  ;;  %v11017_v15 = vsub.s32 5, %v13840_v16 }
 0x722   :  { %v11053_v8 = vadd.f32 %v14758_v9, %v10692_v1  ;;  %v11052_v27 = vadd.f32 %v14762_v39, %v10572_v4  ;;  %v10694_v59 = vpop.f32.mrb[57].mxu1  ;;  %v10574_v56 = vpop.f32.mrb[58].mxu0 }
 0x723   :  { %v11091_v57 = vmax.f32 %v11051_v35, 0.0  ;;  %v11054_v52 = vadd.f32 %v14766_v21, %v10694_v59  ;;  %v11059_v6 = vadd.f32 %v14754_v26, %v10574_v56  ;;  %v10696_v14 = vpop.f32.mrb[58].mxu1  ;;  %v10576_v41 = vpop.f32.mrb[59].mxu0  ;;  %v11025_v35 = vsub.s32 7, %v13840_v16 }
 0x724   :  { %v11093_v11 = vmax.f32 %v11053_v8, 0.0  ;;  %v11092_v48 = vmax.f32 %v11052_v27, 0.0  ;;  %v11061_v55 = vadd.f32 %v14758_v9, %v10696_v14  ;;  %v11060_v58 = vadd.f32 %v14762_v39, %v10576_v41  ;;  %v10698_v40 = vpop.f32.mrb[59].mxu1 }
 0x725   :  { %11131 = vst [vmem:[#allocation16 + $0x80] sm:$0xff] %v11091_v57  ;;  %v11094_v36 = vmax.f32 %v11054_v52, 0.0  ;;  %v11099_v29 = vmax.f32 %v11059_v6, 0.0  ;;  %v11062_v37 = vadd.f32 %v14766_v21, %v10698_v40  ;;  %v14812_v4 = vrot.slane %v14750_v5, %v11021_v44 }
 0x726   :  { %11133 = vst [vmem:[#allocation16 + $0x90] sm:$0xff] %v11093_v11  ;;  %11132 = vst [vmem:[#allocation16 + $0x88] sm:$0xff] %v11092_v48  ;;  %v11101_v12 = vmax.f32 %v11061_v55, 0.0  ;;  %v11100_v54 = vmax.f32 %v11060_v58, 0.0  ;;  %v14815_v8 = vrot.slane %v14750_v5, %v11017_v15  ;;  %v14818_v27 = vrot.slane %v14750_v5, %v11025_v35 }
 0x727   :  { %11134 = vst [vmem:[#allocation16 + $0x98] sm:$0xff] %v11094_v36  ;;  %11139 = vst [vmem:[#allocation16 + $0xc0] sm:$0xff] %v11099_v29  ;;  %v11102_v47 = vmax.f32 %v11062_v37, 0.0 }
 0x728   :  { %11141 = vst [vmem:[#allocation16 + $0xd0] sm:$0xff] %v11101_v12  ;;  %11140 = vst [vmem:[#allocation16 + $0xc8] sm:$0xff] %v11100_v54  ;;  %v10580_v22 = vpop.f32.mrb[104].mxu0 }
 0x729   :  { %11142 = vst [vmem:[#allocation16 + $0xd8] sm:$0xff] %v11102_v47  ;;  %v10581_v28 = vadd.f32 %v10580_v22, %v14742_v10  ;;  %v10702_v23 = vpop.f32.mrb[104].mxu1  ;;  %v10582_v34 = vpop.f32.mrb[105].mxu0 }
 0x72a   :  { %v10703_v43 = vadd.f32 %v10702_v23, %v14744_v42  ;;  %v10583_v24 = vadd.f32 %v10582_v34, %v14746_v38  ;;  %v10704_v18 = vpop.f32.mrb[105].mxu1  ;;  %v10584_v45 = vpop.f32.mrb[106].mxu0 }
 0x72b   :  { %v10985_v30 = vadd.f32 %v10581_v28, %v14651_v46  ;;  %v10705_v3 = vadd.f32 %v10704_v18, %v14748_v13  ;;  %v10706_v20 = vpop.f32.mrb[106].mxu1  ;;  %v10585_v31 = vpop.f32.mrb[107].mxu0 }
 0x72c   :  { %v10987_v25 = vadd.f32 %v10703_v43, %v14654_v50  ;;  %v10986_v62 = vadd.f32 %v10583_v24, %v14657_v33  ;;  %v10707_v0 = vpop.f32.mrb[107].mxu1 }
 0x72d   :  { %v11067_v10 = vadd.f32 %v14754_v26, %v10985_v30  ;;  %v10988_v60 = vadd.f32 %v10705_v3, %v14660_v7 }
 0x72e   :  { %v11069_v42 = vadd.f32 %v14758_v9, %v10987_v25  ;;  %v11068_v38 = vadd.f32 %v14762_v39, %v10986_v62 }
 0x72f   :  { %v11107_v53 = vmax.f32 %v11067_v10, 0.0  ;;  %v11070_v46 = vadd.f32 %v14766_v21, %v10988_v60  ;;  %v11013_v21 = vsub.s32 4, %v13840_v16 }
 0x730   :  { %v11109_v2 = vmax.f32 %v11069_v42, 0.0  ;;  %v11108_v13 = vmax.f32 %v11068_v38, 0.0 }
 0x731   :  { %11147 = vst [vmem:[#allocation16 + $0x100] sm:$0xf] %v11107_v53  ;;  %v11110_v17 = vmax.f32 %v11070_v46, 0.0  ;;  %v14809_v1 = vrot.slane %v14750_v5, %v11013_v21 }
 0x732   :  { %11149 = vst [vmem:[#allocation16 + $0x110] sm:$0xf] %v11109_v2  ;;  %11148 = vst [vmem:[#allocation16 + $0x108] sm:$0xf] %v11108_v13 }
 0x733   :  { %11150 = vst [vmem:[#allocation16 + $0x118] sm:$0xf] %v11110_v17 }
 0x769   :  { %v14796_v50 = vpop.f32.mrb[108].mxu0 }
 0x76a   :  { %v14798_v33 = vpop.f32.mrb[108].mxu1  ;;  %v14800_v26 = vpop.f32.mrb[109].mxu0 }
 0x76b   :  { %v14802_v7 = vpop.f32.mrb[109].mxu1  ;;  %v10767_v9 = vpop.f32.mrb[110].mxu0 }
 0x76c   :  { %v10889_v39 = vpop.f32.mrb[110].mxu1  ;;  %v10768_v51 = vpop.f32.mrb[111].mxu0 }
 0x76d   :  { %v10890_v61 = vpop.f32.mrb[111].mxu1 }
 0x79a   :  { %v10804_v59 = vpop.f32.mrb[68].mxu0 }
 0x79b   :  { %v11039_v56 = vadd.f32 %v14809_v1, %v10804_v59  ;;  %v10926_v57 = vpop.f32.mrb[68].mxu1  ;;  %v10806_v52 = vpop.f32.mrb[69].mxu0 }
 0x79c   :  { %v11041_v6 = vadd.f32 %v14812_v4, %v10926_v57  ;;  %v11040_v16 = vadd.f32 %v14815_v8, %v10806_v52  ;;  %v10928_v14 = vpop.f32.mrb[69].mxu1  ;;  %v10808_v41 = vpop.f32.mrb[70].mxu0 }
 0x79d   :  { %v11079_v11 = vmax.f32 %v11039_v56, 0.0  ;;  %v11042_v48 = vadd.f32 %v14818_v27, %v10928_v14  ;;  %v11047_v55 = vadd.f32 %v14809_v1, %v10808_v41  ;;  %v10930_v58 = vpop.f32.mrb[70].mxu1  ;;  %v10810_v40 = vpop.f32.mrb[71].mxu0 }
 0x79e   :  { %v11081_v5 = vmax.f32 %v11041_v6, 0.0  ;;  %v11080_v36 = vmax.f32 %v11040_v16, 0.0  ;;  %v11049_v29 = vadd.f32 %v14812_v4, %v10930_v58  ;;  %v11048_v37 = vadd.f32 %v14815_v8, %v10810_v40  ;;  %v10932_v12 = vpop.f32.mrb[71].mxu1 }
 0x79f   :  { %11119 = vst [vmem:[#allocation16 + $0x20] sm:$0xff] %v11079_v11  ;;  %v11082_v54 = vmax.f32 %v11042_v48, 0.0  ;;  %v11087_v47 = vmax.f32 %v11047_v55, 0.0  ;;  %v11050_v22 = vadd.f32 %v14818_v27, %v10932_v12 }
 0x7a0   :  { %11121 = vst [vmem:[#allocation16 + $0x30] sm:$0xff] %v11081_v5  ;;  %11120 = vst [vmem:[#allocation16 + $0x28] sm:$0xff] %v11080_v36  ;;  %v11089_v28 = vmax.f32 %v11049_v29, 0.0  ;;  %v11088_v23 = vmax.f32 %v11048_v37, 0.0 }
 0x7a1   :  { %11122 = vst [vmem:[#allocation16 + $0x38] sm:$0xff] %v11082_v54  ;;  %11127 = vst [vmem:[#allocation16 + $0x60] sm:$0xff] %v11087_v47  ;;  %v11090_v34 = vmax.f32 %v11050_v22, 0.0 }
 0x7a2   :  { %11129 = vst [vmem:[#allocation16 + $0x70] sm:$0xff] %v11089_v28  ;;  %11128 = vst [vmem:[#allocation16 + $0x68] sm:$0xff] %v11088_v23  ;;  %v10814_v43 = vpop.f32.mrb[72].mxu0 }
 0x7a3   :  { %11130 = vst [vmem:[#allocation16 + $0x78] sm:$0xff] %v11090_v34  ;;  %v11055_v24 = vadd.f32 %v14809_v1, %v10814_v43  ;;  %v10936_v18 = vpop.f32.mrb[72].mxu1  ;;  %v10816_v45 = vpop.f32.mrb[73].mxu0 }
 0x7a4   :  { %v11057_v30 = vadd.f32 %v14812_v4, %v10936_v18  ;;  %v11056_v3 = vadd.f32 %v14815_v8, %v10816_v45  ;;  %v10938_v20 = vpop.f32.mrb[73].mxu1  ;;  %v10818_v31 = vpop.f32.mrb[74].mxu0 }
 0x7a5   :  { %v11095_v25 = vmax.f32 %v11055_v24, 0.0  ;;  %v11058_v62 = vadd.f32 %v14818_v27, %v10938_v20  ;;  %v11063_v0 = vadd.f32 %v14809_v1, %v10818_v31  ;;  %v10940_v10 = vpop.f32.mrb[74].mxu1  ;;  %v10820_v60 = vpop.f32.mrb[75].mxu0 }
 0x7a6   :  { %v11097_v42 = vmax.f32 %v11057_v30, 0.0  ;;  %v11096_v38 = vmax.f32 %v11056_v3, 0.0  ;;  %v11065_v53 = vadd.f32 %v14812_v4, %v10940_v10  ;;  %v11064_v46 = vadd.f32 %v14815_v8, %v10820_v60  ;;  %v10942_v2 = vpop.f32.mrb[75].mxu1 }
 0x7a7   :  { %11135 = vst [vmem:[#allocation16 + $0xa0] sm:$0xff] %v11095_v25  ;;  %v11098_v13 = vmax.f32 %v11058_v62, 0.0  ;;  %v11103_v17 = vmax.f32 %v11063_v0, 0.0  ;;  %v11066_v9 = vadd.f32 %v14818_v27, %v10942_v2 }
 0x7a8   :  { %11137 = vst [vmem:[#allocation16 + $0xb0] sm:$0xff] %v11097_v42  ;;  %11136 = vst [vmem:[#allocation16 + $0xa8] sm:$0xff] %v11096_v38  ;;  %v11105_v39 = vmax.f32 %v11065_v53, 0.0  ;;  %v11104_v51 = vmax.f32 %v11064_v46, 0.0 }
 0x7a9   :  { %11138 = vst [vmem:[#allocation16 + $0xb8] sm:$0xff] %v11098_v13  ;;  %11143 = vst [vmem:[#allocation16 + $0xe0] sm:$0xff] %v11103_v17  ;;  %v11106_v61 = vmax.f32 %v11066_v9, 0.0 }
 0x7aa   :  { %11145 = vst [vmem:[#allocation16 + $0xf0] sm:$0xff] %v11105_v39  ;;  %11144 = vst [vmem:[#allocation16 + $0xe8] sm:$0xff] %v11104_v51  ;;  %v10824_v21 = vpop.f32.mrb[112].mxu0 }
 0x7ab   :  { %11146 = vst [vmem:[#allocation16 + $0xf8] sm:$0xff] %v11106_v61  ;;  %v10825_v44 = vadd.f32 %v10824_v21, %v14796_v50  ;;  %v10946_v15 = vpop.f32.mrb[112].mxu1  ;;  %v10826_v35 = vpop.f32.mrb[113].mxu0 }
 0x7ac   :  { %v10947_v59 = vadd.f32 %v10946_v15, %v14798_v33  ;;  %v10827_v56 = vadd.f32 %v10826_v35, %v14800_v26  ;;  %v10948_v57 = vpop.f32.mrb[113].mxu1  ;;  %v10828_v52 = vpop.f32.mrb[114].mxu0 }
 0x7ad   :  { %v10989_v6 = vadd.f32 %v10825_v44, %v14721_v19  ;;  %v10949_v16 = vadd.f32 %v10948_v57, %v14802_v7  ;;  %v10950_v14 = vpop.f32.mrb[114].mxu1  ;;  %v10829_v41 = vpop.f32.mrb[115].mxu0 }
 0x7ae   :  { %v10991_v11 = vadd.f32 %v10947_v59, %v14724_v32  ;;  %v10990_v48 = vadd.f32 %v10827_v56, %v14727_v63  ;;  %v10951_v55 = vpop.f32.mrb[115].mxu1 }
 0x7af   :  { %v11071_v50 = vadd.f32 %v14809_v1, %v10989_v6  ;;  %v10992_v58 = vadd.f32 %v10949_v16, %v14730_v49 }
 0x7b0   :  { %v11073_v33 = vadd.f32 %v14812_v4, %v10991_v11  ;;  %v11072_v26 = vadd.f32 %v14815_v8, %v10990_v48 }
 0x7b1   :  { %v11111_v19 = vmax.f32 %v11071_v50, 0.0  ;;  %v11074_v7 = vadd.f32 %v14818_v27, %v10992_v58 }
 0x7b2   :  { %v11113_v40 = vmax.f32 %v11073_v33, 0.0  ;;  %v11112_v5 = vmax.f32 %v11072_v26, 0.0 }
 0x7b3   :  { %11151 = vst [vmem:[#allocation16 + $0x120] sm:$0xf] %v11111_v19  ;;  %v11114_v32 = vmax.f32 %v11074_v7, 0.0 }
 0x7b4   :  { %11153 = vst [vmem:[#allocation16 + $0x130] sm:$0xf] %v11113_v40  ;;  %11152 = vst [vmem:[#allocation16 + $0x128] sm:$0xf] %v11112_v5 }
 0x7b5   :  { %11154 = vst [vmem:[#allocation16 + $0x138] sm:$0xf] %v11114_v32 }
 0x7b6   :  { %13576 = shalt.err (!%p13573_p4)
}
 0x7b7   :  { %s13577_s2 = scalar_lea.hbm %s14869_s8, 5120 }
 0x7b8   :  { %p13578_p5 = scmp.ne.s32.totalorder %s14869_s8, %s13577_s2  ;;  %p13581_p6 = scmp.lt.u32.totalorder %s13577_s2, %s14869_s8 }
 0x7ba   :  { %p13583_p7 = pnand %p13581_p6, %p13578_p5 }
 0x7bc   :  { %13586 = shalt.err (!%p13583_p7)
}
 0x7bd   :  { %s13612_s17 = smov 1024  }
 0x7be   :  { %11166 = dma.vmem_to_hbm [thread:$0]  %s11161_s30, 5120, %s14869_s8, [#allocation6], %s13612_s17, %s13612_s17, %s13605_s5  }
 0x7bf   :  { %13595 = dma.done.wait [#allocation6], 5120  }
 0x7c0   :  { %13596 = vsyncadd [#allocation6], 4294962176 }
 0x7c1   :  { %11170 = vsyncpa [#allocation5], 1 }
 0x7c2   :  { %11171 = vsyncpa [#allocation8], 1 }
 0x7c3   :  { %11172 = vsyncpa [#allocation11], 1 }
 0x7c4   :  { %11173 = vsyncpa [#allocation14], 1 }
 0x7c5   :  { %11174 = vsyncpa [#allocation6], 1 }

</bundles_post_ra>
